<compile_context>
chip_gen: v7x
topology: tpu7x:2x2x1
jax: 0.10.0
libtpu: 0.0.40
codegen_flags: <defaults>
</compile_context>

<pallas_src>
import functools

import jax
import jax.numpy as jnp
from jax import lax
from jax.experimental import pallas as pl
from jax.experimental.pallas import tpu as pltpu

_CPAD = 128  # channels zero-padded to the 128-lane tile (lane-dense everywhere)


def _disc_small_fused_kernel(mask_ref, x_ref, w1_ref, b1_ref, w2_ref, b2_ref,
                             w3_ref, b3_ref, o_ref, act_ref, col_ref,
                             *, H, W, c_in, base):
    """Fused conv1+lrelu -> conv2+lrelu -> classifier for one batch element.

    mask_ref: (H*Wp, 1)        1.0 on real pixels, 0.0 on wrap-around columns
    x_ref:    (1, H*W, c_in)   pixel-major input image
    w*_ref:   (9*128, 128)     tap-major, channel-padded im2col weights
    b*_ref:   (1, 128)         channel-padded bias
    o_ref:    (1, H*Wp, 128)   lane-dense output slab (channel 0 is real)
    act_ref:  (act_rows, 128)  flat zero-padded activation scratch
    col_ref:  (H*Wp, 9*128)    im2col staging scratch
    """
    Wp = W + 2                   # padded row stride
    HWp = H * Wp                 # number of conv "bases" computed per layer
    CPAD = act_ref.shape[-1]

    # ---- zero the padded activation scratch (halo rows/cols + channel pad) ----
    act_ref[...] = jnp.zeros_like(act_ref)

    # ---- scatter the input image into the interior of the padded layout ----
    # pixel (h, w), channel c  ->  act[base + (h+1)*Wp + (w+1), c]
    for h in range(H):
        act_ref[pl.ds(base + (h + 1) * Wp + 1, W), :c_in] = (
            x_ref[0, pl.ds(h * W, W), :])

    mask = mask_ref[...]         # (HWp, 1)

    def conv3x3(w_ref, b_ref, leaky):
        # im2col: 9 lane-aligned, sublane-shifted full-width copies of act.
        for tap in range(9):
            dy, dx = divmod(tap, 3)
            col_ref[:, tap * CPAD:(tap + 1) * CPAD] = (
                act_ref[pl.ds(base + dy * Wp + dx, HWp), :])
        # one MXU matmul per layer, f32 accumulation.
        y = jnp.dot(col_ref[...], w_ref[...],
                    preferred_element_type=jnp.float32)
        y = y + b_ref[...]
        if leaky:
            y = jnp.where(y >= 0, y, 0.2 * y)          # LeakyReLU(0.2)
        return y                                        # (HWp, CPAD)

    # conv1 / conv2: write the result back into the padded layout.  Shifting
    # by Wp+1 puts output pixel (h, w) at padded pixel (h+1, w+1); the mask
    # zeroes the wrap-around columns so the halo stays zero for the next layer.
    y = conv3x3(w1_ref, b1_ref, leaky=True)
    act_ref[pl.ds(base + Wp + 1, HWp), :] = y * mask

    y = conv3x3(w2_ref, b2_ref, leaky=True)
    act_ref[pl.ds(base + Wp + 1, HWp), :] = y * mask

    # classifier: Cout=1 zero-padded to 128 lanes -> one dense (HWp, 128) store.
    y = conv3x3(w3_ref, b3_ref, leaky=False)
    o_ref[0] = y.astype(o_ref.dtype)


def _prep_weight(w_oihw):
    """OIHW conv weight -> (9*128, 128) tap-major, channel-padded im2col tile."""
    cout, cin = w_oihw.shape[0], w_oihw.shape[1]
    w = jnp.transpose(w_oihw, (2, 3, 1, 0))                     # (3,3,Cin,Cout)
    w = jnp.pad(w, ((0, 0), (0, 0), (0, _CPAD - cin), (0, _CPAD - cout)))
    return w.reshape(9 * _CPAD, _CPAD).astype(jnp.float32)


def _prep_bias(b):
    return jnp.pad(b, (0, _CPAD - b.shape[0])).reshape(1, _CPAD).astype(jnp.float32)


def discriminator_small_forward(params, x_nchw):
    """Forward pass matching Discriminator_small; input/output in NCHW."""
    N, c_in, H, W = x_nchw.shape
    Wp = W + 2
    HWp = H * Wp

    # grad_reverse is identity in the forward pass.
    # NCHW -> pixel-major (N, H*W, Cin) for the in-kernel scatter.
    x_pm = jnp.transpose(x_nchw, (0, 2, 3, 1)).reshape(N, H * W, c_in)
    x_pm = x_pm.astype(jnp.float32)

    w1, b1 = params["conv1"]
    w2, b2 = params["conv2"]
    w3, b3 = params["classifier"]
    W1, B1 = _prep_weight(w1), _prep_bias(b1)
    W2, B2 = _prep_weight(w2), _prep_bias(b2)
    W3, B3 = _prep_weight(w3), _prep_bias(b3)

    # Interior-pixel mask over the H*Wp conv bases (kills wrap-around columns).
    mask = (jnp.arange(HWp, dtype=jnp.int32) % Wp < W)
    mask = mask.astype(jnp.float32).reshape(HWp, 1)

    # Base row offset chosen so the big (HWp, 128) write-back is sublane-aligned.
    base = (-(Wp + 1)) % 8
    act_rows = base + HWp + 2 * Wp + 2       # one past the last row ever touched
    act_rows = (act_rows + 7) // 8 * 8

    kernel = functools.partial(_disc_small_fused_kernel,
                               H=H, W=W, c_in=c_in, base=base)

    out = pl.pallas_call(
        kernel,
        out_shape=jax.ShapeDtypeStruct((N, HWp, _CPAD), jnp.float32),
        grid=(N,),
        in_specs=[
            pl.BlockSpec((HWp, 1), lambda n: (0, 0)),             # mask
            pl.BlockSpec((1, H * W, c_in), lambda n: (n, 0, 0)),  # x
            pl.BlockSpec((9 * _CPAD, _CPAD), lambda n: (0, 0)),   # W1
            pl.BlockSpec((1, _CPAD), lambda n: (0, 0)),           # b1
            pl.BlockSpec((9 * _CPAD, _CPAD), lambda n: (0, 0)),   # W2
            pl.BlockSpec((1, _CPAD), lambda n: (0, 0)),           # b2
            pl.BlockSpec((9 * _CPAD, _CPAD), lambda n: (0, 0)),   # W3
            pl.BlockSpec((1, _CPAD), lambda n: (0, 0)),           # b3
        ],
        out_specs=pl.BlockSpec((1, HWp, _CPAD), lambda n: (n, 0, 0)),
        scratch_shapes=[
            pltpu.VMEM((act_rows, _CPAD), jnp.float32),   # padded activations
            pltpu.VMEM((HWp, 9 * _CPAD), jnp.float32),    # im2col staging
        ],
        compiler_params=pltpu.CompilerParams(
            dimension_semantics=("parallel",)),
    )(mask, x_pm, W1, B1, W2, B2, W3, B3)

    # Channel 0 holds the classifier output; drop the wrap-around columns.
    y = out[:, :, 0].reshape(N, H, Wp)[:, :, :W]
    return y[:, None, :, :].astype(x_nchw.dtype)


def init_params(key, input_nc, ndf):
    """Deterministic PyTorch-default-style init (uniform +- 1/sqrt(fan_in))."""
    def conv_init(k, cout, cin):
        kw, kb = jax.random.split(k)
        bound = 1.0 / jnp.sqrt(cin * 9.0)
        w = jax.random.uniform(kw, (cout, cin, 3, 3), jnp.float32, -bound, bound)
        b = jax.random.uniform(kb, (cout,), jnp.float32, -bound, bound)
        return w, b

    k1, k2, k3 = jax.random.split(key, 3)
    return {
        "conv1": conv_init(k1, ndf, input_nc),
        "conv2": conv_init(k2, ndf, ndf),
        "classifier": conv_init(k3, 1, ndf),
    }


def _reference_forward(params, x_nchw):
    """Pure-JAX reference (lax.conv) for correctness checking."""
    def conv(x, w, b, leaky):
        y = lax.conv_general_dilated(
            x, jnp.transpose(w, (2, 3, 1, 0)),  # OIHW -> HWIO
            window_strides=(1, 1), padding="SAME",
            dimension_numbers=("NHWC", "HWIO", "NHWC"))
        y = y + b[None, None, None, :]
        if leaky:
            y = jnp.where(y >= 0, y, 0.2 * y)
        return y

    x = jnp.transpose(x_nchw, (0, 2, 3, 1))
    x = conv(x, *params["conv1"], True)
    x = conv(x, *params["conv2"], True)
    x = conv(x, *params["classifier"], False)
    return jnp.transpose(x, (0, 3, 1, 2))


if __name__ == "__main__":
    key = jax.random.PRNGKey(0)
    kx, kp = jax.random.split(key)

    N, input_nc, H, W = 2, 4, 16, 16
    ndf = 32

    x = jax.random.normal(kx, (N, input_nc, H, W), jnp.float32)
    params = init_params(kp, input_nc, ndf)

    out = jax.block_until_ready(discriminator_small_forward(params, x))
    assert out.shape == (N, 1, H, W), out.shape

    ref = jax.block_until_ready(_reference_forward(params, x))
    assert jnp.allclose(out, ref, atol=1e-4, rtol=1e-4), "mismatch vs reference"

    # TODO(synk): GradReverse only affects the backward pass (gradient negation);
    # forward is identity and is what is implemented here.
    print("KERNEL_OK")
</pallas_src>

<mosaic_0001>
module attributes {stable_mosaic.version = 11 : i64} {
  func.func @_disc_small_fused_kernel(%arg0: i32, %arg1: memref<288x1xf32, #tpu.memory_space<vmem>>, %arg2: memref<1x256x4xf32, #tpu.memory_space<vmem>>, %arg3: memref<1152x128xf32, #tpu.memory_space<vmem>>, %arg4: memref<1x128xf32, #tpu.memory_space<vmem>>, %arg5: memref<1152x128xf32, #tpu.memory_space<vmem>>, %arg6: memref<1x128xf32, #tpu.memory_space<vmem>>, %arg7: memref<1152x128xf32, #tpu.memory_space<vmem>>, %arg8: memref<1x128xf32, #tpu.memory_space<vmem>>, %arg9: memref<1x288x128xf32, #tpu.memory_space<vmem>>, %arg10: memref<336x128xf32, #tpu.memory_space<vmem>>, %arg11: memref<288x1152xf32, #tpu.memory_space<vmem>>) attributes {dimension_semantics = [#tpu.dimension_semantics<parallel>], iteration_bounds = array<i64: 2>, scalar_prefetch = 0 : i64, scratch_operands = 2 : i64, tpu.core_type = #tpu.core_type<tc>, window_params = [{pipeline_mode = #tpu.pipeline_mode<synchronous>, transform_indices = @transform_0, window_bounds = array<i64: 288, 1>}, {transform_indices = @transform_1, window_bounds = array<i64: 1, 256, 4>}, {pipeline_mode = #tpu.pipeline_mode<synchronous>, transform_indices = @transform_2, window_bounds = array<i64: 1152, 128>}, {pipeline_mode = #tpu.pipeline_mode<synchronous>, transform_indices = @transform_3, window_bounds = array<i64: 1, 128>}, {pipeline_mode = #tpu.pipeline_mode<synchronous>, transform_indices = @transform_4, window_bounds = array<i64: 1152, 128>}, {pipeline_mode = #tpu.pipeline_mode<synchronous>, transform_indices = @transform_5, window_bounds = array<i64: 1, 128>}, {pipeline_mode = #tpu.pipeline_mode<synchronous>, transform_indices = @transform_6, window_bounds = array<i64: 1152, 128>}, {pipeline_mode = #tpu.pipeline_mode<synchronous>, transform_indices = @transform_7, window_bounds = array<i64: 1, 128>}, {transform_indices = @transform_8, window_bounds = array<i64: 1, 288, 128>}]} {
    %cst = arith.constant 0.000000e+00 : f32
    %0 = vector.broadcast %cst : f32 to vector<336x128xf32>
    %c0 = arith.constant 0 : index
    %c0_0 = arith.constant 0 : index
    %1 = vector.load %arg10[%c0, %c0_0] : memref<336x128xf32, #tpu.memory_space<vmem>>, vector<336x128xf32>
    tpu.vector_store %arg10[%c0, %c0_0], %0 {strides = array<i32>} : memref<336x128xf32, #tpu.memory_space<vmem>>, vector<336x128xf32>,
    %c0_1 = arith.constant 0 : index
    %c0_2 = arith.constant 0 : index
    %c0_3 = arith.constant 0 : index
    %2 = vector.load %arg2[%c0_1, %c0_2, %c0_3] : memref<1x256x4xf32, #tpu.memory_space<vmem>>, vector<1x16x4xf32>
    %3 = vector.shape_cast %2 : vector<1x16x4xf32> to vector<16x4xf32>
    %c24 = arith.constant 24 : index
    %c0_4 = arith.constant 0 : index
    %4 = vector.load %arg10[%c24, %c0_4] : memref<336x128xf32, #tpu.memory_space<vmem>>, vector<16x4xf32>
    tpu.vector_store %arg10[%c24, %c0_4], %3 {strides = array<i32>} : memref<336x128xf32, #tpu.memory_space<vmem>>, vector<16x4xf32>,
    %c0_5 = arith.constant 0 : index
    %c16 = arith.constant 16 : index
    %c0_6 = arith.constant 0 : index
    %5 = vector.load %arg2[%c0_5, %c16, %c0_6] : memref<1x256x4xf32, #tpu.memory_space<vmem>>, vector<1x16x4xf32>
    %6 = vector.shape_cast %5 : vector<1x16x4xf32> to vector<16x4xf32>
    %c42 = arith.constant 42 : index
    %c0_7 = arith.constant 0 : index
    %7 = vector.load %arg10[%c42, %c0_7] : memref<336x128xf32, #tpu.memory_space<vmem>>, vector<16x4xf32>
    tpu.vector_store %arg10[%c42, %c0_7], %6 {strides = array<i32>} : memref<336x128xf32, #tpu.memory_space<vmem>>, vector<16x4xf32>,
    %c0_8 = arith.constant 0 : index
    %c32 = arith.constant 32 : index
    %c0_9 = arith.constant 0 : index
    %8 = vector.load %arg2[%c0_8, %c32, %c0_9] : memref<1x256x4xf32, #tpu.memory_space<vmem>>, vector<1x16x4xf32>
    %9 = vector.shape_cast %8 : vector<1x16x4xf32> to vector<16x4xf32>
    %c60 = arith.constant 60 : index
    %c0_10 = arith.constant 0 : index
    %10 = vector.load %arg10[%c60, %c0_10] : memref<336x128xf32, #tpu.memory_space<vmem>>, vector<16x4xf32>
    tpu.vector_store %arg10[%c60, %c0_10], %9 {strides = array<i32>} : memref<336x128xf32, #tpu.memory_space<vmem>>, vector<16x4xf32>,
    %c0_11 = arith.constant 0 : index
    %c48 = arith.constant 48 : index
    %c0_12 = arith.constant 0 : index
    %11 = vector.load %arg2[%c0_11, %c48, %c0_12] : memref<1x256x4xf32, #tpu.memory_space<vmem>>, vector<1x16x4xf32>
    %12 = vector.shape_cast %11 : vector<1x16x4xf32> to vector<16x4xf32>
    %c78 = arith.constant 78 : index
    %c0_13 = arith.constant 0 : index
    %13 = vector.load %arg10[%c78, %c0_13] : memref<336x128xf32, #tpu.memory_space<vmem>>, vector<16x4xf32>
    tpu.vector_store %arg10[%c78, %c0_13], %12 {strides = array<i32>} : memref<336x128xf32, #tpu.memory_space<vmem>>, vector<16x4xf32>,
    %c0_14 = arith.constant 0 : index
    %c64 = arith.constant 64 : index
    %c0_15 = arith.constant 0 : index
    %14 = vector.load %arg2[%c0_14, %c64, %c0_15] : memref<1x256x4xf32, #tpu.memory_space<vmem>>, vector<1x16x4xf32>
    %15 = vector.shape_cast %14 : vector<1x16x4xf32> to vector<16x4xf32>
    %c96 = arith.constant 96 : index
    %c0_16 = arith.constant 0 : index
    %16 = vector.load %arg10[%c96, %c0_16] : memref<336x128xf32, #tpu.memory_space<vmem>>, vector<16x4xf32>
    tpu.vector_store %arg10[%c96, %c0_16], %15 {strides = array<i32>} : memref<336x128xf32, #tpu.memory_space<vmem>>, vector<16x4xf32>,
    %c0_17 = arith.constant 0 : index
    %c80 = arith.constant 80 : index
    %c0_18 = arith.constant 0 : index
    %17 = vector.load %arg2[%c0_17, %c80, %c0_18] : memref<1x256x4xf32, #tpu.memory_space<vmem>>, vector<1x16x4xf32>
    %18 = vector.shape_cast %17 : vector<1x16x4xf32> to vector<16x4xf32>
    %c114 = arith.constant 114 : index
    %c0_19 = arith.constant 0 : index
    %19 = vector.load %arg10[%c114, %c0_19] : memref<336x128xf32, #tpu.memory_space<vmem>>, vector<16x4xf32>
    tpu.vector_store %arg10[%c114, %c0_19], %18 {strides = array<i32>} : memref<336x128xf32, #tpu.memory_space<vmem>>, vector<16x4xf32>,
    %c0_20 = arith.constant 0 : index
    %c96_21 = arith.constant 96 : index
    %c0_22 = arith.constant 0 : index
    %20 = vector.load %arg2[%c0_20, %c96_21, %c0_22] : memref<1x256x4xf32, #tpu.memory_space<vmem>>, vector<1x16x4xf32>
    %21 = vector.shape_cast %20 : vector<1x16x4xf32> to vector<16x4xf32>
    %c132 = arith.constant 132 : index
    %c0_23 = arith.constant 0 : index
    %22 = vector.load %arg10[%c132, %c0_23] : memref<336x128xf32, #tpu.memory_space<vmem>>, vector<16x4xf32>
    tpu.vector_store %arg10[%c132, %c0_23], %21 {strides = array<i32>} : memref<336x128xf32, #tpu.memory_space<vmem>>, vector<16x4xf32>,
    %c0_24 = arith.constant 0 : index
    %c112 = arith.constant 112 : index
    %c0_25 = arith.constant 0 : index
    %23 = vector.load %arg2[%c0_24, %c112, %c0_25] : memref<1x256x4xf32, #tpu.memory_space<vmem>>, vector<1x16x4xf32>
    %24 = vector.shape_cast %23 : vector<1x16x4xf32> to vector<16x4xf32>
    %c150 = arith.constant 150 : index
    %c0_26 = arith.constant 0 : index
    %25 = vector.load %arg10[%c150, %c0_26] : memref<336x128xf32, #tpu.memory_space<vmem>>, vector<16x4xf32>
    tpu.vector_store %arg10[%c150, %c0_26], %24 {strides = array<i32>} : memref<336x128xf32, #tpu.memory_space<vmem>>, vector<16x4xf32>,
    %c0_27 = arith.constant 0 : index
    %c128 = arith.constant 128 : index
    %c0_28 = arith.constant 0 : index
    %26 = vector.load %arg2[%c0_27, %c128, %c0_28] : memref<1x256x4xf32, #tpu.memory_space<vmem>>, vector<1x16x4xf32>
    %27 = vector.shape_cast %26 : vector<1x16x4xf32> to vector<16x4xf32>
    %c168 = arith.constant 168 : index
    %c0_29 = arith.constant 0 : index
    %28 = vector.load %arg10[%c168, %c0_29] : memref<336x128xf32, #tpu.memory_space<vmem>>, vector<16x4xf32>
    tpu.vector_store %arg10[%c168, %c0_29], %27 {strides = array<i32>} : memref<336x128xf32, #tpu.memory_space<vmem>>, vector<16x4xf32>,
    %c0_30 = arith.constant 0 : index
    %c144 = arith.constant 144 : index
    %c0_31 = arith.constant 0 : index
    %29 = vector.load %arg2[%c0_30, %c144, %c0_31] : memref<1x256x4xf32, #tpu.memory_space<vmem>>, vector<1x16x4xf32>
    %30 = vector.shape_cast %29 : vector<1x16x4xf32> to vector<16x4xf32>
    %c186 = arith.constant 186 : index
    %c0_32 = arith.constant 0 : index
    %31 = vector.load %arg10[%c186, %c0_32] : memref<336x128xf32, #tpu.memory_space<vmem>>, vector<16x4xf32>
    tpu.vector_store %arg10[%c186, %c0_32], %30 {strides = array<i32>} : memref<336x128xf32, #tpu.memory_space<vmem>>, vector<16x4xf32>,
    %c0_33 = arith.constant 0 : index
    %c160 = arith.constant 160 : index
    %c0_34 = arith.constant 0 : index
    %32 = vector.load %arg2[%c0_33, %c160, %c0_34] : memref<1x256x4xf32, #tpu.memory_space<vmem>>, vector<1x16x4xf32>
    %33 = vector.shape_cast %32 : vector<1x16x4xf32> to vector<16x4xf32>
    %c204 = arith.constant 204 : index
    %c0_35 = arith.constant 0 : index
    %34 = vector.load %arg10[%c204, %c0_35] : memref<336x128xf32, #tpu.memory_space<vmem>>, vector<16x4xf32>
    tpu.vector_store %arg10[%c204, %c0_35], %33 {strides = array<i32>} : memref<336x128xf32, #tpu.memory_space<vmem>>, vector<16x4xf32>,
    %c0_36 = arith.constant 0 : index
    %c176 = arith.constant 176 : index
    %c0_37 = arith.constant 0 : index
    %35 = vector.load %arg2[%c0_36, %c176, %c0_37] : memref<1x256x4xf32, #tpu.memory_space<vmem>>, vector<1x16x4xf32>
    %36 = vector.shape_cast %35 : vector<1x16x4xf32> to vector<16x4xf32>
    %c222 = arith.constant 222 : index
    %c0_38 = arith.constant 0 : index
    %37 = vector.load %arg10[%c222, %c0_38] : memref<336x128xf32, #tpu.memory_space<vmem>>, vector<16x4xf32>
    tpu.vector_store %arg10[%c222, %c0_38], %36 {strides = array<i32>} : memref<336x128xf32, #tpu.memory_space<vmem>>, vector<16x4xf32>,
    %c0_39 = arith.constant 0 : index
    %c192 = arith.constant 192 : index
    %c0_40 = arith.constant 0 : index
    %38 = vector.load %arg2[%c0_39, %c192, %c0_40] : memref<1x256x4xf32, #tpu.memory_space<vmem>>, vector<1x16x4xf32>
    %39 = vector.shape_cast %38 : vector<1x16x4xf32> to vector<16x4xf32>
    %c240 = arith.constant 240 : index
    %c0_41 = arith.constant 0 : index
    %40 = vector.load %arg10[%c240, %c0_41] : memref<336x128xf32, #tpu.memory_space<vmem>>, vector<16x4xf32>
    tpu.vector_store %arg10[%c240, %c0_41], %39 {strides = array<i32>} : memref<336x128xf32, #tpu.memory_space<vmem>>, vector<16x4xf32>,
    %c0_42 = arith.constant 0 : index
    %c208 = arith.constant 208 : index
    %c0_43 = arith.constant 0 : index
    %41 = vector.load %arg2[%c0_42, %c208, %c0_43] : memref<1x256x4xf32, #tpu.memory_space<vmem>>, vector<1x16x4xf32>
    %42 = vector.shape_cast %41 : vector<1x16x4xf32> to vector<16x4xf32>
    %c258 = arith.constant 258 : index
    %c0_44 = arith.constant 0 : index
    %43 = vector.load %arg10[%c258, %c0_44] : memref<336x128xf32, #tpu.memory_space<vmem>>, vector<16x4xf32>
    tpu.vector_store %arg10[%c258, %c0_44], %42 {strides = array<i32>} : memref<336x128xf32, #tpu.memory_space<vmem>>, vector<16x4xf32>,
    %c0_45 = arith.constant 0 : index
    %c224 = arith.constant 224 : index
    %c0_46 = arith.constant 0 : index
    %44 = vector.load %arg2[%c0_45, %c224, %c0_46] : memref<1x256x4xf32, #tpu.memory_space<vmem>>, vector<1x16x4xf32>
    %45 = vector.shape_cast %44 : vector<1x16x4xf32> to vector<16x4xf32>
    %c276 = arith.constant 276 : index
    %c0_47 = arith.constant 0 : index
    %46 = vector.load %arg10[%c276, %c0_47] : memref<336x128xf32, #tpu.memory_space<vmem>>, vector<16x4xf32>
    tpu.vector_store %arg10[%c276, %c0_47], %45 {strides = array<i32>} : memref<336x128xf32, #tpu.memory_space<vmem>>, vector<16x4xf32>,
    %c0_48 = arith.constant 0 : index
    %c240_49 = arith.constant 240 : index
    %c0_50 = arith.constant 0 : index
    %47 = vector.load %arg2[%c0_48, %c240_49, %c0_50] : memref<1x256x4xf32, #tpu.memory_space<vmem>>, vector<1x16x4xf32>
    %48 = vector.shape_cast %47 : vector<1x16x4xf32> to vector<16x4xf32>
    %c294 = arith.constant 294 : index
    %c0_51 = arith.constant 0 : index
    %49 = vector.load %arg10[%c294, %c0_51] : memref<336x128xf32, #tpu.memory_space<vmem>>, vector<16x4xf32>
    tpu.vector_store %arg10[%c294, %c0_51], %48 {strides = array<i32>} : memref<336x128xf32, #tpu.memory_space<vmem>>, vector<16x4xf32>,
    %c0_52 = arith.constant 0 : index
    %c0_53 = arith.constant 0 : index
    %50 = vector.load %arg1[%c0_52, %c0_53] : memref<288x1xf32, #tpu.memory_space<vmem>>, vector<288x1xf32>
    %c5 = arith.constant 5 : index
    %c0_54 = arith.constant 0 : index
    %51 = vector.load %arg10[%c5, %c0_54] : memref<336x128xf32, #tpu.memory_space<vmem>>, vector<288x128xf32>
    %c0_55 = arith.constant 0 : index
    %c0_56 = arith.constant 0 : index
    %52 = vector.load %arg11[%c0_55, %c0_56] : memref<288x1152xf32, #tpu.memory_space<vmem>>, vector<288x128xf32>
    tpu.vector_store %arg11[%c0_55, %c0_56], %51 {strides = array<i32>} : memref<288x1152xf32, #tpu.memory_space<vmem>>, vector<288x128xf32>,
    %c6 = arith.constant 6 : index
    %c0_57 = arith.constant 0 : index
    %53 = vector.load %arg10[%c6, %c0_57] : memref<336x128xf32, #tpu.memory_space<vmem>>, vector<288x128xf32>
    %c0_58 = arith.constant 0 : index
    %c128_59 = arith.constant 128 : index
    %54 = vector.load %arg11[%c0_58, %c128_59] : memref<288x1152xf32, #tpu.memory_space<vmem>>, vector<288x128xf32>
    tpu.vector_store %arg11[%c0_58, %c128_59], %53 {strides = array<i32>} : memref<288x1152xf32, #tpu.memory_space<vmem>>, vector<288x128xf32>,
    %c7 = arith.constant 7 : index
    %c0_60 = arith.constant 0 : index
    %55 = vector.load %arg10[%c7, %c0_60] : memref<336x128xf32, #tpu.memory_space<vmem>>, vector<288x128xf32>
    %c0_61 = arith.constant 0 : index
    %c256 = arith.constant 256 : index
    %56 = vector.load %arg11[%c0_61, %c256] : memref<288x1152xf32, #tpu.memory_space<vmem>>, vector<288x128xf32>
    tpu.vector_store %arg11[%c0_61, %c256], %55 {strides = array<i32>} : memref<288x1152xf32, #tpu.memory_space<vmem>>, vector<288x128xf32>,
    %c23 = arith.constant 23 : index
    %c0_62 = arith.constant 0 : index
    %57 = vector.load %arg10[%c23, %c0_62] : memref<336x128xf32, #tpu.memory_space<vmem>>, vector<288x128xf32>
    %c0_63 = arith.constant 0 : index
    %c384 = arith.constant 384 : index
    %58 = vector.load %arg11[%c0_63, %c384] : memref<288x1152xf32, #tpu.memory_space<vmem>>, vector<288x128xf32>
    tpu.vector_store %arg11[%c0_63, %c384], %57 {strides = array<i32>} : memref<288x1152xf32, #tpu.memory_space<vmem>>, vector<288x128xf32>,
    %c24_64 = arith.constant 24 : index
    %c0_65 = arith.constant 0 : index
    %59 = vector.load %arg10[%c24_64, %c0_65] : memref<336x128xf32, #tpu.memory_space<vmem>>, vector<288x128xf32>
    %c0_66 = arith.constant 0 : index
    %c512 = arith.constant 512 : index
    %60 = vector.load %arg11[%c0_66, %c512] : memref<288x1152xf32, #tpu.memory_space<vmem>>, vector<288x128xf32>
    tpu.vector_store %arg11[%c0_66, %c512], %59 {strides = array<i32>} : memref<288x1152xf32, #tpu.memory_space<vmem>>, vector<288x128xf32>,
    %c25 = arith.constant 25 : index
    %c0_67 = arith.constant 0 : index
    %61 = vector.load %arg10[%c25, %c0_67] : memref<336x128xf32, #tpu.memory_space<vmem>>, vector<288x128xf32>
    %c0_68 = arith.constant 0 : index
    %c640 = arith.constant 640 : index
    %62 = vector.load %arg11[%c0_68, %c640] : memref<288x1152xf32, #tpu.memory_space<vmem>>, vector<288x128xf32>
    tpu.vector_store %arg11[%c0_68, %c640], %61 {strides = array<i32>} : memref<288x1152xf32, #tpu.memory_space<vmem>>, vector<288x128xf32>,
    %c41 = arith.constant 41 : index
    %c0_69 = arith.constant 0 : index
    %63 = vector.load %arg10[%c41, %c0_69] : memref<336x128xf32, #tpu.memory_space<vmem>>, vector<288x128xf32>
    %c0_70 = arith.constant 0 : index
    %c768 = arith.constant 768 : index
    %64 = vector.load %arg11[%c0_70, %c768] : memref<288x1152xf32, #tpu.memory_space<vmem>>, vector<288x128xf32>
    tpu.vector_store %arg11[%c0_70, %c768], %63 {strides = array<i32>} : memref<288x1152xf32, #tpu.memory_space<vmem>>, vector<288x128xf32>,
    %c42_71 = arith.constant 42 : index
    %c0_72 = arith.constant 0 : index
    %65 = vector.load %arg10[%c42_71, %c0_72] : memref<336x128xf32, #tpu.memory_space<vmem>>, vector<288x128xf32>
    %c0_73 = arith.constant 0 : index
    %c896 = arith.constant 896 : index
    %66 = vector.load %arg11[%c0_73, %c896] : memref<288x1152xf32, #tpu.memory_space<vmem>>, vector<288x128xf32>
    tpu.vector_store %arg11[%c0_73, %c896], %65 {strides = array<i32>} : memref<288x1152xf32, #tpu.memory_space<vmem>>, vector<288x128xf32>,
    %c43 = arith.constant 43 : index
    %c0_74 = arith.constant 0 : index
    %67 = vector.load %arg10[%c43, %c0_74] : memref<336x128xf32, #tpu.memory_space<vmem>>, vector<288x128xf32>
    %c0_75 = arith.constant 0 : index
    %c1024 = arith.constant 1024 : index
    %68 = vector.load %arg11[%c0_75, %c1024] : memref<288x1152xf32, #tpu.memory_space<vmem>>, vector<288x128xf32>
    tpu.vector_store %arg11[%c0_75, %c1024], %67 {strides = array<i32>} : memref<288x1152xf32, #tpu.memory_space<vmem>>, vector<288x128xf32>,
    %c0_76 = arith.constant 0 : index
    %c0_77 = arith.constant 0 : index
    %69 = vector.load %arg11[%c0_76, %c0_77] : memref<288x1152xf32, #tpu.memory_space<vmem>>, vector<288x1152xf32>
    %c0_78 = arith.constant 0 : index
    %c0_79 = arith.constant 0 : index
    %70 = vector.load %arg3[%c0_78, %c0_79] : memref<1152x128xf32, #tpu.memory_space<vmem>>, vector<1152x128xf32>
    %cst_80 = arith.constant dense<0.000000e+00> : vector<288x128xf32>
    %71 = tpu.matmul %69, %70, %cst_80 {dimension_numbers = #tpu.dot_dimension_numbers<[1], [0], [0], [1], [0, 0, 1, 1], [], []>} : vector<288x1152xf32>, vector<1152x128xf32>, vector<288x128xf32> -> vector<288x128xf32>
    %c0_81 = arith.constant 0 : index
    %c0_82 = arith.constant 0 : index
    %72 = vector.load %arg4[%c0_81, %c0_82] : memref<1x128xf32, #tpu.memory_space<vmem>>, vector<1x128xf32>
    %73 = vector.broadcast %72 : vector<1x128xf32> to vector<288x128xf32>
    %74 = arith.addf %71, %73 : vector<288x128xf32>
    %cst_83 = arith.constant 0.000000e+00 : f32
    %75 = vector.broadcast %cst_83 : f32 to vector<288x128xf32>
    %76 = arith.cmpf oge, %74, %75 : vector<288x128xf32>
    %cst_84 = arith.constant 2.000000e-01 : f32
    %77 = vector.broadcast %cst_84 : f32 to vector<288x128xf32>
    %78 = arith.mulf %77, %74 : vector<288x128xf32>
    %79 = arith.select %76, %74, %78 : vector<288x128xi1>, vector<288x128xf32>
    %80 = vector.broadcast %50 : vector<288x1xf32> to vector<288x128xf32>
    %81 = arith.mulf %79, %80 : vector<288x128xf32>
    %c24_85 = arith.constant 24 : index
    %c0_86 = arith.constant 0 : index
    %82 = vector.load %arg10[%c24_85, %c0_86] : memref<336x128xf32, #tpu.memory_space<vmem>>, vector<288x128xf32>
    tpu.vector_store %arg10[%c24_85, %c0_86], %81 {strides = array<i32>} : memref<336x128xf32, #tpu.memory_space<vmem>>, vector<288x128xf32>,
    %c5_87 = arith.constant 5 : index
    %c0_88 = arith.constant 0 : index
    %83 = vector.load %arg10[%c5_87, %c0_88] : memref<336x128xf32, #tpu.memory_space<vmem>>, vector<288x128xf32>
    %c0_89 = arith.constant 0 : index
    %c0_90 = arith.constant 0 : index
    %84 = vector.load %arg11[%c0_89, %c0_90] : memref<288x1152xf32, #tpu.memory_space<vmem>>, vector<288x128xf32>
    tpu.vector_store %arg11[%c0_89, %c0_90], %83 {strides = array<i32>} : memref<288x1152xf32, #tpu.memory_space<vmem>>, vector<288x128xf32>,
    %c6_91 = arith.constant 6 : index
    %c0_92 = arith.constant 0 : index
    %85 = vector.load %arg10[%c6_91, %c0_92] : memref<336x128xf32, #tpu.memory_space<vmem>>, vector<288x128xf32>
    %c0_93 = arith.constant 0 : index
    %c128_94 = arith.constant 128 : index
    %86 = vector.load %arg11[%c0_93, %c128_94] : memref<288x1152xf32, #tpu.memory_space<vmem>>, vector<288x128xf32>
    tpu.vector_store %arg11[%c0_93, %c128_94], %85 {strides = array<i32>} : memref<288x1152xf32, #tpu.memory_space<vmem>>, vector<288x128xf32>,
    %c7_95 = arith.constant 7 : index
    %c0_96 = arith.constant 0 : index
    %87 = vector.load %arg10[%c7_95, %c0_96] : memref<336x128xf32, #tpu.memory_space<vmem>>, vector<288x128xf32>
    %c0_97 = arith.constant 0 : index
    %c256_98 = arith.constant 256 : index
    %88 = vector.load %arg11[%c0_97, %c256_98] : memref<288x1152xf32, #tpu.memory_space<vmem>>, vector<288x128xf32>
    tpu.vector_store %arg11[%c0_97, %c256_98], %87 {strides = array<i32>} : memref<288x1152xf32, #tpu.memory_space<vmem>>, vector<288x128xf32>,
    %c23_99 = arith.constant 23 : index
    %c0_100 = arith.constant 0 : index
    %89 = vector.load %arg10[%c23_99, %c0_100] : memref<336x128xf32, #tpu.memory_space<vmem>>, vector<288x128xf32>
    %c0_101 = arith.constant 0 : index
    %c384_102 = arith.constant 384 : index
    %90 = vector.load %arg11[%c0_101, %c384_102] : memref<288x1152xf32, #tpu.memory_space<vmem>>, vector<288x128xf32>
    tpu.vector_store %arg11[%c0_101, %c384_102], %89 {strides = array<i32>} : memref<288x1152xf32, #tpu.memory_space<vmem>>, vector<288x128xf32>,
    %c24_103 = arith.constant 24 : index
    %c0_104 = arith.constant 0 : index
    %91 = vector.load %arg10[%c24_103, %c0_104] : memref<336x128xf32, #tpu.memory_space<vmem>>, vector<288x128xf32>
    %c0_105 = arith.constant 0 : index
    %c512_106 = arith.constant 512 : index
    %92 = vector.load %arg11[%c0_105, %c512_106] : memref<288x1152xf32, #tpu.memory_space<vmem>>, vector<288x128xf32>
    tpu.vector_store %arg11[%c0_105, %c512_106], %91 {strides = array<i32>} : memref<288x1152xf32, #tpu.memory_space<vmem>>, vector<288x128xf32>,
    %c25_107 = arith.constant 25 : index
    %c0_108 = arith.constant 0 : index
    %93 = vector.load %arg10[%c25_107, %c0_108] : memref<336x128xf32, #tpu.memory_space<vmem>>, vector<288x128xf32>
    %c0_109 = arith.constant 0 : index
    %c640_110 = arith.constant 640 : index
    %94 = vector.load %arg11[%c0_109, %c640_110] : memref<288x1152xf32, #tpu.memory_space<vmem>>, vector<288x128xf32>
    tpu.vector_store %arg11[%c0_109, %c640_110], %93 {strides = array<i32>} : memref<288x1152xf32, #tpu.memory_space<vmem>>, vector<288x128xf32>,
    %c41_111 = arith.constant 41 : index
    %c0_112 = arith.constant 0 : index
    %95 = vector.load %arg10[%c41_111, %c0_112] : memref<336x128xf32, #tpu.memory_space<vmem>>, vector<288x128xf32>
    %c0_113 = arith.constant 0 : index
    %c768_114 = arith.constant 768 : index
    %96 = vector.load %arg11[%c0_113, %c768_114] : memref<288x1152xf32, #tpu.memory_space<vmem>>, vector<288x128xf32>
    tpu.vector_store %arg11[%c0_113, %c768_114], %95 {strides = array<i32>} : memref<288x1152xf32, #tpu.memory_space<vmem>>, vector<288x128xf32>,
    %c42_115 = arith.constant 42 : index
    %c0_116 = arith.constant 0 : index
    %97 = vector.load %arg10[%c42_115, %c0_116] : memref<336x128xf32, #tpu.memory_space<vmem>>, vector<288x128xf32>
    %c0_117 = arith.constant 0 : index
    %c896_118 = arith.constant 896 : index
    %98 = vector.load %arg11[%c0_117, %c896_118] : memref<288x1152xf32, #tpu.memory_space<vmem>>, vector<288x128xf32>
    tpu.vector_store %arg11[%c0_117, %c896_118], %97 {strides = array<i32>} : memref<288x1152xf32, #tpu.memory_space<vmem>>, vector<288x128xf32>,
    %c43_119 = arith.constant 43 : index
    %c0_120 = arith.constant 0 : index
    %99 = vector.load %arg10[%c43_119, %c0_120] : memref<336x128xf32, #tpu.memory_space<vmem>>, vector<288x128xf32>
    %c0_121 = arith.constant 0 : index
    %c1024_122 = arith.constant 1024 : index
    %100 = vector.load %arg11[%c0_121, %c1024_122] : memref<288x1152xf32, #tpu.memory_space<vmem>>, vector<288x128xf32>
    tpu.vector_store %arg11[%c0_121, %c1024_122], %99 {strides = array<i32>} : memref<288x1152xf32, #tpu.memory_space<vmem>>, vector<288x128xf32>,
    %c0_123 = arith.constant 0 : index
    %c0_124 = arith.constant 0 : index
    %101 = vector.load %arg11[%c0_123, %c0_124] : memref<288x1152xf32, #tpu.memory_space<vmem>>, vector<288x1152xf32>
    %c0_125 = arith.constant 0 : index
    %c0_126 = arith.constant 0 : index
    %102 = vector.load %arg5[%c0_125, %c0_126] : memref<1152x128xf32, #tpu.memory_space<vmem>>, vector<1152x128xf32>
    %cst_127 = arith.constant dense<0.000000e+00> : vector<288x128xf32>
    %103 = tpu.matmul %101, %102, %cst_127 {dimension_numbers = #tpu.dot_dimension_numbers<[1], [0], [0], [1], [0, 0, 1, 1], [], []>} : vector<288x1152xf32>, vector<1152x128xf32>, vector<288x128xf32> -> vector<288x128xf32>
    %c0_128 = arith.constant 0 : index
    %c0_129 = arith.constant 0 : index
    %104 = vector.load %arg6[%c0_128, %c0_129] : memref<1x128xf32, #tpu.memory_space<vmem>>, vector<1x128xf32>
    %105 = vector.broadcast %104 : vector<1x128xf32> to vector<288x128xf32>
    %106 = arith.addf %103, %105 : vector<288x128xf32>
    %cst_130 = arith.constant 0.000000e+00 : f32
    %107 = vector.broadcast %cst_130 : f32 to vector<288x128xf32>
    %108 = arith.cmpf oge, %106, %107 : vector<288x128xf32>
    %cst_131 = arith.constant 2.000000e-01 : f32
    %109 = vector.broadcast %cst_131 : f32 to vector<288x128xf32>
    %110 = arith.mulf %109, %106 : vector<288x128xf32>
    %111 = arith.select %108, %106, %110 : vector<288x128xi1>, vector<288x128xf32>
    %112 = vector.broadcast %50 : vector<288x1xf32> to vector<288x128xf32>
    %113 = arith.mulf %111, %112 : vector<288x128xf32>
    %c24_132 = arith.constant 24 : index
    %c0_133 = arith.constant 0 : index
    %114 = vector.load %arg10[%c24_132, %c0_133] : memref<336x128xf32, #tpu.memory_space<vmem>>, vector<288x128xf32>
    tpu.vector_store %arg10[%c24_132, %c0_133], %113 {strides = array<i32>} : memref<336x128xf32, #tpu.memory_space<vmem>>, vector<288x128xf32>,
    %c5_134 = arith.constant 5 : index
    %c0_135 = arith.constant 0 : index
    %115 = vector.load %arg10[%c5_134, %c0_135] : memref<336x128xf32, #tpu.memory_space<vmem>>, vector<288x128xf32>
    %c0_136 = arith.constant 0 : index
    %c0_137 = arith.constant 0 : index
    %116 = vector.load %arg11[%c0_136, %c0_137] : memref<288x1152xf32, #tpu.memory_space<vmem>>, vector<288x128xf32>
    tpu.vector_store %arg11[%c0_136, %c0_137], %115 {strides = array<i32>} : memref<288x1152xf32, #tpu.memory_space<vmem>>, vector<288x128xf32>,
    %c6_138 = arith.constant 6 : index
    %c0_139 = arith.constant 0 : index
    %117 = vector.load %arg10[%c6_138, %c0_139] : memref<336x128xf32, #tpu.memory_space<vmem>>, vector<288x128xf32>
    %c0_140 = arith.constant 0 : index
    %c128_141 = arith.constant 128 : index
    %118 = vector.load %arg11[%c0_140, %c128_141] : memref<288x1152xf32, #tpu.memory_space<vmem>>, vector<288x128xf32>
    tpu.vector_store %arg11[%c0_140, %c128_141], %117 {strides = array<i32>} : memref<288x1152xf32, #tpu.memory_space<vmem>>, vector<288x128xf32>,
    %c7_142 = arith.constant 7 : index
    %c0_143 = arith.constant 0 : index
    %119 = vector.load %arg10[%c7_142, %c0_143] : memref<336x128xf32, #tpu.memory_space<vmem>>, vector<288x128xf32>
    %c0_144 = arith.constant 0 : index
    %c256_145 = arith.constant 256 : index
    %120 = vector.load %arg11[%c0_144, %c256_145] : memref<288x1152xf32, #tpu.memory_space<vmem>>, vector<288x128xf32>
    tpu.vector_store %arg11[%c0_144, %c256_145], %119 {strides = array<i32>} : memref<288x1152xf32, #tpu.memory_space<vmem>>, vector<288x128xf32>,
    %c23_146 = arith.constant 23 : index
    %c0_147 = arith.constant 0 : index
    %121 = vector.load %arg10[%c23_146, %c0_147] : memref<336x128xf32, #tpu.memory_space<vmem>>, vector<288x128xf32>
    %c0_148 = arith.constant 0 : index
    %c384_149 = arith.constant 384 : index
    %122 = vector.load %arg11[%c0_148, %c384_149] : memref<288x1152xf32, #tpu.memory_space<vmem>>, vector<288x128xf32>
    tpu.vector_store %arg11[%c0_148, %c384_149], %121 {strides = array<i32>} : memref<288x1152xf32, #tpu.memory_space<vmem>>, vector<288x128xf32>,
    %c24_150 = arith.constant 24 : index
    %c0_151 = arith.constant 0 : index
    %123 = vector.load %arg10[%c24_150, %c0_151] : memref<336x128xf32, #tpu.memory_space<vmem>>, vector<288x128xf32>
    %c0_152 = arith.constant 0 : index
    %c512_153 = arith.constant 512 : index
    %124 = vector.load %arg11[%c0_152, %c512_153] : memref<288x1152xf32, #tpu.memory_space<vmem>>, vector<288x128xf32>
    tpu.vector_store %arg11[%c0_152, %c512_153], %123 {strides = array<i32>} : memref<288x1152xf32, #tpu.memory_space<vmem>>, vector<288x128xf32>,
    %c25_154 = arith.constant 25 : index
    %c0_155 = arith.constant 0 : index
    %125 = vector.load %arg10[%c25_154, %c0_155] : memref<336x128xf32, #tpu.memory_space<vmem>>, vector<288x128xf32>
    %c0_156 = arith.constant 0 : index
    %c640_157 = arith.constant 640 : index
    %126 = vector.load %arg11[%c0_156, %c640_157] : memref<288x1152xf32, #tpu.memory_space<vmem>>, vector<288x128xf32>
    tpu.vector_store %arg11[%c0_156, %c640_157], %125 {strides = array<i32>} : memref<288x1152xf32, #tpu.memory_space<vmem>>, vector<288x128xf32>,
    %c41_158 = arith.constant 41 : index
    %c0_159 = arith.constant 0 : index
    %127 = vector.load %arg10[%c41_158, %c0_159] : memref<336x128xf32, #tpu.memory_space<vmem>>, vector<288x128xf32>
    %c0_160 = arith.constant 0 : index
    %c768_161 = arith.constant 768 : index
    %128 = vector.load %arg11[%c0_160, %c768_161] : memref<288x1152xf32, #tpu.memory_space<vmem>>, vector<288x128xf32>
    tpu.vector_store %arg11[%c0_160, %c768_161], %127 {strides = array<i32>} : memref<288x1152xf32, #tpu.memory_space<vmem>>, vector<288x128xf32>,
    %c42_162 = arith.constant 42 : index
    %c0_163 = arith.constant 0 : index
    %129 = vector.load %arg10[%c42_162, %c0_163] : memref<336x128xf32, #tpu.memory_space<vmem>>, vector<288x128xf32>
    %c0_164 = arith.constant 0 : index
    %c896_165 = arith.constant 896 : index
    %130 = vector.load %arg11[%c0_164, %c896_165] : memref<288x1152xf32, #tpu.memory_space<vmem>>, vector<288x128xf32>
    tpu.vector_store %arg11[%c0_164, %c896_165], %129 {strides = array<i32>} : memref<288x1152xf32, #tpu.memory_space<vmem>>, vector<288x128xf32>,
    %c43_166 = arith.constant 43 : index
    %c0_167 = arith.constant 0 : index
    %131 = vector.load %arg10[%c43_166, %c0_167] : memref<336x128xf32, #tpu.memory_space<vmem>>, vector<288x128xf32>
    %c0_168 = arith.constant 0 : index
    %c1024_169 = arith.constant 1024 : index
    %132 = vector.load %arg11[%c0_168, %c1024_169] : memref<288x1152xf32, #tpu.memory_space<vmem>>, vector<288x128xf32>
    tpu.vector_store %arg11[%c0_168, %c1024_169], %131 {strides = array<i32>} : memref<288x1152xf32, #tpu.memory_space<vmem>>, vector<288x128xf32>,
    %c0_170 = arith.constant 0 : index
    %c0_171 = arith.constant 0 : index
    %133 = vector.load %arg11[%c0_170, %c0_171] : memref<288x1152xf32, #tpu.memory_space<vmem>>, vector<288x1152xf32>
    %c0_172 = arith.constant 0 : index
    %c0_173 = arith.constant 0 : index
    %134 = vector.load %arg7[%c0_172, %c0_173] : memref<1152x128xf32, #tpu.memory_space<vmem>>, vector<1152x128xf32>
    %cst_174 = arith.constant dense<0.000000e+00> : vector<288x128xf32>
    %135 = tpu.matmul %133, %134, %cst_174 {dimension_numbers = #tpu.dot_dimension_numbers<[1], [0], [0], [1], [0, 0, 1, 1], [], []>} : vector<288x1152xf32>, vector<1152x128xf32>, vector<288x128xf32> -> vector<288x128xf32>
    %c0_175 = arith.constant 0 : index
    %c0_176 = arith.constant 0 : index
    %136 = vector.load %arg8[%c0_175, %c0_176] : memref<1x128xf32, #tpu.memory_space<vmem>>, vector<1x128xf32>
    %137 = vector.broadcast %136 : vector<1x128xf32> to vector<288x128xf32>
    %138 = arith.addf %135, %137 : vector<288x128xf32>
    %c0_177 = arith.constant 0 : index
    %c0_178 = arith.constant 0 : index
    %c0_179 = arith.constant 0 : index
    %139 = vector.load %arg9[%c0_177, %c0_178, %c0_179] : memref<1x288x128xf32, #tpu.memory_space<vmem>>, vector<1x288x128xf32>
    %140 = vector.shape_cast %139 : vector<1x288x128xf32> to vector<288x128xf32>
    %141 = vector.shape_cast %138 : vector<288x128xf32> to vector<1x288x128xf32>
    tpu.vector_store %arg9[%c0_177, %c0_178, %c0_179], %141 {strides = array<i32>} : memref<1x288x128xf32, #tpu.memory_space<vmem>>, vector<1x288x128xf32>,
    return
  }
  func.func @transform_0(%arg0: i32) -> (i32, i32) {
    %c0_i32 = arith.constant 0 : i32
    %c0_i32_0 = arith.constant 0 : i32
    %c0_i32_1 = arith.constant 0 : i32
    return %c0_i32, %c0_i32_0 : i32, i32
  }
  func.func @transform_1(%arg0: i32) -> (i32, i32, i32) {
    %c0_i32 = arith.constant 0 : i32
    %c0_i32_0 = arith.constant 0 : i32
    %c0_i32_1 = arith.constant 0 : i32
    return %arg0, %c0_i32, %c0_i32_0 : i32, i32, i32
  }
  func.func @transform_2(%arg0: i32) -> (i32, i32) {
    %c0_i32 = arith.constant 0 : i32
    %c0_i32_0 = arith.constant 0 : i32
    %c0_i32_1 = arith.constant 0 : i32
    return %c0_i32, %c0_i32_0 : i32, i32
  }
  func.func @transform_3(%arg0: i32) -> (i32, i32) {
    %c0_i32 = arith.constant 0 : i32
    %c0_i32_0 = arith.constant 0 : i32
    %c0_i32_1 = arith.constant 0 : i32
    return %c0_i32, %c0_i32_0 : i32, i32
  }
  func.func @transform_4(%arg0: i32) -> (i32, i32) {
    %c0_i32 = arith.constant 0 : i32
    %c0_i32_0 = arith.constant 0 : i32
    %c0_i32_1 = arith.constant 0 : i32
    return %c0_i32, %c0_i32_0 : i32, i32
  }
  func.func @transform_5(%arg0: i32) -> (i32, i32) {
    %c0_i32 = arith.constant 0 : i32
    %c0_i32_0 = arith.constant 0 : i32
    %c0_i32_1 = arith.constant 0 : i32
    return %c0_i32, %c0_i32_0 : i32, i32
  }
  func.func @transform_6(%arg0: i32) -> (i32, i32) {
    %c0_i32 = arith.constant 0 : i32
    %c0_i32_0 = arith.constant 0 : i32
    %c0_i32_1 = arith.constant 0 : i32
    return %c0_i32, %c0_i32_0 : i32, i32
  }
  func.func @transform_7(%arg0: i32) -> (i32, i32) {
    %c0_i32 = arith.constant 0 : i32
    %c0_i32_0 = arith.constant 0 : i32
    %c0_i32_1 = arith.constant 0 : i32
    return %c0_i32, %c0_i32_0 : i32, i32
  }
  func.func @transform_8(%arg0: i32) -> (i32, i32, i32) {
    %c0_i32 = arith.constant 0 : i32
    %c0_i32_0 = arith.constant 0 : i32
    %c0_i32_1 = arith.constant 0 : i32
    return %arg0, %c0_i32, %c0_i32_0 : i32, i32, i32
  }
}

</mosaic_0001>

<bundles_post_ra>
// kernel: tpu_custom_call.1
= control target key start
LH: loop header
LB: loop body
LE: loop exit
PB: predicated region body
PF: predicated region fallthrough
CT: control target
= control target key end

     0   :  { %13 = vsyncpa [#allocation5], 0  ;;  %s12130_s0 = inlined_call_operand.vmem [shape: f32[288,1], index: 0, kind: input, shape index: {}]   ;;  %s12131_s1 = inlined_call_operand.vmem [shape: f32[2,256,4], index: 1, kind: input, shape index: {}]   ;;  %s12132_s2 = inlined_call_operand.hbm [shape: f32[1152,128], index: 2, kind: input, shape index: {}]   ;;  %s12133_s3 = inlined_call_operand.vmem [shape: f32[1,128], index: 3, kind: input, shape index: {}]   ;;  %s12134_s4 = inlined_call_operand.hbm [shape: f32[1152,128], index: 4, kind: input, shape index: {}]   ;;  %s12135_s5 = inlined_call_operand.vmem [shape: f32[1,128], index: 5, kind: input, shape index: {}]   ;;  %s12136_s6 = inlined_call_operand.hbm [shape: f32[1152,128], index: 6, kind: input, shape index: {}]   ;;  %s12137_s7 = inlined_call_operand.vmem [shape: f32[1,128], index: 7, kind: input, shape index: {}]   ;;  %s12138_s8 = inlined_call_operand.hbm [shape: f32[2,288,128], index: 8, kind: output, shape index: {}]  }
   0x1   :  { %14 = vsyncpa [#allocation8], 0 }
   0x2   :  { %15 = vsyncpa [#allocation6], 0 }
   0x3   :  { %17 = vsyncpa [#allocation6 + $0x1], 0  ;;  %s10347_s27 = smov 0   ;;  %s10349_s28 = smov 0  }
   0x4   :  { %s10351_s29 = smov 0   ;;  %s10353_s30 = smov 0  }
   0x5 LB: > { %12194 = sst [smem:[#allocation14_spill]] %s10285_s29  ;;  %s10368_s9 = sadd.s32 4294967295, %s10289_s30   ;;  %s10289_s30 = sphi %s10353_s30, %s12384_s30   ;;  %s10285_s29 = sphi %s10351_s29, %s12386_s29   ;;  %s10281_s28 = sphi %s10349_s28, %s12388_s28   ;;  %s10277_s27 = sphi %s10347_s27, %s12387_s27  }
   0x6   : > { %s8218_s10 = sadd.s32 4294967294, %s10289_s30   ;;  %s10372_s11 = sadd.s32 1, %s10289_s30  }
   0x7   : > { %12195 = sst [smem:[#allocation15_spill]] %s10372_s11  ;;  %s203_s12 = sadd.s32 1, %s10285_s29 }
   0x8   : > { %s200_s13 = ssub.s32 %s10289_s30, %s10372_s11  ;;  %p213_p0 = scmp.ne.s32.totalorder %s10285_s29, %s10281_s28 }
   0x9   : > { %p201_p1 = scmp.eq.s32.totalorder %s200_s13, 0  ;;  %p214_p2 = scmp.eq.s32.totalorder %s10368_s9, 1 }
   0xa   : > { %p219_p3 = scmp.ne.s32.totalorder %s10281_s28, %s10277_s27  ;;  %p220_p4 = scmp.eq.s32.totalorder %s8218_s10, 1 }
   0xb   : > { %s10383_s14 = scalar_select %p201_p1, %s10285_s29, %s203_s12  }
   0xc   : > { %p10385_p5 = por %p214_p2, %p213_p0  ;;  %p10389_p6 = por %p220_p4, %p219_p3 }
   0xd   : > { %12196 = sst [smem:[#allocation16_spill]] %s10383_s14  ;;  %p8219_p7 = scmp.ge.s32.totalorder %s10289_s30, 1 }
   0xe   : > { %s12197_s15 = scalar_select %p10385_p5, 1, 0 }
   0xf   : > { %s12198_s16 = scalar_select %p10389_p6, 1, 0 }
  0x10   : > { %p227_p8 = scmp.lt.s32.totalorder %s10289_s30, 3  ;;  %p12139_p9 = scmp.eq.s32.totalorder %s10368_s9, 0 }
  0x11   : > { %12199 = sst [smem:[#allocation17_spill]] %s12198_s16  ;;  %s10291_s18 = smov [#allocation7]  }
  0x12   : > { %p10396_p10 = pnand %p8219_p7, %p227_p8  ;;  %s258_s19 = sshll.u32 %s10291_s18, 4  ;;  %s10402_s19 = int_to_ptr.vmem [resolvable:$true] %s258_s19 }
  0x13   : > { %s10292_s21 = smov [#allocation4]   ;;  %s10293_s23 = smov [#allocation9]  }
  0x14   : > { %s12200_s17 = scalar_select %p10396_p10, 1, 0 }
  0x15   : > { %p10068_p11 = pneg %p10396_p10  ;;  %s242_s22 = sshll.u32 %s10292_s21, 4  ;;  %s10410_s22 = int_to_ptr.vmem [resolvable:$true] %s242_s22 }
  0x16   : > { %s10412_s24 = sshll.u32 %s10293_s23, 4  ;;  %s10135_s10 = scalar_lea.hbm %s12134_s4, 18432  ;;  %s275_s24 = int_to_ptr.vmem [resolvable:$true] %s10412_s24 }
  0x17   : > { %p10406_p12 = pnand %p12139_p9, %p10068_p11  ;;  %p10136_p13 = scmp.ne.s32.totalorder %s12134_s4, %s10135_s10 }
  0x18   : > { %p10142_p3 = scmp.lt.u32.totalorder %s10135_s10, %s12134_s4 }
  0x19   : > { %p10422_p0 = pneg %p10406_p12 }
  0x1b   : > { %p10138_p1 = pnand %p10422_p0, %p10136_p13 }
  0x1d   : > { %p10139_p2 = pneg %p10138_p1 }
  0x1f   : > { %p10144_p4 = pnand %p10142_p3, %p10139_p2 }
  0x21   : > { %10147 = shalt.err (!%p10144_p4)
}
  0x22   : > { %s10148_s25 = scalar_lea.vmem %s10402_s19, 18432  ;;  %p10156_p9 = scmp.lt.s32.totalorder %s10402_s19, %s10402_s19 }
  0x23   : > { %p10149_p7 = scmp.ne.s32.totalorder %s10402_s19, %s10148_s25  ;;  %p10157_p6 = scmp.lt.s32.totalorder %s10148_s25, %s10148_s25 }
  0x25   : > { %p10151_p8 = pnand %p10149_p7, %p10422_p0  ;;  %p10158_p13 = por %p10157_p6, %p10156_p9 }
  0x27   : > { %p10152_p11 = pneg %p10151_p8 }
  0x29   : > { %p10159_p1 = pnand %p10158_p13, %p10152_p11 }
  0x2b   : > { %10162 = shalt.err (!%p10159_p1)
}
  0x2c   : > { %s10294_s26 = smov 128   ;;  %s10295_s10 = smov 8  }
  0x2d   : > { %10074 = dma.hbm_to_vmem [thread:$0]  (!%p10406_p12), %s12134_s4, 18432, %s10402_s19, [#allocation8], %s10294_s26, %s10294_s26, %s10295_s10  }
  0x2e   : > { %s10163_s25 = scalar_lea.hbm %s12132_s2, 18432 }
  0x2f   : > { %p10164_p6 = scmp.ne.s32.totalorder %s12132_s2, %s10163_s25  ;;  %p10170_p3 = scmp.lt.u32.totalorder %s10163_s25, %s12132_s2 }
  0x31   : > { %p10166_p9 = pnand %p10164_p6, %p10422_p0 }
  0x33   : > { %p10167_p2 = pneg %p10166_p9 }
  0x35   : > { %p10172_p4 = pnand %p10170_p3, %p10167_p2 }
  0x37   : > { %10175 = shalt.err (!%p10172_p4)
}
  0x38   : > { %s10176_s19 = scalar_lea.vmem %s10410_s22, 18432  ;;  %p10184_p13 = scmp.lt.s32.totalorder %s10410_s22, %s10410_s22 }
  0x39   : > { %p10177_p7 = scmp.ne.s32.totalorder %s10410_s22, %s10176_s19  ;;  %p10185_p1 = scmp.lt.s32.totalorder %s10176_s19, %s10176_s19 }
  0x3b   : > { %p10179_p8 = pnand %p10177_p7, %p10422_p0  ;;  %p10186_p6 = por %p10185_p1, %p10184_p13 }
  0x3d   : > { %p10180_p11 = pneg %p10179_p8 }
  0x3f   : > { %p10187_p9 = pnand %p10186_p6, %p10180_p11 }
  0x41   : > { %10190 = shalt.err (!%p10187_p9)
}
  0x42   : > { %10071 = dma.hbm_to_vmem [thread:$0]  (!%p10406_p12), %s12132_s2, 18432, %s10410_s22, [#allocation5], %s10294_s26, %s10294_s26, %s10295_s10  }
  0x43   : > { %s10191_s12 = scalar_lea.hbm %s12136_s6, 18432 }
  0x44   : > { %p10192_p2 = scmp.ne.s32.totalorder %s12136_s6, %s10191_s12  ;;  %p10198_p7 = scmp.lt.u32.totalorder %s10191_s12, %s12136_s6 }
  0x46   : > { %p10194_p3 = pnand %p10192_p2, %p10422_p0 }
  0x48   : > { %p10195_p4 = pneg %p10194_p3 }
  0x4a   : > { %p10200_p8 = pnand %p10198_p7, %p10195_p4 }
  0x4c   : > { %10203 = shalt.err (!%p10200_p8)
}
  0x4d   : > { %s10204_s19 = scalar_lea.vmem %s275_s24, 18432  ;;  %p10212_p6 = scmp.lt.s32.totalorder %s275_s24, %s275_s24 }
  0x4e   : > { %p10205_p11 = scmp.ne.s32.totalorder %s275_s24, %s10204_s19  ;;  %p10213_p9 = scmp.lt.s32.totalorder %s10204_s19, %s10204_s19 }
  0x50   : > { %p10207_p13 = pnand %p10205_p11, %p10422_p0  ;;  %p10214_p5 = por %p10213_p9, %p10212_p6 }
  0x52   : > { %p10208_p1 = pneg %p10207_p13 }
  0x54   : > { %p10215_p10 = pnand %p10214_p5, %p10208_p1 }
  0x56   : > { %10218 = shalt.err (!%p10215_p10)
}
  0x57   : > { %10077 = dma.hbm_to_vmem [thread:$0]  (!%p10406_p12), %s12136_s6, 18432, %s275_s24, [#allocation8], %s10294_s26, %s10294_s26, %s10295_s10  }
  0x58   : > { %p12203_p2 = scmp.ne.s32.totalorder %s12200_s17, 0 }
  0x5a   : > { %301 = sbr.rel (%p12203_p2) target bundleno = 2056 (0x808), region = 52 }
  0x61   : > { %p12204_p0 = scmp.eq.s32.totalorder %s10368_s9, 0 }
  0x63   : > { %10264 = dma.done.wait (%p12204_p0), [#allocation5], 18432   ;;  %p12205_p3 = pmov %p12204_p0 }
  0x64   : > { %p12206_p5 = pmov %p12204_p0 }
  0x65   : > { %10266 = vsyncadd (%p12205_p3), [#allocation5], 4294948864 }
  0x66   : > { %10268 = dma.done.wait (%p12206_p5), [#allocation8], 36864   ;;  %p12207_p10 = pmov %p12204_p0 }
  0x67   : > { %v12153_v0 = vmov 0.0|0.0   ;;  %v10297_v1 = vmov 0.0   ;;  %p343_p12 = scmp.lt.s32.totalorder %s10368_s9, 1  ;;  %v1463_v2 = vld [vmem:[#allocation4] sm:$0xff]  ;;  %v1464_v3 = vld [vmem:[#allocation4 + $0x8] sm:$0xff]  ;;  %v1465_v4 = vld [vmem:[#allocation4 + $0x10] sm:$0xff] }
  0x68   : > { %10270 = vsyncadd (%p12207_p10), [#allocation8], 4294930432  ;;  %8651 = vmatprep.subr.bf16.mxu0 %v12153_v0  ;;  %348 = vst [vmem:[#allocation2] sm:$0xff] %v10297_v1  ;;  %v8652_v5 = vpack.c.bf16 %v1464_v3, %v1463_v2  ;;  %v1466_v6 = vld [vmem:[#allocation4 + $0x18] sm:$0xff]  ;;  %v1467_v8 = vld [vmem:[#allocation4 + $0x20] sm:$0xff]  ;;  %vm392_vm0 = vcmask 31744  }
  0x69   : > { %349 = vst [vmem:[#allocation2 + $0x8] sm:$0xff] %v10297_v1  ;;  %350 = vst [vmem:[#allocation2 + $0x10] sm:$0xff] %v10297_v1  ;;  %s344_s17 = scalar_select %p343_p12, %s10368_s9, 1  ;;  %v8655_v7 = vpack.c.bf16 %v1466_v6, %v1465_v4  ;;  %v1468_v9 = vld [vmem:[#allocation4 + $0x28] sm:$0xff]  ;;  %v1469_v11 = vld [vmem:[#allocation4 + $0x30] sm:$0xff] }
  0x6a   : > { %351 = vst [vmem:[#allocation2 + $0x18] sm:$0xff] %v10297_v1  ;;  %352 = vst [vmem:[#allocation2 + $0x20] sm:$0xff] %v10297_v1  ;;  %8653 = vmatpush1.bf16.msra.mxu0 %v8652_v5  ;;  %v8658_v10 = vpack.c.bf16 %v1468_v9, %v1467_v8  ;;  %v1470_v12 = vld [vmem:[#allocation4 + $0x38] sm:$0xff]  ;;  %v1471_v15 = vld [vmem:[#allocation4 + $0x40] sm:$0xff]  ;;  %s10053_s10 = smul.u32 4608, %s10368_s9  ;;  %p12381_p7 = scmp.ne.s32.totalorder %s12197_s15, 0 }
  0x6b   : > { %353 = vst [vmem:[#allocation2 + $0x28] sm:$0xff] %v10297_v1  ;;  %354 = vst [vmem:[#allocation2 + $0x30] sm:$0xff] %v10297_v1  ;;  %8654 = vmatprep.subr.bf16.mxu0 %v12153_v0  ;;  %s8236_s20 = sshll.u32 %s344_s17, 8  ;;  %v8661_v14 = vpack.c.bf16 %v1470_v12, %v1469_v11  ;;  %v1472_v16 = vld [vmem:[#allocation4 + $0x48] sm:$0xff]  ;;  %v1473_v24 = vld [vmem:[#allocation4 + $0x50] sm:$0xff]  ;;  %s340_s17 = sand.u32 1, %s10281_s28  }
  0x6c   : > { %355 = vst [vmem:[#allocation2 + $0x38] sm:$0xff] %v10297_v1  ;;  %356 = vst [vmem:[#allocation2 + $0x40] sm:$0xff] %v10297_v1  ;;  %s10512_s26 = scalar_lea.vmem %s12131_s1, %s8236_s20  ;;  %v8664_v21 = vpack.c.bf16 %v1472_v16, %v1471_v15  ;;  %v1474_v25 = vld [vmem:[#allocation4 + $0x58] sm:$0xff]  ;;  %v1475_v33 = vld [vmem:[#allocation4 + $0x60] sm:$0xff]  ;;  %s10052_s18 = smul.u32 288, %s340_s17 }
  0x6d   : > { %357 = vst [vmem:[#allocation2 + $0x48] sm:$0xff] %v10297_v1  ;;  %358 = vst [vmem:[#allocation2 + $0x50] sm:$0xff] %v10297_v1  ;;  %v390_v17 = vld [vmem:[%s10512_s26] sm:$0xff]  ;;  %v391_v18 = vld [vmem:[%s10512_s26 + $0x8] sm:$0xff]  ;;  %v8667_v29 = vpack.c.bf16 %v1474_v25, %v1473_v24  ;;  %s12081_s12 = scalar_lea.hbm %s12138_s8, %s10053_s10  ;;  %s12089_s9 = scalar_lea.sflag [#allocation6], %s340_s17 }
  0x6e   : > { %359 = vst [vmem:[#allocation2 + $0x58] sm:$0xff] %v10297_v1  ;;  %360 = vst [vmem:[#allocation2 + $0x60] sm:$0xff] %v10297_v1  ;;  %8656 = vmatpush1.bf16.msra.mxu0 %v8655_v7  ;;  %v395_v19 = vld [vmem:[%s10512_s26 + $0x10] sm:$0xff]  ;;  %v396_v20 = vld [vmem:[%s10512_s26 + $0x18] sm:$0xff]  ;;  %s10299_s21 = smov [#allocation10]  }
  0x6f   : > { %361 = vst [vmem:[#allocation2 + $0x68] sm:$0xff] %v10297_v1  ;;  %362 = vst [vmem:[#allocation2 + $0x70] sm:$0xff] %v10297_v1  ;;  %8657 = vmatprep.subr.bf16.mxu0 %v12153_v0  ;;  %v399_v22 = vld [vmem:[%s10512_s26 + $0x20] sm:$0xff]  ;;  %v400_v23 = vld [vmem:[%s10512_s26 + $0x28] sm:$0xff]  ;;  %s10223_s23 = sshll.u32 %s10299_s21, 4  ;;  %s10224_s23 = int_to_ptr.vmem [resolvable:$false] %s10223_s23 }
  0x70   : > { %363 = vst [vmem:[#allocation2 + $0x78] sm:$0xff] %v10297_v1  ;;  %364 = vst [vmem:[#allocation2 + $0x80] sm:$0xff] %v10297_v1  ;;  %v563_v13 = vld [vmem:[#allocation2 + $0x6] sm:$0xff]  ;;  %v403_v26 = vld [vmem:[%s10512_s26 + $0x30] sm:$0xff]  ;;  %s10225_s25 = scalar_lea.vmem %s10224_s23, 9216 }
  0x71   : > { %365 = vst [vmem:[#allocation2 + $0x88] sm:$0xff] %v10297_v1  ;;  %366 = vst [vmem:[#allocation2 + $0x90] sm:$0xff] %v10297_v1  ;;  %1678 = vmatprep.mubr.f32.mxu0 %v563_v13  ;;  %v404_v27 = vld [vmem:[%s10512_s26 + $0x38] sm:$0xff]  ;;  %v407_v28 = vld [vmem:[%s10512_s26 + $0x40] sm:$0xff] }
  0x72   : > { %367 = vst [vmem:[#allocation2 + $0x98] sm:$0xff] %v10297_v1  ;;  %368 = vst [vmem:[#allocation2 + $0xa0] sm:$0xff] %v10297_v1  ;;  %8659 = vmatpush1.bf16.msra.mxu0 %v8658_v10  ;;  %v408_v30 = vld [vmem:[%s10512_s26 + $0x48] sm:$0xff]  ;;  %v411_v31 = vld [vmem:[%s10512_s26 + $0x50] sm:$0xff] }
  0x73   : > { %369 = vst [vmem:[#allocation2 + $0xa8] sm:$0xff] %v10297_v1  ;;  %370 = vst [vmem:[#allocation2 + $0xb0] sm:$0xff] %v10297_v1  ;;  %8660 = vmatprep.subr.bf16.mxu0 %v12153_v0  ;;  %v412_v32 = vld [vmem:[%s10512_s26 + $0x58] sm:$0xff]  ;;  %v1477_v36 = vld [vmem:[#allocation4 + $0x70] sm:$0xff] }
  0x74   : > { %371 = vst [vmem:[#allocation2 + $0xb8] sm:$0xff] %v10297_v1  ;;  %372 = vst [vmem:[#allocation2 + $0xc0] sm:$0xff] %v10297_v1  ;;  %v1476_v34 = vld [vmem:[#allocation4 + $0x68] sm:$0xff]  ;;  %v1478_v37 = vld [vmem:[#allocation4 + $0x78] sm:$0xff] }
  0x75   : > { %373 = vst [vmem:[#allocation2 + $0xc8] sm:$0xff] %v10297_v1  ;;  %374 = vst [vmem:[#allocation2 + $0xd0] sm:$0xff] %v10297_v1  ;;  %v8670_v35 = vpack.c.bf16 %v1476_v34, %v1475_v33  ;;  %v8673_v38 = vpack.c.bf16 %v1478_v37, %v1477_v36  ;;  %v1479_v39 = vld [vmem:[#allocation4 + $0x80] sm:$0xff]  ;;  %v1480_v40 = vld [vmem:[#allocation4 + $0x88] sm:$0xff] }
  0x76   : > { %375 = vst [vmem:[#allocation2 + $0xd8] sm:$0xff] %v10297_v1  ;;  %376 = vst [vmem:[#allocation2 + $0xe0] sm:$0xff] %v10297_v1  ;;  %8662 = vmatpush1.bf16.msra.mxu0 %v8661_v14  ;;  %v415_v41 = vld [vmem:[%s10512_s26 + $0x60] sm:$0xff]  ;;  %v416_v42 = vld [vmem:[%s10512_s26 + $0x68] sm:$0xff]  ;;  %v8676_v44 = vpack.c.bf16 %v1480_v40, %v1479_v39 }
  0x77   : > { %377 = vst [vmem:[#allocation2 + $0xe8] sm:$0xff] %v10297_v1  ;;  %378 = vst [vmem:[#allocation2 + $0xf0] sm:$0xff] %v10297_v1  ;;  %8663 = vmatprep.subr.bf16.mxu0 %v12153_v0  ;;  %v419_v43 = vld [vmem:[%s10512_s26 + $0x70] sm:$0xff]  ;;  %v420_v45 = vld [vmem:[%s10512_s26 + $0x78] sm:$0xff] }
  0x78   : > { %379 = vst [vmem:[#allocation2 + $0xf8] sm:$0xff] %v10297_v1  ;;  %380 = vst [vmem:[#allocation2 + $0x100] sm:$0xff] %v10297_v1  ;;  %v1481_v46 = vld [vmem:[#allocation4 + $0x90] sm:$0xff]  ;;  %v1482_v47 = vld [vmem:[#allocation4 + $0x98] sm:$0xff] }
  0x79   : > { %381 = vst [vmem:[#allocation2 + $0x108] sm:$0xff] %v10297_v1  ;;  %382 = vst [vmem:[#allocation2 + $0x110] sm:$0xff] %v10297_v1  ;;  %v423_v48 = vld [vmem:[%s10512_s26 + $0x80] sm:$0xff]  ;;  %v424_v49 = vld [vmem:[%s10512_s26 + $0x88] sm:$0xff]  ;;  %v8679_v53 = vpack.c.bf16 %v1482_v47, %v1481_v46 }
  0x7a   : > { %383 = vst [vmem:[#allocation2 + $0x118] sm:$0xff] %v10297_v1  ;;  %384 = vst [vmem:[#allocation2 + $0x120] sm:$0xff] %v10297_v1  ;;  %8665 = vmatpush1.bf16.msra.mxu0 %v8664_v21  ;;  %v427_v50 = vld [vmem:[%s10512_s26 + $0x90] sm:$0xff]  ;;  %v428_v51 = vld [vmem:[%s10512_s26 + $0x98] sm:$0xff] }
  0x7b   : > { %385 = vst [vmem:[#allocation2 + $0x128] sm:$0xff] %v10297_v1  ;;  %386 = vst [vmem:[#allocation2 + $0x130] sm:$0xff] %v10297_v1  ;;  %8666 = vmatprep.subr.bf16.mxu0 %v12153_v0  ;;  %v431_v52 = vld [vmem:[%s10512_s26 + $0xa0] sm:$0xff]  ;;  %v432_v54 = vld [vmem:[%s10512_s26 + $0xa8] sm:$0xff] }
  0x7c   : > { %387 = vst [vmem:[#allocation2 + $0x138] sm:$0xff] %v10297_v1  ;;  %388 = vst [vmem:[#allocation2 + $0x140] sm:$0xff] %v10297_v1  ;;  %v1483_v55 = vld [vmem:[#allocation4 + $0xa0] sm:$0xff]  ;;  %v1484_v56 = vld [vmem:[#allocation4 + $0xa8] sm:$0xff] }
  0x7d   : > { %389 = vst [vmem:[#allocation2 + $0x148] sm:$0xff] %v10297_v1  ;;  %393 = vst.msk [vmem:[#allocation2 + $0x18] sm:$0xff] %vm392_vm0, %v390_v17  ;;  %v435_v57 = vld [vmem:[%s10512_s26 + $0xb0] sm:$0xff]  ;;  %v8682_v58 = vpack.c.bf16 %v1484_v56, %v1483_v55  ;;  %v1485_v59 = vld [vmem:[#allocation4 + $0xb0] sm:$0xff] }
  0x7e   : > { %394 = vst.msk [vmem:[#allocation2 + $0x20] sm:$0xff] %vm392_vm0, %v391_v18  ;;  %397 = vst.msk [vmem:[#allocation2 + $0x2a] sm:$0xff] %vm392_vm0, %v395_v19  ;;  %8668 = vmatpush1.bf16.msra.mxu0 %v8667_v29  ;;  %v1486_v60 = vld [vmem:[#allocation4 + $0xb8] sm:$0xff]  ;;  %v1487_v62 = vld [vmem:[#allocation4 + $0xc0] sm:$0xff] }
  0x7f   : > { %398 = vst.msk [vmem:[#allocation2 + $0x32] sm:$0xff] %vm392_vm0, %v396_v20  ;;  %401 = vst.msk [vmem:[#allocation2 + $0x3c] sm:$0xff] %vm392_vm0, %v399_v22  ;;  %8669 = vmatprep.subr.bf16.mxu0 %v12153_v0  ;;  %v8685_v61 = vpack.c.bf16 %v1486_v60, %v1485_v59  ;;  %v1488_v63 = vld [vmem:[#allocation4 + $0xc8] sm:$0xff]  ;;  %v439_v3 = vld [vmem:[%s10512_s26 + $0xc0] sm:$0xff] }
  0x80   : > { %402 = vst.msk [vmem:[#allocation2 + $0x44] sm:$0xff] %vm392_vm0, %v400_v23  ;;  %405 = vst.msk [vmem:[#allocation2 + $0x4e] sm:$0xff] %vm392_vm0, %v403_v26  ;;  %v8688_v1 = vpack.c.bf16 %v1488_v63, %v1487_v62  ;;  %v436_v2 = vld [vmem:[%s10512_s26 + $0xb8] sm:$0xff]  ;;  %v1489_v4 = vld [vmem:[#allocation4 + $0xd0] sm:$0xff] }
  0x81   : > { %406 = vst.msk [vmem:[#allocation2 + $0x56] sm:$0xff] %vm392_vm0, %v404_v27  ;;  %409 = vst.msk [vmem:[#allocation2 + $0x60] sm:$0xff] %vm392_vm0, %v407_v28  ;;  %v1490_v5 = vld [vmem:[#allocation4 + $0xd8] sm:$0xff]  ;;  %v1491_v8 = vld [vmem:[#allocation4 + $0xe0] sm:$0xff] }
  0x82   : > { %410 = vst.msk [vmem:[#allocation2 + $0x68] sm:$0xff] %vm392_vm0, %v408_v30  ;;  %413 = vst.msk [vmem:[#allocation2 + $0x72] sm:$0xff] %vm392_vm0, %v411_v31  ;;  %8671 = vmatpush1.bf16.msra.mxu0 %v8670_v35  ;;  %v440_v6 = vld [vmem:[%s10512_s26 + $0xc8] sm:$0xff]  ;;  %v8691_v7 = vpack.c.bf16 %v1490_v5, %v1489_v4  ;;  %v1492_v9 = vld [vmem:[#allocation4 + $0xe8] sm:$0xff] }
  0x83   : > { %414 = vst.msk [vmem:[#allocation2 + $0x7a] sm:$0xff] %vm392_vm0, %v412_v32  ;;  %8672 = vmatprep.subr.bf16.mxu0 %v12153_v0  ;;  %417 = vst.msk [vmem:[#allocation2 + $0x84] sm:$0xff] %vm392_vm0, %v415_v41  ;;  %v443_v10 = vld [vmem:[%s10512_s26 + $0xd0] sm:$0xff]  ;;  %v8694_v11 = vpack.c.bf16 %v1492_v9, %v1491_v8  ;;  %v1493_v12 = vld [vmem:[#allocation4 + $0xf0] sm:$0xff] }
  0x84   : > { %418 = vst.msk [vmem:[#allocation2 + $0x8c] sm:$0xff] %vm392_vm0, %v416_v42  ;;  %421 = vst.msk [vmem:[#allocation2 + $0x96] sm:$0xff] %vm392_vm0, %v419_v43  ;;  %v1494_v13 = vld [vmem:[#allocation4 + $0xf8] sm:$0xff]  ;;  %v444_v14 = vld [vmem:[%s10512_s26 + $0xd8] sm:$0xff] }
  0x85   : > { %422 = vst.msk [vmem:[#allocation2 + $0x9e] sm:$0xff] %vm392_vm0, %v420_v45  ;;  %425 = vst.msk [vmem:[#allocation2 + $0xa8] sm:$0xff] %vm392_vm0, %v423_v48  ;;  %v8697_v15 = vpack.c.bf16 %v1494_v13, %v1493_v12  ;;  %v1495_v16 = vld [vmem:[#allocation4 + $0x100] sm:$0xff]  ;;  %v1496_v17 = vld [vmem:[#allocation4 + $0x108] sm:$0xff] }
  0x86   : > { %8674 = vmatpush1.bf16.msra.mxu0 %v8673_v38  ;;  %426 = vst.msk [vmem:[#allocation2 + $0xb0] sm:$0xff] %vm392_vm0, %v424_v49  ;;  %429 = vst.msk [vmem:[#allocation2 + $0xba] sm:$0xff] %vm392_vm0, %v427_v50  ;;  %v447_v18 = vld [vmem:[%s10512_s26 + $0xe0] sm:$0xff]  ;;  %v8700_v20 = vpack.c.bf16 %v1496_v17, %v1495_v16  ;;  %v564_v21 = vld [vmem:[#allocation2 + $0xe] sm:$0xff] }
  0x87   : > { %8675 = vmatprep.subr.bf16.mxu0 %v12153_v0  ;;  %430 = vst.msk [vmem:[#allocation2 + $0xc2] sm:$0xff] %vm392_vm0, %v428_v51  ;;  %433 = vst.msk [vmem:[#allocation2 + $0xcc] sm:$0xff] %vm392_vm0, %v431_v52  ;;  %v491_v19 = vld [vmem:[#allocation2 + $0x5] sm:$0xff]  ;;  %v492_v25 = vld [vmem:[#allocation2 + $0xd] sm:$0xff] }
  0x88   : > { %434 = vst.msk [vmem:[#allocation2 + $0xd4] sm:$0xff] %vm392_vm0, %v432_v54  ;;  %437 = vst.msk [vmem:[#allocation2 + $0xde] sm:$0xff] %vm392_vm0, %v435_v57  ;;  %v1497_v22 = vld [vmem:[#allocation4 + $0x110] sm:$0xff]  ;;  %v1498_v23 = vld [vmem:[#allocation4 + $0x118] sm:$0xff] }
  0x89   : > { %438 = vst.msk [vmem:[#allocation2 + $0xe6] sm:$0xff] %vm392_vm0, %v436_v2  ;;  %441 = vst.msk [vmem:[#allocation2 + $0xf0] sm:$0xff] %vm392_vm0, %v439_v3  ;;  %v448_v24 = vld [vmem:[%s10512_s26 + $0xe8] sm:$0xff]  ;;  %v8703_v26 = vpack.c.bf16 %v1498_v23, %v1497_v22  ;;  %v565_v27 = vld [vmem:[#allocation2 + $0x16] sm:$0xff] }
  0x8a   : > { %8677 = vmatpush1.bf16.msra.mxu0 %v8676_v44  ;;  %442 = vst.msk [vmem:[#allocation2 + $0xf8] sm:$0xff] %vm392_vm0, %v440_v6  ;;  %445 = vst.msk [vmem:[#allocation2 + $0x102] sm:$0xff] %vm392_vm0, %v443_v10  ;;  %v1499_v28 = vld [vmem:[#allocation4 + $0x120] sm:$0xff]  ;;  %v1500_v29 = vld [vmem:[#allocation4 + $0x128] sm:$0xff] }
  0x8b   : > { %8678 = vmatprep.subr.bf16.mxu0 %v12153_v0  ;;  %446 = vst.msk [vmem:[#allocation2 + $0x10a] sm:$0xff] %vm392_vm0, %v444_v14  ;;  %449 = vst.msk [vmem:[#allocation2 + $0x114] sm:$0xff] %vm392_vm0, %v447_v18  ;;  %v493_v30 = vld [vmem:[#allocation2 + $0x15] sm:$0xff]  ;;  %v8706_v31 = vpack.c.bf16 %v1500_v29, %v1499_v28  ;;  %v566_v32 = vld [vmem:[#allocation2 + $0x1e] sm:$0xff] }
  0x8c   : > { %450 = vst.msk [vmem:[#allocation2 + $0x11c] sm:$0xff] %vm392_vm0, %v448_v24  ;;  %v1501_v33 = vld [vmem:[#allocation4 + $0x130] sm:$0xff]  ;;  %v1502_v34 = vld [vmem:[#allocation4 + $0x138] sm:$0xff]  ;;  %v1503_v38 = vld [vmem:[#allocation4 + $0x140] sm:$0xff] }
  0x8d   : > { %v494_v35 = vld [vmem:[#allocation2 + $0x1d] sm:$0xff]  ;;  %v8709_v36 = vpack.c.bf16 %v1502_v34, %v1501_v33  ;;  %v567_v37 = vld [vmem:[#allocation2 + $0x26] sm:$0xff]  ;;  %v568_v42 = vld [vmem:[#allocation2 + $0x2e] sm:$0xff] }
  0x8e   : > { %8680 = vmatpush1.bf16.msra.mxu0 %v8679_v53  ;;  %v1504_v39 = vld [vmem:[#allocation4 + $0x148] sm:$0xff]  ;;  %v495_v40 = vld [vmem:[#allocation2 + $0x25] sm:$0xff]  ;;  %v496_v45 = vld [vmem:[#allocation2 + $0x2d] sm:$0xff] }
  0x8f   : > { %8681 = vmatprep.subr.bf16.mxu0 %v12153_v0  ;;  %v8712_v41 = vpack.c.bf16 %v1504_v39, %v1503_v38  ;;  %v1505_v43 = vld [vmem:[#allocation4 + $0x150] sm:$0xff]  ;;  %v1506_v44 = vld [vmem:[#allocation4 + $0x158] sm:$0xff]  ;;  %v569_v47 = vld [vmem:[#allocation2 + $0x36] sm:$0xff] }
  0x90   : > { %v8715_v46 = vpack.c.bf16 %v1506_v44, %v1505_v43  ;;  %v1507_v48 = vld [vmem:[#allocation4 + $0x160] sm:$0xff]  ;;  %v1508_v49 = vld [vmem:[#allocation4 + $0x168] sm:$0xff]  ;;  %v1509_v53 = vld [vmem:[#allocation4 + $0x170] sm:$0xff] }
  0x91   : > { %v497_v50 = vld [vmem:[#allocation2 + $0x35] sm:$0xff]  ;;  %v8718_v51 = vpack.c.bf16 %v1508_v49, %v1507_v48  ;;  %v570_v52 = vld [vmem:[#allocation2 + $0x3e] sm:$0xff]  ;;  %v1510_v54 = vld [vmem:[#allocation4 + $0x178] sm:$0xff] }
  0x92   : > { %8683 = vmatpush1.bf16.msra.mxu0 %v8682_v58  ;;  %v498_v55 = vld [vmem:[#allocation2 + $0x3d] sm:$0xff]  ;;  %v8721_v56 = vpack.c.bf16 %v1510_v54, %v1509_v53  ;;  %v571_v57 = vld [vmem:[#allocation2 + $0x46] sm:$0xff]  ;;  %v1511_v58 = vld [vmem:[#allocation4 + $0x180] sm:$0xff] }
  0x93   : > { %8684 = vmatprep.subr.bf16.mxu0 %v12153_v0  ;;  %v1512_v59 = vld [vmem:[#allocation4 + $0x188] sm:$0xff]  ;;  %v499_v60 = vld [vmem:[#allocation2 + $0x45] sm:$0xff]  ;;  %v572_v62 = vld [vmem:[#allocation2 + $0x4e] sm:$0xff] }
  0x94   : > { %v1513_v63 = vld [vmem:[#allocation4 + $0x190] sm:$0xff]  ;;  %v500_v2 = vld [vmem:[#allocation2 + $0x4d] sm:$0xff]  ;;  %v573_v4 = vld [vmem:[#allocation2 + $0x56] sm:$0xff] }
  0x95   : > { %v1515_v5 = vld [vmem:[#allocation4 + $0x1a0] sm:$0xff]  ;;  %v1516_v6 = vld [vmem:[#allocation4 + $0x1a8] sm:$0xff]  ;;  %v1517_v10 = vld [vmem:[#allocation4 + $0x1b0] sm:$0xff] }
  0x96   : > { %8686 = vmatpush1.bf16.msra.mxu0 %v8685_v61  ;;  %v8724_v61 = vpack.c.bf16 %v1512_v59, %v1511_v58  ;;  %v8730_v8 = vpack.c.bf16 %v1516_v6, %v1515_v5  ;;  %v574_v9 = vld [vmem:[#allocation2 + $0x5e] sm:$0xff]  ;;  %v575_v14 = vld [vmem:[#allocation2 + $0x66] sm:$0xff]  ;;  %v577_v24 = vld [vmem:[#allocation2 + $0x76] sm:$0xff] }
  0x97   : > { %8687 = vmatprep.subr.bf16.mxu0 %v12153_v0  ;;  %v502_v12 = vld [vmem:[#allocation2 + $0x5d] sm:$0xff]  ;;  %v503_v17 = vld [vmem:[#allocation2 + $0x65] sm:$0xff]  ;;  %v504_v22 = vld [vmem:[#allocation2 + $0x6d] sm:$0xff] }
  0x98   : > { %v1520_v16 = vld [vmem:[#allocation4 + $0x1c8] sm:$0xff]  ;;  %v579_v34 = vld [vmem:[#allocation2 + $0x86] sm:$0xff]  ;;  %v584_v44 = vld [vmem:[#allocation2 + $0xae] sm:$0xff] }
  0x99   : > { %v578_v29 = vld [vmem:[#allocation2 + $0x7e] sm:$0xff]  ;;  %v581_v38 = vld [vmem:[#allocation2 + $0x96] sm:$0xff]  ;;  %v516_v53 = vld [vmem:[#allocation2 + $0xcd] sm:$0xff] }
  0x9a   : > { %8689 = vmatpush1.bf16.msra.mxu0 %v8688_v1  ;;  %v1514_v1 = vld [vmem:[#allocation4 + $0x198] sm:$0xff]  ;;  %v509_v39 = vld [vmem:[#allocation2 + $0x95] sm:$0xff]  ;;  %v586_v48 = vld [vmem:[#allocation2 + $0xbe] sm:$0xff] }
  0x9b   : > { %8690 = vmatprep.subr.bf16.mxu0 %v12153_v0  ;;  %v8727_v3 = vpack.c.bf16 %v1514_v1, %v1513_v63  ;;  %v511_v43 = vld [vmem:[#allocation2 + $0xa5] sm:$0xff]  ;;  %v514_v49 = vld [vmem:[#allocation2 + $0xbd] sm:$0xff]  ;;  %v521_v63 = vld [vmem:[#allocation2 + $0xf5] sm:$0xff] }
  0x9c   : > { %v589_v54 = vld [vmem:[#allocation2 + $0xd6] sm:$0xff]  ;;  %v591_v58 = vld [vmem:[#allocation2 + $0xe6] sm:$0xff]  ;;  %v594_v1 = vld [vmem:[#allocation2 + $0xfe] sm:$0xff] }
  0x9d   : > { %v519_v59 = vld [vmem:[#allocation2 + $0xe5] sm:$0xff]  ;;  %v596_v5 = vld [vmem:[#allocation2 + $0x10e] sm:$0xff] }
  0x9e   : > { %8692 = vmatpush1.bf16.msra.mxu0 %v8691_v7  ;;  %v501_v7 = vld [vmem:[#allocation2 + $0x55] sm:$0xff]  ;;  %v524_v6 = vld [vmem:[#allocation2 + $0x10d] sm:$0xff] }
  0x9f   : > { %8693 = vmatprep.subr.bf16.mxu0 %v12153_v0 }
  0xa2   : > { %8695 = vmatpush1.bf16.msra.mxu0 %v8694_v11  ;;  %v1518_v11 = vld [vmem:[#allocation4 + $0x1b8] sm:$0xff] }
  0xa3   : > { %8696 = vmatprep.subr.bf16.mxu0 %v12153_v0  ;;  %v8733_v13 = vpack.c.bf16 %v1518_v11, %v1517_v10  ;;  %v526_v10 = vld [vmem:[#allocation2 + $0x11d] sm:$0xff] }
  0xa4   : > { %v707_v11 = vld [vmem:[#allocation2 + $0x17] sm:$0xff] }
  0xa6   : > { %8698 = vmatpush1.bf16.msra.mxu0 %v8697_v15  ;;  %v1519_v15 = vld [vmem:[#allocation4 + $0x1c0] sm:$0xff] }
  0xa7   : > { %8699 = vmatprep.subr.bf16.mxu0 %v12153_v0  ;;  %v8736_v18 = vpack.c.bf16 %v1520_v16, %v1519_v15  ;;  %v635_v15 = vld [vmem:[#allocation2 + $0x7] sm:$0xff] }
  0xa9   : > { %1679 = vmatmul.mubr.f32.vlgmr.msra.gmra.mrb[0].mxu0 %v491_v19  ;;  %v576_v19 = vld [vmem:[#allocation2 + $0x6e] sm:$0xff] }
  0xaa   : > { %8701 = vmatpush1.bf16.msra.mxu0 %v8700_v20  ;;  %1683 = vmatprep.mubr.f32.mxu0 %v564_v21  ;;  %v1521_v20 = vld [vmem:[#allocation4 + $0x1d0] sm:$0xff]  ;;  %v1522_v21 = vld [vmem:[#allocation4 + $0x1d8] sm:$0xff] }
  0xab   : > { %8702 = vmatprep.subr.bf16.mxu0 %v12153_v0  ;;  %v8739_v23 = vpack.c.bf16 %v1522_v21, %v1521_v20  ;;  %v452_v20 = vld [vmem:[%s10512_s26 + $0xf8] sm:$0xff]  ;;  %v636_v21 = vld [vmem:[#allocation2 + $0xf] sm:$0xff] }
  0xac   : > { %454 = vst.msk [vmem:[#allocation2 + $0x12e] sm:$0xff] %vm392_vm0, %v452_v20  ;;  %v727_v20 = vld [vmem:[#allocation2 + $0xb7] sm:$0xff] }
  0xad   : > { %1684 = vmatmul.mubr.f32.gmra.mrb[2].mxu0 %v492_v25  ;;  %v1523_v25 = vld [vmem:[#allocation4 + $0x1e0] sm:$0xff] }
  0xae   : > { %1688 = vmatprep.mubr.f32.mxu0 %v565_v27  ;;  %8704 = vmatpush1.bf16.msra.mxu0 %v8703_v26  ;;  %v1524_v26 = vld [vmem:[#allocation4 + $0x1e8] sm:$0xff] }
  0xaf   : > { %8705 = vmatprep.subr.bf16.mxu0 %v12153_v0  ;;  %v505_v27 = vld [vmem:[#allocation2 + $0x75] sm:$0xff]  ;;  %v8742_v28 = vpack.c.bf16 %v1524_v26, %v1523_v25 }
  0xb0   : > { %v1532_v25 = vld [vmem:[#allocation4 + $0x228] sm:$0xff] }
  0xb1   : > { %1689 = vmatmul.mubr.f32.gmra.mrb[4].mxu0 %v493_v30  ;;  %v1525_v30 = vld [vmem:[#allocation4 + $0x1f0] sm:$0xff] }
  0xb2   : > { %1693 = vmatprep.mubr.f32.mxu0 %v566_v32  ;;  %8707 = vmatpush1.bf16.msra.mxu0 %v8706_v31  ;;  %v1526_v31 = vld [vmem:[#allocation4 + $0x1f8] sm:$0xff]  ;;  %v506_v32 = vld [vmem:[#allocation2 + $0x7d] sm:$0xff] }
  0xb3   : > { %8708 = vmatprep.subr.bf16.mxu0 %v12153_v0  ;;  %v8745_v33 = vpack.c.bf16 %v1526_v31, %v1525_v30  ;;  %v711_v31 = vld [vmem:[#allocation2 + $0x37] sm:$0xff] }
  0xb5   : > { %1694 = vmatmul.mubr.f32.gmra.mrb[6].mxu0 %v494_v35  ;;  %v507_v35 = vld [vmem:[#allocation2 + $0x85] sm:$0xff] }
  0xb6   : > { %1698 = vmatprep.mubr.f32.mxu0 %v567_v37  ;;  %8710 = vmatpush1.bf16.msra.mxu0 %v8709_v36  ;;  %v580_v36 = vld [vmem:[#allocation2 + $0x8e] sm:$0xff] }
  0xb7   : > { %8711 = vmatprep.subr.bf16.mxu0 %v12153_v0  ;;  %v508_v37 = vld [vmem:[#allocation2 + $0x8d] sm:$0xff] }
  0xb9   : > { %1699 = vmatmul.mubr.f32.gmra.mrb[8].mxu0 %v495_v40  ;;  %v582_v40 = vld [vmem:[#allocation2 + $0x9e] sm:$0xff] }
  0xba   : > { %1703 = vmatprep.mubr.f32.mxu0 %v568_v42  ;;  %8713 = vmatpush1.bf16.msra.mxu0 %v8712_v41  ;;  %v510_v41 = vld [vmem:[#allocation2 + $0x9d] sm:$0xff]  ;;  %v583_v42 = vld [vmem:[#allocation2 + $0xa6] sm:$0xff] }
  0xbb   : > { %8714 = vmatprep.subr.bf16.mxu0 %v12153_v0 }
  0xbd   : > { %1704 = vmatmul.mubr.f32.gmra.mrb[10].mxu0 %v496_v45  ;;  %v512_v45 = vld [vmem:[#allocation2 + $0xad] sm:$0xff] }
  0xbe   : > { %1708 = vmatprep.mubr.f32.mxu0 %v569_v47  ;;  %8716 = vmatpush1.bf16.msra.mxu0 %v8715_v46  ;;  %v585_v46 = vld [vmem:[#allocation2 + $0xb6] sm:$0xff] }
  0xbf   : > { %8717 = vmatprep.subr.bf16.mxu0 %v12153_v0  ;;  %v513_v47 = vld [vmem:[#allocation2 + $0xb5] sm:$0xff] }
  0xc1   : > { %1709 = vmatmul.mubr.f32.gmra.mrb[12].mxu0 %v497_v50  ;;  %v587_v50 = vld [vmem:[#allocation2 + $0xc6] sm:$0xff] }
  0xc2   : > { %1713 = vmatprep.mubr.f32.mxu0 %v570_v52  ;;  %8719 = vmatpush1.bf16.msra.mxu0 %v8718_v51  ;;  %v515_v51 = vld [vmem:[#allocation2 + $0xc5] sm:$0xff]  ;;  %v588_v52 = vld [vmem:[#allocation2 + $0xce] sm:$0xff] }
  0xc3   : > { %8720 = vmatprep.subr.bf16.mxu0 %v12153_v0 }
  0xc5   : > { %1714 = vmatmul.mubr.f32.gmra.mrb[14].mxu0 %v498_v55  ;;  %v517_v55 = vld [vmem:[#allocation2 + $0xd5] sm:$0xff] }
  0xc6   : > { %1718 = vmatprep.mubr.f32.mxu0 %v571_v57  ;;  %8722 = vmatpush1.bf16.msra.mxu0 %v8721_v56  ;;  %v590_v56 = vld [vmem:[#allocation2 + $0xde] sm:$0xff] }
  0xc7   : > { %8723 = vmatprep.subr.bf16.mxu0 %v12153_v0  ;;  %v518_v57 = vld [vmem:[#allocation2 + $0xdd] sm:$0xff] }
  0xc9   : > { %1719 = vmatmul.mubr.f32.gmra.mrb[16].mxu0 %v499_v60  ;;  %v592_v60 = vld [vmem:[#allocation2 + $0xee] sm:$0xff] }
  0xca   : > { %1723 = vmatprep.mubr.f32.mxu0 %v572_v62  ;;  %8725 = vmatpush1.bf16.msra.mxu0 %v8724_v61  ;;  %v520_v61 = vld [vmem:[#allocation2 + $0xed] sm:$0xff]  ;;  %v593_v62 = vld [vmem:[#allocation2 + $0xf6] sm:$0xff] }
  0xcb   : > { %8726 = vmatprep.subr.bf16.mxu0 %v12153_v0 }
  0xcd   : > { %1724 = vmatmul.mubr.f32.gmra.mrb[18].mxu0 %v500_v2  ;;  %v522_v2 = vld [vmem:[#allocation2 + $0xfd] sm:$0xff] }
  0xce   : > { %1728 = vmatprep.mubr.f32.mxu0 %v573_v4  ;;  %8728 = vmatpush1.bf16.msra.mxu0 %v8727_v3  ;;  %v595_v3 = vld [vmem:[#allocation2 + $0x106] sm:$0xff] }
  0xcf   : > { %8729 = vmatprep.subr.bf16.mxu0 %v12153_v0  ;;  %v523_v4 = vld [vmem:[#allocation2 + $0x105] sm:$0xff] }
  0xd1   : > { %1729 = vmatmul.mubr.f32.gmra.mrb[20].mxu0 %v501_v7  ;;  %v597_v7 = vld [vmem:[#allocation2 + $0x116] sm:$0xff] }
  0xd2   : > { %1733 = vmatprep.mubr.f32.mxu0 %v574_v9  ;;  %8731 = vmatpush1.bf16.msra.mxu0 %v8730_v8  ;;  %v525_v8 = vld [vmem:[#allocation2 + $0x115] sm:$0xff]  ;;  %v598_v9 = vld [vmem:[#allocation2 + $0x11e] sm:$0xff] }
  0xd3   : > { %8732 = vmatprep.subr.bf16.mxu0 %v12153_v0 }
  0xd5   : > { %1734 = vmatmul.mubr.f32.gmra.mrb[22].mxu0 %v502_v12  ;;  %v1527_v12 = vld [vmem:[#allocation4 + $0x200] sm:$0xff] }
  0xd6   : > { %1738 = vmatprep.mubr.f32.mxu0 %v575_v14  ;;  %8734 = vmatpush1.bf16.msra.mxu0 %v8733_v13  ;;  %v1528_v13 = vld [vmem:[#allocation4 + $0x208] sm:$0xff]  ;;  %v451_v14 = vld [vmem:[%s10512_s26 + $0xf0] sm:$0xff]  ;;  %s11945_s26 = scalar_lea.vmem [#allocation10], %s10052_s18 }
  0xd7   : > { %8735 = vmatprep.subr.bf16.mxu0 %v12153_v0  ;;  %453 = vst.msk [vmem:[#allocation2 + $0x126] sm:$0xff] %vm392_vm0, %v451_v14  ;;  %v8748_v16 = vpack.c.bf16 %v1528_v13, %v1527_v12  ;;  %v722_v12 = vld [vmem:[#allocation2 + $0x8f] sm:$0xff]  ;;  %v1557_v13 = vld [vmem:[#allocation4 + $0x2f0] sm:$0xff]  ;;  %s8125_s11 = sshll.u32 %s11945_s26, 4  ;;  %s12084_s11 = int_to_ptr.vmem [resolvable:$true] %s8125_s11 }
  0xd8   : > { %v1558_v14 = vld [vmem:[#allocation4 + $0x2f8] sm:$0xff]  ;;  %s10219_s13 = scalar_lea.vmem %s12084_s11, 4608  ;;  %p10226_p13 = scmp.lt.s32.totalorder %s12084_s11, %s10224_s23 }
  0xd9   : > { %1739 = vmatmul.mubr.f32.gmra.mrb[24].mxu0 %v503_v17  ;;  %v708_v17 = vld [vmem:[#allocation2 + $0x1f] sm:$0xff]  ;;  %p10220_p4 = scmp.ne.s32.totalorder %s12084_s11, %s10219_s13  ;;  %p10227_p1 = scmp.lt.s32.totalorder %s10225_s25, %s10219_s13 }
  0xda   : > { %1743 = vmatprep.mubr.f32.mxu0 %v576_v19  ;;  %8737 = vmatpush1.bf16.msra.mxu0 %v8736_v18  ;;  %v1529_v18 = vld [vmem:[#allocation4 + $0x210] sm:$0xff]  ;;  %v1530_v19 = vld [vmem:[#allocation4 + $0x218] sm:$0xff] }
  0xdb   : > { %8738 = vmatprep.subr.bf16.mxu0 %v12153_v0  ;;  %p10221_p8 = pnand %p10220_p4, %p12381_p7  ;;  %p10228_p6 = por %p10227_p1, %p10226_p13 }
  0xdd   : > { %1744 = vmatmul.mubr.f32.gmra.mrb[26].mxu0 %v504_v22  ;;  %v8751_v22 = vpack.c.bf16 %v1530_v19, %v1529_v18  ;;  %v725_v18 = vld [vmem:[#allocation2 + $0xa7] sm:$0xff]  ;;  %v726_v19 = vld [vmem:[#allocation2 + $0xaf] sm:$0xff]  ;;  %p10222_p11 = pneg %p10221_p8 }
  0xde   : > { %1748 = vmatprep.mubr.f32.mxu0 %v577_v24  ;;  %8740 = vmatpush1.bf16.msra.mxu0 %v8739_v23  ;;  %v709_v23 = vld [vmem:[#allocation2 + $0x27] sm:$0xff]  ;;  %v1531_v24 = vld [vmem:[#allocation4 + $0x220] sm:$0xff] }
  0xdf   : > { %8741 = vmatprep.subr.bf16.mxu0 %v12153_v0  ;;  %v8754_v26 = vpack.c.bf16 %v1532_v25, %v1531_v24  ;;  %v731_v24 = vld [vmem:[#allocation2 + $0xd7] sm:$0xff]  ;;  %v732_v25 = vld [vmem:[#allocation2 + $0xdf] sm:$0xff]  ;;  %p10229_p9 = pnand %p10228_p6, %p10222_p11 }
  0xe1   : > { %1749 = vmatmul.mubr.f32.gmra.mrb[28].mxu0 %v505_v27  ;;  %v710_v27 = vld [vmem:[#allocation2 + $0x2f] sm:$0xff] }
  0xe2   : > { %1753 = vmatprep.mubr.f32.mxu0 %v578_v29  ;;  %8743 = vmatpush1.bf16.msra.mxu0 %v8742_v28  ;;  %v1533_v28 = vld [vmem:[#allocation4 + $0x230] sm:$0xff]  ;;  %v1534_v29 = vld [vmem:[#allocation4 + $0x238] sm:$0xff] }
  0xe3   : > { %8744 = vmatprep.subr.bf16.mxu0 %v12153_v0  ;;  %v8757_v30 = vpack.c.bf16 %v1534_v29, %v1533_v28  ;;  %v735_v28 = vld [vmem:[#allocation2 + $0xf7] sm:$0xff]  ;;  %v736_v29 = vld [vmem:[#allocation2 + $0xff] sm:$0xff] }
  0xe5   : > { %1754 = vmatmul.mubr.f32.gmra.mrb[30].mxu0 %v506_v32  ;;  %v1535_v32 = vld [vmem:[#allocation4 + $0x240] sm:$0xff] }
  0xe6   : > { %1758 = vmatprep.mubr.f32.mxu0 %v579_v34  ;;  %8746 = vmatpush1.bf16.msra.mxu0 %v8745_v33  ;;  %v1536_v33 = vld [vmem:[#allocation4 + $0x248] sm:$0xff] }
  0xe7   : > { %8747 = vmatprep.subr.bf16.mxu0 %v12153_v0  ;;  %v8760_v34 = vpack.c.bf16 %v1536_v33, %v1535_v32  ;;  %v739_v32 = vld [vmem:[#allocation2 + $0x117] sm:$0xff] }
  0xe8   : > { %v1591_v33 = vld [vmem:[#allocation4 + $0x400] sm:$0xff] }
  0xe9   : > { %1759 = vmatmul.mubr.f32.gmra.mrb[32].mxu0 %v507_v35  ;;  %v712_v35 = vld [vmem:[#allocation2 + $0x3f] sm:$0xff] }
  0xea   : > { %1763 = vmatprep.mubr.f32.mxu0 %v580_v36  ;;  %v1537_v36 = vld [vmem:[#allocation4 + $0x250] sm:$0xff] }
  0xed   : > { %1764 = vmatmul.mubr.f32.gmra.mrb[34].mxu0 %v508_v37  ;;  %v1538_v37 = vld [vmem:[#allocation4 + $0x258] sm:$0xff] }
  0xee   : > { %1768 = vmatprep.mubr.f32.mxu0 %v581_v38  ;;  %v8763_v38 = vpack.c.bf16 %v1538_v37, %v1537_v36  ;;  %v1593_v37 = vld [vmem:[#allocation4 + $0x410] sm:$0xff] }
  0xf1   : > { %1769 = vmatmul.mubr.f32.gmra.mrb[36].mxu0 %v509_v39  ;;  %v713_v39 = vld [vmem:[#allocation2 + $0x47] sm:$0xff] }
  0xf2   : > { %1773 = vmatprep.mubr.f32.mxu0 %v582_v40  ;;  %v1539_v40 = vld [vmem:[#allocation4 + $0x260] sm:$0xff] }
  0xf5   : > { %1774 = vmatmul.mubr.f32.gmra.mrb[38].mxu0 %v510_v41  ;;  %v1540_v41 = vld [vmem:[#allocation4 + $0x268] sm:$0xff] }
  0xf6   : > { %1778 = vmatprep.mubr.f32.mxu0 %v583_v42  ;;  %v8766_v42 = vpack.c.bf16 %v1540_v41, %v1539_v40  ;;  %v1595_v41 = vld [vmem:[#allocation4 + $0x420] sm:$0xff] }
  0xf9   : > { %1779 = vmatmul.mubr.f32.gmra.mrb[40].mxu0 %v511_v43  ;;  %v714_v43 = vld [vmem:[#allocation2 + $0x4f] sm:$0xff] }
  0xfa   : > { %1783 = vmatprep.mubr.f32.mxu0 %v584_v44  ;;  %v1541_v44 = vld [vmem:[#allocation4 + $0x270] sm:$0xff] }
  0xfd   : > { %1784 = vmatmul.mubr.f32.gmra.mrb[42].mxu0 %v512_v45  ;;  %v1542_v45 = vld [vmem:[#allocation4 + $0x278] sm:$0xff] }
  0xfe   : > { %1788 = vmatprep.mubr.f32.mxu0 %v585_v46  ;;  %v8769_v46 = vpack.c.bf16 %v1542_v45, %v1541_v44  ;;  %v1597_v45 = vld [vmem:[#allocation4 + $0x430] sm:$0xff] }
 0x101   : > { %1789 = vmatmul.mubr.f32.gmra.mrb[44].mxu0 %v513_v47  ;;  %v715_v47 = vld [vmem:[#allocation2 + $0x57] sm:$0xff] }
 0x102   : > { %1793 = vmatprep.mubr.f32.mxu0 %v586_v48  ;;  %v1543_v48 = vld [vmem:[#allocation4 + $0x280] sm:$0xff] }
 0x105   : > { %1794 = vmatmul.mubr.f32.gmra.mrb[46].mxu0 %v514_v49  ;;  %v1544_v49 = vld [vmem:[#allocation4 + $0x288] sm:$0xff] }
 0x106   : > { %1798 = vmatprep.mubr.f32.mxu0 %v587_v50  ;;  %v8772_v50 = vpack.c.bf16 %v1544_v49, %v1543_v48  ;;  %v1559_v48 = vld [vmem:[#allocation4 + $0x300] sm:$0xff]  ;;  %v1560_v49 = vld [vmem:[#allocation4 + $0x308] sm:$0xff] }
 0x109   : > { %1799 = vmatmul.mubr.f32.gmra.mrb[48].mxu0 %v515_v51  ;;  %v716_v51 = vld [vmem:[#allocation2 + $0x5f] sm:$0xff] }
 0x10a   : > { %1803 = vmatprep.mubr.f32.mxu0 %v588_v52  ;;  %v1545_v52 = vld [vmem:[#allocation4 + $0x290] sm:$0xff] }
 0x10d   : > { %1804 = vmatmul.mubr.f32.gmra.mrb[50].mxu0 %v516_v53  ;;  %v1546_v53 = vld [vmem:[#allocation4 + $0x298] sm:$0xff] }
 0x10e   : > { %1808 = vmatprep.mubr.f32.mxu0 %v589_v54  ;;  %v8775_v54 = vpack.c.bf16 %v1546_v53, %v1545_v52  ;;  %v8796_v52 = vpack.c.bf16 %v1560_v49, %v1559_v48  ;;  %v852_v53 = vld [vmem:[#allocation2 + $0x21] sm:$0xff]  ;;  %v1071_v49 = vld [vmem:[#allocation2 + $0x4b] sm:$0xff] }
 0x10f   : > { %v1578_v48 = vld [vmem:[#allocation4 + $0x398] sm:$0xff] }
 0x111   : > { %1809 = vmatmul.mubr.f32.gmra.mrb[52].mxu0 %v517_v55  ;;  %v717_v55 = vld [vmem:[#allocation2 + $0x67] sm:$0xff] }
 0x112   : > { %1813 = vmatprep.mubr.f32.mxu0 %v590_v56  ;;  %v1547_v56 = vld [vmem:[#allocation4 + $0x2a0] sm:$0xff] }
 0x115   : > { %1814 = vmatmul.mubr.f32.gmra.mrb[54].mxu0 %v518_v57  ;;  %v1548_v57 = vld [vmem:[#allocation4 + $0x2a8] sm:$0xff] }
 0x116   : > { %1818 = vmatprep.mubr.f32.mxu0 %v591_v58  ;;  %v8778_v58 = vpack.c.bf16 %v1548_v57, %v1547_v56  ;;  %v1599_v56 = vld [vmem:[#allocation4 + $0x440] sm:$0xff]  ;;  %v1600_v57 = vld [vmem:[#allocation4 + $0x448] sm:$0xff] }
 0x119   : > { %1819 = vmatmul.mubr.f32.gmra.mrb[56].mxu0 %v519_v59  ;;  %v718_v59 = vld [vmem:[#allocation2 + $0x6f] sm:$0xff] }
 0x11a   : > { %1823 = vmatprep.mubr.f32.mxu0 %v592_v60  ;;  %v1549_v60 = vld [vmem:[#allocation4 + $0x2b0] sm:$0xff] }
 0x11d   : > { %1824 = vmatmul.mubr.f32.gmra.mrb[58].mxu0 %v520_v61  ;;  %v1550_v61 = vld [vmem:[#allocation4 + $0x2b8] sm:$0xff] }
 0x11e   : > { %1828 = vmatprep.mubr.f32.mxu0 %v593_v62  ;;  %v8781_v62 = vpack.c.bf16 %v1550_v61, %v1549_v60  ;;  %v1601_v61 = vld [vmem:[#allocation4 + $0x450] sm:$0xff] }
 0x121   : > { %1829 = vmatmul.mubr.f32.gmra.mrb[60].mxu0 %v521_v63  ;;  %v719_v63 = vld [vmem:[#allocation2 + $0x77] sm:$0xff] }
 0x122   : > { %1833 = vmatprep.mubr.f32.mxu0 %v594_v1  ;;  %v1551_v1 = vld [vmem:[#allocation4 + $0x2c0] sm:$0xff] }
 0x125   : > { %1834 = vmatmul.mubr.f32.gmra.mrb[62].mxu0 %v522_v2  ;;  %v1552_v2 = vld [vmem:[#allocation4 + $0x2c8] sm:$0xff] }
 0x126   : > { %1838 = vmatprep.mubr.f32.mxu0 %v595_v3  ;;  %v8784_v3 = vpack.c.bf16 %v1552_v2, %v1551_v1  ;;  %v1563_v1 = vld [vmem:[#allocation4 + $0x320] sm:$0xff]  ;;  %v1564_v2 = vld [vmem:[#allocation4 + $0x328] sm:$0xff] }
 0x129   : > { %1839 = vmatmul.mubr.f32.gmra.mrb[64].mxu0 %v523_v4  ;;  %v720_v4 = vld [vmem:[#allocation2 + $0x7f] sm:$0xff] }
 0x12a   : > { %1843 = vmatprep.mubr.f32.mxu0 %v596_v5  ;;  %v1553_v5 = vld [vmem:[#allocation4 + $0x2d0] sm:$0xff] }
 0x12d   : > { %1844 = vmatmul.mubr.f32.gmra.mrb[66].mxu0 %v524_v6  ;;  %v1554_v6 = vld [vmem:[#allocation4 + $0x2d8] sm:$0xff] }
 0x12e   : > { %1848 = vmatprep.mubr.f32.mxu0 %v597_v7  ;;  %v8787_v7 = vpack.c.bf16 %v1554_v6, %v1553_v5  ;;  %v8802_v5 = vpack.c.bf16 %v1564_v2, %v1563_v1  ;;  %v1603_v6 = vld [vmem:[#allocation4 + $0x460] sm:$0xff]  ;;  %v1073_v1 = vld [vmem:[#allocation2 + $0x5b] sm:$0xff]  ;;  %v1074_v2 = vld [vmem:[#allocation2 + $0x63] sm:$0xff] }
 0x131   : > { %1849 = vmatmul.mubr.f32.gmra.mrb[68].mxu0 %v525_v8  ;;  %v721_v8 = vld [vmem:[#allocation2 + $0x87] sm:$0xff] }
 0x132   : > { %1853 = vmatprep.mubr.f32.mxu0 %v598_v9  ;;  %v1555_v9 = vld [vmem:[#allocation4 + $0x2e0] sm:$0xff] }
 0x135   : > { %1854 = vmatmul.mubr.f32.gmra.mrb[70].mxu0 %v526_v10  ;;  %v1556_v10 = vld [vmem:[#allocation4 + $0x2e8] sm:$0xff] }
 0x136   : > { %1923 = vmatprep.mubr.f32.mxu0 %v707_v11 }
 0x139   : > { %1924 = vmatmul.mubr.f32.vlgmr.msra.gmra.mrb[0].mxu0 %v635_v15  ;;  %v8793_v15 = vpack.c.bf16 %v1558_v14, %v1557_v13  ;;  %v1605_v14 = vld [vmem:[#allocation4 + $0x470] sm:$0xff] }
 0x13a   : > { %8749 = vmatpush1.bf16.msra.mxu0 %v8748_v16  ;;  %1928 = vmatprep.mubr.f32.mxu0 %v708_v17  ;;  %v723_v16 = vld [vmem:[#allocation2 + $0x97] sm:$0xff] }
 0x13b   : > { %8750 = vmatprep.subr.bf16.mxu0 %v12153_v0 }
 0x13d   : > { %1929 = vmatmul.mubr.f32.gmra.mrb[2].mxu0 %v636_v21  ;;  %v728_v21 = vld [vmem:[#allocation2 + $0xbf] sm:$0xff] }
 0x13e   : > { %1933 = vmatprep.mubr.f32.mxu0 %v709_v23  ;;  %8752 = vmatpush1.bf16.msra.mxu0 %v8751_v22  ;;  %v729_v22 = vld [vmem:[#allocation2 + $0xc7] sm:$0xff] }
 0x13f   : > { %8753 = vmatprep.subr.bf16.mxu0 %v12153_v0 }
 0x141   : > { %1934 = vmatmul.mubr.f32.gmra.mrb[4].mxu0 %v707_v11  ;;  %v8790_v11 = vpack.c.bf16 %v1556_v10, %v1555_v9  ;;  %v1565_v9 = vld [vmem:[#allocation4 + $0x330] sm:$0xff]  ;;  %v1566_v10 = vld [vmem:[#allocation4 + $0x338] sm:$0xff] }
 0x142   : > { %1938 = vmatprep.mubr.f32.mxu0 %v710_v27  ;;  %8755 = vmatpush1.bf16.msra.mxu0 %v8754_v26  ;;  %v733_v26 = vld [vmem:[#allocation2 + $0xe7] sm:$0xff]  ;;  %v8805_v13 = vpack.c.bf16 %v1566_v10, %v1565_v9  ;;  %v1584_v9 = vld [vmem:[#allocation4 + $0x3c8] sm:$0xff] }
 0x143   : > { %8756 = vmatprep.subr.bf16.mxu0 %v12153_v0  ;;  %v791_v10 = vld [vmem:[#allocation2 + $0x78] sm:$0xff] }
 0x145   : > { %1939 = vmatmul.mubr.f32.gmra.mrb[6].mxu0 %v708_v17  ;;  %v724_v17 = vld [vmem:[#allocation2 + $0x9f] sm:$0xff] }
 0x146   : > { %1943 = vmatprep.mubr.f32.mxu0 %v711_v31  ;;  %8758 = vmatpush1.bf16.msra.mxu0 %v8757_v30  ;;  %v737_v30 = vld [vmem:[#allocation2 + $0x107] sm:$0xff] }
 0x147   : > { %8759 = vmatprep.subr.bf16.mxu0 %v12153_v0 }
 0x149   : > { %1944 = vmatmul.mubr.f32.gmra.mrb[8].mxu0 %v709_v23  ;;  %v730_v23 = vld [vmem:[#allocation2 + $0xcf] sm:$0xff] }
 0x14a   : > { %1948 = vmatprep.mubr.f32.mxu0 %v712_v35  ;;  %8761 = vmatpush1.bf16.msra.mxu0 %v8760_v34  ;;  %v1592_v34 = vld [vmem:[#allocation4 + $0x408] sm:$0xff] }
 0x14b   : > { %8762 = vmatprep.subr.bf16.mxu0 %v12153_v0  ;;  %v8843_v36 = vpack.c.bf16 %v1592_v34, %v1591_v33  ;;  %v10645_v33 = vld [vmem:[#allocation2 + $0x51] sm:$0xff] }
 0x14d   : > { %1949 = vmatmul.mubr.f32.gmra.mrb[10].mxu0 %v710_v27  ;;  %v734_v27 = vld [vmem:[#allocation2 + $0xef] sm:$0xff]  ;;  %8844 = vmatprep.subr.bf16.mxu1 %v8843_v36 }
 0x14e   : > { %1953 = vmatprep.mubr.f32.mxu0 %v713_v39  ;;  %8764 = vmatpush1.bf16.msra.mxu0 %v8763_v38  ;;  %v1594_v38 = vld [vmem:[#allocation4 + $0x418] sm:$0xff] }
 0x14f   : > { %8765 = vmatprep.subr.bf16.mxu0 %v12153_v0  ;;  %8846 = vmatpush3.bf16.msra.mxu1 %v8843_v36  ;;  %v8847_v40 = vpack.c.bf16 %v1594_v38, %v1593_v37  ;;  %v1574_v36 = vld [vmem:[#allocation4 + $0x378] sm:$0xff]  ;;  %v1069_v37 = vld [vmem:[#allocation2 + $0x3b] sm:$0xff] }
 0x150   : > { %v1070_v38 = vld [vmem:[#allocation2 + $0x43] sm:$0xff] }
 0x151   : > { %1954 = vmatmul.mubr.f32.gmra.mrb[12].mxu0 %v711_v31  ;;  %v738_v31 = vld [vmem:[#allocation2 + $0x10f] sm:$0xff]  ;;  %8848 = vmatprep.subr.bf16.mxu1 %v8847_v40 }
 0x152   : > { %1958 = vmatprep.mubr.f32.mxu0 %v714_v43  ;;  %8767 = vmatpush1.bf16.msra.mxu0 %v8766_v42  ;;  %v1596_v42 = vld [vmem:[#allocation4 + $0x428] sm:$0xff] }
 0x153   : > { %8768 = vmatprep.subr.bf16.mxu0 %v12153_v0  ;;  %8850 = vmatpush3.bf16.msra.mxu1 %v8847_v40  ;;  %v8851_v44 = vpack.c.bf16 %v1596_v42, %v1595_v41  ;;  %v10649_v41 = vld [vmem:[#allocation2 + $0x59] sm:$0xff]  ;;  %v1575_v42 = vld [vmem:[#allocation4 + $0x380] sm:$0xff] }
 0x155   : > { %1959 = vmatmul.mubr.f32.gmra.mrb[14].mxu0 %v712_v35  ;;  %v740_v35 = vld [vmem:[#allocation2 + $0x11f] sm:$0xff]  ;;  %8852 = vmatprep.subr.bf16.mxu1 %v8851_v44 }
 0x156   : > { %1963 = vmatprep.mubr.f32.mxu0 %v715_v47  ;;  %8770 = vmatpush1.bf16.msra.mxu0 %v8769_v46  ;;  %v1598_v46 = vld [vmem:[#allocation4 + $0x438] sm:$0xff] }
 0x157   : > { %8771 = vmatprep.subr.bf16.mxu0 %v12153_v0  ;;  %8854 = vmatpush3.bf16.msra.mxu1 %v8851_v44  ;;  %v787_v44 = vld [vmem:[#allocation2 + $0x58] sm:$0xff] }
 0x159   : > { %1964 = vmatmul.mubr.f32.gmra.mrb[16].mxu0 %v713_v39  ;;  %v741_v39 = vld [vmem:[#allocation2 + $0x127] sm:$0xff] }
 0x15a   : > { %1968 = vmatprep.mubr.f32.mxu0 %v716_v51  ;;  %8773 = vmatpush1.bf16.msra.mxu0 %v8772_v50  ;;  %v8855_v50 = vpack.c.bf16 %v1598_v46, %v1597_v45  ;;  %v10653_v45 = vld [vmem:[#allocation2 + $0x61] sm:$0xff] }
 0x15b   : > { %8774 = vmatprep.subr.bf16.mxu0 %v12153_v0 }
 0x15c   : > { %8856 = vmatprep.subr.bf16.mxu1 %v8855_v50 }
 0x15d   : > { %1969 = vmatmul.mubr.f32.gmra.mrb[18].mxu0 %v714_v43  ;;  %v742_v43 = vld [vmem:[#allocation2 + $0x12f] sm:$0xff]  ;;  %8858 = vmatpush3.bf16.msra.mxu1 %v8855_v50 }
 0x15e   : > { %1973 = vmatprep.mubr.f32.mxu0 %v717_v55  ;;  %8776 = vmatpush1.bf16.msra.mxu0 %v8775_v54  ;;  %v1561_v54 = vld [vmem:[#allocation4 + $0x310] sm:$0xff]  ;;  %v1072_v50 = vld [vmem:[#allocation2 + $0x53] sm:$0xff] }
 0x15f   : > { %8777 = vmatprep.subr.bf16.mxu0 %v12153_v0 }
 0x161   : > { %1974 = vmatmul.mubr.f32.gmra.mrb[20].mxu0 %v715_v47  ;;  %v851_v47 = vld [vmem:[#allocation2 + $0x19] sm:$0xff] }
 0x162   : > { %1978 = vmatprep.mubr.f32.mxu0 %v718_v59  ;;  %8779 = vmatpush1.bf16.msra.mxu0 %v8778_v58  ;;  %v8859_v58 = vpack.c.bf16 %v1600_v57, %v1599_v56  ;;  %v789_v56 = vld [vmem:[#allocation2 + $0x68] sm:$0xff]  ;;  %v10661_v57 = vld [vmem:[#allocation2 + $0x71] sm:$0xff] }
 0x163   : > { %8780 = vmatprep.subr.bf16.mxu0 %v12153_v0 }
 0x164   : > { %8860 = vmatprep.subr.bf16.mxu1 %v8859_v58 }
 0x165   : > { %1979 = vmatmul.mubr.f32.gmra.mrb[22].mxu0 %v716_v51  ;;  %v779_v51 = vld [vmem:[#allocation2 + $0x18] sm:$0xff]  ;;  %8862 = vmatpush3.bf16.msra.mxu1 %v8859_v58 }
 0x166   : > { %1983 = vmatprep.mubr.f32.mxu0 %v719_v63  ;;  %8782 = vmatpush1.bf16.msra.mxu0 %v8781_v62  ;;  %v1602_v62 = vld [vmem:[#allocation4 + $0x458] sm:$0xff] }
 0x167   : > { %8783 = vmatprep.subr.bf16.mxu0 %v12153_v0 }
 0x169   : > { %1984 = vmatmul.mubr.f32.gmra.mrb[24].mxu0 %v717_v55  ;;  %v1562_v55 = vld [vmem:[#allocation4 + $0x318] sm:$0xff] }
 0x16a   : > { %1988 = vmatprep.mubr.f32.mxu0 %v720_v4  ;;  %8785 = vmatpush1.bf16.msra.mxu0 %v8784_v3  ;;  %v8799_v60 = vpack.c.bf16 %v1562_v55, %v1561_v54  ;;  %v8863_v3 = vpack.c.bf16 %v1602_v62, %v1601_v61  ;;  %v1579_v54 = vld [vmem:[#allocation4 + $0x3a0] sm:$0xff]  ;;  %v1580_v55 = vld [vmem:[#allocation4 + $0x3a8] sm:$0xff]  ;;  %v1582_v61 = vld [vmem:[#allocation4 + $0x3b8] sm:$0xff]  ;;  %v10298_v62 = vmov 0  }
 0x16b   : > { %8786 = vmatprep.subr.bf16.mxu0 %v12153_v0  ;;  %v8826_v58 = vpack.c.bf16 %v1580_v55, %v1579_v54  ;;  %10131 = vset.pattern.permute.xlu0 %v10298_v62  ;;  %v466_v54 = vld [vmem:[%s12130_s0 + $0x58] sm:$0xff]  ;;  %v469_v55 = vld [vmem:[%s12130_s0 + $0x70] sm:$0xff] }
 0x16c   : > { %8864 = vmatprep.subr.bf16.mxu1 %v8863_v3  ;;  %10132 = vset.pattern.permute.xlu1 %v10298_v62  ;;  %v1081_v62 = vld [vmem:[#allocation2 + $0x9b] sm:$0xff] }
 0x16d   : > { %1989 = vmatmul.mubr.f32.gmra.mrb[26].mxu0 %v718_v59  ;;  %v780_v59 = vld [vmem:[#allocation2 + $0x20] sm:$0xff]  ;;  %8866 = vmatpush3.bf16.msra.mxu1 %v8863_v3  ;;  %v790_v3 = vld [vmem:[#allocation2 + $0x70] sm:$0xff] }
 0x16e   : > { %1993 = vmatprep.mubr.f32.mxu0 %v721_v8  ;;  %8788 = vmatpush1.bf16.msra.mxu0 %v8787_v7  ;;  %v1604_v7 = vld [vmem:[#allocation4 + $0x468] sm:$0xff] }
 0x16f   : > { %8789 = vmatprep.subr.bf16.mxu0 %v12153_v0 }
 0x171   : > { %1994 = vmatmul.mubr.f32.gmra.mrb[28].mxu0 %v719_v63  ;;  %v10624_v63 = vld [vmem:[#allocation2 + $0x29] sm:$0xff] }
 0x172   : > { %1998 = vmatprep.mubr.f32.mxu0 %v722_v12  ;;  %8791 = vmatpush1.bf16.msra.mxu0 %v8790_v11  ;;  %v8867_v11 = vpack.c.bf16 %v1604_v7, %v1603_v6  ;;  %v10671_v6 = vld [vmem:[#allocation2 + $0x79] sm:$0xff]  ;;  %v1583_v7 = vld [vmem:[#allocation4 + $0x3c0] sm:$0xff] }
 0x173   : > { %8792 = vmatprep.subr.bf16.mxu0 %v12153_v0 }
 0x174   : > { %8868 = vmatprep.subr.bf16.mxu1 %v8867_v11 }
 0x175   : > { %1999 = vmatmul.mubr.f32.gmra.mrb[30].mxu0 %v720_v4  ;;  %v781_v4 = vld [vmem:[#allocation2 + $0x28] sm:$0xff]  ;;  %8870 = vmatpush3.bf16.msra.mxu1 %v8867_v11 }
 0x176   : > { %2003 = vmatprep.mubr.f32.mxu0 %v723_v16  ;;  %8794 = vmatpush1.bf16.msra.mxu0 %v8793_v15  ;;  %v1606_v15 = vld [vmem:[#allocation4 + $0x478] sm:$0xff] }
 0x177   : > { %8795 = vmatprep.subr.bf16.mxu0 %v12153_v0  ;;  %v10675_v11 = vld [vmem:[#allocation2 + $0x81] sm:$0xff] }
 0x179   : > { %2004 = vmatmul.mubr.f32.gmra.mrb[32].mxu0 %v721_v8  ;;  %v10628_v8 = vld [vmem:[#allocation2 + $0x31] sm:$0xff] }
 0x17a   : > { %2008 = vmatprep.mubr.f32.mxu0 %v724_v17 }
 0x17d   : > { %2009 = vmatmul.mubr.f32.gmra.mrb[34].mxu0 %v722_v12  ;;  %v782_v12 = vld [vmem:[#allocation2 + $0x30] sm:$0xff] }
 0x17e   : > { %2013 = vmatprep.mubr.f32.mxu0 %v725_v18 }
 0x181   : > { %2014 = vmatmul.mubr.f32.gmra.mrb[36].mxu0 %v723_v16  ;;  %v10632_v16 = vld [vmem:[#allocation2 + $0x39] sm:$0xff] }
 0x182   : > { %2018 = vmatprep.mubr.f32.mxu0 %v726_v19 }
 0x185   : > { %2019 = vmatmul.mubr.f32.gmra.mrb[38].mxu0 %v724_v17  ;;  %v1567_v17 = vld [vmem:[#allocation4 + $0x340] sm:$0xff] }
 0x186   : > { %2023 = vmatprep.mubr.f32.mxu0 %v727_v20 }
 0x189   : > { %2024 = vmatmul.mubr.f32.gmra.mrb[40].mxu0 %v725_v18  ;;  %v1568_v18 = vld [vmem:[#allocation4 + $0x348] sm:$0xff] }
 0x18a   : > { %2028 = vmatprep.mubr.f32.mxu0 %v728_v21 }
 0x18d   : > { %2029 = vmatmul.mubr.f32.gmra.mrb[42].mxu0 %v726_v19  ;;  %v8871_v19 = vpack.c.bf16 %v1606_v15, %v1605_v14  ;;  %v459_v14 = vld [vmem:[%s12130_s0 + $0x20] sm:$0xff] }
 0x18e   : > { %2033 = vmatprep.mubr.f32.mxu0 %v729_v22  ;;  %v1585_v15 = vld [vmem:[#allocation4 + $0x3d0] sm:$0xff] }
 0x18f   : > { %8872 = vmatprep.subr.bf16.mxu1 %v8871_v19 }
 0x190   : > { %8874 = vmatpush3.bf16.msra.mxu1 %v8871_v19  ;;  %v1076_v19 = vld [vmem:[#allocation2 + $0x73] sm:$0xff] }
 0x191   : > { %2034 = vmatmul.mubr.f32.gmra.mrb[44].mxu0 %v727_v20  ;;  %v783_v20 = vld [vmem:[#allocation2 + $0x38] sm:$0xff]  ;;  %8923 = vmatprep.subr.bf16.mxu1 %v12153_v0 }
 0x192   : > { %2038 = vmatprep.mubr.f32.mxu0 %v730_v23 }
 0x195   : > { %2039 = vmatmul.mubr.f32.gmra.mrb[46].mxu0 %v728_v21  ;;  %v10636_v21 = vld [vmem:[#allocation2 + $0x41] sm:$0xff] }
 0x196   : > { %2043 = vmatprep.mubr.f32.mxu0 %v731_v24 }
 0x199   : > { %2044 = vmatmul.mubr.f32.gmra.mrb[48].mxu0 %v729_v22  ;;  %v8808_v22 = vpack.c.bf16 %v1568_v18, %v1567_v17  ;;  %v1586_v17 = vld [vmem:[#allocation4 + $0x3d8] sm:$0xff] }
 0x19a   : > { %2048 = vmatprep.mubr.f32.mxu0 %v732_v25  ;;  %v1075_v18 = vld [vmem:[#allocation2 + $0x6b] sm:$0xff] }
 0x19d   : > { %2049 = vmatmul.mubr.f32.gmra.mrb[50].mxu0 %v730_v23  ;;  %v1569_v23 = vld [vmem:[#allocation4 + $0x350] sm:$0xff] }
 0x19e   : > { %2053 = vmatprep.mubr.f32.mxu0 %v733_v26 }
 0x1a1   : > { %2054 = vmatmul.mubr.f32.gmra.mrb[52].mxu0 %v731_v24  ;;  %v1570_v24 = vld [vmem:[#allocation4 + $0x358] sm:$0xff] }
 0x1a2   : > { %2058 = vmatprep.mubr.f32.mxu0 %v734_v27 }
 0x1a5   : > { %2059 = vmatmul.mubr.f32.gmra.mrb[54].mxu0 %v732_v25  ;;  %v1067_v25 = vld [vmem:[#allocation2 + $0x2b] sm:$0xff] }
 0x1a6   : > { %2063 = vmatprep.mubr.f32.mxu0 %v735_v28  ;;  %8425 = vmatprep.mubr.f32.mxu1 %v1067_v25  ;;  %v10691_v25 = vld [vmem:[#allocation2 + $0x89] sm:$0xff] }
 0x1a9   : > { %2064 = vmatmul.mubr.f32.gmra.mrb[56].mxu0 %v733_v26  ;;  %v1068_v26 = vld [vmem:[#allocation2 + $0x33] sm:$0xff] }
 0x1aa   : > { %2068 = vmatprep.mubr.f32.mxu0 %v736_v29  ;;  %8426 = vmatmul.mubr.f32.vlgmr.msra.gmra.mrb[0].mxu1 %v1068_v26  ;;  %v1587_v26 = vld [vmem:[#allocation4 + $0x3e0] sm:$0xff] }
 0x1ab   : > { %8428 = vmatprep.mubr.f32.mxu1 %v1069_v37  ;;  %v1077_v37 = vld [vmem:[#allocation2 + $0x7b] sm:$0xff] }
 0x1ad   : > { %2069 = vmatmul.mubr.f32.gmra.mrb[58].mxu0 %v734_v27  ;;  %v784_v27 = vld [vmem:[#allocation2 + $0x40] sm:$0xff] }
 0x1ae   : > { %2073 = vmatprep.mubr.f32.mxu0 %v737_v30  ;;  %8429 = vmatmul.mubr.f32.gmra.mrb[2].mxu1 %v1070_v38  ;;  %v1078_v38 = vld [vmem:[#allocation2 + $0x83] sm:$0xff] }
 0x1af   : > { %8431 = vmatprep.mubr.f32.mxu1 %v1071_v49  ;;  %v10721_v49 = vld [vmem:[#allocation2 + $0xa1] sm:$0xff] }
 0x1b1   : > { %2074 = vmatmul.mubr.f32.gmra.mrb[60].mxu0 %v735_v28  ;;  %v8811_v28 = vpack.c.bf16 %v1570_v24, %v1569_v23  ;;  %v458_v23 = vld [vmem:[%s12130_s0 + $0x18] sm:$0xff]  ;;  %v461_v24 = vld [vmem:[%s12130_s0 + $0x30] sm:$0xff] }
 0x1b2   : > { %2078 = vmatprep.mubr.f32.mxu0 %v738_v31  ;;  %8432 = vmatmul.mubr.f32.gmra.mrb[4].mxu1 %v1072_v50  ;;  %v1079_v50 = vld [vmem:[#allocation2 + $0x8b] sm:$0xff] }
 0x1b3   : > { %8434 = vmatprep.mubr.f32.mxu1 %v1073_v1  ;;  %v1082_v1 = vld [vmem:[#allocation2 + $0xa3] sm:$0xff] }
 0x1b5   : > { %2079 = vmatmul.mubr.f32.gmra.mrb[62].mxu0 %v736_v29  ;;  %v10641_v29 = vld [vmem:[#allocation2 + $0x49] sm:$0xff] }
 0x1b6   : > { %2083 = vmatprep.mubr.f32.mxu0 %v739_v32  ;;  %8435 = vmatmul.mubr.f32.gmra.mrb[6].mxu1 %v1074_v2  ;;  %v798_v2 = vld [vmem:[#allocation2 + $0xb0] sm:$0xff] }
 0x1b7   : > { %8437 = vmatprep.mubr.f32.mxu1 %v1075_v18  ;;  %v477_v18 = vld [vmem:[%s12130_s0 + $0xb0] sm:$0xff] }
 0x1b9   : > { %2084 = vmatmul.mubr.f32.gmra.mrb[64].mxu0 %v737_v30  ;;  %v1571_v30 = vld [vmem:[#allocation4 + $0x360] sm:$0xff] }
 0x1ba   : > { %2088 = vmatprep.mubr.f32.mxu0 %v740_v35  ;;  %8438 = vmatmul.mubr.f32.gmra.mrb[8].mxu1 %v1076_v19  ;;  %v10767_v19 = vld [vmem:[#allocation2 + $0xc9] sm:$0xff] }
 0x1bb   : > { %8440 = vmatprep.mubr.f32.mxu1 %v1077_v37  ;;  %v483_v37 = vld [vmem:[%s12130_s0 + $0xe0] sm:$0xff] }
 0x1bd   : > { %2089 = vmatmul.mubr.f32.gmra.mrb[66].mxu0 %v738_v31  ;;  %v1572_v31 = vld [vmem:[#allocation4 + $0x368] sm:$0xff] }
 0x1be   : > { %2093 = vmatprep.mubr.f32.mxu0 %v741_v39  ;;  %v8814_v34 = vpack.c.bf16 %v1572_v31, %v1571_v30  ;;  %v786_v39 = vld [vmem:[#allocation2 + $0x50] sm:$0xff]  ;;  %8441 = vmatmul.mubr.f32.gmra.mrb[10].mxu1 %v1078_v38  ;;  %v10794_v38 = vld [vmem:[#allocation2 + $0xe1] sm:$0xff] }
 0x1bf   : > { %v10695_v30 = vld [vmem:[#allocation2 + $0x91] sm:$0xff]  ;;  %8443 = vmatprep.mubr.f32.mxu1 %v1079_v50  ;;  %v484_v50 = vld [vmem:[%s12130_s0 + $0xe8] sm:$0xff] }
 0x1c1   : > { %2094 = vmatmul.mubr.f32.gmra.mrb[68].mxu0 %v739_v32  ;;  %v785_v32 = vld [vmem:[#allocation2 + $0x48] sm:$0xff] }
 0x1c2   : > { %2098 = vmatprep.mubr.f32.mxu0 %v742_v43  ;;  %v1576_v43 = vld [vmem:[#allocation4 + $0x388] sm:$0xff] }
 0x1c3   : > { %v8820_v46 = vpack.c.bf16 %v1576_v43, %v1575_v42  ;;  %v462_v42 = vld [vmem:[%s12130_s0 + $0x38] sm:$0xff]  ;;  %v465_v43 = vld [vmem:[%s12130_s0 + $0x50] sm:$0xff] }
 0x1c5   : > { %2099 = vmatmul.mubr.f32.gmra.mrb[70].mxu0 %v740_v35  ;;  %v1573_v35 = vld [vmem:[#allocation4 + $0x370] sm:$0xff] }
 0x1c6   : > { %2168 = vmatprep.mubr.f32.mxu0 %v851_v47  ;;  %v8817_v40 = vpack.c.bf16 %v1574_v36, %v1573_v35  ;;  %v1577_v47 = vld [vmem:[#allocation4 + $0x390] sm:$0xff]  ;;  %v1590_v36 = vld [vmem:[#allocation4 + $0x3f8] sm:$0xff] }
 0x1c7   : > { %v1589_v35 = vld [vmem:[#allocation4 + $0x3f0] sm:$0xff] }
 0x1c9   : > { %2169 = vmatmul.mubr.f32.vlgmr.msra.gmra.mrb[0].mxu0 %v779_v51  ;;  %v788_v51 = vld [vmem:[#allocation2 + $0x60] sm:$0xff] }
 0x1ca   : > { %8797 = vmatpush1.bf16.msra.mxu0 %v8796_v52  ;;  %2173 = vmatprep.mubr.f32.mxu0 %v852_v53  ;;  %v8823_v52 = vpack.c.bf16 %v1578_v48, %v1577_v47  ;;  %v10657_v53 = vld [vmem:[#allocation2 + $0x69] sm:$0xff]  ;;  %v467_v48 = vld [vmem:[%s12130_s0 + $0x60] sm:$0xff] }
 0x1cb   : > { %8798 = vmatprep.subr.bf16.mxu0 %v12153_v0  ;;  %v464_v47 = vld [vmem:[%s12130_s0 + $0x48] sm:$0xff] }
 0x1cd   : > { %2174 = vmatmul.mubr.f32.gmra.mrb[2].mxu0 %v780_v59  ;;  %v455_v59 = vld [vmem:[%s12130_s0] sm:$0xff] }
 0x1ce   : > { %2178 = vmatprep.mubr.f32.mxu0 %v10624_v63  ;;  %8800 = vmatpush1.bf16.msra.mxu0 %v8799_v60  ;;  %v1581_v60 = vld [vmem:[#allocation4 + $0x3b0] sm:$0xff] }
 0x1cf   : > { %8801 = vmatprep.subr.bf16.mxu0 %v12153_v0  ;;  %2949 = vperm.xlu0 %10131, %v455_v59   ;;  %v468_v59 = vld [vmem:[%s12130_s0 + $0x68] sm:$0xff] }
 0x1d1   : > { %2179 = vmatmul.mubr.f32.gmra.mrb[4].mxu0 %v781_v4  ;;  %v8829_v4 = vpack.c.bf16 %v1582_v61, %v1581_v60  ;;  %v471_v60 = vld [vmem:[%s12130_s0 + $0x80] sm:$0xff]  ;;  %v10740_v61 = vld [vmem:[#allocation2 + $0xb1] sm:$0xff] }
 0x1d2   : > { %2183 = vmatprep.mubr.f32.mxu0 %v10628_v8  ;;  %8803 = vmatpush1.bf16.msra.mxu0 %v8802_v5  ;;  %v456_v5 = vld [vmem:[%s12130_s0 + $0x8] sm:$0xff] }
 0x1d3   : > { %8804 = vmatprep.subr.bf16.mxu0 %v12153_v0  ;;  %2954 = vperm.xlu0 %10131, %v456_v5   ;;  %v10749_v5 = vld [vmem:[#allocation2 + $0xb9] sm:$0xff] }
 0x1d5   : > { %2184 = vmatmul.mubr.f32.gmra.mrb[6].mxu0 %v782_v12  ;;  %v8832_v12 = vpack.c.bf16 %v1584_v9, %v1583_v7  ;;  %v799_v7 = vld [vmem:[#allocation2 + $0xb8] sm:$0xff]  ;;  %v472_v9 = vld [vmem:[%s12130_s0 + $0x88] sm:$0xff] }
 0x1d6   : > { %2188 = vmatprep.mubr.f32.mxu0 %v10632_v16  ;;  %8806 = vmatpush1.bf16.msra.mxu0 %v8805_v13  ;;  %v457_v13 = vld [vmem:[%s12130_s0 + $0x10] sm:$0xff] }
 0x1d7   : > { %8807 = vmatprep.subr.bf16.mxu0 %v12153_v0  ;;  %2959 = vperm.xlu1 %10132, %v457_v13   ;;  %v1083_v13 = vld [vmem:[#allocation2 + $0xab] sm:$0xff] }
 0x1d8   : > { %2969 = vperm.xlu0 %10131, %v459_v14   ;;  %v1084_v14 = vld [vmem:[#allocation2 + $0xb3] sm:$0xff] }
 0x1d9   : > { %2189 = vmatmul.mubr.f32.gmra.mrb[8].mxu0 %v783_v20  ;;  %v792_v20 = vld [vmem:[#allocation2 + $0x80] sm:$0xff] }
 0x1da   : > { %2193 = vmatprep.mubr.f32.mxu0 %v10636_v21  ;;  %8809 = vmatpush1.bf16.msra.mxu0 %v8808_v22  ;;  %v8835_v22 = vpack.c.bf16 %v1586_v17, %v1585_v15  ;;  %v800_v15 = vld [vmem:[#allocation2 + $0xc0] sm:$0xff]  ;;  %v474_v17 = vld [vmem:[%s12130_s0 + $0x98] sm:$0xff] }
 0x1db   : > { %8810 = vmatprep.subr.bf16.mxu0 %v12153_v0  ;;  %2964 = vperm.xlu1 %10132, %v458_v23   ;;  %v479_v23 = vld [vmem:[%s12130_s0 + $0xc0] sm:$0xff] }
 0x1dc   : > { %2979 = vperm.xlu0 %10131, %v461_v24   ;;  %v10776_v24 = vld [vmem:[#allocation2 + $0xd1] sm:$0xff] }
 0x1dd   : > { %2194 = vmatmul.mubr.f32.gmra.mrb[10].mxu0 %v784_v27  ;;  %v1588_v27 = vld [vmem:[#allocation4 + $0x3e8] sm:$0xff] }
 0x1de   : > { %2198 = vmatprep.mubr.f32.mxu0 %v10641_v29  ;;  %8812 = vmatpush1.bf16.msra.mxu0 %v8811_v28  ;;  %v793_v28 = vld [vmem:[#allocation2 + $0x88] sm:$0xff]  ;;  %v8838_v31 = vpack.c.bf16 %v1588_v27, %v1587_v26  ;;  %v1085_v26 = vld [vmem:[#allocation2 + $0xbb] sm:$0xff] }
 0x1df   : > { %8813 = vmatprep.subr.bf16.mxu0 %v12153_v0  ;;  %v1086_v27 = vld [vmem:[#allocation2 + $0xc3] sm:$0xff] }
 0x1e1   : > { %2199 = vmatmul.mubr.f32.gmra.mrb[12].mxu0 %v785_v32  ;;  %v460_v32 = vld [vmem:[%s12130_s0 + $0x28] sm:$0xff] }
 0x1e2   : > { %2203 = vmatprep.mubr.f32.mxu0 %v10645_v33  ;;  %8815 = vmatpush1.bf16.msra.mxu0 %v8814_v34  ;;  %v463_v34 = vld [vmem:[%s12130_s0 + $0x40] sm:$0xff] }
 0x1e3   : > { %8816 = vmatprep.subr.bf16.mxu0 %v12153_v0  ;;  %2974 = vperm.xlu1 %10132, %v460_v32   ;;  %v481_v32 = vld [vmem:[%s12130_s0 + $0xd0] sm:$0xff] }
 0x1e4   : > { %2989 = vperm.xlu0 %10131, %v463_v34   ;;  %v10785_v34 = vld [vmem:[#allocation2 + $0xd9] sm:$0xff] }
 0x1e5   : > { %2204 = vmatmul.mubr.f32.gmra.mrb[14].mxu0 %v786_v39  ;;  %v794_v39 = vld [vmem:[#allocation2 + $0x90] sm:$0xff] }
 0x1e6   : > { %2208 = vmatprep.mubr.f32.mxu0 %v10649_v41  ;;  %8818 = vmatpush1.bf16.msra.mxu0 %v8817_v40  ;;  %v8841_v40 = vpack.c.bf16 %v1590_v36, %v1589_v35  ;;  %v803_v35 = vld [vmem:[#allocation2 + $0xd8] sm:$0xff]  ;;  %v480_v36 = vld [vmem:[%s12130_s0 + $0xc8] sm:$0xff] }
 0x1e7   : > { %8819 = vmatprep.subr.bf16.mxu0 %v12153_v0  ;;  %2984 = vperm.xlu1 %10132, %v462_v42   ;;  %v804_v42 = vld [vmem:[#allocation2 + $0xe0] sm:$0xff] }
 0x1e8   : > { %2999 = vperm.xlu0 %10131, %v465_v43   ;;  %v482_v43 = vld [vmem:[%s12130_s0 + $0xd8] sm:$0xff] }
 0x1e9   : > { %2209 = vmatmul.mubr.f32.gmra.mrb[16].mxu0 %v787_v44  ;;  %v10711_v44 = vld [vmem:[#allocation2 + $0x99] sm:$0xff] }
 0x1ea   : > { %2213 = vmatprep.mubr.f32.mxu0 %v10653_v45  ;;  %8821 = vmatpush1.bf16.msra.mxu0 %v8820_v46  ;;  %v795_v46 = vld [vmem:[#allocation2 + $0x98] sm:$0xff] }
 0x1eb   : > { %8822 = vmatprep.subr.bf16.mxu0 %v12153_v0  ;;  %2994 = vperm.xlu1 %10132, %v464_v47   ;;  %v10803_v47 = vld [vmem:[#allocation2 + $0xe9] sm:$0xff] }
 0x1ec   : > { %3009 = vperm.xlu0 %10131, %v467_v48   ;;  %v805_v48 = vld [vmem:[#allocation2 + $0xe8] sm:$0xff] }
 0x1ed   : > { %2214 = vmatmul.mubr.f32.gmra.mrb[18].mxu0 %v788_v51  ;;  %v1080_v51 = vld [vmem:[#allocation2 + $0x93] sm:$0xff] }
 0x1ee   : > { %2218 = vmatprep.mubr.f32.mxu0 %v10657_v53  ;;  %8824 = vmatpush1.bf16.msra.mxu0 %v8823_v52  ;;  %v796_v52 = vld [vmem:[#allocation2 + $0xa0] sm:$0xff] }
 0x1ef   : > { %8825 = vmatprep.subr.bf16.mxu0 %v12153_v0  ;;  %8444 = vmatmul.mubr.f32.gmra.mrb[12].mxu1 %v1080_v51  ;;  %v487_v51 = vld [vmem:[%s12130_s0 + $0x100] sm:$0xff] }
 0x1f0   : > { %3004 = vperm.xlu1 %10132, %v466_v54   ;;  %3019 = vperm.xlu0 %10131, %v469_v55   ;;  %v1089_v54 = vld [vmem:[#allocation2 + $0xdb] sm:$0xff]  ;;  %v1090_v55 = vld [vmem:[#allocation2 + $0xe3] sm:$0xff] }
 0x1f1   : > { %2219 = vmatmul.mubr.f32.gmra.mrb[20].mxu0 %v789_v56  ;;  %v10731_v56 = vld [vmem:[#allocation2 + $0xa9] sm:$0xff]  ;;  %8446 = vmatprep.mubr.f32.mxu1 %v1081_v62  ;;  %v10821_v62 = vld [vmem:[#allocation2 + $0xf9] sm:$0xff] }
 0x1f2   : > { %2223 = vmatprep.mubr.f32.mxu0 %v10661_v57  ;;  %8827 = vmatpush1.bf16.msra.mxu0 %v8826_v58  ;;  %v797_v58 = vld [vmem:[#allocation2 + $0xa8] sm:$0xff] }
 0x1f3   : > { %8828 = vmatprep.subr.bf16.mxu0 %v12153_v0  ;;  %8447 = vmatmul.mubr.f32.gmra.mrb[14].mxu1 %v1082_v1  ;;  %v807_v1 = vld [vmem:[#allocation2 + $0xf8] sm:$0xff] }
 0x1f4   : > { %3014 = vperm.xlu1 %10132, %v468_v59   ;;  %3029 = vperm.xlu0 %10131, %v471_v60   ;;  %v486_v59 = vld [vmem:[%s12130_s0 + $0xf8] sm:$0xff]  ;;  %v489_v60 = vld [vmem:[%s12130_s0 + $0x110] sm:$0xff] }
 0x1f5   : > { %2224 = vmatmul.mubr.f32.gmra.mrb[22].mxu0 %v790_v3  ;;  %v470_v3 = vld [vmem:[%s12130_s0 + $0x78] sm:$0xff]  ;;  %8449 = vmatprep.mubr.f32.mxu1 %v1083_v13  ;;  %v10833_v13 = vld [vmem:[#allocation2 + $0x109] sm:$0xff] }
 0x1f6   : > { %2228 = vmatprep.mubr.f32.mxu0 %v10671_v6  ;;  %8830 = vmatpush1.bf16.msra.mxu0 %v8829_v4  ;;  %v473_v4 = vld [vmem:[%s12130_s0 + $0x90] sm:$0xff] }
 0x1f7   : > { %8831 = vmatprep.subr.bf16.mxu0 %v12153_v0  ;;  %8450 = vmatmul.mubr.f32.gmra.mrb[16].mxu1 %v1084_v14  ;;  %v809_v14 = vld [vmem:[#allocation2 + $0x108] sm:$0xff] }
 0x1f8   : > { %3024 = vperm.xlu1 %10132, %v470_v3   ;;  %3039 = vperm.xlu0 %10131, %v473_v4   ;;  %v10827_v3 = vld [vmem:[#allocation2 + $0x101] sm:$0xff]  ;;  %v1091_v4 = vld [vmem:[#allocation2 + $0xeb] sm:$0xff] }
 0x1f9   : > { %2229 = vmatmul.mubr.f32.gmra.mrb[24].mxu0 %v791_v10  ;;  %v475_v10 = vld [vmem:[%s12130_s0 + $0xa0] sm:$0xff]  ;;  %8452 = vmatprep.mubr.f32.mxu1 %v1085_v26 }
 0x1fa   : > { %2233 = vmatprep.mubr.f32.mxu0 %v10675_v11  ;;  %8833 = vmatpush1.bf16.msra.mxu0 %v8832_v12  ;;  %v10758_v12 = vld [vmem:[#allocation2 + $0xc1] sm:$0xff] }
 0x1fb   : > { %8834 = vmatprep.subr.bf16.mxu0 %v12153_v0  ;;  %8453 = vmatmul.mubr.f32.gmra.mrb[18].mxu1 %v1086_v27  ;;  %v10842_v26 = vld [vmem:[#allocation2 + $0x121] sm:$0xff]  ;;  %v1095_v27 = vld [vmem:[#allocation2 + $0x10b] sm:$0xff] }
 0x1fc   : > { %3034 = vperm.xlu1 %10132, %v472_v9   ;;  %3049 = vperm.xlu0 %10131, %v475_v10   ;;  %v808_v9 = vld [vmem:[#allocation2 + $0x100] sm:$0xff]  ;;  %v490_v10 = vld [vmem:[%s12130_s0 + $0x118] sm:$0xff] }
 0x1fd   : > { %2234 = vmatmul.mubr.f32.gmra.mrb[26].mxu0 %v792_v20  ;;  %v801_v20 = vld [vmem:[#allocation2 + $0xc8] sm:$0xff] }
 0x1fe   : > { %2238 = vmatprep.mubr.f32.mxu0 %v10691_v25  ;;  %8836 = vmatpush1.bf16.msra.mxu0 %v8835_v22  ;;  %v476_v22 = vld [vmem:[%s12130_s0 + $0xa8] sm:$0xff] }
 0x1ff   : > { %8837 = vmatprep.subr.bf16.mxu0 %v12153_v0 }
 0x200   : > { %3044 = vperm.xlu1 %10132, %v474_v17   ;;  %3059 = vperm.xlu0 %10131, %v477_v18   ;;  %v1093_v17 = vld [vmem:[#allocation2 + $0xfb] sm:$0xff]  ;;  %v1094_v18 = vld [vmem:[#allocation2 + $0x103] sm:$0xff] }
 0x201   : > { %2239 = vmatmul.mubr.f32.gmra.mrb[28].mxu0 %v793_v28  ;;  %v802_v28 = vld [vmem:[#allocation2 + $0xd0] sm:$0xff] }
 0x202   : > { %2243 = vmatprep.mubr.f32.mxu0 %v10695_v30  ;;  %8839 = vmatpush1.bf16.msra.mxu0 %v8838_v31  ;;  %v478_v31 = vld [vmem:[%s12130_s0 + $0xb8] sm:$0xff] }
 0x203   : > { %8840 = vmatprep.subr.bf16.mxu0 %v12153_v0 }
 0x204   : > { %3054 = vperm.xlu1 %10132, %v476_v22   ;;  %3069 = vperm.xlu0 %10131, %v479_v23   ;;  %v10839_v22 = vld [vmem:[#allocation2 + $0x119] sm:$0xff] }
 0x205   : > { %2244 = vmatmul.mubr.f32.gmra.mrb[30].mxu0 %v794_v39  ;;  %v1087_v39 = vld [vmem:[#allocation2 + $0xcb] sm:$0xff]  ;;  %v811_v23 = vld [vmem:[#allocation2 + $0x118] sm:$0xff] }
 0x206   : > { %2248 = vmatprep.mubr.f32.mxu0 %v10711_v44  ;;  %8842 = vmatpush1.bf16.msra.mxu0 %v8841_v40  ;;  %v1088_v40 = vld [vmem:[#allocation2 + $0xd3] sm:$0xff] }
 0x207   : > { %8875 = vmatprep.subr.bf16.mxu0 %v12153_v0  ;;  %8455 = vmatprep.mubr.f32.mxu1 %v1087_v39  ;;  %v1098_v39 = vld [vmem:[#allocation2 + $0x123] sm:$0xff] }
 0x208   : > { %3064 = vperm.xlu1 %10132, %v478_v31   ;;  %3079 = vperm.xlu0 %10131, %v481_v32   ;;  %v812_v31 = vld [vmem:[#allocation2 + $0x120] sm:$0xff]  ;;  %v10845_v32 = vld [vmem:[#allocation2 + $0x129] sm:$0xff] }
 0x209   : > { %2249 = vmatmul.mubr.f32.gmra.mrb[32].mxu0 %v795_v46  ;;  %8456 = vmatmul.mubr.f32.gmra.mrb[20].mxu1 %v1088_v40  ;;  %v485_v46 = vld [vmem:[%s12130_s0 + $0xf0] sm:$0xff] }
 0x20a   : > { %2253 = vmatprep.mubr.f32.mxu0 %v10721_v49  ;;  %8458 = vmatprep.mubr.f32.mxu1 %v1089_v54  ;;  %v814_v40 = vld [vmem:[#allocation2 + $0x130] sm:$0xff]  ;;  %v1101_v54 = vld [vmem:[#allocation2 + $0x13b] sm:$0xff] }
 0x20c   : > { %3074 = vperm.xlu1 %10132, %v480_v36   ;;  %3089 = vperm.xlu0 %10131, %v483_v37   ;;  %v10848_v36 = vld [vmem:[#allocation2 + $0x131] sm:$0xff]  ;;  %v1097_v37 = vld [vmem:[#allocation2 + $0x11b] sm:$0xff] }
 0x20d   : > { %2254 = vmatmul.mubr.f32.gmra.mrb[34].mxu0 %v796_v52  ;;  %v10812_v52 = vld [vmem:[#allocation2 + $0xf1] sm:$0xff]  ;;  %8459 = vmatmul.mubr.f32.gmra.mrb[22].mxu1 %v1090_v55  ;;  %v1102_v55 = vld [vmem:[#allocation2 + $0x143] sm:$0xff] }
 0x20e   : > { %2258 = vmatprep.mubr.f32.mxu0 %v10731_v56  ;;  %8461 = vmatprep.mubr.f32.mxu1 %v1091_v4  ;;  %v4173_v4 = vld [vmem:[#allocation7 + $0x10] sm:$0xff] }
 0x210   : > { %3084 = vperm.xlu1 %10132, %v482_v43   ;;  %3099 = vperm.xlu0 %10131, %v485_v46   ;;  %v996_v43 = vld [vmem:[#allocation2 + $0x32] sm:$0xff] }
 0x211   : > { %2259 = vmatmul.mubr.f32.gmra.mrb[36].mxu0 %v797_v58  ;;  %v806_v58 = vld [vmem:[#allocation2 + $0xf0] sm:$0xff] }
 0x212   : > { %2263 = vmatprep.mubr.f32.mxu0 %v10740_v61  ;;  %v1099_v46 = vld [vmem:[#allocation2 + $0x12b] sm:$0xff] }
 0x214   : > { %3094 = vperm.xlu1 %10132, %v484_v50   ;;  %3109 = vperm.xlu0 %10131, %v487_v51   ;;  %v997_v50 = vld [vmem:[#allocation2 + $0x3a] sm:$0xff]  ;;  %v998_v51 = vld [vmem:[#allocation2 + $0x42] sm:$0xff] }
 0x215   : > { %2264 = vmatmul.mubr.f32.gmra.mrb[38].mxu0 %v798_v2  ;;  %v488_v2 = vld [vmem:[%s12130_s0 + $0x108] sm:$0xff] }
 0x216   : > { %2268 = vmatprep.mubr.f32.mxu0 %v10749_v5 }
 0x218   : > { %3104 = vperm.xlu1 %10132, %v486_v59   ;;  %3119 = vperm.xlu0 %10131, %v489_v60   ;;  %v4171_v59 = vld [vmem:[#allocation7] sm:$0xff]  ;;  %v4172_v60 = vld [vmem:[#allocation7 + $0x8] sm:$0xff] }
 0x219   : > { %2269 = vmatmul.mubr.f32.gmra.mrb[40].mxu0 %v799_v7  ;;  %v1092_v7 = vld [vmem:[#allocation2 + $0xf3] sm:$0xff] }
 0x21a   : > { %2273 = vmatprep.mubr.f32.mxu0 %v10758_v12  ;;  %8462 = vmatmul.mubr.f32.gmra.mrb[24].mxu1 %v1092_v7  ;;  %v1000_v7 = vld [vmem:[#allocation2 + $0x52] sm:$0xff] }
 0x21b   : > { %8464 = vmatprep.mubr.f32.mxu1 %v1093_v17 }
 0x21c   : > { %3114 = vperm.xlu1 %10132, %v488_v2   ;;  %v4204_v2 = vld [vmem:[#allocation7 + $0x108] sm:$0xff] }
 0x21d   : > { %2274 = vmatmul.mubr.f32.gmra.mrb[42].mxu0 %v800_v15  ;;  %v10836_v15 = vld [vmem:[#allocation2 + $0x111] sm:$0xff] }
 0x21e   : > { %2278 = vmatprep.mubr.f32.mxu0 %v10767_v19  ;;  %8465 = vmatmul.mubr.f32.gmra.mrb[26].mxu1 %v1094_v18  ;;  %v4175_v18 = vld [vmem:[#allocation7 + $0x20] sm:$0xff] }
 0x21f   : > { %8467 = vmatprep.mubr.f32.mxu1 %v1095_v27  ;;  %v1001_v27 = vld [vmem:[#allocation2 + $0x5a] sm:$0xff] }
 0x220   : > { %3124 = vperm.xlu1 %10132, %v490_v10   ;;  %v4205_v10 = vld [vmem:[#allocation7 + $0x110] sm:$0xff] }
 0x221   : > { %2279 = vmatmul.mubr.f32.gmra.mrb[44].mxu0 %v801_v20  ;;  %v810_v20 = vld [vmem:[#allocation2 + $0x110] sm:$0xff] }
 0x222   : > { %2283 = vmatprep.mubr.f32.mxu0 %v10776_v24 }
 0x225   : > { %2284 = vmatmul.mubr.f32.gmra.mrb[46].mxu0 %v802_v28  ;;  %v1096_v28 = vld [vmem:[#allocation2 + $0x113] sm:$0xff] }
 0x226   : > { %2288 = vmatprep.mubr.f32.mxu0 %v10785_v34  ;;  %8468 = vmatmul.mubr.f32.gmra.mrb[28].mxu1 %v1096_v28 }
 0x227   : > { %8470 = vmatprep.mubr.f32.mxu1 %v1097_v37  ;;  %v4209_v37 = vld [vmem:[#allocation7 + $0x130] sm:$0xff] }
 0x229   : > { %2289 = vmatmul.mubr.f32.gmra.mrb[48].mxu0 %v803_v35  ;;  %v813_v35 = vld [vmem:[#allocation2 + $0x128] sm:$0xff] }
 0x22a   : > { %2293 = vmatprep.mubr.f32.mxu0 %v10794_v38  ;;  %8471 = vmatmul.mubr.f32.gmra.mrb[30].mxu1 %v1098_v39  ;;  %v4210_v39 = vld [vmem:[#allocation7 + $0x138] sm:$0xff] }
 0x22b   : > { %8473 = vmatprep.mubr.f32.mxu1 %v1099_v46  ;;  %v4179_v46 = vld [vmem:[#allocation7 + $0x40] sm:$0xff] }
 0x22d   : > { %2294 = vmatmul.mubr.f32.gmra.mrb[50].mxu0 %v804_v42  ;;  %v995_v42 = vld [vmem:[#allocation2 + $0x2a] sm:$0xff] }
 0x22e   : > { %2298 = vmatprep.mubr.f32.mxu0 %v10803_v47 }
 0x231   : > { %2299 = vmatmul.mubr.f32.gmra.mrb[52].mxu0 %v805_v48  ;;  %v1100_v48 = vld [vmem:[#allocation2 + $0x133] sm:$0xff] }
 0x232   : > { %2303 = vmatprep.mubr.f32.mxu0 %v10812_v52  ;;  %8474 = vmatmul.mubr.f32.gmra.mrb[32].mxu1 %v1100_v48  ;;  %v4211_v48 = vld [vmem:[#allocation7 + $0x140] sm:$0xff] }
 0x233   : > { %8476 = vmatprep.mubr.f32.mxu1 %v1101_v54 }
 0x235   : > { %2304 = vmatmul.mubr.f32.gmra.mrb[54].mxu0 %v806_v58  ;;  %v999_v58 = vld [vmem:[#allocation2 + $0x4a] sm:$0xff] }
 0x236   : > { %2308 = vmatprep.mubr.f32.mxu0 %v10821_v62  ;;  %8477 = vmatmul.mubr.f32.gmra.mrb[34].mxu1 %v1102_v55 }
 0x239   : > { %2309 = vmatmul.mubr.f32.gmra.mrb[56].mxu0 %v807_v1  ;;  %v8876_v1 = vpack.c.bf16 %v4172_v60, %v4171_v59  ;;  %v1004_v59 = vld [vmem:[#allocation2 + $0x72] sm:$0xff]  ;;  %v4213_v60 = vld [vmem:[#allocation7 + $0x150] sm:$0xff] }
 0x23a   : > { %2313 = vmatprep.mubr.f32.mxu0 %v10827_v3 }
 0x23d   : > { %2314 = vmatmul.mubr.f32.gmra.mrb[58].mxu0 %v808_v9 }
 0x23e   : > { %2318 = vmatprep.mubr.f32.mxu0 %v10833_v13 }
 0x241   : > { %2319 = vmatmul.mubr.f32.gmra.mrb[60].mxu0 %v809_v14  ;;  %v4206_v14 = vld [vmem:[#allocation7 + $0x118] sm:$0xff] }
 0x242   : > { %2323 = vmatprep.mubr.f32.mxu0 %v10836_v15 }
 0x245   : > { %2324 = vmatmul.mubr.f32.gmra.mrb[62].mxu0 %v810_v20  ;;  %v4207_v20 = vld [vmem:[#allocation7 + $0x120] sm:$0xff] }
 0x246   : > { %2328 = vmatprep.mubr.f32.mxu0 %v10839_v22 }
 0x249   : > { %2329 = vmatmul.mubr.f32.gmra.mrb[64].mxu0 %v811_v23  ;;  %v4208_v23 = vld [vmem:[#allocation7 + $0x128] sm:$0xff] }
 0x24a   : > { %2333 = vmatprep.mubr.f32.mxu0 %v10842_v26 }
 0x24d   : > { %2334 = vmatmul.mubr.f32.gmra.mrb[66].mxu0 %v812_v31  ;;  %v8930_v31 = vpack.c.bf16 %v4208_v23, %v4207_v20  ;;  %v4187_v23 = vld [vmem:[#allocation7 + $0x80] sm:$0xff] }
 0x24e   : > { %2338 = vmatprep.mubr.f32.mxu0 %v10845_v32 }
 0x251   : > { %2339 = vmatmul.mubr.f32.gmra.mrb[68].mxu0 %v813_v35  ;;  %v4177_v35 = vld [vmem:[#allocation7 + $0x30] sm:$0xff] }
 0x252   : > { %2343 = vmatprep.mubr.f32.mxu0 %v10848_v36 }
 0x255   : > { %2344 = vmatmul.mubr.f32.gmra.mrb[70].mxu0 %v814_v40  ;;  %v1002_v40 = vld [vmem:[#allocation2 + $0x62] sm:$0xff] }
 0x256   : > { %2413 = vmatprep.mubr.f32.mxu0 %v995_v42 }
 0x259   : > { %2414 = vmatmul.mubr.f32.vlgmr.msra.gmra.mrb[0].mxu0 %v10624_v63  ;;  %v4203_v63 = vld [vmem:[#allocation7 + $0x100] sm:$0xff] }
 0x25a   : > { %2418 = vmatprep.mubr.f32.mxu0 %v996_v43  ;;  %v8924_v9 = vpack.c.bf16 %v4204_v2, %v4203_v63  ;;  %8877 = vmatpush1.bf16.msra.mxu0 %v8876_v1  ;;  %v8933_v43 = vpack.c.bf16 %v4210_v39, %v4209_v37  ;;  %v4214_v63 = vld [vmem:[#allocation7 + $0x158] sm:$0xff]  ;;  %v4183_v2 = vld [vmem:[#allocation7 + $0x60] sm:$0xff]  ;;  %v4189_v37 = vld [vmem:[#allocation7 + $0x90] sm:$0xff] }
 0x25b   : > { %8878 = vmatprep.subr.bf16.mxu0 %v12153_v0 }
 0x25c   : > { %8925 = vmatpush1.bf16.msra.mxu1 %v8924_v9  ;;  %v4216_v9 = vld [vmem:[#allocation7 + $0x168] sm:$0xff] }
 0x25d   : > { %2419 = vmatmul.mubr.f32.gmra.mrb[2].mxu0 %v10628_v8  ;;  %v4174_v8 = vld [vmem:[#allocation7 + $0x18] sm:$0xff]  ;;  %8926 = vmatprep.subr.bf16.mxu1 %v12153_v0 }
 0x25e   : > { %2423 = vmatprep.mubr.f32.mxu0 %v997_v50  ;;  %v8879_v17 = vpack.c.bf16 %v4174_v8, %v4173_v4  ;;  %v4212_v50 = vld [vmem:[#allocation7 + $0x148] sm:$0xff] }
 0x25f   : > { %v8936_v55 = vpack.c.bf16 %v4212_v50, %v4211_v48  ;;  %v4184_v4 = vld [vmem:[#allocation7 + $0x68] sm:$0xff] }
 0x260   : > { %8880 = vmatpush1.bf16.msra.mxu0 %v8879_v17  ;;  %v1005_v8 = vld [vmem:[#allocation2 + $0x7a] sm:$0xff] }
 0x261   : > { %2424 = vmatmul.mubr.f32.gmra.mrb[4].mxu0 %v10632_v16  ;;  %v8927_v16 = vpack.c.bf16 %v4206_v14, %v4205_v10  ;;  %8881 = vmatprep.subr.bf16.mxu0 %v12153_v0  ;;  %v8894_v10 = vpack.c.bf16 %v4184_v4, %v4183_v2  ;;  %v4185_v14 = vld [vmem:[#allocation7 + $0x70] sm:$0xff]  ;;  %v4195_v2 = vld [vmem:[#allocation7 + $0xc0] sm:$0xff] }
 0x262   : > { %2428 = vmatprep.mubr.f32.mxu0 %v998_v51  ;;  %v1003_v51 = vld [vmem:[#allocation2 + $0x6a] sm:$0xff]  ;;  %v1009_v50 = vld [vmem:[#allocation2 + $0x9a] sm:$0xff] }
 0x263   : > { %8928 = vmatpush1.bf16.msra.mxu1 %v8927_v16  ;;  %v1006_v16 = vld [vmem:[#allocation2 + $0x82] sm:$0xff] }
 0x264   : > { %8929 = vmatprep.subr.bf16.mxu1 %v12153_v0 }
 0x265   : > { %2429 = vmatmul.mubr.f32.gmra.mrb[6].mxu0 %v10636_v21  ;;  %v4176_v21 = vld [vmem:[#allocation7 + $0x28] sm:$0xff] }
 0x266   : > { %2433 = vmatprep.mubr.f32.mxu0 %v999_v58  ;;  %v8882_v28 = vpack.c.bf16 %v4176_v21, %v4175_v18  ;;  %v4181_v58 = vld [vmem:[#allocation7 + $0x50] sm:$0xff]  ;;  %v4218_v21 = vld [vmem:[#allocation7 + $0x178] sm:$0xff] }
 0x267   : > { %8931 = vmatpush1.bf16.msra.mxu1 %v8930_v31  ;;  %v4217_v18 = vld [vmem:[#allocation7 + $0x170] sm:$0xff]  ;;  %v4219_v31 = vld [vmem:[#allocation7 + $0x180] sm:$0xff] }
 0x268   : > { %8883 = vmatpush1.bf16.msra.mxu0 %v8882_v28  ;;  %8932 = vmatprep.subr.bf16.mxu1 %v12153_v0  ;;  %v1007_v28 = vld [vmem:[#allocation2 + $0x8a] sm:$0xff] }
 0x269   : > { %2434 = vmatmul.mubr.f32.gmra.mrb[8].mxu0 %v10641_v29  ;;  %v4178_v29 = vld [vmem:[#allocation7 + $0x38] sm:$0xff]  ;;  %8884 = vmatprep.subr.bf16.mxu0 %v12153_v0 }
 0x26a   : > { %2438 = vmatprep.mubr.f32.mxu0 %v1000_v7  ;;  %v8885_v42 = vpack.c.bf16 %v4178_v29, %v4177_v35  ;;  %v4215_v7 = vld [vmem:[#allocation7 + $0x160] sm:$0xff]  ;;  %v4220_v35 = vld [vmem:[#allocation7 + $0x188] sm:$0xff] }
 0x26b   : > { %8934 = vmatpush1.bf16.msra.mxu1 %v8933_v43  ;;  %v8942_v17 = vpack.c.bf16 %v4216_v9, %v4215_v7  ;;  %v8948_v39 = vpack.c.bf16 %v4220_v35, %v4219_v31  ;;  %v4222_v43 = vld [vmem:[#allocation7 + $0x198] sm:$0xff]  ;;  %v1012_v7 = vld [vmem:[#allocation2 + $0xb2] sm:$0xff] }
 0x26c   : > { %8886 = vmatpush1.bf16.msra.mxu0 %v8885_v42  ;;  %8935 = vmatprep.subr.bf16.mxu1 %v12153_v0  ;;  %v4221_v42 = vld [vmem:[#allocation7 + $0x190] sm:$0xff]  ;;  %v4202_v31 = vld [vmem:[#allocation7 + $0xf8] sm:$0xff] }
 0x26d   : > { %2439 = vmatmul.mubr.f32.gmra.mrb[10].mxu0 %v10645_v33  ;;  %v4180_v33 = vld [vmem:[#allocation7 + $0x48] sm:$0xff]  ;;  %8887 = vmatprep.subr.bf16.mxu0 %v12153_v0  ;;  %v8951_v48 = vpack.c.bf16 %v4222_v43, %v4221_v42  ;;  %v1014_v9 = vld [vmem:[#allocation2 + $0xc2] sm:$0xff]  ;;  %v1019_v35 = vld [vmem:[#allocation2 + $0xea] sm:$0xff] }
 0x26e   : > { %2443 = vmatprep.mubr.f32.mxu0 %v1001_v27  ;;  %v8888_v54 = vpack.c.bf16 %v4180_v33, %v4179_v46  ;;  %v8945_v27 = vpack.c.bf16 %v4218_v21, %v4217_v18  ;;  %v4191_v33 = vld [vmem:[#allocation7 + $0xa0] sm:$0xff]  ;;  %v4200_v21 = vld [vmem:[#allocation7 + $0xe8] sm:$0xff]  ;;  %v4233_v43 = vld [vmem:[#allocation7 + $0x1f0] sm:$0xff] }
 0x26f   : > { %8937 = vmatpush1.bf16.msra.mxu1 %v8936_v55  ;;  %v1020_v42 = vld [vmem:[#allocation2 + $0xf2] sm:$0xff] }
 0x270   : > { %8889 = vmatpush1.bf16.msra.mxu0 %v8888_v54  ;;  %8938 = vmatprep.subr.bf16.mxu1 %v12153_v0  ;;  %v4224_v54 = vld [vmem:[#allocation7 + $0x1a8] sm:$0xff] }
 0x271   : > { %2444 = vmatmul.mubr.f32.gmra.mrb[12].mxu0 %v10649_v41  ;;  %v4182_v41 = vld [vmem:[#allocation7 + $0x58] sm:$0xff]  ;;  %8890 = vmatprep.subr.bf16.mxu0 %v12153_v0 }
 0x272   : > { %2448 = vmatprep.mubr.f32.mxu0 %v1002_v40  ;;  %v8891_v1 = vpack.c.bf16 %v4182_v41, %v4181_v58  ;;  %v1008_v40 = vld [vmem:[#allocation2 + $0x92] sm:$0xff]  ;;  %v4193_v58 = vld [vmem:[#allocation7 + $0xb0] sm:$0xff] }
 0x274   : > { %8892 = vmatpush1.bf16.msra.mxu0 %v8891_v1 }
 0x275   : > { %2449 = vmatmul.mubr.f32.gmra.mrb[14].mxu0 %v10653_v45  ;;  %v8939_v45 = vpack.c.bf16 %v4214_v63, %v4213_v60  ;;  %8893 = vmatprep.subr.bf16.mxu0 %v12153_v0  ;;  %v4225_v60 = vld [vmem:[#allocation7 + $0x1b0] sm:$0xff]  ;;  %v4226_v63 = vld [vmem:[#allocation7 + $0x1b8] sm:$0xff] }
 0x276   : > { %2453 = vmatprep.mubr.f32.mxu0 %v1003_v51  ;;  %v4223_v51 = vld [vmem:[#allocation7 + $0x1a0] sm:$0xff]  ;;  %v8957_v4 = vpack.c.bf16 %v4226_v63, %v4225_v60 }
 0x277   : > { %8940 = vmatpush1.bf16.msra.mxu1 %v8939_v45  ;;  %v8954_v41 = vpack.c.bf16 %v4224_v54, %v4223_v51  ;;  %v1011_v45 = vld [vmem:[#allocation2 + $0xaa] sm:$0xff] }
 0x278   : > { %8941 = vmatprep.subr.bf16.mxu1 %v12153_v0  ;;  %8895 = vmatpush1.bf16.msra.mxu0 %v8894_v10  ;;  %v1016_v10 = vld [vmem:[#allocation2 + $0xd2] sm:$0xff] }
 0x279   : > { %2454 = vmatmul.mubr.f32.gmra.mrb[16].mxu0 %v10657_v53  ;;  %v4186_v53 = vld [vmem:[#allocation7 + $0x78] sm:$0xff]  ;;  %8896 = vmatprep.subr.bf16.mxu0 %v12153_v0 }
 0x27a   : > { %2458 = vmatprep.mubr.f32.mxu0 %v1004_v59  ;;  %v8897_v20 = vpack.c.bf16 %v4186_v53, %v4185_v14  ;;  %v1010_v59 = vld [vmem:[#allocation2 + $0xa2] sm:$0xff] }
 0x27b   : > { %8943 = vmatpush1.bf16.msra.mxu1 %v8942_v17  ;;  %v4197_v14 = vld [vmem:[#allocation7 + $0xd0] sm:$0xff] }
 0x27c   : > { %8944 = vmatprep.subr.bf16.mxu1 %v12153_v0  ;;  %8898 = vmatpush1.bf16.msra.mxu0 %v8897_v20  ;;  %v1017_v17 = vld [vmem:[#allocation2 + $0xda] sm:$0xff]  ;;  %v1018_v20 = vld [vmem:[#allocation2 + $0xe2] sm:$0xff] }
 0x27d   : > { %2459 = vmatmul.mubr.f32.gmra.mrb[18].mxu0 %v10661_v57  ;;  %v4188_v57 = vld [vmem:[#allocation7 + $0x88] sm:$0xff]  ;;  %8899 = vmatprep.subr.bf16.mxu0 %v12153_v0  ;;  %v10899_v18 = vpop.f32.mrb[0].mxu1 }
 0x27e   : > { %2463 = vmatprep.mubr.f32.mxu0 %v1005_v8  ;;  %v8900_v29 = vpack.c.bf16 %v4188_v57, %v4187_v23  ;;  %v4230_v57 = vld [vmem:[#allocation7 + $0x1d8] sm:$0xff] }
 0x27f   : > { %8946 = vmatpush1.bf16.msra.mxu1 %v8945_v27  ;;  %v4201_v27 = vld [vmem:[#allocation7 + $0xf0] sm:$0xff] }
 0x280   : > { %8947 = vmatprep.subr.bf16.mxu1 %v12153_v0  ;;  %8901 = vmatpush1.bf16.msra.mxu0 %v8900_v29  ;;  %v8921_v29 = vpack.c.bf16 %v4202_v31, %v4201_v27  ;;  %v4301_v27 = vld [vmem:[#allocation7 + $0x410] sm:$0xff] }
 0x281   : > { %2464 = vmatmul.mubr.f32.gmra.mrb[20].mxu0 %v10671_v6  ;;  %v4190_v6 = vld [vmem:[#allocation7 + $0x98] sm:$0xff]  ;;  %8902 = vmatprep.subr.bf16.mxu0 %v12153_v0  ;;  %v10983_v31 = vld [vmem:[%s12133_s3] ss:$0 sm:$0xff] }
 0x282   : > { %2468 = vmatprep.mubr.f32.mxu0 %v1006_v16  ;;  %v8903_v46 = vpack.c.bf16 %v4190_v6, %v4189_v37  ;;  %v4228_v16 = vld [vmem:[#allocation7 + $0x1c8] sm:$0xff] }
 0x283   : > { %8949 = vmatpush1.bf16.msra.mxu1 %v8948_v39  ;;  %v4232_v39 = vld [vmem:[#allocation7 + $0x1e8] sm:$0xff] }
 0x284   : > { %8950 = vmatprep.subr.bf16.mxu1 %v12153_v0  ;;  %8904 = vmatpush1.bf16.msra.mxu0 %v8903_v46  ;;  %v4234_v46 = vld [vmem:[#allocation7 + $0x1f8] sm:$0xff] }
 0x285   : > { %2469 = vmatmul.mubr.f32.gmra.mrb[22].mxu0 %v10675_v11  ;;  %v4192_v11 = vld [vmem:[#allocation7 + $0xa8] sm:$0xff]  ;;  %8905 = vmatprep.subr.bf16.mxu0 %v12153_v0 }
 0x286   : > { %2473 = vmatprep.mubr.f32.mxu0 %v1007_v28  ;;  %v8906_v55 = vpack.c.bf16 %v4192_v11, %v4191_v33  ;;  %v8969_v33 = vpack.c.bf16 %v4234_v46, %v4233_v43  ;;  %v4304_v43 = vld [vmem:[#allocation7 + $0x428] sm:$0xff] }
 0x287   : > { %8952 = vmatpush1.bf16.msra.mxu1 %v8951_v48 }
 0x288   : > { %8953 = vmatprep.subr.bf16.mxu1 %v12153_v0  ;;  %8907 = vmatpush1.bf16.msra.mxu0 %v8906_v55  ;;  %v1024_v55 = vld [vmem:[#allocation2 + $0x112] sm:$0xff] }
 0x289   : > { %2474 = vmatmul.mubr.f32.gmra.mrb[24].mxu0 %v10691_v25  ;;  %v4194_v25 = vld [vmem:[#allocation7 + $0xb8] sm:$0xff]  ;;  %8908 = vmatprep.subr.bf16.mxu0 %v12153_v0 }
 0x28a   : > { %2478 = vmatprep.mubr.f32.mxu0 %v1008_v40  ;;  %v8909_v1 = vpack.c.bf16 %v4194_v25, %v4193_v58  ;;  %v1026_v25 = vld [vmem:[#allocation2 + $0x122] sm:$0xff] }
 0x28b   : > { %8955 = vmatpush1.bf16.msra.mxu1 %v8954_v41 }
 0x28c   : > { %8956 = vmatprep.subr.bf16.mxu1 %v12153_v0  ;;  %8910 = vmatpush1.bf16.msra.mxu0 %v8909_v1  ;;  %v1030_v1 = vld [vmem:[#allocation2 + $0x142] sm:$0xff] }
 0x28d   : > { %2479 = vmatmul.mubr.f32.gmra.mrb[26].mxu0 %v10695_v30  ;;  %v4196_v30 = vld [vmem:[#allocation7 + $0xc8] sm:$0xff]  ;;  %8911 = vmatprep.subr.bf16.mxu0 %v12153_v0 }
 0x28e   : > { %2483 = vmatprep.mubr.f32.mxu0 %v1009_v50  ;;  %v8912_v8 = vpack.c.bf16 %v4196_v30, %v4195_v2  ;;  %v1022_v50 = vld [vmem:[#allocation2 + $0x102] sm:$0xff] }
 0x28f   : > { %8958 = vmatpush1.bf16.msra.mxu1 %v8957_v4  ;;  %v3271_v2 = vld [vmem:[#allocation2 + $0x6] sm:$0xff] }
 0x290   : > { %8959 = vmatprep.subr.bf16.mxu1 %v12153_v0  ;;  %8913 = vmatpush1.bf16.msra.mxu0 %v8912_v8 }
 0x291   : > { %2484 = vmatmul.mubr.f32.gmra.mrb[28].mxu0 %v10711_v44  ;;  %8914 = vmatprep.subr.bf16.mxu0 %v12153_v0  ;;  %v1013_v44 = vld [vmem:[#allocation2 + $0xba] sm:$0xff] }
 0x292   : > { %2488 = vmatprep.mubr.f32.mxu0 %v1010_v59  ;;  %v1028_v59 = vld [vmem:[#allocation2 + $0x132] sm:$0xff] }
 0x295   : > { %2489 = vmatmul.mubr.f32.gmra.mrb[30].mxu0 %v10721_v49  ;;  %v1015_v49 = vld [vmem:[#allocation2 + $0xca] sm:$0xff] }
 0x296   : > { %2493 = vmatprep.mubr.f32.mxu0 %v1011_v45  ;;  %v3272_v45 = vld [vmem:[#allocation2 + $0xe] sm:$0xff] }
 0x299   : > { %2494 = vmatmul.mubr.f32.gmra.mrb[32].mxu0 %v10731_v56  ;;  %v4198_v56 = vld [vmem:[#allocation7 + $0xd8] sm:$0xff] }
 0x29a   : > { %2498 = vmatprep.mubr.f32.mxu0 %v1012_v7  ;;  %v8915_v53 = vpack.c.bf16 %v4198_v56, %v4197_v14 }
 0x29c   : > { %8916 = vmatpush1.bf16.msra.mxu0 %v8915_v53 }
 0x29d   : > { %2499 = vmatmul.mubr.f32.gmra.mrb[34].mxu0 %v10740_v61  ;;  %v4227_v61 = vld [vmem:[#allocation7 + $0x1c0] sm:$0xff]  ;;  %8917 = vmatprep.subr.bf16.mxu0 %v12153_v0 }
 0x29e   : > { %2503 = vmatprep.mubr.f32.mxu0 %v1013_v44 }
 0x2a1   : > { %2504 = vmatmul.mubr.f32.gmra.mrb[36].mxu0 %v10749_v5  ;;  %v4199_v5 = vld [vmem:[#allocation7 + $0xe0] sm:$0xff] }
 0x2a2   : > { %2508 = vmatprep.mubr.f32.mxu0 %v1014_v9  ;;  %v8918_v23 = vpack.c.bf16 %v4200_v21, %v4199_v5 }
 0x2a4   : > { %8919 = vmatpush1.bf16.msra.mxu0 %v8918_v23  ;;  %v4300_v23 = vld [vmem:[#allocation7 + $0x408] sm:$0xff] }
 0x2a5   : > { %2509 = vmatmul.mubr.f32.gmra.mrb[38].mxu0 %v10758_v12  ;;  %v8960_v12 = vpack.c.bf16 %v4228_v16, %v4227_v61  ;;  %8920 = vmatprep.subr.bf16.mxu0 %v12153_v0 }
 0x2a6   : > { %2513 = vmatprep.mubr.f32.mxu0 %v1015_v49 }
 0x2a7   : > { %8961 = vmatpush1.bf16.msra.mxu1 %v8960_v12 }
 0x2a8   : > { %8962 = vmatprep.subr.bf16.mxu1 %v12153_v0  ;;  %8922 = vmatpush1.bf16.msra.mxu0 %v8921_v29 }
 0x2a9   : > { %2514 = vmatmul.mubr.f32.gmra.mrb[40].mxu0 %v10767_v19  ;;  %v10901_v19 = vpop.f32.mrb[1].mxu1 }
 0x2aa   : > { %2518 = vmatprep.mubr.f32.mxu0 %v1016_v10  ;;  %v10906_v37 = vpop.f32.mrb[2].mxu1 }
 0x2ab   : > { %v10909_v6 = vpop.f32.mrb[3].mxu1 }
 0x2ac   : > { %v10914_v11 = vpop.f32.mrb[4].mxu1 }
 0x2ad   : > { %2519 = vmatmul.mubr.f32.gmra.mrb[42].mxu0 %v10776_v24  ;;  %v4229_v24 = vld [vmem:[#allocation7 + $0x1d0] sm:$0xff]  ;;  %v10917_v48 = vpop.f32.mrb[5].mxu1 }
 0x2ae   : > { %2523 = vmatprep.mubr.f32.mxu0 %v1017_v17  ;;  %v8963_v28 = vpack.c.bf16 %v4230_v57, %v4229_v24  ;;  %v10922_v51 = vpop.f32.mrb[6].mxu1 }
 0x2af   : > { %v10924_v54 = vpop.f32.mrb[7].mxu1 }
 0x2b0   : > { %8964 = vmatpush1.bf16.msra.mxu1 %v8963_v28  ;;  %v10928_v58 = vpop.f32.mrb[8].mxu1  ;;  %v4302_v28 = vld [vmem:[#allocation7 + $0x418] sm:$0xff] }
 0x2b1   : > { %2524 = vmatmul.mubr.f32.gmra.mrb[44].mxu0 %v10785_v34  ;;  %8965 = vmatprep.subr.bf16.mxu1 %v12153_v0  ;;  %v4231_v34 = vld [vmem:[#allocation7 + $0x1e0] sm:$0xff] }
 0x2b2   : > { %2528 = vmatprep.mubr.f32.mxu0 %v1018_v20  ;;  %v8966_v40 = vpack.c.bf16 %v4232_v39, %v4231_v34  ;;  %v4299_v20 = vld [vmem:[#allocation7 + $0x400] sm:$0xff] }
 0x2b3   : > { %v9067_v57 = vpack.c.bf16 %v4300_v23, %v4299_v20  ;;  %v4307_v20 = vld [vmem:[#allocation7 + $0x440] sm:$0xff] }
 0x2b4   : > { %8967 = vmatpush1.bf16.msra.mxu1 %v8966_v40 }
 0x2b5   : > { %2529 = vmatmul.mubr.f32.gmra.mrb[46].mxu0 %v10794_v38  ;;  %8968 = vmatprep.subr.bf16.mxu1 %v12153_v0  ;;  %v1021_v38 = vld [vmem:[#allocation2 + $0xfa] sm:$0xff] }
 0x2b6   : > { %2533 = vmatprep.mubr.f32.mxu0 %v1019_v35  ;;  %9068 = vmatprep.subr.bf16.mxu0 %v9067_v57  ;;  %v9071_v35 = vpack.c.bf16 %v4302_v28, %v4301_v27 }
 0x2b8   : > { %8970 = vmatpush1.bf16.msra.mxu1 %v8969_v33 }
 0x2b9   : > { %2534 = vmatmul.mubr.f32.gmra.mrb[48].mxu0 %v10803_v47  ;;  %8971 = vmatprep.subr.bf16.mxu1 %v12153_v0  ;;  %v1023_v47 = vld [vmem:[#allocation2 + $0x10a] sm:$0xff] }
 0x2ba   : > { %2538 = vmatprep.mubr.f32.mxu0 %v1020_v42  ;;  %v4303_v42 = vld [vmem:[#allocation7 + $0x420] sm:$0xff] }
 0x2bb   : > { %v9075_v33 = vpack.c.bf16 %v4304_v43, %v4303_v42  ;;  %v4236_v42 = vld [vmem:[#allocation7 + $0x208] sm:$0xff]  ;;  %v11005_v43 = vpop.permute.xlu1 %2959 }
 0x2bd   : > { %2539 = vmatmul.mubr.f32.gmra.mrb[50].mxu0 %v10812_v52  ;;  %v1025_v52 = vld [vmem:[#allocation2 + $0x11a] sm:$0xff] }
 0x2be   : > { %2543 = vmatprep.mubr.f32.mxu0 %v1021_v38 }
 0x2c1   : > { %2544 = vmatmul.mubr.f32.gmra.mrb[52].mxu0 %v10821_v62  ;;  %v10930_v62 = vpop.f32.mrb[9].mxu1 }
 0x2c2   : > { %2548 = vmatprep.mubr.f32.mxu0 %v1022_v50  ;;  %v10934_v41 = vpop.f32.mrb[10].mxu1 }
 0x2c5   : > { %2549 = vmatmul.mubr.f32.gmra.mrb[54].mxu0 %v10827_v3  ;;  %v1027_v3 = vld [vmem:[#allocation2 + $0x12a] sm:$0xff] }
 0x2c6   : > { %2553 = vmatprep.mubr.f32.mxu0 %v1023_v47  ;;  %v10991_v47 = vpop.permute.xlu0 %2949 }
 0x2c9   : > { %2554 = vmatmul.mubr.f32.gmra.mrb[56].mxu0 %v10833_v13  ;;  %v10936_v13 = vpop.f32.mrb[11].mxu1 }
 0x2ca   : > { %2558 = vmatprep.mubr.f32.mxu0 %v1024_v55  ;;  %v10940_v60 = vpop.f32.mrb[12].mxu1  ;;  %v11001_v27 = vpop.permute.xlu0 %2954 }
 0x2cb   : > { %v10942_v63 = vpop.f32.mrb[13].mxu1 }
 0x2cc   : > { %v10944_v30 = vpop.f32.mrb[14].mxu1 }
 0x2cd   : > { %2559 = vmatmul.mubr.f32.gmra.mrb[58].mxu0 %v10836_v15  ;;  %v1029_v15 = vld [vmem:[#allocation2 + $0x13a] sm:$0xff]  ;;  %v10946_v4 = vpop.f32.mrb[15].mxu1 }
 0x2ce   : > { %2563 = vmatprep.mubr.f32.mxu0 %v1025_v52  ;;  %v10948_v8 = vpop.f32.mrb[16].mxu1 }
 0x2cf   : > { %v10950_v7 = vpop.f32.mrb[17].mxu1 }
 0x2d0   : > { %v10952_v44 = vpop.f32.mrb[18].mxu1 }
 0x2d1   : > { %2564 = vmatmul.mubr.f32.gmra.mrb[60].mxu0 %v10839_v22  ;;  %v957_v22 = vld [vmem:[#allocation2 + $0x139] sm:$0xff]  ;;  %v10954_v9 = vpop.f32.mrb[19].mxu1 }
 0x2d2   : > { %2568 = vmatprep.mubr.f32.mxu0 %v1026_v25 }
 0x2d5   : > { %2569 = vmatmul.mubr.f32.gmra.mrb[62].mxu0 %v10842_v26  ;;  %v958_v26 = vld [vmem:[#allocation2 + $0x141] sm:$0xff] }
 0x2d6   : > { %2573 = vmatprep.mubr.f32.mxu0 %v1027_v3  ;;  %v4305_v3 = vld [vmem:[#allocation7 + $0x430] sm:$0xff] }
 0x2d9   : > { %2574 = vmatmul.mubr.f32.gmra.mrb[64].mxu0 %v10845_v32  ;;  %v3199_v32 = vld [vmem:[#allocation2 + $0x5] sm:$0xff] }
 0x2da   : > { %2578 = vmatprep.mubr.f32.mxu0 %v1028_v59  ;;  %v4306_v59 = vld [vmem:[#allocation7 + $0x438] sm:$0xff] }
 0x2dc   : > { %v10956_v49 = vpop.f32.mrb[20].mxu1 }
 0x2dd   : > { %2579 = vmatmul.mubr.f32.gmra.mrb[66].mxu0 %v10848_v36  ;;  %v3200_v36 = vld [vmem:[#allocation2 + $0xd] sm:$0xff]  ;;  %v10958_v10 = vpop.f32.mrb[21].mxu1 }
 0x2de   : > { %2583 = vmatprep.mubr.f32.mxu0 %v1029_v15  ;;  %v9079_v15 = vpack.c.bf16 %v4306_v59, %v4305_v3 }
 0x2e0   : > { %v10960_v14 = vpop.f32.mrb[22].mxu1 }
 0x2e1   : > { %2584 = vmatmul.mubr.f32.gmra.mrb[68].mxu0 %v957_v22  ;;  %v10962_v56 = vpop.f32.mrb[23].mxu1 }
 0x2e2   : > { %2588 = vmatprep.mubr.f32.mxu0 %v1030_v1 }
 0x2e5   : > { %2589 = vmatmul.mubr.f32.gmra.mrb[70].mxu0 %v958_v26 }
 0x2e6   : > { %4386 = vmatprep.mubr.f32.mxu0 %v3271_v2 }
 0x2e9   : > { %4387 = vmatmul.mubr.f32.vlgmr.msra.gmra.mrb[72].mxu0 %v3199_v32 }
 0x2ea   : > { %4391 = vmatprep.mubr.f32.mxu0 %v3272_v45  ;;  %9070 = vmatpush3.bf16.msra.mxu0 %v9067_v57  ;;  %v4308_v57 = vld [vmem:[#allocation7 + $0x448] sm:$0xff] }
 0x2eb   : > { %9072 = vmatprep.subr.bf16.mxu0 %v9071_v35 }
 0x2ed   : > { %4392 = vmatmul.mubr.f32.gmra.mrb[74].mxu0 %v3200_v36  ;;  %v10964_v53 = vpop.f32.mrb[24].mxu1 }
 0x2ee   : > { %v10966_v17 = vpop.f32.mrb[25].mxu1  ;;  %9074 = vmatpush3.bf16.msra.mxu0 %v9071_v35  ;;  %v9083_v35 = vpack.c.bf16 %v4308_v57, %v4307_v20 }
 0x2ef   : > { %9076 = vmatprep.subr.bf16.mxu0 %v9075_v33 }
 0x2f1   : > { %v10968_v61 = vpop.f32.mrb[26].mxu1 }
 0x2f2   : > { %v10970_v16 = vpop.f32.mrb[27].mxu1  ;;  %9078 = vmatpush3.bf16.msra.mxu0 %v9075_v33 }
 0x2f3   : > { %9080 = vmatprep.subr.bf16.mxu0 %v9079_v15 }
 0x2f6   : > { %9082 = vmatpush3.bf16.msra.mxu0 %v9079_v15 }
 0x2f7   : > { %9084 = vmatprep.subr.bf16.mxu0 %v9083_v35 }
 0x2f9   : > { %v10972_v5 = vpop.f32.mrb[28].mxu1 }
 0x2fa   : > { %v10974_v12 = vpop.f32.mrb[29].mxu1  ;;  %9086 = vmatpush3.bf16.msra.mxu0 %v9083_v35  ;;  %v11011_v35 = vpop.permute.xlu1 %2964 }
 0x2fd   : > { %v10976_v21 = vpop.f32.mrb[30].mxu1 }
 0x2fe   : > { %v10978_v24 = vpop.f32.mrb[31].mxu1 }
 0x305   : > { %v10986_v40 = vpop.f32.mrb[32].mxu1 }
 0x306   : > { %v10988_v46 = vpop.f32.mrb[33].mxu1 }
 0x309   : > { %v10997_v36 = vpop.f32.mrb[34].mxu1 }
 0x30a   : > { %v10999_v23 = vpop.f32.mrb[35].mxu1 }
 0x32c   : > { %v2415_v29 = vpop.f32.mrb[0].mxu0 }
 0x32d   : > { %v2417_v34 = vpop.f32.mrb[1].mxu0  ;;  %v9355_v39 = vadd.f32 %v10983_v31, %v2415_v29 }
 0x32f   : > { %v2661_v38 = vadd.f32 %v9355_v39, %v10901_v19  ;;  %v4235_v39 = vld [vmem:[#allocation7 + $0x200] sm:$0xff] }
 0x330   : > { %v2420_v50 = vpop.f32.mrb[2].mxu0 }
 0x331   : > { %vm2839_vm1 = vcmp.ge.f32.partialorder %v2661_v38, 0.0  ;;  %v2875_v55 = vmul.f32 0.2, %v2661_v38  ;;  %v9356_v52 = vadd.f32 %v10983_v31, %v2420_v50  ;;  %v2422_v25 = vpop.f32.mrb[3].mxu0 }
 0x333   : > { %v2911_v22 = vsel %vm2839_vm1, %v2661_v38, %v2875_v55  ;;  %v2666_v1 = vadd.f32 %v9356_v52, %v10899_v18  ;;  %v4309_v55 = vld [vmem:[#allocation7 + $0x450] sm:$0xff]  ;;  %v4310_v52 = vld [vmem:[#allocation7 + $0x458] sm:$0xff] }
 0x334   : > { %v3127_v26 = vmul.f32 %v10991_v47, %v2911_v22  ;;  %v2425_v2 = vpop.f32.mrb[4].mxu0  ;;  %v9087_v25 = vpack.c.bf16 %v4310_v52, %v4309_v55  ;;  %v3343_v22 = vld [vmem:[#allocation2 + $0x7] sm:$0xff]  ;;  %v4239_v55 = vld [vmem:[#allocation7 + $0x220] sm:$0xff]  ;;  %v4240_v52 = vld [vmem:[#allocation7 + $0x228] sm:$0xff] }
 0x335   : > { %vm2840_vm2 = vcmp.ge.f32.partialorder %v2666_v1, 0.0  ;;  %v2876_v19 = vmul.f32 0.2, %v2666_v1  ;;  %v2427_v32 = vpop.f32.mrb[5].mxu0  ;;  %v9357_v45 = vadd.f32 %v10983_v31, %v2425_v2  ;;  %v4238_v2 = vld [vmem:[#allocation7 + $0x218] sm:$0xff] }
 0x336   : > { %3163 = vst [vmem:[#allocation2 + $0x18] sm:$0xff] %v3127_v26  ;;  %v4237_v26 = vld [vmem:[#allocation7 + $0x210] sm:$0xff]  ;;  %9088 = vmatprep.subr.bf16.mxu0 %v9087_v25 }
 0x337   : > { %v2912_v18 = vsel %vm2840_vm2, %v2666_v1, %v2876_v19  ;;  %v2671_v28 = vadd.f32 %v9357_v45, %v10909_v6  ;;  %v8972_v1 = vpack.c.bf16 %v4236_v42, %v4235_v39  ;;  %9090 = vmatpush3.bf16.msra.mxu0 %v9087_v25  ;;  %v4313_v25 = vld [vmem:[#allocation7 + $0x470] sm:$0xff] }
 0x338   : > { %v3128_v29 = vmul.f32 %v11001_v27, %v2912_v18  ;;  %v2430_v34 = vpop.f32.mrb[6].mxu0 }
 0x339   : > { %vm2841_vm3 = vcmp.ge.f32.partialorder %v2671_v28, 0.0  ;;  %v2877_v33 = vmul.f32 0.2, %v2671_v28  ;;  %v9358_v38 = vadd.f32 %v10983_v31, %v2430_v34  ;;  %v2432_v50 = vpop.f32.mrb[7].mxu0 }
 0x33a   : > { %3164 = vst [vmem:[#allocation2 + $0x20] sm:$0xff] %v3128_v29  ;;  %v8975_v50 = vpack.c.bf16 %v4238_v2, %v4237_v26  ;;  %v4314_v2 = vld [vmem:[#allocation7 + $0x478] sm:$0xff] }
 0x33b   : > { %v2913_v6 = vsel %vm2841_vm3, %v2671_v28, %v2877_v33  ;;  %v2676_v3 = vadd.f32 %v9358_v38, %v10906_v37  ;;  %v4311_v37 = vld [vmem:[#allocation7 + $0x460] sm:$0xff]  ;;  %v4312_v28 = vld [vmem:[#allocation7 + $0x468] sm:$0xff] }
 0x33c   : > { %v3129_v59 = vmul.f32 %v11005_v43, %v2913_v6  ;;  %v2435_v15 = vpop.f32.mrb[8].mxu0  ;;  %v9091_v39 = vpack.c.bf16 %v4312_v28, %v4311_v37  ;;  %v3344_v38 = vld [vmem:[#allocation2 + $0xf] sm:$0xff]  ;;  %v9095_v28 = vpack.c.bf16 %v4314_v2, %v4313_v25 }
 0x33d   : > { %vm2842_vm4 = vcmp.ge.f32.partialorder %v2676_v3, 0.0  ;;  %v2878_v19 = vmul.f32 0.2, %v2676_v3  ;;  %v9359_v32 = vadd.f32 %v10983_v31, %v2435_v15  ;;  %v2437_v45 = vpop.f32.mrb[9].mxu0  ;;  %v3273_v20 = vld [vmem:[#allocation2 + $0x16] sm:$0xff]  ;;  %v4242_v37 = vld [vmem:[#allocation7 + $0x238] sm:$0xff] }
 0x33e   : > { %v3415_v57 = vld [vmem:[#allocation2 + $0x17] sm:$0xff]  ;;  %3165 = vst [vmem:[#allocation2 + $0x28] sm:$0xff] %v3129_v59  ;;  %4396 = vmatprep.mubr.f32.mxu0 %v3273_v20  ;;  %9092 = vmatprep.subr.bf16.mxu0 %v9091_v39  ;;  %v8978_v20 = vpack.c.bf16 %v4240_v52, %v4239_v55 }
 0x33f   : > { %4631 = vmatprep.mubr.f32.mxu1 %v3415_v57  ;;  %v3201_v18 = vld [vmem:[#allocation2 + $0x15] sm:$0xff]  ;;  %v2914_v29 = vsel %vm2842_vm4, %v2676_v3, %v2878_v19  ;;  %v2681_v34 = vadd.f32 %v9359_v32, %v10917_v48  ;;  %9094 = vmatpush3.bf16.msra.mxu0 %v9091_v39 }
 0x340   : > { %4397 = vmatmul.mubr.f32.gmra.mrb[76].mxu0 %v3201_v18  ;;  %4632 = vmatmul.mubr.f32.vlgmr.msra.gmra.mrb[36].mxu1 %v3343_v22  ;;  %v3130_v42 = vmul.f32 %v11011_v35, %v2914_v29  ;;  %v2440_v33 = vpop.f32.mrb[10].mxu0  ;;  %v11017_v22 = vpop.permute.xlu0 %2969  ;;  %v4241_v18 = vld [vmem:[#allocation7 + $0x230] sm:$0xff] }
 0x341   : > { %8973 = vmatpush1.bf16.msra.mxu1 %v8972_v1  ;;  %vm2843_vm5 = vcmp.ge.f32.partialorder %v2681_v34, 0.0  ;;  %v2879_v6 = vmul.f32 0.2, %v2681_v34  ;;  %v9360_v59 = vadd.f32 %v10983_v31, %v2440_v33  ;;  %v2442_v15 = vpop.f32.mrb[11].mxu0  ;;  %v3274_v3 = vld [vmem:[#allocation2 + $0x1e] sm:$0xff]  ;;  %9096 = vmatprep.subr.bf16.mxu0 %v9095_v28 }
 0x342   : > { %v3416_v19 = vld [vmem:[#allocation2 + $0x1f] sm:$0xff]  ;;  %8974 = vmatprep.subr.bf16.mxu1 %v12153_v0  ;;  %3166 = vst [vmem:[#allocation2 + $0x30] sm:$0xff] %v3130_v42  ;;  %4401 = vmatprep.mubr.f32.mxu0 %v3274_v3  ;;  %v4243_v15 = vld [vmem:[#allocation7 + $0x240] sm:$0xff] }
 0x343   : > { %4636 = vmatprep.mubr.f32.mxu1 %v3416_v19  ;;  %v3202_v48 = vld [vmem:[#allocation2 + $0x1d] sm:$0xff]  ;;  %v2915_v1 = vsel %vm2843_vm5, %v2681_v34, %v2879_v6  ;;  %v2686_v26 = vadd.f32 %v9360_v59, %v10914_v11  ;;  %v11023_v6 = vpop.permute.xlu1 %2974  ;;  %v8981_v59 = vpack.c.bf16 %v4242_v37, %v4241_v18  ;;  %9098 = vmatpush3.bf16.msra.mxu0 %v9095_v28 }
 0x344   : > { %4402 = vmatmul.mubr.f32.gmra.mrb[78].mxu0 %v3202_v48  ;;  %4637 = vmatmul.mubr.f32.gmra.mrb[38].mxu1 %v3344_v38  ;;  %v3131_v32 = vmul.f32 %v11017_v22, %v2915_v1  ;;  %v2445_v45 = vpop.f32.mrb[12].mxu0  ;;  %v4244_v3 = vld [vmem:[#allocation7 + $0x248] sm:$0xff] }
 0x345   : > { %8976 = vmatpush1.bf16.msra.mxu1 %v8975_v50  ;;  %vm2844_vm6 = vcmp.ge.f32.partialorder %v2686_v26, 0.0  ;;  %v2880_v29 = vmul.f32 0.2, %v2686_v26  ;;  %v9361_v42 = vadd.f32 %v10983_v31, %v2445_v45  ;;  %v2447_v34 = vpop.f32.mrb[13].mxu0  ;;  %v3275_v33 = vld [vmem:[#allocation2 + $0x26] sm:$0xff]  ;;  %v8984_v37 = vpack.c.bf16 %v4244_v3, %v4243_v15  ;;  %9243 = vmatprep.subr.bf16.mxu0 %v12153_v0  ;;  %v4247_v3 = vld [vmem:[#allocation7 + $0x260] sm:$0xff] }
 0x346   : > { %v3417_v11 = vld [vmem:[#allocation2 + $0x27] sm:$0xff]  ;;  %8977 = vmatprep.subr.bf16.mxu1 %v12153_v0  ;;  %3167 = vst [vmem:[#allocation2 + $0x38] sm:$0xff] %v3131_v32  ;;  %4406 = vmatprep.mubr.f32.mxu0 %v3275_v33 }
 0x347   : > { %4641 = vmatprep.mubr.f32.mxu1 %v3417_v11  ;;  %v3203_v38 = vld [vmem:[#allocation2 + $0x25] sm:$0xff]  ;;  %v2916_v50 = vsel %vm2844_vm6, %v2686_v26, %v2880_v29  ;;  %v2691_v55 = vadd.f32 %v9361_v42, %v10924_v54 }
 0x348   : > { %4407 = vmatmul.mubr.f32.gmra.mrb[80].mxu0 %v3203_v38  ;;  %4642 = vmatmul.mubr.f32.gmra.mrb[40].mxu1 %v3415_v57  ;;  %v3132_v39 = vmul.f32 %v11023_v6, %v2916_v50  ;;  %v2450_v52 = vpop.f32.mrb[14].mxu0  ;;  %v11029_v57 = vpop.permute.xlu0 %2979  ;;  %v4245_v29 = vld [vmem:[#allocation7 + $0x250] sm:$0xff]  ;;  %v4246_v42 = vld [vmem:[#allocation7 + $0x258] sm:$0xff] }
 0x349   : > { %8979 = vmatpush1.bf16.msra.mxu1 %v8978_v20  ;;  %vm2845_vm7 = vcmp.ge.f32.partialorder %v2691_v55, 0.0  ;;  %v2881_v48 = vmul.f32 0.2, %v2691_v55  ;;  %v9362_v1 = vadd.f32 %v10983_v31, %v2450_v52  ;;  %v2452_v25 = vpop.f32.mrb[15].mxu0  ;;  %v3276_v2 = vld [vmem:[#allocation2 + $0x2e] sm:$0xff]  ;;  %12208 = vst [vmem:[#allocation18_spill] sm:$0xff] %v11029_v57  ;;  %v8987_v15 = vpack.c.bf16 %v4246_v42, %v4245_v29 }
 0x34a   : > { %v3418_v32 = vld [vmem:[#allocation2 + $0x2f] sm:$0xff]  ;;  %8980 = vmatprep.subr.bf16.mxu1 %v12153_v0  ;;  %3168 = vst [vmem:[#allocation2 + $0x40] sm:$0xff] %v3132_v39  ;;  %4411 = vmatprep.mubr.f32.mxu0 %v3276_v2  ;;  %v4249_v42 = vld [vmem:[#allocation7 + $0x270] sm:$0xff] }
 0x34b   : > { %4646 = vmatprep.mubr.f32.mxu1 %v3418_v32  ;;  %v3204_v54 = vld [vmem:[#allocation2 + $0x2d] sm:$0xff]  ;;  %v2917_v26 = vsel %vm2845_vm7, %v2691_v55, %v2881_v48  ;;  %v2696_v45 = vadd.f32 %v9362_v1, %v10922_v51  ;;  %v4248_v48 = vld [vmem:[#allocation7 + $0x268] sm:$0xff] }
 0x34c   : > { %4412 = vmatmul.mubr.f32.gmra.mrb[82].mxu0 %v3204_v54  ;;  %4647 = vmatmul.mubr.f32.gmra.mrb[42].mxu1 %v3416_v19  ;;  %v3133_v20 = vmul.f32 %v11029_v57, %v2917_v26  ;;  %v2455_v18 = vpop.f32.mrb[16].mxu0  ;;  %v11036_v19 = vpop.permute.xlu1 %2984  ;;  %v8990_v29 = vpack.c.bf16 %v4248_v48, %v4247_v3  ;;  %v4251_v48 = vld [vmem:[#allocation7 + $0x280] sm:$0xff] }
 0x34d   : > { %8982 = vmatpush1.bf16.msra.mxu1 %v8981_v59  ;;  %vm2846_vm8 = vcmp.ge.f32.partialorder %v2696_v45, 0.0  ;;  %v2882_v28 = vmul.f32 0.2, %v2696_v45  ;;  %v9363_v34 = vadd.f32 %v10983_v31, %v2455_v18  ;;  %v2457_v33 = vpop.f32.mrb[17].mxu0  ;;  %v3277_v38 = vld [vmem:[#allocation2 + $0x36] sm:$0xff]  ;;  %12209 = vst [vmem:[#allocation19_spill] sm:$0xff] %v11036_v19 }
 0x34e   : > { %v3419_v50 = vld [vmem:[#allocation2 + $0x37] sm:$0xff]  ;;  %8983 = vmatprep.subr.bf16.mxu1 %v12153_v0  ;;  %3169 = vst [vmem:[#allocation2 + $0x48] sm:$0xff] %v3133_v20  ;;  %4416 = vmatprep.mubr.f32.mxu0 %v3277_v38 }
 0x34f   : > { %4651 = vmatprep.mubr.f32.mxu1 %v3419_v50  ;;  %v3205_v51 = vld [vmem:[#allocation2 + $0x35] sm:$0xff]  ;;  %v2918_v55 = vsel %vm2846_vm8, %v2696_v45, %v2882_v28  ;;  %v2701_v39 = vadd.f32 %v9363_v34, %v10930_v62  ;;  %v4250_v28 = vld [vmem:[#allocation7 + $0x278] sm:$0xff] }
 0x350   : > { %4417 = vmatmul.mubr.f32.gmra.mrb[84].mxu0 %v3205_v51  ;;  %4652 = vmatmul.mubr.f32.gmra.mrb[44].mxu1 %v3417_v11  ;;  %v3134_v52 = vmul.f32 %v11036_v19, %v2918_v55  ;;  %v2460_v59 = vpop.f32.mrb[18].mxu0  ;;  %v11042_v11 = vpop.permute.xlu0 %2989  ;;  %v8993_v3 = vpack.c.bf16 %v4250_v28, %v4249_v42  ;;  %v4253_v28 = vld [vmem:[#allocation7 + $0x290] sm:$0xff] }
 0x351   : > { %8985 = vmatpush1.bf16.msra.mxu1 %v8984_v37  ;;  %vm2847_vm9 = vcmp.ge.f32.partialorder %v2701_v39, 0.0  ;;  %v2883_v1 = vmul.f32 0.2, %v2701_v39  ;;  %v9364_v25 = vadd.f32 %v10983_v31, %v2460_v59  ;;  %v2462_v2 = vpop.f32.mrb[19].mxu0  ;;  %v3278_v54 = vld [vmem:[#allocation2 + $0x3e] sm:$0xff]  ;;  %12210 = vst [vmem:[#allocation20_spill] sm:$0xff] %v11042_v11 }
 0x352   : > { %v3420_v26 = vld [vmem:[#allocation2 + $0x3f] sm:$0xff]  ;;  %8986 = vmatprep.subr.bf16.mxu1 %v12153_v0  ;;  %3170 = vst [vmem:[#allocation2 + $0x50] sm:$0xff] %v3134_v52  ;;  %4421 = vmatprep.mubr.f32.mxu0 %v3278_v54 }
 0x353   : > { %4656 = vmatprep.mubr.f32.mxu1 %v3420_v26  ;;  %v3206_v62 = vld [vmem:[#allocation2 + $0x3d] sm:$0xff]  ;;  %v2919_v45 = vsel %vm2847_vm9, %v2701_v39, %v2883_v1  ;;  %v2706_v20 = vadd.f32 %v9364_v25, %v10928_v58 }
 0x354   : > { %4422 = vmatmul.mubr.f32.gmra.mrb[86].mxu0 %v3206_v62  ;;  %4657 = vmatmul.mubr.f32.gmra.mrb[46].mxu1 %v3418_v32  ;;  %v3135_v18 = vmul.f32 %v11042_v11, %v2919_v45  ;;  %v2465_v37 = vpop.f32.mrb[20].mxu0  ;;  %v11048_v32 = vpop.permute.xlu1 %2994  ;;  %v4252_v1 = vld [vmem:[#allocation7 + $0x288] sm:$0xff]  ;;  %v6701_v11 = vld [vmem:[#allocation9 + $0x10] sm:$0xff] }
 0x355   : > { %8988 = vmatpush1.bf16.msra.mxu1 %v8987_v15  ;;  %vm2848_vm10 = vcmp.ge.f32.partialorder %v2706_v20, 0.0  ;;  %v2884_v34 = vmul.f32 0.2, %v2706_v20  ;;  %v9365_v33 = vadd.f32 %v10983_v31, %v2465_v37  ;;  %v2467_v38 = vpop.f32.mrb[21].mxu0  ;;  %v3279_v51 = vld [vmem:[#allocation2 + $0x46] sm:$0xff]  ;;  %12211 = vst [vmem:[#allocation21_spill] sm:$0xff] %v11048_v32  ;;  %v8996_v42 = vpack.c.bf16 %v4252_v1, %v4251_v48 }
 0x356   : > { %v3421_v55 = vld [vmem:[#allocation2 + $0x47] sm:$0xff]  ;;  %8989 = vmatprep.subr.bf16.mxu1 %v12153_v0  ;;  %3171 = vst [vmem:[#allocation2 + $0x58] sm:$0xff] %v3135_v18  ;;  %4426 = vmatprep.mubr.f32.mxu0 %v3279_v51  ;;  %v4255_v1 = vld [vmem:[#allocation7 + $0x2a0] sm:$0xff] }
 0x357   : > { %4661 = vmatprep.mubr.f32.mxu1 %v3421_v55  ;;  %v3207_v58 = vld [vmem:[#allocation2 + $0x45] sm:$0xff]  ;;  %v2920_v39 = vsel %vm2848_vm10, %v2706_v20, %v2884_v34  ;;  %v2711_v52 = vadd.f32 %v9365_v33, %v10936_v13 }
 0x358   : > { %4427 = vmatmul.mubr.f32.gmra.mrb[88].mxu0 %v3207_v58  ;;  %4662 = vmatmul.mubr.f32.gmra.mrb[48].mxu1 %v3419_v50  ;;  %v3136_v59 = vmul.f32 %v11048_v32, %v2920_v39  ;;  %v2470_v15 = vpop.f32.mrb[22].mxu0  ;;  %v11054_v50 = vpop.permute.xlu0 %2999  ;;  %v4254_v34 = vld [vmem:[#allocation7 + $0x298] sm:$0xff] }
 0x359   : > { %8991 = vmatpush1.bf16.msra.mxu1 %v8990_v29  ;;  %vm2849_vm11 = vcmp.ge.f32.partialorder %v2711_v52, 0.0  ;;  %v2885_v25 = vmul.f32 0.2, %v2711_v52  ;;  %v9366_v2 = vadd.f32 %v10983_v31, %v2470_v15  ;;  %v2472_v54 = vpop.f32.mrb[23].mxu0  ;;  %v3280_v62 = vld [vmem:[#allocation2 + $0x4e] sm:$0xff]  ;;  %12212 = vst [vmem:[#allocation22_spill] sm:$0xff] %v11054_v50  ;;  %v8999_v48 = vpack.c.bf16 %v4254_v34, %v4253_v28 }
 0x35a   : > { %v3422_v45 = vld [vmem:[#allocation2 + $0x4f] sm:$0xff]  ;;  %8992 = vmatprep.subr.bf16.mxu1 %v12153_v0  ;;  %3172 = vst [vmem:[#allocation2 + $0x60] sm:$0xff] %v3136_v59  ;;  %4431 = vmatprep.mubr.f32.mxu0 %v3280_v62  ;;  %v4257_v34 = vld [vmem:[#allocation7 + $0x2b0] sm:$0xff] }
 0x35b   : > { %4666 = vmatprep.mubr.f32.mxu1 %v3422_v45  ;;  %v3208_v13 = vld [vmem:[#allocation2 + $0x4d] sm:$0xff]  ;;  %v2921_v20 = vsel %vm2849_vm11, %v2711_v52, %v2885_v25  ;;  %v2716_v18 = vadd.f32 %v9366_v2, %v10934_v41  ;;  %v4256_v25 = vld [vmem:[#allocation7 + $0x2a8] sm:$0xff] }
 0x35c   : > { %4432 = vmatmul.mubr.f32.gmra.mrb[90].mxu0 %v3208_v13  ;;  %4667 = vmatmul.mubr.f32.gmra.mrb[50].mxu1 %v3420_v26  ;;  %v3137_v37 = vmul.f32 %v11054_v50, %v2921_v20  ;;  %v2475_v29 = vpop.f32.mrb[24].mxu0  ;;  %v11060_v26 = vpop.permute.xlu1 %3004  ;;  %v9002_v28 = vpack.c.bf16 %v4256_v25, %v4255_v1  ;;  %v4259_v25 = vld [vmem:[#allocation7 + $0x2c0] sm:$0xff] }
 0x35d   : > { %8994 = vmatpush1.bf16.msra.mxu1 %v8993_v3  ;;  %vm2850_vm12 = vcmp.ge.f32.partialorder %v2716_v18, 0.0  ;;  %v2886_v33 = vmul.f32 0.2, %v2716_v18  ;;  %v9367_v38 = vadd.f32 %v10983_v31, %v2475_v29  ;;  %v2477_v51 = vpop.f32.mrb[25].mxu0  ;;  %v3281_v58 = vld [vmem:[#allocation2 + $0x56] sm:$0xff]  ;;  %12213 = vst [vmem:[#allocation23_spill] sm:$0xff] %v11060_v26 }
 0x35e   : > { %v3423_v39 = vld [vmem:[#allocation2 + $0x57] sm:$0xff]  ;;  %8995 = vmatprep.subr.bf16.mxu1 %v12153_v0  ;;  %3173 = vst [vmem:[#allocation2 + $0x68] sm:$0xff] %v3137_v37  ;;  %4436 = vmatprep.mubr.f32.mxu0 %v3281_v58 }
 0x35f   : > { %4671 = vmatprep.mubr.f32.mxu1 %v3423_v39  ;;  %v3209_v41 = vld [vmem:[#allocation2 + $0x55] sm:$0xff]  ;;  %v2922_v52 = vsel %vm2850_vm12, %v2716_v18, %v2886_v33  ;;  %v2721_v59 = vadd.f32 %v9367_v38, %v10942_v63  ;;  %v4258_v33 = vld [vmem:[#allocation7 + $0x2b8] sm:$0xff] }
 0x360   : > { %4437 = vmatmul.mubr.f32.gmra.mrb[92].mxu0 %v3209_v41  ;;  %4672 = vmatmul.mubr.f32.gmra.mrb[52].mxu1 %v3421_v55  ;;  %v3138_v15 = vmul.f32 %v11060_v26, %v2922_v52  ;;  %v2480_v3 = vpop.f32.mrb[26].mxu0  ;;  %v11066_v55 = vpop.permute.xlu0 %3009  ;;  %v9005_v1 = vpack.c.bf16 %v4258_v33, %v4257_v34  ;;  %v4261_v33 = vld [vmem:[#allocation7 + $0x2d0] sm:$0xff] }
 0x361   : > { %8997 = vmatpush1.bf16.msra.mxu1 %v8996_v42  ;;  %vm2851_vm13 = vcmp.ge.f32.partialorder %v2721_v59, 0.0  ;;  %v2887_v2 = vmul.f32 0.2, %v2721_v59  ;;  %v9368_v54 = vadd.f32 %v10983_v31, %v2480_v3  ;;  %v2482_v62 = vpop.f32.mrb[27].mxu0  ;;  %v3282_v13 = vld [vmem:[#allocation2 + $0x5e] sm:$0xff]  ;;  %12214 = vst [vmem:[#allocation24_spill] sm:$0xff] %v11066_v55 }
 0x362   : > { %v3424_v20 = vld [vmem:[#allocation2 + $0x5f] sm:$0xff]  ;;  %8998 = vmatprep.subr.bf16.mxu1 %v12153_v0  ;;  %3174 = vst [vmem:[#allocation2 + $0x70] sm:$0xff] %v3138_v15  ;;  %4441 = vmatprep.mubr.f32.mxu0 %v3282_v13 }
 0x363   : > { %4676 = vmatprep.mubr.f32.mxu1 %v3424_v20  ;;  %v3210_v63 = vld [vmem:[#allocation2 + $0x5d] sm:$0xff]  ;;  %v2923_v18 = vsel %vm2851_vm13, %v2721_v59, %v2887_v2  ;;  %v2726_v37 = vadd.f32 %v9368_v54, %v10940_v60 }
 0x364   : > { %4442 = vmatmul.mubr.f32.gmra.mrb[94].mxu0 %v3210_v63  ;;  %4677 = vmatmul.mubr.f32.gmra.mrb[54].mxu1 %v3422_v45  ;;  %v3139_v29 = vmul.f32 %v11066_v55, %v2923_v18  ;;  %v2485_v42 = vpop.f32.mrb[28].mxu0  ;;  %v11072_v45 = vpop.permute.xlu1 %3014  ;;  %v4260_v2 = vld [vmem:[#allocation7 + $0x2c8] sm:$0xff] }
 0x365   : > { %9000 = vmatpush1.bf16.msra.mxu1 %v8999_v48  ;;  %vm2852_vm14 = vcmp.ge.f32.partialorder %v2726_v37, 0.0  ;;  %v2888_v38 = vmul.f32 0.2, %v2726_v37  ;;  %v9369_v51 = vadd.f32 %v10983_v31, %v2485_v42  ;;  %v2487_v58 = vpop.f32.mrb[29].mxu0  ;;  %v3283_v41 = vld [vmem:[#allocation2 + $0x66] sm:$0xff]  ;;  %12215 = vst [vmem:[#allocation25_spill] sm:$0xff] %v11072_v45  ;;  %v9008_v34 = vpack.c.bf16 %v4260_v2, %v4259_v25 }
 0x366   : > { %v3425_v52 = vld [vmem:[#allocation2 + $0x67] sm:$0xff]  ;;  %9001 = vmatprep.subr.bf16.mxu1 %v12153_v0  ;;  %3175 = vst [vmem:[#allocation2 + $0x78] sm:$0xff] %v3139_v29  ;;  %4446 = vmatprep.mubr.f32.mxu0 %v3283_v41  ;;  %v4263_v2 = vld [vmem:[#allocation7 + $0x2e0] sm:$0xff] }
 0x367   : > { %4681 = vmatprep.mubr.f32.mxu1 %v3425_v52  ;;  %v3211_v60 = vld [vmem:[#allocation2 + $0x65] sm:$0xff]  ;;  %v2924_v59 = vsel %vm2852_vm14, %v2726_v37, %v2888_v38  ;;  %v2731_v15 = vadd.f32 %v9369_v51, %v10946_v4 }
 0x368   : > { %4447 = vmatmul.mubr.f32.gmra.mrb[96].mxu0 %v3211_v60  ;;  %4682 = vmatmul.mubr.f32.gmra.mrb[56].mxu1 %v3423_v39  ;;  %v3140_v3 = vmul.f32 %v11072_v45, %v2924_v59  ;;  %v2490_v48 = vpop.f32.mrb[30].mxu0  ;;  %v11078_v39 = vpop.permute.xlu0 %3019  ;;  %v4262_v38 = vld [vmem:[#allocation7 + $0x2d8] sm:$0xff] }
 0x369   : > { %9003 = vmatpush1.bf16.msra.mxu1 %v9002_v28  ;;  %vm2853_vm15 = vcmp.ge.f32.partialorder %v2731_v15, 0.0  ;;  %v2889_v54 = vmul.f32 0.2, %v2731_v15  ;;  %v9370_v62 = vadd.f32 %v10983_v31, %v2490_v48  ;;  %v2492_v13 = vpop.f32.mrb[31].mxu0  ;;  %v3284_v63 = vld [vmem:[#allocation2 + $0x6e] sm:$0xff]  ;;  %12216 = vst [vmem:[#allocation26_spill] sm:$0xff] %v11078_v39  ;;  %v9011_v25 = vpack.c.bf16 %v4262_v38, %v4261_v33 }
 0x36a   : > { %v3426_v18 = vld [vmem:[#allocation2 + $0x6f] sm:$0xff]  ;;  %9004 = vmatprep.subr.bf16.mxu1 %v12153_v0  ;;  %3176 = vst [vmem:[#allocation2 + $0x80] sm:$0xff] %v3140_v3  ;;  %4451 = vmatprep.mubr.f32.mxu0 %v3284_v63  ;;  %v4265_v38 = vld [vmem:[#allocation7 + $0x2f0] sm:$0xff] }
 0x36b   : > { %4686 = vmatprep.mubr.f32.mxu1 %v3426_v18  ;;  %v3212_v4 = vld [vmem:[#allocation2 + $0x6d] sm:$0xff]  ;;  %v2925_v37 = vsel %vm2853_vm15, %v2731_v15, %v2889_v54  ;;  %v2736_v29 = vadd.f32 %v9370_v62, %v10944_v30  ;;  %v4264_v54 = vld [vmem:[#allocation7 + $0x2e8] sm:$0xff] }
 0x36c   : > { %4452 = vmatmul.mubr.f32.gmra.mrb[98].mxu0 %v3212_v4  ;;  %4687 = vmatmul.mubr.f32.gmra.mrb[58].mxu1 %v3424_v20  ;;  %v3141_v42 = vmul.f32 %v11078_v39, %v2925_v37  ;;  %v2495_v28 = vpop.f32.mrb[32].mxu0  ;;  %v11084_v20 = vpop.permute.xlu1 %3024  ;;  %v9014_v33 = vpack.c.bf16 %v4264_v54, %v4263_v2 }
 0x36d   : > { %9006 = vmatpush1.bf16.msra.mxu1 %v9005_v1  ;;  %vm2854_vm0 = vcmp.ge.f32.partialorder %v2736_v29, 0.0  ;;  %v2890_v51 = vmul.f32 0.2, %v2736_v29  ;;  %v9371_v58 = vadd.f32 %v10983_v31, %v2495_v28  ;;  %v2497_v41 = vpop.f32.mrb[33].mxu0  ;;  %v3285_v60 = vld [vmem:[#allocation2 + $0x76] sm:$0xff]  ;;  %12217 = vst [vmem:[#allocation27_spill] sm:$0xff] %v11084_v20 }
 0x36e   : > { %v3427_v59 = vld [vmem:[#allocation2 + $0x77] sm:$0xff]  ;;  %9007 = vmatprep.subr.bf16.mxu1 %v12153_v0  ;;  %3177 = vst [vmem:[#allocation2 + $0x88] sm:$0xff] %v3141_v42  ;;  %4456 = vmatprep.mubr.f32.mxu0 %v3285_v60 }
 0x36f   : > { %4691 = vmatprep.mubr.f32.mxu1 %v3427_v59  ;;  %v3213_v30 = vld [vmem:[#allocation2 + $0x75] sm:$0xff]  ;;  %v2926_v15 = vsel %vm2854_vm0, %v2736_v29, %v2890_v51  ;;  %v2741_v3 = vadd.f32 %v9371_v58, %v10950_v7  ;;  %v4266_v51 = vld [vmem:[#allocation7 + $0x2f8] sm:$0xff] }
 0x370   : > { %4457 = vmatmul.mubr.f32.gmra.mrb[100].mxu0 %v3213_v30  ;;  %4692 = vmatmul.mubr.f32.gmra.mrb[60].mxu1 %v3425_v52  ;;  %v3142_v48 = vmul.f32 %v11084_v20, %v2926_v15  ;;  %v2500_v1 = vpop.f32.mrb[34].mxu0  ;;  %v11090_v52 = vpop.permute.xlu0 %3029  ;;  %v9017_v2 = vpack.c.bf16 %v4266_v51, %v4265_v38 }
 0x371   : > { %9009 = vmatpush1.bf16.msra.mxu1 %v9008_v34  ;;  %vm2855_vm1 = vcmp.ge.f32.partialorder %v2741_v3, 0.0  ;;  %v2891_v62 = vmul.f32 0.2, %v2741_v3  ;;  %v9372_v13 = vadd.f32 %v10983_v31, %v2500_v1  ;;  %v2502_v63 = vpop.f32.mrb[35].mxu0  ;;  %v3286_v4 = vld [vmem:[#allocation2 + $0x7e] sm:$0xff]  ;;  %12218 = vst [vmem:[#allocation28_spill] sm:$0xff] %v11090_v52 }
 0x372   : > { %v3428_v37 = vld [vmem:[#allocation2 + $0x7f] sm:$0xff]  ;;  %9010 = vmatprep.subr.bf16.mxu1 %v12153_v0  ;;  %3178 = vst [vmem:[#allocation2 + $0x90] sm:$0xff] %v3142_v48  ;;  %4461 = vmatprep.mubr.f32.mxu0 %v3286_v4 }
 0x373   : > { %4696 = vmatprep.mubr.f32.mxu1 %v3428_v37  ;;  %v3214_v7 = vld [vmem:[#allocation2 + $0x7d] sm:$0xff]  ;;  %v2927_v29 = vsel %vm2855_vm1, %v2741_v3, %v2891_v62  ;;  %v2746_v42 = vadd.f32 %v9372_v13, %v10948_v8 }
 0x374   : > { %4462 = vmatmul.mubr.f32.gmra.mrb[102].mxu0 %v3214_v7  ;;  %4697 = vmatmul.mubr.f32.gmra.mrb[62].mxu1 %v3426_v18  ;;  %v3143_v28 = vmul.f32 %v11090_v52, %v2927_v29  ;;  %v2505_v34 = vpop.f32.mrb[36].mxu0  ;;  %v11096_v18 = vpop.permute.xlu1 %3034 }
 0x375   : > { %9012 = vmatpush1.bf16.msra.mxu1 %v9011_v25  ;;  %vm2856_vm2 = vcmp.ge.f32.partialorder %v2746_v42, 0.0  ;;  %v2892_v58 = vmul.f32 0.2, %v2746_v42  ;;  %v9373_v41 = vadd.f32 %v10983_v31, %v2505_v34  ;;  %v2507_v60 = vpop.f32.mrb[37].mxu0  ;;  %v3287_v30 = vld [vmem:[#allocation2 + $0x86] sm:$0xff]  ;;  %12219 = vst [vmem:[#allocation29_spill] sm:$0xff] %v11096_v18  ;;  %v11102_v7 = vpop.permute.xlu0 %3039 }
 0x376   : > { %v3429_v15 = vld [vmem:[#allocation2 + $0x87] sm:$0xff]  ;;  %9013 = vmatprep.subr.bf16.mxu1 %v12153_v0  ;;  %3179 = vst [vmem:[#allocation2 + $0x98] sm:$0xff] %v3143_v28  ;;  %4466 = vmatprep.mubr.f32.mxu0 %v3287_v30  ;;  %12220 = vst [vmem:[#allocation30_spill] sm:$0xff] %v11102_v7 }
 0x377   : > { %4701 = vmatprep.mubr.f32.mxu1 %v3429_v15  ;;  %v3215_v8 = vld [vmem:[#allocation2 + $0x85] sm:$0xff]  ;;  %v2928_v3 = vsel %vm2856_vm2, %v2746_v42, %v2892_v58  ;;  %v2751_v48 = vadd.f32 %v9373_v41, %v10954_v9 }
 0x378   : > { %4467 = vmatmul.mubr.f32.gmra.mrb[104].mxu0 %v3215_v8  ;;  %4702 = vmatmul.mubr.f32.gmra.mrb[64].mxu1 %v3427_v59  ;;  %v3144_v1 = vmul.f32 %v11096_v18, %v2928_v3  ;;  %v2510_v25 = vpop.f32.mrb[38].mxu0 }
 0x379   : > { %9015 = vmatpush1.bf16.msra.mxu1 %v9014_v33  ;;  %vm2857_vm3 = vcmp.ge.f32.partialorder %v2751_v48, 0.0  ;;  %v2893_v54 = vmul.f32 0.2, %v2751_v48  ;;  %v9374_v62 = vadd.f32 %v10983_v31, %v2510_v25  ;;  %v2512_v13 = vpop.f32.mrb[39].mxu0  ;;  %v3288_v63 = vld [vmem:[#allocation2 + $0x8e] sm:$0xff] }
 0x37a   : > { %v3430_v4 = vld [vmem:[#allocation2 + $0x8f] sm:$0xff]  ;;  %9016 = vmatprep.subr.bf16.mxu1 %v12153_v0  ;;  %3180 = vst [vmem:[#allocation2 + $0xa0] sm:$0xff] %v3144_v1  ;;  %4471 = vmatprep.mubr.f32.mxu0 %v3288_v63 }
 0x37b   : > { %4706 = vmatprep.mubr.f32.mxu1 %v3430_v4  ;;  %v3216_v9 = vld [vmem:[#allocation2 + $0x8d] sm:$0xff]  ;;  %v2929_v59 = vsel %vm2857_vm3, %v2751_v48, %v2893_v54  ;;  %v2756_v29 = vadd.f32 %v9374_v62, %v10952_v44  ;;  %v11108_v44 = vpop.permute.xlu1 %3044  ;;  %v11113_v62 = vpop.permute.xlu0 %3049 }
 0x37c   : > { %4472 = vmatmul.mubr.f32.gmra.mrb[106].mxu0 %v3216_v9  ;;  %4707 = vmatmul.mubr.f32.gmra.mrb[66].mxu1 %v3428_v37  ;;  %v3145_v42 = vmul.f32 %v11102_v7, %v2929_v59  ;;  %v2515_v28 = vpop.f32.mrb[40].mxu0  ;;  %12221 = vst [vmem:[#allocation31_spill] sm:$0xff] %v11108_v44  ;;  %12222 = vst [vmem:[#allocation32_spill] sm:$0xff] %v11113_v62 }
 0x37d   : > { %9018 = vmatpush1.bf16.msra.mxu1 %v9017_v2  ;;  %vm2858_vm4 = vcmp.ge.f32.partialorder %v2756_v29, 0.0  ;;  %v2894_v34 = vmul.f32 0.2, %v2756_v29  ;;  %v9375_v33 = vadd.f32 %v10983_v31, %v2515_v28  ;;  %v2517_v38 = vpop.f32.mrb[41].mxu0  ;;  %v3289_v51 = vld [vmem:[#allocation2 + $0x96] sm:$0xff] }
 0x37e   : > { %v3431_v58 = vld [vmem:[#allocation2 + $0x97] sm:$0xff]  ;;  %9019 = vmatprep.subr.bf16.mxu1 %v12153_v0  ;;  %3181 = vst [vmem:[#allocation2 + $0xa8] sm:$0xff] %v3145_v42  ;;  %4476 = vmatprep.mubr.f32.mxu0 %v3289_v51 }
 0x37f   : > { %4711 = vmatprep.mubr.f32.mxu1 %v3431_v58  ;;  %v3217_v41 = vld [vmem:[#allocation2 + $0x95] sm:$0xff]  ;;  %v2930_v37 = vsel %vm2858_vm4, %v2756_v29, %v2894_v34  ;;  %v2761_v60 = vadd.f32 %v9375_v33, %v10958_v10  ;;  %v11118_v33 = vpop.permute.xlu1 %3054 }
 0x380   : > { %4477 = vmatmul.mubr.f32.gmra.mrb[108].mxu0 %v3217_v41  ;;  %4712 = vmatmul.mubr.f32.gmra.mrb[68].mxu1 %v3429_v15  ;;  %v3146_v30 = vmul.f32 %v11108_v44, %v2930_v37  ;;  %v2520_v8 = vpop.f32.mrb[42].mxu0  ;;  %12223 = vst [vmem:[#allocation33_spill] sm:$0xff] %v11118_v33 }
 0x381   : > { %vm2859_vm5 = vcmp.ge.f32.partialorder %v2761_v60, 0.0  ;;  %v2895_v3 = vmul.f32 0.2, %v2761_v60  ;;  %v9376_v48 = vadd.f32 %v10983_v31, %v2520_v8  ;;  %v2522_v1 = vpop.f32.mrb[43].mxu0  ;;  %v3290_v25 = vld [vmem:[#allocation2 + $0x9e] sm:$0xff] }
 0x382   : > { %v3432_v2 = vld [vmem:[#allocation2 + $0x9f] sm:$0xff]  ;;  %3182 = vst [vmem:[#allocation2 + $0xb0] sm:$0xff] %v3146_v30  ;;  %4481 = vmatprep.mubr.f32.mxu0 %v3290_v25 }
 0x383   : > { %4716 = vmatprep.mubr.f32.mxu1 %v3432_v2  ;;  %v3218_v54 = vld [vmem:[#allocation2 + $0x9d] sm:$0xff]  ;;  %v2931_v13 = vsel %vm2859_vm5, %v2761_v60, %v2895_v3  ;;  %v2766_v10 = vadd.f32 %v9376_v48, %v10956_v49  ;;  %v11123_v48 = vpop.permute.xlu0 %3059 }
 0x384   : > { %4482 = vmatmul.mubr.f32.gmra.mrb[110].mxu0 %v3218_v54  ;;  %4717 = vmatmul.mubr.f32.gmra.mrb[70].mxu1 %v3430_v4  ;;  %v3147_v15 = vmul.f32 %v11113_v62, %v2931_v13  ;;  %v2525_v63 = vpop.f32.mrb[44].mxu0  ;;  %12224 = vst [vmem:[#allocation34_spill] sm:$0xff] %v11123_v48 }
 0x385   : > { %vm2860_vm6 = vcmp.ge.f32.partialorder %v2766_v10, 0.0  ;;  %v2896_v9 = vmul.f32 0.2, %v2766_v10  ;;  %v9377_v59 = vadd.f32 %v10983_v31, %v2525_v63  ;;  %v2527_v29 = vpop.f32.mrb[45].mxu0  ;;  %v3291_v42 = vld [vmem:[#allocation2 + $0xa6] sm:$0xff] }
 0x386   : > { %v3433_v28 = vld [vmem:[#allocation2 + $0xa7] sm:$0xff]  ;;  %3183 = vst [vmem:[#allocation2 + $0xb8] sm:$0xff] %v3147_v15  ;;  %4486 = vmatprep.mubr.f32.mxu0 %v3291_v42 }
 0x387   : > { %4721 = vmatprep.mubr.f32.mxu1 %v3433_v28  ;;  %v3219_v34 = vld [vmem:[#allocation2 + $0xa5] sm:$0xff]  ;;  %v2932_v38 = vsel %vm2860_vm6, %v2766_v10, %v2896_v9  ;;  %v2771_v49 = vadd.f32 %v9377_v59, %v10962_v56  ;;  %v11128_v59 = vpop.permute.xlu1 %3064 }
 0x388   : > { %4487 = vmatmul.mubr.f32.gmra.mrb[112].mxu0 %v3219_v34  ;;  %4722 = vmatmul.mubr.f32.gmra.mrb[72].mxu1 %v3431_v58  ;;  %v3148_v4 = vmul.f32 %v11118_v33, %v2932_v38  ;;  %v2530_v51 = vpop.f32.mrb[46].mxu0  ;;  %12225 = vst [vmem:[#allocation35_spill] sm:$0xff] %v11128_v59 }
 0x389   : > { %vm2861_vm7 = vcmp.ge.f32.partialorder %v2771_v49, 0.0  ;;  %v2897_v41 = vmul.f32 0.2, %v2771_v49  ;;  %v9378_v37 = vadd.f32 %v10983_v31, %v2530_v51  ;;  %v2532_v60 = vpop.f32.mrb[47].mxu0  ;;  %v3292_v30 = vld [vmem:[#allocation2 + $0xae] sm:$0xff] }
 0x38a   : > { %v3434_v8 = vld [vmem:[#allocation2 + $0xaf] sm:$0xff]  ;;  %3184 = vst [vmem:[#allocation2 + $0xc0] sm:$0xff] %v3148_v4  ;;  %4491 = vmatprep.mubr.f32.mxu0 %v3292_v30 }
 0x38b   : > { %4726 = vmatprep.mubr.f32.mxu1 %v3434_v8  ;;  %v3220_v3 = vld [vmem:[#allocation2 + $0xad] sm:$0xff]  ;;  %v2933_v1 = vsel %vm2861_vm7, %v2771_v49, %v2897_v41  ;;  %v2776_v56 = vadd.f32 %v9378_v37, %v10960_v14 }
 0x38c   : > { %4492 = vmatmul.mubr.f32.gmra.mrb[114].mxu0 %v3220_v3  ;;  %4727 = vmatmul.mubr.f32.gmra.mrb[74].mxu1 %v3432_v2  ;;  %v3149_v58 = vmul.f32 %v11123_v48, %v2933_v1  ;;  %v2535_v25 = vpop.f32.mrb[48].mxu0 }
 0x38d   : > { %vm2862_vm8 = vcmp.ge.f32.partialorder %v2776_v56, 0.0  ;;  %v2898_v54 = vmul.f32 0.2, %v2776_v56  ;;  %v9379_v13 = vadd.f32 %v10983_v31, %v2535_v25  ;;  %v2537_v10 = vpop.f32.mrb[49].mxu0  ;;  %v3293_v15 = vld [vmem:[#allocation2 + $0xb6] sm:$0xff] }
 0x38e   : > { %v3435_v63 = vld [vmem:[#allocation2 + $0xb7] sm:$0xff]  ;;  %3185 = vst [vmem:[#allocation2 + $0xc8] sm:$0xff] %v3149_v58  ;;  %4496 = vmatprep.mubr.f32.mxu0 %v3293_v15  ;;  %v11135_v31 = vld [vmem:[%s12133_s3] ss:$0 sm:$0xff] }
 0x38f   : > { %4731 = vmatprep.mubr.f32.mxu1 %v3435_v63  ;;  %v3221_v9 = vld [vmem:[#allocation2 + $0xb5] sm:$0xff]  ;;  %v2934_v29 = vsel %vm2862_vm8, %v2776_v56, %v2898_v54  ;;  %v2781_v14 = vadd.f32 %v9379_v13, %v10966_v17  ;;  %v11143_v13 = vpop.permute.xlu1 %3074 }
 0x390   : > { %4497 = vmatmul.mubr.f32.gmra.mrb[116].mxu0 %v3221_v9  ;;  %4732 = vmatmul.mubr.f32.gmra.mrb[76].mxu1 %v3433_v28  ;;  %v3150_v2 = vmul.f32 %v11128_v59, %v2934_v29  ;;  %v2540_v42 = vpop.f32.mrb[50].mxu0  ;;  %v11138_v28 = vpop.permute.xlu0 %3069  ;;  %12227 = vst [vmem:[#allocation37_spill] sm:$0xff] %v11143_v13 }
 0x391   : > { %vm2863_vm9 = vcmp.ge.f32.partialorder %v2781_v14, 0.0  ;;  %v2899_v34 = vmul.f32 0.2, %v2781_v14  ;;  %v9380_v38 = vadd.f32 %v11135_v31, %v2540_v42  ;;  %v2542_v49 = vpop.f32.mrb[51].mxu0  ;;  %v3294_v4 = vld [vmem:[#allocation2 + $0xbe] sm:$0xff]  ;;  %12226 = vst [vmem:[#allocation36_spill] sm:$0xff] %v11138_v28 }
 0x392   : > { %v3436_v51 = vld [vmem:[#allocation2 + $0xbf] sm:$0xff]  ;;  %3186 = vst [vmem:[#allocation2 + $0xd0] sm:$0xff] %v3150_v2  ;;  %4501 = vmatprep.mubr.f32.mxu0 %v3294_v4 }
 0x393   : > { %4736 = vmatprep.mubr.f32.mxu1 %v3436_v51  ;;  %v3222_v17 = vld [vmem:[#allocation2 + $0xbd] sm:$0xff]  ;;  %v2935_v41 = vsel %vm2863_vm9, %v2781_v14, %v2899_v34  ;;  %v2786_v37 = vadd.f32 %v9380_v38, %v10964_v53 }
 0x394   : > { %4502 = vmatmul.mubr.f32.gmra.mrb[118].mxu0 %v3222_v17  ;;  %4737 = vmatmul.mubr.f32.gmra.mrb[78].mxu1 %v3434_v8  ;;  %v3151_v60 = vmul.f32 %v11138_v28, %v2935_v41  ;;  %v2545_v30 = vpop.f32.mrb[52].mxu0  ;;  %v11148_v38 = vpop.permute.xlu0 %3079 }
 0x395   : > { %vm2864_vm10 = vcmp.ge.f32.partialorder %v2786_v37, 0.0  ;;  %v2900_v3 = vmul.f32 0.2, %v2786_v37  ;;  %v9381_v1 = vadd.f32 %v11135_v31, %v2545_v30  ;;  %v2547_v56 = vpop.f32.mrb[53].mxu0  ;;  %v3295_v58 = vld [vmem:[#allocation2 + $0xc6] sm:$0xff]  ;;  %12228 = vst [vmem:[#allocation38_spill] sm:$0xff] %v11148_v38 }
 0x396   : > { %v3437_v25 = vld [vmem:[#allocation2 + $0xc7] sm:$0xff]  ;;  %3187 = vst [vmem:[#allocation2 + $0xd8] sm:$0xff] %v3151_v60  ;;  %4506 = vmatprep.mubr.f32.mxu0 %v3295_v58 }
 0x397   : > { %4741 = vmatprep.mubr.f32.mxu1 %v3437_v25  ;;  %v3223_v54 = vld [vmem:[#allocation2 + $0xc5] sm:$0xff]  ;;  %v2936_v10 = vsel %vm2864_vm10, %v2786_v37, %v2900_v3  ;;  %v2791_v53 = vadd.f32 %v9381_v1, %v10970_v16  ;;  %v11153_v1 = vpop.permute.xlu1 %3084 }
 0x398   : > { %4507 = vmatmul.mubr.f32.gmra.mrb[120].mxu0 %v3223_v54  ;;  %4742 = vmatmul.mubr.f32.gmra.mrb[80].mxu1 %v3435_v63  ;;  %v3152_v8 = vmul.f32 %v11143_v13, %v2936_v10  ;;  %v2550_v15 = vpop.f32.mrb[54].mxu0  ;;  %12229 = vst [vmem:[#allocation39_spill] sm:$0xff] %v11153_v1  ;;  %v3508_v13 = vld [vmem:[#allocation2 + $0xc0] sm:$0xff]  ;;  %v3509_v59 = vld [vmem:[#allocation2 + $0xc8] sm:$0xff] }
 0x399   : > { %vm2865_vm11 = vcmp.ge.f32.partialorder %v2791_v53, 0.0  ;;  %v2901_v9 = vmul.f32 0.2, %v2791_v53  ;;  %v9382_v29 = vadd.f32 %v11135_v31, %v2550_v15  ;;  %v2552_v14 = vpop.f32.mrb[55].mxu0  ;;  %v3296_v2 = vld [vmem:[#allocation2 + $0xce] sm:$0xff] }
 0x39a   : > { %v3438_v42 = vld [vmem:[#allocation2 + $0xcf] sm:$0xff]  ;;  %3188 = vst [vmem:[#allocation2 + $0xe0] sm:$0xff] %v3152_v8  ;;  %4511 = vmatprep.mubr.f32.mxu0 %v3296_v2 }
 0x39b   : > { %4746 = vmatprep.mubr.f32.mxu1 %v3438_v42  ;;  %v3224_v34 = vld [vmem:[#allocation2 + $0xcd] sm:$0xff]  ;;  %v2937_v49 = vsel %vm2865_vm11, %v2791_v53, %v2901_v9  ;;  %v2796_v16 = vadd.f32 %v9382_v29, %v10968_v61  ;;  %v11158_v29 = vpop.permute.xlu0 %3089 }
 0x39c   : > { %4512 = vmatmul.mubr.f32.gmra.mrb[122].mxu0 %v3224_v34  ;;  %4747 = vmatmul.mubr.f32.gmra.mrb[82].mxu1 %v3436_v51  ;;  %v3153_v63 = vmul.f32 %v11148_v38, %v2937_v49  ;;  %v2555_v4 = vpop.f32.mrb[56].mxu0  ;;  %12230 = vst [vmem:[#allocation40_spill] sm:$0xff] %v11158_v29  ;;  %v3510_v33 = vld [vmem:[#allocation2 + $0xd0] sm:$0xff] }
 0x39d   : > { %vm2866_vm12 = vcmp.ge.f32.partialorder %v2796_v16, 0.0  ;;  %v2902_v17 = vmul.f32 0.2, %v2796_v16  ;;  %v9383_v41 = vadd.f32 %v11135_v31, %v2555_v4  ;;  %v2557_v37 = vpop.f32.mrb[57].mxu0  ;;  %v3297_v60 = vld [vmem:[#allocation2 + $0xd6] sm:$0xff] }
 0x39e   : > { %v3439_v30 = vld [vmem:[#allocation2 + $0xd7] sm:$0xff]  ;;  %3189 = vst [vmem:[#allocation2 + $0xe8] sm:$0xff] %v3153_v63  ;;  %4516 = vmatprep.mubr.f32.mxu0 %v3297_v60 }
 0x39f   : > { %4751 = vmatprep.mubr.f32.mxu1 %v3439_v30  ;;  %v3225_v3 = vld [vmem:[#allocation2 + $0xd5] sm:$0xff]  ;;  %v2938_v56 = vsel %vm2866_vm12, %v2796_v16, %v2902_v17  ;;  %v2801_v61 = vadd.f32 %v9383_v41, %v10974_v12  ;;  %v11163_v41 = vpop.permute.xlu1 %3094 }
 0x3a0   : > { %4517 = vmatmul.mubr.f32.gmra.mrb[124].mxu0 %v3225_v3  ;;  %4752 = vmatmul.mubr.f32.gmra.mrb[84].mxu1 %v3437_v25  ;;  %v3154_v51 = vmul.f32 %v11153_v1, %v2938_v56  ;;  %v2560_v58 = vpop.f32.mrb[58].mxu0  ;;  %12231 = vst [vmem:[#allocation41_spill] sm:$0xff] %v11163_v41  ;;  %v3507_v1 = vld [vmem:[#allocation2 + $0xb8] sm:$0xff] }
 0x3a1   : > { %vm2867_vm13 = vcmp.ge.f32.partialorder %v2801_v61, 0.0  ;;  %v2903_v54 = vmul.f32 0.2, %v2801_v61  ;;  %v9384_v10 = vadd.f32 %v11135_v31, %v2560_v58  ;;  %v2562_v53 = vpop.f32.mrb[59].mxu0  ;;  %v3298_v8 = vld [vmem:[#allocation2 + $0xde] sm:$0xff] }
 0x3a2   : > { %v3440_v15 = vld [vmem:[#allocation2 + $0xdf] sm:$0xff]  ;;  %3190 = vst [vmem:[#allocation2 + $0xf0] sm:$0xff] %v3154_v51  ;;  %4521 = vmatprep.mubr.f32.mxu0 %v3298_v8 }
 0x3a3   : > { %4756 = vmatprep.mubr.f32.mxu1 %v3440_v15  ;;  %v3226_v9 = vld [vmem:[#allocation2 + $0xdd] sm:$0xff]  ;;  %v2939_v14 = vsel %vm2867_vm13, %v2801_v61, %v2903_v54  ;;  %v2806_v12 = vadd.f32 %v9384_v10, %v10972_v5  ;;  %v11171_v10 = vpop.permute.xlu0 %3099 }
 0x3a4   : > { %4522 = vmatmul.mubr.f32.gmra.mrb[126].mxu0 %v3226_v9  ;;  %4757 = vmatmul.mubr.f32.gmra.mrb[86].mxu1 %v3438_v42  ;;  %v3155_v25 = vmul.f32 %v11158_v29, %v2939_v14  ;;  %v2565_v2 = vpop.f32.mrb[60].mxu0  ;;  %12232 = vst [vmem:[#allocation42_spill] sm:$0xff] %v11171_v10  ;;  %v3511_v44 = vld [vmem:[#allocation2 + $0xd8] sm:$0xff]  ;;  %v3512_v18 = vld [vmem:[#allocation2 + $0xe0] sm:$0xff] }
 0x3a5   : > { %vm2868_vm14 = vcmp.ge.f32.partialorder %v2806_v12, 0.0  ;;  %v2904_v34 = vmul.f32 0.2, %v2806_v12  ;;  %v9385_v49 = vadd.f32 %v11135_v31, %v2565_v2  ;;  %v2567_v16 = vpop.f32.mrb[61].mxu0  ;;  %v3299_v63 = vld [vmem:[#allocation2 + $0xe6] sm:$0xff] }
 0x3a6   : > { %v3441_v4 = vld [vmem:[#allocation2 + $0xe7] sm:$0xff]  ;;  %3191 = vst [vmem:[#allocation2 + $0xf8] sm:$0xff] %v3155_v25  ;;  %4526 = vmatprep.mubr.f32.mxu0 %v3299_v63 }
 0x3a7   : > { %4761 = vmatprep.mubr.f32.mxu1 %v3441_v4  ;;  %v3227_v17 = vld [vmem:[#allocation2 + $0xe5] sm:$0xff]  ;;  %v2940_v37 = vsel %vm2868_vm14, %v2806_v12, %v2904_v34  ;;  %v2811_v5 = vadd.f32 %v9385_v49, %v10978_v24  ;;  %v11179_v49 = vpop.permute.xlu1 %3104 }
 0x3a8   : > { %4527 = vmatmul.mubr.f32.gmra.mrb[128].mxu0 %v3227_v17  ;;  %4762 = vmatmul.mubr.f32.gmra.mrb[88].mxu1 %v3439_v30  ;;  %v11167_v42 = vmul.f32 %v11163_v41, %v2940_v37  ;;  %v2570_v60 = vpop.f32.mrb[62].mxu0  ;;  %12233 = vst [vmem:[#allocation43_spill] sm:$0xff] %v11179_v49  ;;  %v3513_v20 = vld [vmem:[#allocation2 + $0xe8] sm:$0xff] }
 0x3a9   : > { %vm2869_vm15 = vcmp.ge.f32.partialorder %v2811_v5, 0.0  ;;  %v2905_v3 = vmul.f32 0.2, %v2811_v5  ;;  %v9386_v56 = vadd.f32 %v11135_v31, %v2570_v60  ;;  %v2572_v61 = vpop.f32.mrb[63].mxu0  ;;  %v3300_v51 = vld [vmem:[#allocation2 + $0xee] sm:$0xff] }
 0x3aa   : > { %v3442_v58 = vld [vmem:[#allocation2 + $0xef] sm:$0xff]  ;;  %3192 = vst [vmem:[#allocation2 + $0x100] sm:$0xff] %v11167_v42  ;;  %4531 = vmatprep.mubr.f32.mxu0 %v3300_v51  ;;  %v11187_v61 = vpop.permute.xlu0 %3109 }
 0x3ab   : > { %4766 = vmatprep.mubr.f32.mxu1 %v3442_v58  ;;  %v3228_v54 = vld [vmem:[#allocation2 + $0xed] sm:$0xff]  ;;  %v2941_v24 = vsel %vm2869_vm15, %v2811_v5, %v2905_v3  ;;  %v2816_v30 = vadd.f32 %v9386_v56, %v10976_v21  ;;  %12234 = vst [vmem:[#allocation44_spill] sm:$0xff] %v11187_v61 }
 0x3ac   : > { %4532 = vmatmul.mubr.f32.gmra.mrb[130].mxu0 %v3228_v54  ;;  %4767 = vmatmul.mubr.f32.gmra.mrb[90].mxu1 %v3440_v15  ;;  %v11175_v53 = vmul.f32 %v11171_v10, %v2941_v24  ;;  %v2575_v8 = vpop.f32.mrb[64].mxu0  ;;  %v3514_v45 = vld [vmem:[#allocation2 + $0xf0] sm:$0xff] }
 0x3ad   : > { %vm2870_vm0 = vcmp.ge.f32.partialorder %v2816_v30, 0.0  ;;  %v2906_v9 = vmul.f32 0.2, %v2816_v30  ;;  %v9387_v14 = vadd.f32 %v11135_v31, %v2575_v8  ;;  %v2577_v12 = vpop.f32.mrb[65].mxu0  ;;  %v3301_v25 = vld [vmem:[#allocation2 + $0xf6] sm:$0xff] }
 0x3ae   : > { %v3443_v2 = vld [vmem:[#allocation2 + $0xf7] sm:$0xff]  ;;  %3193 = vst [vmem:[#allocation2 + $0x108] sm:$0xff] %v11175_v53  ;;  %4536 = vmatprep.mubr.f32.mxu0 %v3301_v25  ;;  %v11195_v25 = vpop.permute.xlu1 %3114 }
 0x3af   : > { %4771 = vmatprep.mubr.f32.mxu1 %v3443_v2  ;;  %v3229_v34 = vld [vmem:[#allocation2 + $0xf5] sm:$0xff]  ;;  %v2942_v21 = vsel %vm2870_vm0, %v2816_v30, %v2906_v9  ;;  %v2821_v15 = vadd.f32 %v9387_v14, %v10988_v46  ;;  %12235 = vst [vmem:[#allocation45_spill] sm:$0xff] %v11195_v25 }
 0x3b0   : > { %4537 = vmatmul.mubr.f32.gmra.mrb[132].mxu0 %v3229_v34  ;;  %4772 = vmatmul.mubr.f32.gmra.mrb[92].mxu1 %v3441_v4  ;;  %v11183_v16 = vmul.f32 %v11179_v49, %v2942_v21  ;;  %v2580_v63 = vpop.f32.mrb[66].mxu0  ;;  %v3515_v26 = vld [vmem:[#allocation2 + $0xf8] sm:$0xff] }
 0x3b1   : > { %vm2871_vm1 = vcmp.ge.f32.partialorder %v2821_v15, 0.0  ;;  %v2907_v17 = vmul.f32 0.2, %v2821_v15  ;;  %v9388_v37 = vadd.f32 %v11135_v31, %v2580_v63  ;;  %v2582_v5 = vpop.f32.mrb[67].mxu0  ;;  %v3302_v60 = vld [vmem:[#allocation2 + $0xfe] sm:$0xff] }
 0x3b2   : > { %v3444_v3 = vld [vmem:[#allocation2 + $0xff] sm:$0xff]  ;;  %3194 = vst [vmem:[#allocation2 + $0x110] sm:$0xff] %v11183_v16  ;;  %4541 = vmatprep.mubr.f32.mxu0 %v3302_v60 }
 0x3b3   : > { %4776 = vmatprep.mubr.f32.mxu1 %v3444_v3  ;;  %v3230_v56 = vld [vmem:[#allocation2 + $0xfd] sm:$0xff]  ;;  %v2943_v46 = vsel %vm2871_vm1, %v2821_v15, %v2907_v17  ;;  %v2826_v4 = vadd.f32 %v9388_v37, %v10986_v40 }
 0x3b4   : > { %4542 = vmatmul.mubr.f32.gmra.mrb[134].mxu0 %v3230_v56  ;;  %4777 = vmatmul.mubr.f32.gmra.mrb[94].mxu1 %v3442_v58  ;;  %v11191_v51 = vmul.f32 %v11187_v61, %v2943_v46  ;;  %v2585_v54 = vpop.f32.mrb[68].mxu0  ;;  %v11203_v56 = vpop.permute.xlu0 %3119 }
 0x3b5   : > { %vm2872_vm2 = vcmp.ge.f32.partialorder %v2826_v4, 0.0  ;;  %v2908_v24 = vmul.f32 0.2, %v2826_v4  ;;  %v9389_v30 = vadd.f32 %v11135_v31, %v2585_v54  ;;  %v2587_v8 = vpop.f32.mrb[69].mxu0  ;;  %v3303_v9 = vld [vmem:[#allocation2 + $0x106] sm:$0xff]  ;;  %12236 = vst [vmem:[#allocation46_spill] sm:$0xff] %v11203_v56 }
 0x3b6   : > { %v3445_v14 = vld [vmem:[#allocation2 + $0x107] sm:$0xff]  ;;  %3195 = vst [vmem:[#allocation2 + $0x118] sm:$0xff] %v11191_v51  ;;  %4546 = vmatprep.mubr.f32.mxu0 %v3303_v9  ;;  %v11212_v9 = vpop.permute.xlu1 %3124 }
 0x3b7   : > { %4781 = vmatprep.mubr.f32.mxu1 %v3445_v14  ;;  %v3231_v12 = vld [vmem:[#allocation2 + $0x105] sm:$0xff]  ;;  %v2944_v40 = vsel %vm2872_vm2, %v2826_v4, %v2908_v24  ;;  %v2831_v58 = vadd.f32 %v9389_v30, %v10999_v23  ;;  %12237 = vst [vmem:[#allocation47_spill] sm:$0xff] %v11212_v9 }
 0x3b8   : > { %4547 = vmatmul.mubr.f32.gmra.mrb[136].mxu0 %v3231_v12  ;;  %4782 = vmatmul.mubr.f32.gmra.mrb[96].mxu1 %v3443_v2  ;;  %v11199_v34 = vmul.f32 %v11195_v25, %v2944_v40  ;;  %v2590_v21 = vpop.f32.mrb[70].mxu0 }
 0x3b9   : > { %vm2873_vm3 = vcmp.ge.f32.partialorder %v2831_v58, 0.0  ;;  %v2909_v15 = vmul.f32 0.2, %v2831_v58  ;;  %v9390_v63 = vadd.f32 %v11135_v31, %v2590_v21  ;;  %v2592_v17 = vpop.f32.mrb[71].mxu0  ;;  %v3304_v37 = vld [vmem:[#allocation2 + $0x10e] sm:$0xff] }
 0x3ba   : > { %v3446_v5 = vld [vmem:[#allocation2 + $0x10f] sm:$0xff]  ;;  %3196 = vst [vmem:[#allocation2 + $0x120] sm:$0xff] %v11199_v34  ;;  %4551 = vmatprep.mubr.f32.mxu0 %v3304_v37  ;;  %v3777_v37 = vld [vmem:[#allocation2 + $0x3b] sm:$0xff] }
 0x3bb   : > { %4786 = vmatprep.mubr.f32.mxu1 %v3446_v5  ;;  %v3232_v60 = vld [vmem:[#allocation2 + $0x10d] sm:$0xff]  ;;  %v2945_v23 = vsel %vm2873_vm3, %v2831_v58, %v2909_v15  ;;  %v2836_v2 = vadd.f32 %v9390_v63, %v10997_v36 }
 0x3bc   : > { %4552 = vmatmul.mubr.f32.gmra.mrb[138].mxu0 %v3232_v60  ;;  %4787 = vmatmul.mubr.f32.gmra.mrb[98].mxu1 %v3444_v3  ;;  %v11207_v46 = vmul.f32 %v11203_v56, %v2945_v23  ;;  %v11209_v4 = vpop.f32.mrb[72].mxu0  ;;  %v3775_v63 = vld [vmem:[#allocation2 + $0x2b] sm:$0xff] }
 0x3bd   : > { %vm2874_vm4 = vcmp.ge.f32.partialorder %v2836_v2, 0.0  ;;  %v2910_v31 = vmul.f32 0.2, %v2836_v2  ;;  %v3305_v54 = vld [vmem:[#allocation2 + $0x116] sm:$0xff]  ;;  %v4390_v8 = vpop.f32.mrb[73].mxu0 }
 0x3be   : > { %v3447_v24 = vld [vmem:[#allocation2 + $0x117] sm:$0xff]  ;;  %3197 = vst [vmem:[#allocation2 + $0x128] sm:$0xff] %v11207_v46  ;;  %4556 = vmatprep.mubr.f32.mxu0 %v3305_v54 }
 0x3bf   : > { %v3233_v30 = vld [vmem:[#allocation2 + $0x115] sm:$0xff]  ;;  %4791 = vmatprep.mubr.f32.mxu1 %v3447_v24  ;;  %v2946_v36 = vsel %vm2874_vm4, %v2836_v2, %v2910_v31  ;;  %v3778_v31 = vld [vmem:[#allocation2 + $0x43] sm:$0xff] }
 0x3c0   : > { %4557 = vmatmul.mubr.f32.gmra.mrb[140].mxu0 %v3233_v30  ;;  %4792 = vmatmul.mubr.f32.gmra.mrb[100].mxu1 %v3445_v14  ;;  %v11215_v3 = vmul.f32 %v11212_v9, %v2946_v36  ;;  %v11217_v12 = vpop.f32.mrb[74].mxu0  ;;  %v3776_v14 = vld [vmem:[#allocation2 + $0x33] sm:$0xff]  ;;  %v3779_v30 = vld [vmem:[#allocation2 + $0x4b] sm:$0xff] }
 0x3c1   : > { %v3306_v40 = vld [vmem:[#allocation2 + $0x11e] sm:$0xff]  ;;  %v4395_v15 = vpop.f32.mrb[75].mxu0  ;;  %v4267_v23 = vld [vmem:[#allocation7 + $0x300] sm:$0xff] }
 0x3c2   : > { %v3448_v58 = vld [vmem:[#allocation2 + $0x11f] sm:$0xff]  ;;  %3198 = vst [vmem:[#allocation2 + $0x130] sm:$0xff] %v11215_v3  ;;  %4561 = vmatprep.mubr.f32.mxu0 %v3306_v40  ;;  %v3780_v36 = vld [vmem:[#allocation2 + $0x53] sm:$0xff] }
 0x3c3   : > { %v3234_v21 = vld [vmem:[#allocation2 + $0x11d] sm:$0xff]  ;;  %4796 = vmatprep.mubr.f32.mxu1 %v3448_v58 }
 0x3c4   : > { %4562 = vmatmul.mubr.f32.gmra.mrb[142].mxu0 %v3234_v21  ;;  %4797 = vmatmul.mubr.f32.gmra.mrb[102].mxu1 %v3446_v5  ;;  %v4268_v2 = vld [vmem:[#allocation7 + $0x308] sm:$0xff]  ;;  %v4269_v40 = vld [vmem:[#allocation7 + $0x310] sm:$0xff]  ;;  %v4270_v21 = vld [vmem:[#allocation7 + $0x318] sm:$0xff] }
 0x3c5   : > { %8511 = vmatprep.mubr.f32.mxu0 %v3775_v63  ;;  %v3449_v17 = vld [vmem:[#allocation2 + $0x127] sm:$0xff]  ;;  %v3559_v54 = vld [vmem:[#allocation2 + $0x19] sm:$0xff]  ;;  %v9020_v5 = vpack.c.bf16 %v4268_v2, %v4267_v23 }
 0x3c6   : > { %4801 = vmatprep.mubr.f32.mxu1 %v3449_v17  ;;  %v3487_v8 = vld [vmem:[#allocation2 + $0x18] sm:$0xff]  ;;  %v3488_v63 = vld [vmem:[#allocation2 + $0x20] sm:$0xff]  ;;  %v3783_v23 = vld [vmem:[#allocation2 + $0x6b] sm:$0xff] }
 0x3c7   : > { %v3781_v15 = vld [vmem:[#allocation2 + $0x5b] sm:$0xff]  ;;  %v3782_v17 = vld [vmem:[#allocation2 + $0x63] sm:$0xff] }
 0x3c8   : > { %4802 = vmatmul.mubr.f32.gmra.mrb[104].mxu1 %v3447_v24  ;;  %8512 = vmatmul.mubr.f32.vlgmr.msra.gmra.mrb[144].mxu0 %v3776_v14  ;;  %v3560_v24 = vld [vmem:[#allocation2 + $0x21] sm:$0xff]  ;;  %v4271_v14 = vld [vmem:[#allocation7 + $0x320] sm:$0xff] }
 0x3c9   : > { %8514 = vmatprep.mubr.f32.mxu0 %v3777_v37  ;;  %v3450_v60 = vld [vmem:[#allocation2 + $0x12f] sm:$0xff]  ;;  %v4272_v37 = vld [vmem:[#allocation7 + $0x328] sm:$0xff] }
 0x3ca   : > { %4806 = vmatprep.mubr.f32.mxu1 %v3450_v60  ;;  %v11221_v60 = vld [vmem:[#allocation2 + $0x29] sm:$0xff] }
 0x3cb   : > { %v3489_v2 = vld [vmem:[#allocation2 + $0x28] sm:$0xff] }
 0x3cc   : > { %4807 = vmatmul.mubr.f32.gmra.mrb[106].mxu1 %v3448_v58  ;;  %8515 = vmatmul.mubr.f32.gmra.mrb[146].mxu0 %v3778_v31  ;;  %v9023_v58 = vpack.c.bf16 %v4270_v21, %v4269_v40  ;;  %v9026_v31 = vpack.c.bf16 %v4272_v37, %v4271_v14  ;;  %v3490_v40 = vld [vmem:[#allocation2 + $0x30] sm:$0xff]  ;;  %v3491_v14 = vld [vmem:[#allocation2 + $0x38] sm:$0xff] }
 0x3cd   : > { %4876 = vmatprep.mubr.f32.mxu1 %v3559_v54  ;;  %8517 = vmatprep.mubr.f32.mxu0 %v3779_v30  ;;  %v3784_v54 = vld [vmem:[#allocation2 + $0x73] sm:$0xff]  ;;  %v4273_v30 = vld [vmem:[#allocation7 + $0x330] sm:$0xff] }
 0x3d0   : > { %4877 = vmatmul.mubr.f32.vlgmr.msra.gmra.mrb[36].mxu1 %v3487_v8  ;;  %8518 = vmatmul.mubr.f32.gmra.mrb[148].mxu0 %v3780_v36  ;;  %v11225_v8 = vld [vmem:[#allocation2 + $0x31] sm:$0xff]  ;;  %v3785_v36 = vld [vmem:[#allocation2 + $0x7b] sm:$0xff] }
 0x3d1   : > { %4881 = vmatprep.mubr.f32.mxu1 %v3560_v24  ;;  %9021 = vmatpush1.bf16.msra.mxu1 %v9020_v5  ;;  %v4274_v5 = vld [vmem:[#allocation7 + $0x338] sm:$0xff] }
 0x3d2   : > { %8520 = vmatprep.mubr.f32.mxu0 %v3781_v15  ;;  %9022 = vmatprep.subr.bf16.mxu1 %v12153_v0  ;;  %v9029_v21 = vpack.c.bf16 %v4274_v5, %v4273_v30  ;;  %v3786_v24 = vld [vmem:[#allocation2 + $0x83] sm:$0xff]  ;;  %v4275_v15 = vld [vmem:[#allocation7 + $0x340] sm:$0xff]  ;;  %v3789_v30 = vld [vmem:[#allocation2 + $0x9b] sm:$0xff] }
 0x3d3   : > { %v3492_v5 = vld [vmem:[#allocation2 + $0x40] sm:$0xff] }
 0x3d4   : > { %4882 = vmatmul.mubr.f32.gmra.mrb[38].mxu1 %v3488_v63  ;;  %8521 = vmatmul.mubr.f32.gmra.mrb[150].mxu0 %v3782_v17  ;;  %v4276_v63 = vld [vmem:[#allocation7 + $0x348] sm:$0xff]  ;;  %v3787_v17 = vld [vmem:[#allocation2 + $0x8b] sm:$0xff] }
 0x3d5   : > { %4886 = vmatprep.mubr.f32.mxu1 %v11221_v60  ;;  %8523 = vmatprep.mubr.f32.mxu0 %v3783_v23  ;;  %v9032_v37 = vpack.c.bf16 %v4276_v63, %v4275_v15  ;;  %v3788_v23 = vld [vmem:[#allocation2 + $0x93] sm:$0xff]  ;;  %v11237_v15 = vld [vmem:[#allocation2 + $0x49] sm:$0xff] }
 0x3d6   : > { %9024 = vmatpush1.bf16.msra.mxu1 %v9023_v58  ;;  %v11229_v58 = vld [vmem:[#allocation2 + $0x39] sm:$0xff]  ;;  %v3791_v63 = vld [vmem:[#allocation2 + $0xab] sm:$0xff] }
 0x3d7   : > { %9025 = vmatprep.subr.bf16.mxu1 %v12153_v0 }
 0x3d8   : > { %4887 = vmatmul.mubr.f32.gmra.mrb[40].mxu1 %v3489_v2  ;;  %8524 = vmatmul.mubr.f32.gmra.mrb[152].mxu0 %v3784_v54  ;;  %v4277_v2 = vld [vmem:[#allocation7 + $0x350] sm:$0xff] }
 0x3d9   : > { %4891 = vmatprep.mubr.f32.mxu1 %v11225_v8  ;;  %8526 = vmatprep.mubr.f32.mxu0 %v3785_v36  ;;  %v11233_v54 = vld [vmem:[#allocation2 + $0x41] sm:$0xff] }
 0x3da   : > { %9027 = vmatpush1.bf16.msra.mxu1 %v9026_v31  ;;  %v4278_v31 = vld [vmem:[#allocation7 + $0x358] sm:$0xff] }
 0x3db   : > { %9028 = vmatprep.subr.bf16.mxu1 %v12153_v0  ;;  %v9035_v36 = vpack.c.bf16 %v4278_v31, %v4277_v2  ;;  %v4282_v2 = vld [vmem:[#allocation7 + $0x378] sm:$0xff]  ;;  %v11241_v31 = vld [vmem:[#allocation2 + $0x51] sm:$0xff] }
 0x3dc   : > { %4892 = vmatmul.mubr.f32.gmra.mrb[42].mxu1 %v3490_v40  ;;  %8527 = vmatmul.mubr.f32.gmra.mrb[154].mxu0 %v3786_v24  ;;  %v3790_v40 = vld [vmem:[#allocation2 + $0xa3] sm:$0xff]  ;;  %v4280_v24 = vld [vmem:[#allocation7 + $0x368] sm:$0xff] }
 0x3dd   : > { %4896 = vmatprep.mubr.f32.mxu1 %v11229_v58  ;;  %8529 = vmatprep.mubr.f32.mxu0 %v3787_v17  ;;  %v3493_v17 = vld [vmem:[#allocation2 + $0x48] sm:$0xff] }
 0x3de   : > { %9030 = vmatpush1.bf16.msra.mxu1 %v9029_v21  ;;  %v4279_v21 = vld [vmem:[#allocation7 + $0x360] sm:$0xff] }
 0x3df   : > { %9031 = vmatprep.subr.bf16.mxu1 %v12153_v0 }
 0x3e0   : > { %4897 = vmatmul.mubr.f32.gmra.mrb[44].mxu1 %v3491_v14  ;;  %8530 = vmatmul.mubr.f32.gmra.mrb[156].mxu0 %v3788_v23  ;;  %v9038_v14 = vpack.c.bf16 %v4280_v24, %v4279_v21  ;;  %v3792_v23 = vld [vmem:[#allocation2 + $0xb3] sm:$0xff] }
 0x3e1   : > { %4901 = vmatprep.mubr.f32.mxu1 %v11233_v54  ;;  %8532 = vmatprep.mubr.f32.mxu0 %v3789_v30  ;;  %v3793_v30 = vld [vmem:[#allocation2 + $0xbb] sm:$0xff] }
 0x3e2   : > { %9033 = vmatpush1.bf16.msra.mxu1 %v9032_v37  ;;  %v4281_v37 = vld [vmem:[#allocation7 + $0x370] sm:$0xff]  ;;  %v4284_v21 = vld [vmem:[#allocation7 + $0x388] sm:$0xff] }
 0x3e3   : > { %9034 = vmatprep.subr.bf16.mxu1 %v12153_v0  ;;  %v11245_v24 = vld [vmem:[#allocation2 + $0x59] sm:$0xff] }
 0x3e4   : > { %4902 = vmatmul.mubr.f32.gmra.mrb[46].mxu1 %v3492_v5  ;;  %8533 = vmatmul.mubr.f32.gmra.mrb[158].mxu0 %v3790_v40  ;;  %v3494_v5 = vld [vmem:[#allocation2 + $0x50] sm:$0xff]  ;;  %v9041_v40 = vpack.c.bf16 %v4282_v2, %v4281_v37  ;;  %v4286_v37 = vld [vmem:[#allocation7 + $0x398] sm:$0xff] }
 0x3e5   : > { %4906 = vmatprep.mubr.f32.mxu1 %v11237_v15  ;;  %8535 = vmatprep.mubr.f32.mxu0 %v3791_v63  ;;  %v3794_v63 = vld [vmem:[#allocation2 + $0xc3] sm:$0xff] }
 0x3e6   : > { %9036 = vmatpush1.bf16.msra.mxu1 %v9035_v36  ;;  %v4283_v36 = vld [vmem:[#allocation7 + $0x380] sm:$0xff]  ;;  %v11249_v2 = vld [vmem:[#allocation2 + $0x61] sm:$0xff] }
 0x3e7   : > { %9037 = vmatprep.subr.bf16.mxu1 %v12153_v0  ;;  %v9044_v9 = vpack.c.bf16 %v4284_v21, %v4283_v36  ;;  %v4288_v36 = vld [vmem:[#allocation7 + $0x3a8] sm:$0xff]  ;;  %v11253_v21 = vld [vmem:[#allocation2 + $0x69] sm:$0xff] }
 0x3e8   : > { %4907 = vmatmul.mubr.f32.gmra.mrb[48].mxu1 %v3493_v17  ;;  %8536 = vmatmul.mubr.f32.gmra.mrb[160].mxu0 %v3792_v23  ;;  %v3795_v17 = vld [vmem:[#allocation2 + $0xcb] sm:$0xff]  ;;  %v3495_v23 = vld [vmem:[#allocation2 + $0x58] sm:$0xff] }
 0x3e9   : > { %4911 = vmatprep.mubr.f32.mxu1 %v11241_v31  ;;  %8538 = vmatprep.mubr.f32.mxu0 %v3793_v30  ;;  %v3796_v30 = vld [vmem:[#allocation2 + $0xd3] sm:$0xff] }
 0x3ea   : > { %9039 = vmatpush1.bf16.msra.mxu1 %v9038_v14  ;;  %v4285_v14 = vld [vmem:[#allocation7 + $0x390] sm:$0xff] }
 0x3eb   : > { %9040 = vmatprep.subr.bf16.mxu1 %v12153_v0  ;;  %v9047_v56 = vpack.c.bf16 %v4286_v37, %v4285_v14  ;;  %v4290_v14 = vld [vmem:[#allocation7 + $0x3b8] sm:$0xff]  ;;  %v11257_v37 = vld [vmem:[#allocation2 + $0x71] sm:$0xff] }
 0x3ec   : > { %4912 = vmatmul.mubr.f32.gmra.mrb[50].mxu1 %v3494_v5  ;;  %8539 = vmatmul.mubr.f32.gmra.mrb[162].mxu0 %v3794_v63  ;;  %v3797_v5 = vld [vmem:[#allocation2 + $0xdb] sm:$0xff] }
 0x3ed   : > { %4916 = vmatprep.mubr.f32.mxu1 %v11245_v24  ;;  %8541 = vmatprep.mubr.f32.mxu0 %v3795_v17  ;;  %v3496_v63 = vld [vmem:[#allocation2 + $0x60] sm:$0xff] }
 0x3ee   : > { %9042 = vmatpush1.bf16.msra.mxu1 %v9041_v40  ;;  %v3798_v17 = vld [vmem:[#allocation2 + $0xe3] sm:$0xff]  ;;  %v4287_v40 = vld [vmem:[#allocation7 + $0x3a0] sm:$0xff] }
 0x3ef   : > { %9043 = vmatprep.subr.bf16.mxu1 %v12153_v0  ;;  %v9050_v25 = vpack.c.bf16 %v4288_v36, %v4287_v40  ;;  %v4292_v40 = vld [vmem:[#allocation7 + $0x3c8] sm:$0xff] }
 0x3f0   : > { %4917 = vmatmul.mubr.f32.gmra.mrb[52].mxu1 %v3495_v23  ;;  %8542 = vmatmul.mubr.f32.gmra.mrb[164].mxu0 %v3796_v30  ;;  %v3799_v23 = vld [vmem:[#allocation2 + $0xeb] sm:$0xff]  ;;  %v11261_v36 = vld [vmem:[#allocation2 + $0x79] sm:$0xff] }
 0x3f1   : > { %4921 = vmatprep.mubr.f32.mxu1 %v11249_v2  ;;  %8544 = vmatprep.mubr.f32.mxu0 %v3797_v5  ;;  %v3497_v30 = vld [vmem:[#allocation2 + $0x68] sm:$0xff]  ;;  %v3800_v5 = vld [vmem:[#allocation2 + $0xf3] sm:$0xff] }
 0x3f2   : > { %9045 = vmatpush1.bf16.msra.mxu1 %v9044_v9  ;;  %v4289_v9 = vld [vmem:[#allocation7 + $0x3b0] sm:$0xff] }
 0x3f3   : > { %9046 = vmatprep.subr.bf16.mxu1 %v12153_v0  ;;  %v9053_v61 = vpack.c.bf16 %v4290_v14, %v4289_v9  ;;  %v4294_v9 = vld [vmem:[#allocation7 + $0x3d8] sm:$0xff] }
 0x3f4   : > { %4922 = vmatmul.mubr.f32.gmra.mrb[54].mxu1 %v3496_v63  ;;  %8545 = vmatmul.mubr.f32.gmra.mrb[166].mxu0 %v3798_v17  ;;  %v3801_v63 = vld [vmem:[#allocation2 + $0xfb] sm:$0xff]  ;;  %v3498_v17 = vld [vmem:[#allocation2 + $0x70] sm:$0xff] }
 0x3f5   : > { %4926 = vmatprep.mubr.f32.mxu1 %v11253_v21  ;;  %8547 = vmatprep.mubr.f32.mxu0 %v3799_v23  ;;  %v3802_v23 = vld [vmem:[#allocation2 + $0x103] sm:$0xff] }
 0x3f6   : > { %9048 = vmatpush1.bf16.msra.mxu1 %v9047_v56  ;;  %v4291_v56 = vld [vmem:[#allocation7 + $0x3c0] sm:$0xff]  ;;  %v11265_v14 = vld [vmem:[#allocation2 + $0x81] sm:$0xff] }
 0x3f7   : > { %9049 = vmatprep.subr.bf16.mxu1 %v12153_v0  ;;  %v9056_v49 = vpack.c.bf16 %v4292_v40, %v4291_v56  ;;  %v4296_v56 = vld [vmem:[#allocation7 + $0x3e8] sm:$0xff]  ;;  %v11269_v40 = vld [vmem:[#allocation2 + $0x89] sm:$0xff] }
 0x3f8   : > { %4927 = vmatmul.mubr.f32.gmra.mrb[56].mxu1 %v3497_v30  ;;  %8548 = vmatmul.mubr.f32.gmra.mrb[168].mxu0 %v3800_v5  ;;  %v3803_v30 = vld [vmem:[#allocation2 + $0x10b] sm:$0xff]  ;;  %v3499_v5 = vld [vmem:[#allocation2 + $0x78] sm:$0xff] }
 0x3f9   : > { %4931 = vmatprep.mubr.f32.mxu1 %v11257_v37  ;;  %8550 = vmatprep.mubr.f32.mxu0 %v3801_v63  ;;  %v3804_v63 = vld [vmem:[#allocation2 + $0x113] sm:$0xff] }
 0x3fa   : > { %9051 = vmatpush1.bf16.msra.mxu1 %v9050_v25  ;;  %v4293_v25 = vld [vmem:[#allocation7 + $0x3d0] sm:$0xff] }
 0x3fb   : > { %9052 = vmatprep.subr.bf16.mxu1 %v12153_v0  ;;  %v9059_v10 = vpack.c.bf16 %v4294_v9, %v4293_v25  ;;  %v4298_v25 = vld [vmem:[#allocation7 + $0x3f8] sm:$0xff]  ;;  %v11273_v9 = vld [vmem:[#allocation2 + $0x91] sm:$0xff] }
 0x3fc   : > { %4932 = vmatmul.mubr.f32.gmra.mrb[58].mxu1 %v3498_v17  ;;  %8551 = vmatmul.mubr.f32.gmra.mrb[170].mxu0 %v3802_v23  ;;  %v3805_v17 = vld [vmem:[#allocation2 + $0x11b] sm:$0xff] }
 0x3fd   : > { %4936 = vmatprep.mubr.f32.mxu1 %v11261_v36  ;;  %8553 = vmatprep.mubr.f32.mxu0 %v3803_v30  ;;  %v3500_v23 = vld [vmem:[#allocation2 + $0x80] sm:$0xff] }
 0x3fe   : > { %9054 = vmatpush1.bf16.msra.mxu1 %v9053_v61  ;;  %v3806_v30 = vld [vmem:[#allocation2 + $0x123] sm:$0xff]  ;;  %v4295_v61 = vld [vmem:[#allocation7 + $0x3e0] sm:$0xff] }
 0x3ff   : > { %9055 = vmatprep.subr.bf16.mxu1 %v12153_v0  ;;  %v9062_v41 = vpack.c.bf16 %v4296_v56, %v4295_v61  ;;  %v11281_v61 = vld [vmem:[#allocation2 + $0xa1] sm:$0xff] }
 0x400   : > { %4937 = vmatmul.mubr.f32.gmra.mrb[60].mxu1 %v3499_v5  ;;  %8554 = vmatmul.mubr.f32.gmra.mrb[172].mxu0 %v3804_v63  ;;  %v3807_v5 = vld [vmem:[#allocation2 + $0x12b] sm:$0xff] }
 0x401   : > { %4941 = vmatprep.mubr.f32.mxu1 %v11265_v14  ;;  %8556 = vmatprep.mubr.f32.mxu0 %v3805_v17  ;;  %v3501_v63 = vld [vmem:[#allocation2 + $0x88] sm:$0xff]  ;;  %v3808_v17 = vld [vmem:[#allocation2 + $0x133] sm:$0xff] }
 0x402   : > { %9057 = vmatpush1.bf16.msra.mxu1 %v9056_v49  ;;  %v4297_v49 = vld [vmem:[#allocation7 + $0x3f0] sm:$0xff] }
 0x403   : > { %9058 = vmatprep.subr.bf16.mxu1 %v12153_v0 }
 0x404   : > { %4942 = vmatmul.mubr.f32.gmra.mrb[62].mxu1 %v3500_v23  ;;  %8557 = vmatmul.mubr.f32.gmra.mrb[174].mxu0 %v3806_v30  ;;  %v9065_v23 = vpack.c.bf16 %v4298_v25, %v4297_v49  ;;  %v3502_v30 = vld [vmem:[#allocation2 + $0x90] sm:$0xff]  ;;  %v3505_v25 = vld [vmem:[#allocation2 + $0xa8] sm:$0xff] }
 0x405   : > { %4946 = vmatprep.mubr.f32.mxu1 %v11269_v40  ;;  %8559 = vmatprep.mubr.f32.mxu0 %v3807_v5  ;;  %v11277_v5 = vld [vmem:[#allocation2 + $0x99] sm:$0xff] }
 0x406   : > { %9060 = vmatpush1.bf16.msra.mxu1 %v9059_v10  ;;  %v3503_v10 = vld [vmem:[#allocation2 + $0x98] sm:$0xff] }
 0x407   : > { %9061 = vmatprep.subr.bf16.mxu1 %v12153_v0 }
 0x408   : > { %4947 = vmatmul.mubr.f32.gmra.mrb[64].mxu1 %v3501_v63  ;;  %8560 = vmatmul.mubr.f32.gmra.mrb[176].mxu0 %v3808_v17  ;;  %v11286_v17 = vld [vmem:[#allocation2 + $0xa9] sm:$0xff] }
 0x409   : > { %4951 = vmatprep.mubr.f32.mxu1 %v11273_v9 }
 0x40a   : > { %9063 = vmatpush1.bf16.msra.mxu1 %v9062_v41  ;;  %v3504_v41 = vld [vmem:[#allocation2 + $0xa0] sm:$0xff] }
 0x40b   : > { %9064 = vmatprep.subr.bf16.mxu1 %v12153_v0 }
 0x40c   : > { %4952 = vmatmul.mubr.f32.gmra.mrb[66].mxu1 %v3502_v30  ;;  %v11291_v30 = vld [vmem:[#allocation2 + $0xb1] sm:$0xff] }
 0x40d   : > { %4956 = vmatprep.mubr.f32.mxu1 %v11277_v5 }
 0x40e   : > { %9066 = vmatpush1.bf16.msra.mxu1 %v9065_v23 }
 0x40f   : > { %9099 = vmatprep.subr.bf16.mxu1 %v12153_v0  ;;  %v3506_v0 = vld [vmem:[#allocation2 + $0xb0] sm:$0xff] }
 0x410   : > { %4957 = vmatmul.mubr.f32.gmra.mrb[68].mxu1 %v3503_v10 }
 0x411   : > { %4961 = vmatprep.mubr.f32.mxu1 %v11281_v61 }
 0x413   : > { %v11284_v56 = vpop.f32.mrb[76].mxu0 }
 0x414   : > { %v4400_v63 = vpop.f32.mrb[77].mxu0  ;;  %4962 = vmatmul.mubr.f32.gmra.mrb[70].mxu1 %v3504_v41 }
 0x415   : > { %4966 = vmatprep.mubr.f32.mxu1 %v11286_v17  ;;  %v11296_v63 = vld [vmem:[#allocation2 + $0xb9] sm:$0xff] }
 0x417   : > { %v11289_v49 = vpop.f32.mrb[78].mxu0 }
 0x418   : > { %v4405_v23 = vpop.f32.mrb[79].mxu0  ;;  %4967 = vmatmul.mubr.f32.gmra.mrb[72].mxu1 %v3505_v25 }
 0x419   : > { %4971 = vmatprep.mubr.f32.mxu1 %v11291_v30  ;;  %v11301_v23 = vld [vmem:[#allocation2 + $0xc1] sm:$0xff] }
 0x41b   : > { %v11294_v10 = vpop.f32.mrb[80].mxu0 }
 0x41c   : > { %v4410_v29 = vpop.f32.mrb[81].mxu0  ;;  %4972 = vmatmul.mubr.f32.gmra.mrb[74].mxu1 %v3506_v0 }
 0x41d   : > { %4976 = vmatprep.mubr.f32.mxu1 %v11296_v63  ;;  %v11306_v29 = vld [vmem:[#allocation2 + $0xc9] sm:$0xff] }
 0x41f   : > { %v11299_v41 = vpop.f32.mrb[82].mxu0 }
 0x420   : > { %v4415_v38 = vpop.f32.mrb[83].mxu0  ;;  %4977 = vmatmul.mubr.f32.gmra.mrb[76].mxu1 %v3507_v1 }
 0x421   : > { %4981 = vmatprep.mubr.f32.mxu1 %v11301_v23  ;;  %v11311_v38 = vld [vmem:[#allocation2 + $0xd1] sm:$0xff] }
 0x423   : > { %v11304_v25 = vpop.f32.mrb[84].mxu0 }
 0x424   : > { %v4420_v28 = vpop.f32.mrb[85].mxu0  ;;  %4982 = vmatmul.mubr.f32.gmra.mrb[78].mxu1 %v3508_v13 }
 0x425   : > { %4986 = vmatprep.mubr.f32.mxu1 %v11306_v29  ;;  %v11316_v28 = vld [vmem:[#allocation2 + $0xd9] sm:$0xff] }
 0x427   : > { %v11309_v0 = vpop.f32.mrb[86].mxu0 }
 0x428   : > { %v4425_v48 = vpop.f32.mrb[87].mxu0  ;;  %4987 = vmatmul.mubr.f32.gmra.mrb[80].mxu1 %v3509_v59 }
 0x429   : > { %4991 = vmatprep.mubr.f32.mxu1 %v11311_v38  ;;  %v11321_v48 = vld [vmem:[#allocation2 + $0xe1] sm:$0xff] }
 0x42b   : > { %v11314_v1 = vpop.f32.mrb[88].mxu0 }
 0x42c   : > { %v4430_v62 = vpop.f32.mrb[89].mxu0  ;;  %4992 = vmatmul.mubr.f32.gmra.mrb[82].mxu1 %v3510_v33 }
 0x42d   : > { %4996 = vmatprep.mubr.f32.mxu1 %v11316_v28  ;;  %v11326_v62 = vld [vmem:[#allocation2 + $0xe9] sm:$0xff] }
 0x42f   : > { %v11319_v13 = vpop.f32.mrb[90].mxu0 }
 0x430   : > { %12238 = vst [vmem:[#allocation48_spill] sm:$0xff] %v11319_v13  ;;  %v4435_v7 = vpop.f32.mrb[91].mxu0  ;;  %4997 = vmatmul.mubr.f32.gmra.mrb[84].mxu1 %v3511_v44  ;;  %v12250_v13 = vmov 0.0|0.0  }
 0x431   : > { %5001 = vmatprep.mubr.f32.mxu1 %v11321_v48  ;;  %v11331_v7 = vld [vmem:[#allocation2 + $0xf1] sm:$0xff] }
 0x433   : > { %v11324_v59 = vpop.f32.mrb[92].mxu0 }
 0x434   : > { %12239 = vst [vmem:[#allocation49_spill] sm:$0xff] %v11324_v59  ;;  %v4440_v52 = vpop.f32.mrb[93].mxu0  ;;  %5002 = vmatmul.mubr.f32.gmra.mrb[86].mxu1 %v3512_v18  ;;  %v6702_v59 = vld [vmem:[#allocation9 + $0x18] sm:$0xff] }
 0x435   : > { %5006 = vmatprep.mubr.f32.mxu1 %v11326_v62  ;;  %v11336_v52 = vld [vmem:[#allocation2 + $0xf9] sm:$0xff]  ;;  %v9103_v19 = vpack.c.bf16 %v6702_v59, %v6701_v11  ;;  %v3706_v59 = vld [vmem:[#allocation2 + $0x42] sm:$0xff] }
 0x437   : > { %v11329_v33 = vpop.f32.mrb[94].mxu0 }
 0x438   : > { %12240 = vst [vmem:[#allocation50_spill] sm:$0xff] %v11329_v33  ;;  %v4445_v39 = vpop.f32.mrb[95].mxu0  ;;  %5007 = vmatmul.mubr.f32.gmra.mrb[88].mxu1 %v3513_v20 }
 0x439   : > { %5011 = vmatprep.mubr.f32.mxu1 %v11331_v7  ;;  %v11341_v39 = vld [vmem:[#allocation2 + $0x101] sm:$0xff] }
 0x43b   : > { %v11334_v44 = vpop.f32.mrb[96].mxu0 }
 0x43c   : > { %12241 = vst [vmem:[#allocation51_spill] sm:$0xff] %v11334_v44  ;;  %v4450_v55 = vpop.f32.mrb[97].mxu0  ;;  %5012 = vmatmul.mubr.f32.gmra.mrb[90].mxu1 %v3514_v45 }
 0x43d   : > { %5016 = vmatprep.mubr.f32.mxu1 %v11336_v52  ;;  %v11347_v55 = vld [vmem:[#allocation2 + $0x109] sm:$0xff] }
 0x43f   : > { %v11339_v18 = vpop.f32.mrb[98].mxu0 }
 0x440   : > { %12242 = vst [vmem:[#allocation52_spill] sm:$0xff] %v11339_v18  ;;  %v4455_v50 = vpop.f32.mrb[99].mxu0  ;;  %5017 = vmatmul.mubr.f32.gmra.mrb[92].mxu1 %v3515_v26 }
 0x441   : > { %5021 = vmatprep.mubr.f32.mxu1 %v11341_v39  ;;  %v11353_v50 = vld [vmem:[#allocation2 + $0x111] sm:$0xff] }
 0x443   : > { %v11344_v20 = vpop.f32.mrb[100].mxu0 }
 0x444   : > { %12243 = vst [vmem:[#allocation53_spill] sm:$0xff] %v11344_v20  ;;  %v4460_v32 = vpop.f32.mrb[101].mxu0  ;;  %5022 = vmatmul.mubr.f32.gmra.mrb[94].mxu1 %v11167_v42 }
 0x445   : > { %5026 = vmatprep.mubr.f32.mxu1 %v11347_v55  ;;  %v11359_v32 = vld [vmem:[#allocation2 + $0x119] sm:$0xff] }
 0x447   : > { %v11350_v45 = vpop.f32.mrb[102].mxu0 }
 0x448   : > { %12244 = vst [vmem:[#allocation54_spill] sm:$0xff] %v11350_v45  ;;  %v4465_v44 = vpop.f32.mrb[103].mxu0  ;;  %5027 = vmatmul.mubr.f32.gmra.mrb[96].mxu1 %v11175_v53 }
 0x449   : > { %5031 = vmatprep.mubr.f32.mxu1 %v11353_v50  ;;  %v11365_v44 = vld [vmem:[#allocation2 + $0x121] sm:$0xff] }
 0x44b   : > { %v11356_v26 = vpop.f32.mrb[104].mxu0 }
 0x44c   : > { %12245 = vst [vmem:[#allocation55_spill] sm:$0xff] %v11356_v26  ;;  %v4470_v18 = vpop.f32.mrb[105].mxu0  ;;  %5032 = vmatmul.mubr.f32.gmra.mrb[98].mxu1 %v11183_v16 }
 0x44d   : > { %5036 = vmatprep.mubr.f32.mxu1 %v11359_v32  ;;  %v11371_v18 = vld [vmem:[#allocation2 + $0x129] sm:$0xff] }
 0x44f   : > { %v11362_v42 = vpop.f32.mrb[106].mxu0 }
 0x450   : > { %12246 = vst [vmem:[#allocation56_spill] sm:$0xff] %v11362_v42  ;;  %v4475_v20 = vpop.f32.mrb[107].mxu0  ;;  %5037 = vmatmul.mubr.f32.gmra.mrb[100].mxu1 %v11191_v51  ;;  %v6699_v51 = vld [vmem:[#allocation9] sm:$0xff]  ;;  %v6700_v42 = vld [vmem:[#allocation9 + $0x8] sm:$0xff] }
 0x451   : > { %5041 = vmatprep.mubr.f32.mxu1 %v11365_v44  ;;  %v11377_v20 = vld [vmem:[#allocation2 + $0x131] sm:$0xff] }
 0x453   : > { %v11368_v53 = vpop.f32.mrb[108].mxu0 }
 0x454   : > { %12247 = vst [vmem:[#allocation57_spill] sm:$0xff] %v11368_v53  ;;  %v4480_v45 = vpop.f32.mrb[109].mxu0  ;;  %5042 = vmatmul.mubr.f32.gmra.mrb[102].mxu1 %v11199_v34  ;;  %v3703_v34 = vld [vmem:[#allocation2 + $0x2a] sm:$0xff]  ;;  %v9100_v53 = vpack.c.bf16 %v6700_v42, %v6699_v51  ;;  %v3705_v42 = vld [vmem:[#allocation2 + $0x3a] sm:$0xff] }
 0x455   : > { %5046 = vmatprep.mubr.f32.mxu1 %v11371_v18 }
 0x457   : > { %v11374_v16 = vpop.f32.mrb[110].mxu0 }
 0x458   : > { %12248 = vst [vmem:[#allocation58_spill] sm:$0xff] %v11374_v16  ;;  %v4485_v26 = vpop.f32.mrb[111].mxu0  ;;  %5047 = vmatmul.mubr.f32.gmra.mrb[104].mxu1 %v11207_v46  ;;  %v3704_v46 = vld [vmem:[#allocation2 + $0x32] sm:$0xff] }
 0x459   : > { %5051 = vmatprep.mubr.f32.mxu1 %v11377_v20 }
 0x45b   : > { %v11380_v33 = vpop.f32.mrb[112].mxu0 }
 0x45c   : > { %12249 = vst [vmem:[#allocation59_spill] sm:$0xff] %v11380_v33  ;;  %v4490_v45 = vpop.f32.mrb[113].mxu0  ;;  %5052 = vmatmul.mubr.f32.gmra.mrb[106].mxu1 %v11215_v3  ;;  %v6703_v33 = vld [vmem:[#allocation9 + $0x20] sm:$0xff] }
 0x45d   : > { %5121 = vmatprep.mubr.f32.mxu1 %v3703_v34  ;;  %v6704_v45 = vld [vmem:[#allocation9 + $0x28] sm:$0xff]  ;;  %v6706_v34 = vld [vmem:[#allocation9 + $0x38] sm:$0xff] }
 0x45e   : > { %v9106_v51 = vpack.c.bf16 %v6704_v45, %v6703_v33 }
 0x45f   : > { %v11383_v16 = vpop.f32.mrb[114].mxu0 }
 0x460   : > { %v4495_v26 = vpop.f32.mrb[115].mxu0  ;;  %5122 = vmatmul.mubr.f32.vlgmr.msra.gmra.mrb[36].mxu1 %v11221_v60  ;;  %v6705_v60 = vld [vmem:[#allocation9 + $0x30] sm:$0xff] }
 0x461   : > { %5126 = vmatprep.mubr.f32.mxu1 %v3704_v46  ;;  %9101 = vmatpush1.bf16.msra.mxu1 %v9100_v53  ;;  %v3809_v53 = vld [vmem:[#allocation2 + $0x13b] sm:$0xff]  ;;  %v3810_v46 = vld [vmem:[#allocation2 + $0x143] sm:$0xff] }
 0x462   : > { %9102 = vmatprep.subr.bf16.mxu1 %v12250_v13  ;;  %8562 = vmatprep.mubr.f32.mxu0 %v3809_v53  ;;  %v3708_v53 = vld [vmem:[#allocation2 + $0x52] sm:$0xff] }
 0x463   : > { %v11387_v57 = vpop.f32.mrb[116].mxu0  ;;  %8563 = vmatmul.mubr.f32.gmra.mrb[178].mxu0 %v3810_v46 }
 0x464   : > { %v4500_v3 = vpop.f32.mrb[117].mxu0  ;;  %5127 = vmatmul.mubr.f32.gmra.mrb[38].mxu1 %v11225_v8  ;;  %v6707_v8 = vld [vmem:[#allocation9 + $0x40] sm:$0xff] }
 0x465   : > { %5131 = vmatprep.mubr.f32.mxu1 %v3705_v42  ;;  %9104 = vmatpush1.bf16.msra.mxu1 %v9103_v19  ;;  %v9109_v3 = vpack.c.bf16 %v6706_v34, %v6705_v60  ;;  %v6708_v19 = vld [vmem:[#allocation9 + $0x48] sm:$0xff]  ;;  %v3707_v42 = vld [vmem:[#allocation2 + $0x4a] sm:$0xff] }
 0x466   : > { %9105 = vmatprep.subr.bf16.mxu1 %v12250_v13  ;;  %v6795_v34 = vld [vmem:[#allocation9 + $0x300] sm:$0xff] }
 0x467   : > { %v11391_v26 = vpop.f32.mrb[118].mxu0 }
 0x468   : > { %12251 = vst [vmem:[#allocation60_spill] sm:$0xff] %v11391_v26  ;;  %v4505_v11 = vpop.f32.mrb[119].mxu0  ;;  %5132 = vmatmul.mubr.f32.gmra.mrb[40].mxu1 %v11229_v58  ;;  %v9112_v58 = vpack.c.bf16 %v6708_v19, %v6707_v8  ;;  %v6711_v8 = vld [vmem:[#allocation9 + $0x60] sm:$0xff]  ;;  %v6712_v19 = vld [vmem:[#allocation9 + $0x68] sm:$0xff] }
 0x469   : > { %5136 = vmatprep.mubr.f32.mxu1 %v3706_v59  ;;  %9107 = vmatpush1.bf16.msra.mxu1 %v9106_v51  ;;  %v6709_v11 = vld [vmem:[#allocation9 + $0x50] sm:$0xff]  ;;  %v6710_v51 = vld [vmem:[#allocation9 + $0x58] sm:$0xff]  ;;  %v6796_v59 = vld [vmem:[#allocation9 + $0x308] sm:$0xff] }
 0x46a   : > { %9108 = vmatprep.subr.bf16.mxu1 %v12250_v13  ;;  %v11402_v46 = vpack.c.bf16 %v6796_v59, %v6795_v34  ;;  %v3709_v59 = vld [vmem:[#allocation2 + $0x5a] sm:$0xff] }
 0x46b   : > { %v11395_v33 = vpop.f32.mrb[120].mxu0 }
 0x46c   : > { %v4510_v45 = vpop.f32.mrb[121].mxu0  ;;  %5137 = vmatmul.mubr.f32.gmra.mrb[42].mxu1 %v11233_v54  ;;  %12253 = vst [vmem:[#allocation62_spill] sm:$0xff] %v11402_v46  ;;  %v6798_v54 = vld [vmem:[#allocation9 + $0x318] sm:$0xff]  ;;  %9245 = vmatpush1.bf16.msra.mxu0 %v11402_v46 }
 0x46d   : > { %5141 = vmatprep.mubr.f32.mxu1 %v3707_v42  ;;  %9110 = vmatpush1.bf16.msra.mxu1 %v9109_v3  ;;  %v6797_v45 = vld [vmem:[#allocation9 + $0x310] sm:$0xff]  ;;  %v9115_v3 = vpack.c.bf16 %v6710_v51, %v6709_v11  ;;  %v6714_v51 = vld [vmem:[#allocation9 + $0x78] sm:$0xff] }
 0x46e   : > { %9111 = vmatprep.subr.bf16.mxu1 %v12250_v13  ;;  %v11406_v42 = vpack.c.bf16 %v6798_v54, %v6797_v45  ;;  %9246 = vmatprep.subr.bf16.mxu0 %v12250_v13  ;;  %v6713_v11 = vld [vmem:[#allocation9 + $0x70] sm:$0xff] }
 0x46f   : > { %v11399_v60 = vpop.f32.mrb[122].mxu0  ;;  %v6801_v54 = vld [vmem:[#allocation9 + $0x330] sm:$0xff] }
 0x470   : > { %12252 = vst [vmem:[#allocation61_spill] sm:$0xff] %v11399_v60  ;;  %v4515_v26 = vpop.f32.mrb[123].mxu0  ;;  %5142 = vmatmul.mubr.f32.gmra.mrb[44].mxu1 %v11237_v15  ;;  %12254 = vst [vmem:[#allocation63_spill] sm:$0xff] %v11406_v42  ;;  %v6799_v15 = vld [vmem:[#allocation9 + $0x320] sm:$0xff]  ;;  %9248 = vmatpush1.bf16.msra.mxu0 %v11406_v42 }
 0x471   : > { %5146 = vmatprep.mubr.f32.mxu1 %v3708_v53  ;;  %9113 = vmatpush1.bf16.msra.mxu1 %v9112_v58  ;;  %v6800_v26 = vld [vmem:[#allocation9 + $0x328] sm:$0xff]  ;;  %v9118_v58 = vpack.c.bf16 %v6712_v19, %v6711_v8  ;;  %v6715_v8 = vld [vmem:[#allocation9 + $0x80] sm:$0xff] }
 0x472   : > { %9114 = vmatprep.subr.bf16.mxu1 %v12250_v13  ;;  %v11414_v53 = vpack.c.bf16 %v6800_v26, %v6799_v15  ;;  %9249 = vmatprep.subr.bf16.mxu0 %v12250_v13  ;;  %v6716_v19 = vld [vmem:[#allocation9 + $0x88] sm:$0xff] }
 0x473   : > { %v11408_v60 = vpop.f32.mrb[124].mxu0 }
 0x474   : > { %v4520_v34 = vpop.f32.mrb[125].mxu0  ;;  %5147 = vmatmul.mubr.f32.gmra.mrb[46].mxu1 %v11241_v31  ;;  %12255 = vst [vmem:[#allocation64_spill] sm:$0xff] %v11414_v53  ;;  %v3710_v31 = vld [vmem:[#allocation2 + $0x62] sm:$0xff]  ;;  %9251 = vmatpush1.bf16.msra.mxu0 %v11414_v53 }
 0x475   : > { %5151 = vmatprep.mubr.f32.mxu1 %v3709_v59  ;;  %9116 = vmatpush1.bf16.msra.mxu1 %v9115_v3  ;;  %v6802_v34 = vld [vmem:[#allocation9 + $0x338] sm:$0xff]  ;;  %v9121_v3 = vpack.c.bf16 %v6714_v51, %v6713_v11  ;;  %v6803_v59 = vld [vmem:[#allocation9 + $0x340] sm:$0xff]  ;;  %v6717_v11 = vld [vmem:[#allocation9 + $0x90] sm:$0xff] }
 0x476   : > { %9117 = vmatprep.subr.bf16.mxu1 %v12250_v13  ;;  %v11422_v15 = vpack.c.bf16 %v6802_v34, %v6801_v54  ;;  %9252 = vmatprep.subr.bf16.mxu0 %v12250_v13  ;;  %v6718_v51 = vld [vmem:[#allocation9 + $0x98] sm:$0xff] }
 0x477   : > { %v11416_v45 = vpop.f32.mrb[126].mxu0 }
 0x478   : > { %v4525_v46 = vpop.f32.mrb[127].mxu0  ;;  %5152 = vmatmul.mubr.f32.gmra.mrb[48].mxu1 %v11245_v24  ;;  %12256 = vst [vmem:[#allocation65_spill] sm:$0xff] %v11422_v15  ;;  %v3711_v24 = vld [vmem:[#allocation2 + $0x6a] sm:$0xff]  ;;  %9254 = vmatpush1.bf16.msra.mxu0 %v11422_v15 }
 0x479   : > { %5156 = vmatprep.mubr.f32.mxu1 %v3710_v31  ;;  %9119 = vmatpush1.bf16.msra.mxu1 %v9118_v58  ;;  %v6804_v46 = vld [vmem:[#allocation9 + $0x348] sm:$0xff]  ;;  %v9124_v58 = vpack.c.bf16 %v6716_v19, %v6715_v8  ;;  %v6805_v31 = vld [vmem:[#allocation9 + $0x350] sm:$0xff]  ;;  %v6719_v8 = vld [vmem:[#allocation9 + $0xa0] sm:$0xff] }
 0x47a   : > { %9120 = vmatprep.subr.bf16.mxu1 %v12250_v13  ;;  %v11430_v54 = vpack.c.bf16 %v6804_v46, %v6803_v59  ;;  %9255 = vmatprep.subr.bf16.mxu0 %v12250_v13  ;;  %v6720_v19 = vld [vmem:[#allocation9 + $0xa8] sm:$0xff] }
 0x47b   : > { %v11424_v26 = vpop.f32.mrb[128].mxu0 }
 0x47c   : > { %12257 = vst [vmem:[#allocation66_spill] sm:$0xff] %v11424_v26  ;;  %v4530_v42 = vpop.f32.mrb[129].mxu0  ;;  %5157 = vmatmul.mubr.f32.gmra.mrb[50].mxu1 %v11249_v2  ;;  %12258 = vst [vmem:[#allocation67_spill] sm:$0xff] %v11430_v54  ;;  %v3712_v2 = vld [vmem:[#allocation2 + $0x72] sm:$0xff]  ;;  %9257 = vmatpush1.bf16.msra.mxu0 %v11430_v54 }
 0x47d   : > { %5161 = vmatprep.mubr.f32.mxu1 %v3711_v24  ;;  %9122 = vmatpush1.bf16.msra.mxu1 %v9121_v3  ;;  %v6806_v42 = vld [vmem:[#allocation9 + $0x358] sm:$0xff]  ;;  %v9127_v3 = vpack.c.bf16 %v6718_v51, %v6717_v11  ;;  %v6807_v24 = vld [vmem:[#allocation9 + $0x360] sm:$0xff]  ;;  %v6721_v11 = vld [vmem:[#allocation9 + $0xb0] sm:$0xff] }
 0x47e   : > { %9123 = vmatprep.subr.bf16.mxu1 %v12250_v13  ;;  %v11438_v59 = vpack.c.bf16 %v6806_v42, %v6805_v31  ;;  %9258 = vmatprep.subr.bf16.mxu0 %v12250_v13  ;;  %v6722_v51 = vld [vmem:[#allocation9 + $0xb8] sm:$0xff] }
 0x47f   : > { %v11432_v34 = vpop.f32.mrb[130].mxu0 }
 0x480   : > { %12259 = vst [vmem:[#allocation68_spill] sm:$0xff] %v11432_v34  ;;  %v4535_v53 = vpop.f32.mrb[131].mxu0  ;;  %5162 = vmatmul.mubr.f32.gmra.mrb[52].mxu1 %v11253_v21  ;;  %12260 = vst [vmem:[#allocation69_spill] sm:$0xff] %v11438_v59  ;;  %v3713_v21 = vld [vmem:[#allocation2 + $0x7a] sm:$0xff]  ;;  %9260 = vmatpush1.bf16.msra.mxu0 %v11438_v59 }
 0x481   : > { %5166 = vmatprep.mubr.f32.mxu1 %v3712_v2  ;;  %9125 = vmatpush1.bf16.msra.mxu1 %v9124_v58  ;;  %v6808_v53 = vld [vmem:[#allocation9 + $0x368] sm:$0xff]  ;;  %v9130_v58 = vpack.c.bf16 %v6720_v19, %v6719_v8  ;;  %v6809_v2 = vld [vmem:[#allocation9 + $0x370] sm:$0xff]  ;;  %v6723_v8 = vld [vmem:[#allocation9 + $0xc0] sm:$0xff] }
 0x482   : > { %9126 = vmatprep.subr.bf16.mxu1 %v12250_v13  ;;  %v11446_v31 = vpack.c.bf16 %v6808_v53, %v6807_v24  ;;  %9261 = vmatprep.subr.bf16.mxu0 %v12250_v13  ;;  %v6724_v19 = vld [vmem:[#allocation9 + $0xc8] sm:$0xff] }
 0x483   : > { %v11440_v46 = vpop.f32.mrb[132].mxu0 }
 0x484   : > { %12261 = vst [vmem:[#allocation70_spill] sm:$0xff] %v11440_v46  ;;  %v4540_v15 = vpop.f32.mrb[133].mxu0  ;;  %5167 = vmatmul.mubr.f32.gmra.mrb[54].mxu1 %v11257_v37  ;;  %12262 = vst [vmem:[#allocation71_spill] sm:$0xff] %v11446_v31  ;;  %v3714_v37 = vld [vmem:[#allocation2 + $0x82] sm:$0xff]  ;;  %9263 = vmatpush1.bf16.msra.mxu0 %v11446_v31 }
 0x485   : > { %5171 = vmatprep.mubr.f32.mxu1 %v3713_v21  ;;  %9128 = vmatpush1.bf16.msra.mxu1 %v9127_v3  ;;  %v6810_v15 = vld [vmem:[#allocation9 + $0x378] sm:$0xff]  ;;  %v9133_v3 = vpack.c.bf16 %v6722_v51, %v6721_v11 }
 0x486   : > { %9129 = vmatprep.subr.bf16.mxu1 %v12250_v13  ;;  %v11454_v24 = vpack.c.bf16 %v6810_v15, %v6809_v2  ;;  %9264 = vmatprep.subr.bf16.mxu0 %v12250_v13  ;;  %v6726_v11 = vld [vmem:[#allocation9 + $0xd8] sm:$0xff]  ;;  %v3716_v15 = vld [vmem:[#allocation2 + $0x92] sm:$0xff] }
 0x487   : > { %v11448_v42 = vpop.f32.mrb[134].mxu0 }
 0x488   : > { %12263 = vst [vmem:[#allocation72_spill] sm:$0xff] %v11448_v42  ;;  %v4545_v54 = vpop.f32.mrb[135].mxu0  ;;  %5172 = vmatmul.mubr.f32.gmra.mrb[56].mxu1 %v11261_v36  ;;  %12264 = vst [vmem:[#allocation73_spill] sm:$0xff] %v11454_v24  ;;  %v3715_v36 = vld [vmem:[#allocation2 + $0x8a] sm:$0xff]  ;;  %9266 = vmatpush1.bf16.msra.mxu0 %v11454_v24  ;;  %v3728_v42 = vld [vmem:[#allocation2 + $0xf2] sm:$0xff] }
 0x489   : > { %5176 = vmatprep.mubr.f32.mxu1 %v3714_v37  ;;  %9131 = vmatpush1.bf16.msra.mxu1 %v9130_v58  ;;  %v9136_v54 = vpack.c.bf16 %v6724_v19, %v6723_v8  ;;  %v6725_v58 = vld [vmem:[#allocation9 + $0xd0] sm:$0xff]  ;;  %v6727_v37 = vld [vmem:[#allocation9 + $0xe0] sm:$0xff] }
 0x48a   : > { %9132 = vmatprep.subr.bf16.mxu1 %v12250_v13  ;;  %9267 = vmatprep.subr.bf16.mxu0 %v12250_v13 }
 0x48b   : > { %v11456_v53 = vpop.f32.mrb[136].mxu0 }
 0x48c   : > { %12265 = vst [vmem:[#allocation74_spill] sm:$0xff] %v11456_v53  ;;  %v4550_v21 = vpop.f32.mrb[137].mxu0  ;;  %5177 = vmatmul.mubr.f32.gmra.mrb[58].mxu1 %v11265_v14  ;;  %v9139_v14 = vpack.c.bf16 %v6726_v11, %v6725_v58  ;;  %v3719_v11 = vld [vmem:[#allocation2 + $0xaa] sm:$0xff]  ;;  %v6816_v53 = vld [vmem:[#allocation9 + $0x3a8] sm:$0xff] }
 0x48d   : > { %5181 = vmatprep.mubr.f32.mxu1 %v3715_v36  ;;  %9134 = vmatpush1.bf16.msra.mxu1 %v9133_v3  ;;  %v6728_v3 = vld [vmem:[#allocation9 + $0xe8] sm:$0xff] }
 0x48e   : > { %9135 = vmatprep.subr.bf16.mxu1 %v12250_v13  ;;  %v3717_v21 = vld [vmem:[#allocation2 + $0x9a] sm:$0xff]  ;;  %v9142_v36 = vpack.c.bf16 %v6728_v3, %v6727_v37 }
 0x48f   : > { %v11462_v51 = vpop.f32.mrb[138].mxu0 }
 0x490   : > { %12266 = vst [vmem:[#allocation75_spill] sm:$0xff] %v11462_v51  ;;  %v4555_v2 = vpop.f32.mrb[139].mxu0  ;;  %5182 = vmatmul.mubr.f32.gmra.mrb[60].mxu1 %v11269_v40 }
 0x491   : > { %5186 = vmatprep.mubr.f32.mxu1 %v3716_v15  ;;  %9137 = vmatpush1.bf16.msra.mxu1 %v9136_v54  ;;  %v3718_v54 = vld [vmem:[#allocation2 + $0xa2] sm:$0xff] }
 0x492   : > { %9138 = vmatprep.subr.bf16.mxu1 %v12250_v13 }
 0x493   : > { %v11467_v8 = vpop.f32.mrb[140].mxu0 }
 0x494   : > { %12267 = vst [vmem:[#allocation76_spill] sm:$0xff] %v11467_v8  ;;  %v4560_v19 = vpop.f32.mrb[141].mxu0  ;;  %5187 = vmatmul.mubr.f32.gmra.mrb[62].mxu1 %v11273_v9 }
 0x495   : > { %5191 = vmatprep.mubr.f32.mxu1 %v3717_v21  ;;  %9140 = vmatpush1.bf16.msra.mxu1 %v9139_v14  ;;  %v3721_v19 = vld [vmem:[#allocation2 + $0xba] sm:$0xff] }
 0x496   : > { %9141 = vmatprep.subr.bf16.mxu1 %v12250_v13 }
 0x497   : > { %v11471_v40 = vpop.f32.mrb[142].mxu0 }
 0x498   : > { %12268 = vst [vmem:[#allocation77_spill] sm:$0xff] %v11471_v40  ;;  %v4565_v2 = vpop.f32.mrb[143].mxu0  ;;  %5192 = vmatmul.mubr.f32.gmra.mrb[64].mxu1 %v11277_v5  ;;  %v3720_v5 = vld [vmem:[#allocation2 + $0xb2] sm:$0xff]  ;;  %v3726_v40 = vld [vmem:[#allocation2 + $0xe2] sm:$0xff] }
 0x499   : > { %5196 = vmatprep.mubr.f32.mxu1 %v3718_v54  ;;  %9143 = vmatpush1.bf16.msra.mxu1 %v9142_v36  ;;  %v3722_v36 = vld [vmem:[#allocation2 + $0xc2] sm:$0xff]  ;;  %v3723_v54 = vld [vmem:[#allocation2 + $0xca] sm:$0xff] }
 0x49a   : > { %9144 = vmatprep.subr.bf16.mxu1 %v12250_v13 }
 0x49b   : > { %v11475_v58 = vpop.f32.mrb[144].mxu0 }
 0x49c   : > { %5197 = vmatmul.mubr.f32.gmra.mrb[66].mxu1 %v11281_v61  ;;  %v11478_v9 = vpop.f32.mrb[145].mxu0 }
 0x49d   : > { %5201 = vmatprep.mubr.f32.mxu1 %v3719_v11 }
 0x49f   : > { %v11480_v15 = vpop.f32.mrb[146].mxu0 }
 0x4a0   : > { %5202 = vmatmul.mubr.f32.gmra.mrb[68].mxu1 %v11286_v17  ;;  %v11483_v14 = vpop.f32.mrb[147].mxu0 }
 0x4a1   : > { %5206 = vmatprep.mubr.f32.mxu1 %v3720_v5  ;;  %v3724_v5 = vld [vmem:[#allocation2 + $0xd2] sm:$0xff] }
 0x4a3   : > { %v11485_v37 = vpop.f32.mrb[148].mxu0 }
 0x4a4   : > { %5207 = vmatmul.mubr.f32.gmra.mrb[70].mxu1 %v11291_v30  ;;  %v11488_v3 = vpop.f32.mrb[149].mxu0 }
 0x4a5   : > { %5211 = vmatprep.mubr.f32.mxu1 %v3721_v19  ;;  %v6811_v19 = vld [vmem:[#allocation9 + $0x380] sm:$0xff] }
 0x4a7   : > { %v11490_v61 = vpop.f32.mrb[150].mxu0 }
 0x4a8   : > { %5212 = vmatmul.mubr.f32.gmra.mrb[72].mxu1 %v11296_v63  ;;  %v11493_v21 = vpop.f32.mrb[151].mxu0 }
 0x4a9   : > { %5216 = vmatprep.mubr.f32.mxu1 %v3722_v36  ;;  %v6812_v36 = vld [vmem:[#allocation9 + $0x388] sm:$0xff] }
 0x4aa   : > { %v11510_v31 = vpack.c.bf16 %v6812_v36, %v6811_v19  ;;  %v6729_v36 = vld [vmem:[#allocation9 + $0xf0] sm:$0xff] }
 0x4ab   : > { %v11495_v17 = vpop.f32.mrb[152].mxu0 }
 0x4ac   : > { %5217 = vmatmul.mubr.f32.gmra.mrb[74].mxu1 %v11301_v23  ;;  %v11498_v2 = vpop.f32.mrb[153].mxu0  ;;  %v3725_v23 = vld [vmem:[#allocation2 + $0xda] sm:$0xff]  ;;  %12269 = vst [vmem:[#allocation78_spill] sm:$0xff] %v11510_v31  ;;  %9269 = vmatpush1.bf16.msra.mxu0 %v11510_v31  ;;  %v6815_v31 = vld [vmem:[#allocation9 + $0x3a0] sm:$0xff] }
 0x4ad   : > { %5221 = vmatprep.mubr.f32.mxu1 %v3723_v54  ;;  %9270 = vmatprep.subr.bf16.mxu0 %v12250_v13 }
 0x4af   : > { %v11500_v30 = vpop.f32.mrb[154].mxu0 }
 0x4b0   : > { %5222 = vmatmul.mubr.f32.gmra.mrb[76].mxu1 %v11306_v29  ;;  %v11503_v11 = vpop.f32.mrb[155].mxu0  ;;  %v6813_v29 = vld [vmem:[#allocation9 + $0x390] sm:$0xff] }
 0x4b1   : > { %5226 = vmatprep.mubr.f32.mxu1 %v3724_v5  ;;  %v6814_v5 = vld [vmem:[#allocation9 + $0x398] sm:$0xff] }
 0x4b3   : > { %v11505_v63 = vpop.f32.mrb[156].mxu0 }
 0x4b4   : > { %5227 = vmatmul.mubr.f32.gmra.mrb[78].mxu1 %v11311_v38  ;;  %v11508_v24 = vpop.f32.mrb[157].mxu0  ;;  %v11519_v38 = vpack.c.bf16 %v6814_v5, %v6813_v29  ;;  %v11528_v29 = vpack.c.bf16 %v6816_v53, %v6815_v31  ;;  %v6817_v5 = vld [vmem:[#allocation9 + $0x3b0] sm:$0xff]  ;;  %v6819_v53 = vld [vmem:[#allocation9 + $0x3c0] sm:$0xff] }
 0x4b5   : > { %5231 = vmatprep.mubr.f32.mxu1 %v3725_v23  ;;  %v6730_v23 = vld [vmem:[#allocation9 + $0xf8] sm:$0xff] }
 0x4b6   : > { %12270 = vst [vmem:[#allocation79_spill] sm:$0xff] %v11519_v38  ;;  %9272 = vmatpush1.bf16.msra.mxu0 %v11519_v38  ;;  %v9145_v51 = vpack.c.bf16 %v6730_v23, %v6729_v36  ;;  %12271 = vst [vmem:[#allocation80_spill] sm:$0xff] %v11528_v29  ;;  %v6818_v38 = vld [vmem:[#allocation9 + $0x3b8] sm:$0xff] }
 0x4b7   : > { %v11513_v54 = vpop.f32.mrb[158].mxu0  ;;  %9273 = vmatprep.subr.bf16.mxu0 %v12250_v13  ;;  %v11538_v36 = vpack.c.bf16 %v6818_v38, %v6817_v5  ;;  %v6822_v38 = vld [vmem:[#allocation9 + $0x3d8] sm:$0xff] }
 0x4b8   : > { %5232 = vmatmul.mubr.f32.gmra.mrb[80].mxu1 %v11316_v28  ;;  %v11517_v59 = vpop.f32.mrb[159].mxu0  ;;  %v3727_v28 = vld [vmem:[#allocation2 + $0xea] sm:$0xff] }
 0x4b9   : > { %5236 = vmatprep.mubr.f32.mxu1 %v3726_v40  ;;  %9146 = vmatpush1.bf16.msra.mxu1 %v9145_v51  ;;  %12272 = vst [vmem:[#allocation81_spill] sm:$0xff] %v11538_v36  ;;  %v6820_v51 = vld [vmem:[#allocation9 + $0x3c8] sm:$0xff] }
 0x4ba   : > { %9275 = vmatpush1.bf16.msra.mxu0 %v11528_v29  ;;  %9147 = vmatprep.subr.bf16.mxu1 %v12250_v13 }
 0x4bb   : > { %v11522_v19 = vpop.f32.mrb[160].mxu0  ;;  %9276 = vmatprep.subr.bf16.mxu0 %v12250_v13 }
 0x4bc   : > { %5237 = vmatmul.mubr.f32.gmra.mrb[82].mxu1 %v11321_v48  ;;  %v11526_v8 = vpop.f32.mrb[161].mxu0 }
 0x4bd   : > { %5241 = vmatprep.mubr.f32.mxu1 %v3727_v28  ;;  %v3729_v28 = vld [vmem:[#allocation2 + $0xfa] sm:$0xff] }
 0x4be   : > { %9278 = vmatpush1.bf16.msra.mxu0 %v11538_v36  ;;  %v3730_v36 = vld [vmem:[#allocation2 + $0x102] sm:$0xff] }
 0x4bf   : > { %v11530_v40 = vpop.f32.mrb[162].mxu0  ;;  %9279 = vmatprep.subr.bf16.mxu0 %v12250_v13 }
 0x4c0   : > { %5242 = vmatmul.mubr.f32.gmra.mrb[84].mxu1 %v11326_v62  ;;  %v11535_v48 = vpop.f32.mrb[163].mxu0  ;;  %v11547_v62 = vpack.c.bf16 %v6820_v51, %v6819_v53  ;;  %v6823_v53 = vld [vmem:[#allocation9 + $0x3e0] sm:$0xff]  ;;  %v6824_v51 = vld [vmem:[#allocation9 + $0x3e8] sm:$0xff] }
 0x4c1   : > { %5246 = vmatprep.mubr.f32.mxu1 %v3728_v42  ;;  %v6821_v42 = vld [vmem:[#allocation9 + $0x3d0] sm:$0xff] }
 0x4c2   : > { %12273 = vst [vmem:[#allocation82_spill] sm:$0xff] %v11547_v62  ;;  %9281 = vmatpush1.bf16.msra.mxu0 %v11547_v62  ;;  %v3731_v62 = vld [vmem:[#allocation2 + $0x10a] sm:$0xff] }
 0x4c3   : > { %v11540_v31 = vpop.f32.mrb[164].mxu0  ;;  %9282 = vmatprep.subr.bf16.mxu0 %v12250_v13 }
 0x4c4   : > { %5247 = vmatmul.mubr.f32.gmra.mrb[86].mxu1 %v11331_v7  ;;  %v11544_v23 = vpop.f32.mrb[165].mxu0  ;;  %v11556_v7 = vpack.c.bf16 %v6822_v38, %v6821_v42  ;;  %v6826_v42 = vld [vmem:[#allocation9 + $0x3f8] sm:$0xff] }
 0x4c5   : > { %5251 = vmatprep.mubr.f32.mxu1 %v3729_v28 }
 0x4c6   : > { %12274 = vst [vmem:[#allocation83_spill] sm:$0xff] %v11556_v7  ;;  %9284 = vmatpush1.bf16.msra.mxu0 %v11556_v7  ;;  %v3732_v7 = vld [vmem:[#allocation2 + $0x112] sm:$0xff] }
 0x4c7   : > { %v11549_v29 = vpop.f32.mrb[166].mxu0  ;;  %9285 = vmatprep.subr.bf16.mxu0 %v12250_v13 }
 0x4c8   : > { %5252 = vmatmul.mubr.f32.gmra.mrb[88].mxu1 %v11336_v52  ;;  %v11553_v5 = vpop.f32.mrb[167].mxu0  ;;  %v11565_v52 = vpack.c.bf16 %v6824_v51, %v6823_v53  ;;  %v3733_v53 = vld [vmem:[#allocation2 + $0x11a] sm:$0xff] }
 0x4c9   : > { %5256 = vmatprep.mubr.f32.mxu1 %v3730_v36  ;;  %v6825_v36 = vld [vmem:[#allocation9 + $0x3f0] sm:$0xff] }
 0x4ca   : > { %12275 = vst [vmem:[#allocation84_spill] sm:$0xff] %v11565_v52  ;;  %9287 = vmatpush1.bf16.msra.mxu0 %v11565_v52  ;;  %v3734_v52 = vld [vmem:[#allocation2 + $0x122] sm:$0xff] }
 0x4cb   : > { %v11558_v46 = vpop.f32.mrb[168].mxu0  ;;  %9288 = vmatprep.subr.bf16.mxu0 %v12250_v13 }
 0x4cc   : > { %5257 = vmatmul.mubr.f32.gmra.mrb[90].mxu1 %v11341_v39  ;;  %v11562_v28 = vpop.f32.mrb[169].mxu0  ;;  %v11574_v39 = vpack.c.bf16 %v6826_v42, %v6825_v36  ;;  %v3735_v42 = vld [vmem:[#allocation2 + $0x12a] sm:$0xff] }
 0x4cd   : > { %5261 = vmatprep.mubr.f32.mxu1 %v3731_v62 }
 0x4ce   : > { %12276 = vst [vmem:[#allocation85_spill] sm:$0xff] %v11574_v39  ;;  %9290 = vmatpush1.bf16.msra.mxu0 %v11574_v39  ;;  %v3738_v39 = vld [vmem:[#allocation2 + $0x142] sm:$0xff] }
 0x4cf   : > { %v11567_v34 = vpop.f32.mrb[170].mxu0 }
 0x4d0   : > { %5262 = vmatmul.mubr.f32.gmra.mrb[92].mxu1 %v11347_v55  ;;  %v11571_v38 = vpop.f32.mrb[171].mxu0 }
 0x4d1   : > { %5266 = vmatprep.mubr.f32.mxu1 %v3732_v7 }
 0x4d3   : > { %v11576_v26 = vpop.f32.mrb[172].mxu0 }
 0x4d4   : > { %12277 = vst [vmem:[#allocation86_spill] sm:$0xff] %v11576_v26  ;;  %5267 = vmatmul.mubr.f32.gmra.mrb[94].mxu1 %v11353_v50  ;;  %v11580_v62 = vpop.f32.mrb[173].mxu0  ;;  %v3736_v50 = vld [vmem:[#allocation2 + $0x132] sm:$0xff]  ;;  %v6734_v26 = vld [vmem:[#allocation9 + $0x118] sm:$0xff] }
 0x4d5   : > { %12278 = vst [vmem:[#allocation87_spill] sm:$0xff] %v11580_v62  ;;  %5271 = vmatprep.mubr.f32.mxu1 %v3733_v53  ;;  %v3737_v53 = vld [vmem:[#allocation2 + $0x13a] sm:$0xff] }
 0x4d7   : > { %v11582_v51 = vpop.f32.mrb[174].mxu0 }
 0x4d8   : > { %12279 = vst [vmem:[#allocation88_spill] sm:$0xff] %v11582_v51  ;;  %5272 = vmatmul.mubr.f32.gmra.mrb[96].mxu1 %v11359_v32  ;;  %v11585_v55 = vpop.f32.mrb[175].mxu0  ;;  %v3665_v32 = vld [vmem:[#allocation2 + $0x139] sm:$0xff]  ;;  %v6731_v51 = vld [vmem:[#allocation9 + $0x100] sm:$0xff] }
 0x4d9   : > { %12280 = vst [vmem:[#allocation89_spill] sm:$0xff] %v11585_v55  ;;  %5276 = vmatprep.mubr.f32.mxu1 %v3734_v52  ;;  %v3666_v52 = vld [vmem:[#allocation2 + $0x141] sm:$0xff]  ;;  %v5800_v55 = vld [vmem:[#allocation2 + $0xe] sm:$0xff] }
 0x4db   : > { %v11587_v36 = vpop.f32.mrb[176].mxu0 }
 0x4dc   : > { %12281 = vst [vmem:[#allocation90_spill] sm:$0xff] %v11587_v36  ;;  %5277 = vmatmul.mubr.f32.gmra.mrb[98].mxu1 %v11365_v44  ;;  %v11590_v7 = vpop.f32.mrb[177].mxu0  ;;  %v5799_v36 = vld [vmem:[#allocation2 + $0x6] sm:$0xff]  ;;  %v6732_v44 = vld [vmem:[#allocation9 + $0x108] sm:$0xff] }
 0x4dd   : > { %12282 = vst [vmem:[#allocation91_spill] sm:$0xff] %v11590_v7  ;;  %5281 = vmatprep.mubr.f32.mxu1 %v3735_v42  ;;  %v5727_v7 = vld [vmem:[#allocation2 + $0x5] sm:$0xff]  ;;  %v9148_v42 = vpack.c.bf16 %v6732_v44, %v6731_v51  ;;  %v6740_v44 = vld [vmem:[#allocation9 + $0x148] sm:$0xff] }
 0x4e0   : > { %5282 = vmatmul.mubr.f32.gmra.mrb[100].mxu1 %v11371_v18  ;;  %v6733_v18 = vld [vmem:[#allocation9 + $0x110] sm:$0xff] }
 0x4e1   : > { %5286 = vmatprep.mubr.f32.mxu1 %v3736_v50  ;;  %v9151_v50 = vpack.c.bf16 %v6734_v26, %v6733_v18  ;;  %v6741_v26 = vld [vmem:[#allocation9 + $0x150] sm:$0xff] }
 0x4e4   : > { %5287 = vmatmul.mubr.f32.gmra.mrb[102].mxu1 %v11377_v20  ;;  %v5728_v20 = vld [vmem:[#allocation2 + $0xd] sm:$0xff] }
 0x4e5   : > { %5291 = vmatprep.mubr.f32.mxu1 %v3737_v53  ;;  %v6735_v53 = vld [vmem:[#allocation9 + $0x120] sm:$0xff] }
 0x4e8   : > { %5292 = vmatmul.mubr.f32.gmra.mrb[104].mxu1 %v3665_v32 }
 0x4e9   : > { %5296 = vmatprep.mubr.f32.mxu1 %v3738_v39  ;;  %v6736_v39 = vld [vmem:[#allocation9 + $0x128] sm:$0xff] }
 0x4ea   : > { %v9154_v32 = vpack.c.bf16 %v6736_v39, %v6735_v53  ;;  %v6745_v39 = vld [vmem:[#allocation9 + $0x170] sm:$0xff] }
 0x4ec   : > { %5297 = vmatmul.mubr.f32.gmra.mrb[106].mxu1 %v3666_v52  ;;  %v6738_v52 = vld [vmem:[#allocation9 + $0x138] sm:$0xff] }
 0x4ed   : > { %6914 = vmatprep.mubr.f32.mxu1 %v5799_v36  ;;  %v6737_v36 = vld [vmem:[#allocation9 + $0x130] sm:$0xff] }
 0x4ee   : > { %v9157_v51 = vpack.c.bf16 %v6738_v52, %v6737_v36  ;;  %v6827_v52 = vld [vmem:[#allocation9 + $0x400] sm:$0xff] }
 0x4f0   : > { %6915 = vmatmul.mubr.f32.vlgmr.msra.gmra.mrb[108].mxu1 %v5727_v7  ;;  %v6739_v7 = vld [vmem:[#allocation9 + $0x140] sm:$0xff] }
 0x4f1   : > { %9149 = vmatpush1.bf16.msra.mxu1 %v9148_v42  ;;  %6919 = vmatprep.mubr.f32.mxu1 %v5800_v55  ;;  %v9160_v55 = vpack.c.bf16 %v6740_v44, %v6739_v7  ;;  %v6742_v42 = vld [vmem:[#allocation9 + $0x158] sm:$0xff]  ;;  %v6747_v44 = vld [vmem:[#allocation9 + $0x180] sm:$0xff] }
 0x4f2   : > { %9150 = vmatprep.subr.bf16.mxu1 %v12250_v13  ;;  %v9163_v18 = vpack.c.bf16 %v6742_v42, %v6741_v26  ;;  %v6749_v42 = vld [vmem:[#allocation9 + $0x190] sm:$0xff] }
 0x4f4   : > { %6920 = vmatmul.mubr.f32.gmra.mrb[110].mxu1 %v5728_v20  ;;  %v6743_v20 = vld [vmem:[#allocation9 + $0x160] sm:$0xff] }
 0x4f5   : > { %9152 = vmatpush1.bf16.msra.mxu1 %v9151_v50  ;;  %v6744_v50 = vld [vmem:[#allocation9 + $0x168] sm:$0xff] }
 0x4f6   : > { %9153 = vmatprep.subr.bf16.mxu1 %v12250_v13  ;;  %v9166_v53 = vpack.c.bf16 %v6744_v50, %v6743_v20  ;;  %v6751_v50 = vld [vmem:[#allocation9 + $0x1a0] sm:$0xff] }
 0x4f9   : > { %9155 = vmatpush1.bf16.msra.mxu1 %v9154_v32  ;;  %v6746_v32 = vld [vmem:[#allocation9 + $0x178] sm:$0xff] }
 0x4fa   : > { %9156 = vmatprep.subr.bf16.mxu1 %v12250_v13  ;;  %v9169_v36 = vpack.c.bf16 %v6746_v32, %v6745_v39  ;;  %v6753_v32 = vld [vmem:[#allocation9 + $0x1b0] sm:$0xff] }
 0x4fd   : > { %9158 = vmatpush1.bf16.msra.mxu1 %v9157_v51  ;;  %v6828_v51 = vld [vmem:[#allocation9 + $0x408] sm:$0xff] }
 0x4fe   : > { %9159 = vmatprep.subr.bf16.mxu1 %v12250_v13  ;;  %v11602_v7 = vpack.c.bf16 %v6828_v51, %v6827_v52  ;;  %v11612_v51 = vld [vmem:[%s12135_s5] ss:$0 sm:$0xff] }
 0x500   : > { %9292 = vmatprep.subr.bf16.mxu0 %v11602_v7 }
 0x501   : > { %9161 = vmatpush1.bf16.msra.mxu1 %v9160_v55  ;;  %v6748_v55 = vld [vmem:[#allocation9 + $0x188] sm:$0xff] }
 0x502   : > { %9162 = vmatprep.subr.bf16.mxu1 %v12250_v13  ;;  %v9172_v26 = vpack.c.bf16 %v6748_v55, %v6747_v44  ;;  %v4389_v44 = vadd.f32 %v11612_v51, %v11209_v4  ;;  %v4399_v4 = vadd.f32 %v11612_v51, %v11284_v56 }
 0x505   : > { %9164 = vmatpush1.bf16.msra.mxu1 %v9163_v18  ;;  %v6750_v18 = vld [vmem:[#allocation9 + $0x198] sm:$0xff] }
 0x506   : > { %9165 = vmatprep.subr.bf16.mxu1 %v12250_v13  ;;  %v9175_v20 = vpack.c.bf16 %v6750_v18, %v6749_v42  ;;  %v6755_v18 = vld [vmem:[#allocation9 + $0x1c0] sm:$0xff] }
 0x509   : > { %9167 = vmatpush1.bf16.msra.mxu1 %v9166_v53  ;;  %v6752_v53 = vld [vmem:[#allocation9 + $0x1a8] sm:$0xff] }
 0x50a   : > { %9168 = vmatprep.subr.bf16.mxu1 %v12250_v13  ;;  %v9178_v39 = vpack.c.bf16 %v6752_v53, %v6751_v50  ;;  %v4394_v50 = vadd.f32 %v11612_v51, %v11217_v12 }
 0x50d   : > { %9170 = vmatpush1.bf16.msra.mxu1 %v9169_v36  ;;  %v6754_v36 = vld [vmem:[#allocation9 + $0x1b8] sm:$0xff] }
 0x50e   : > { %9171 = vmatprep.subr.bf16.mxu1 %v12250_v13  ;;  %v9181_v52 = vpack.c.bf16 %v6754_v36, %v6753_v32 }
 0x511   : > { %9173 = vmatpush1.bf16.msra.mxu1 %v9172_v26 }
 0x512   : > { %9174 = vmatprep.subr.bf16.mxu1 %v12250_v13 }
 0x515   : > { %9176 = vmatpush1.bf16.msra.mxu1 %v9175_v20  ;;  %v6756_v20 = vld [vmem:[#allocation9 + $0x1c8] sm:$0xff] }
 0x516   : > { %9177 = vmatprep.subr.bf16.mxu1 %v12250_v13 }
 0x519   : > { %9179 = vmatpush1.bf16.msra.mxu1 %v9178_v39  ;;  %v9184_v39 = vpack.c.bf16 %v6756_v20, %v6755_v18  ;;  %v6757_v20 = vld [vmem:[#allocation9 + $0x1d0] sm:$0xff] }
 0x51a   : > { %9180 = vmatprep.subr.bf16.mxu1 %v12250_v13 }
 0x51d   : > { %9182 = vmatpush1.bf16.msra.mxu1 %v9181_v52 }
 0x51e   : > { %9183 = vmatprep.subr.bf16.mxu1 %v12250_v13 }
 0x521   : > { %9185 = vmatpush1.bf16.msra.mxu1 %v9184_v39 }
 0x522   : > { %9186 = vmatprep.subr.bf16.mxu1 %v12250_v13 }
 0x533   : > { %v5123_v55 = vpop.f32.mrb[36].mxu1 }
 0x534   : > { %v9392_v26 = vadd.f32 %v5123_v55, %v4389_v44  ;;  %v5125_v42 = vpop.f32.mrb[37].mxu1 }
 0x536   : > { %v5369_v53 = vadd.f32 %v9392_v26, %v11478_v9 }
 0x537   : > { %v5128_v32 = vpop.f32.mrb[38].mxu1 }
 0x538   : > { %vm5547_vm5 = vcmp.ge.f32.partialorder %v5369_v53, 0.0  ;;  %v5583_v36 = vmul.f32 0.2, %v5369_v53  ;;  %v9394_v52 = vadd.f32 %v5128_v32, %v4394_v50  ;;  %v5130_v62 = vpop.f32.mrb[39].mxu1  ;;  %v6758_v50 = vld [vmem:[#allocation9 + $0x1d8] sm:$0xff] }
 0x539   : > { %v4404_v62 = vadd.f32 %v11612_v51, %v11289_v49  ;;  %v9187_v56 = vpack.c.bf16 %v6758_v50, %v6757_v20  ;;  %v4409_v49 = vadd.f32 %v11612_v51, %v11294_v10  ;;  %v6759_v50 = vld [vmem:[#allocation9 + $0x1e0] sm:$0xff] }
 0x53a   : > { %v5619_v44 = vsel %vm5547_vm5, %v5369_v53, %v5583_v36  ;;  %v5374_v55 = vadd.f32 %v9394_v52, %v11475_v58  ;;  %v11628_v36 = vpop.f32.mrb[178].mxu0 }
 0x53b   : > { %v5655_v42 = vmul.f32 %v5619_v44, %v10991_v47  ;;  %v5133_v12 = vpop.f32.mrb[40].mxu1  ;;  %9188 = vmatpush1.bf16.msra.mxu1 %v9187_v56  ;;  %v11630_v44 = vpop.f32.mrb[179].mxu0 }
 0x53c   : > { %vm5548_vm6 = vcmp.ge.f32.partialorder %v5374_v55, 0.0  ;;  %v5584_v9 = vmul.f32 0.2, %v5374_v55  ;;  %v9396_v26 = vadd.f32 %v5133_v12, %v4399_v4  ;;  %v5135_v18 = vpop.f32.mrb[41].mxu1  ;;  %9189 = vmatprep.subr.bf16.mxu1 %v12250_v13 }
 0x53d   : > { %5691 = vst [vmem:[#allocation2 + $0x18] sm:$0xff] %v5655_v42 }
 0x53e   : > { %v5620_v39 = vsel %vm5548_vm6, %v5374_v55, %v5584_v9  ;;  %v5379_v32 = vadd.f32 %v9396_v26, %v11483_v14 }
 0x53f   : > { %v5656_v53 = vmul.f32 %v5620_v39, %v11001_v27  ;;  %v5138_v58 = vpop.f32.mrb[42].mxu1  ;;  %v4414_v39 = vadd.f32 %v11612_v51, %v11299_v41  ;;  %v6761_v41 = vld [vmem:[#allocation9 + $0x1f0] sm:$0xff] }
 0x540   : > { %vm5549_vm7 = vcmp.ge.f32.partialorder %v5379_v32, 0.0  ;;  %v5585_v47 = vmul.f32 0.2, %v5379_v32  ;;  %v9398_v52 = vadd.f32 %v5138_v58, %v4404_v62  ;;  %v5140_v4 = vpop.f32.mrb[43].mxu1  ;;  %v6760_v62 = vld [vmem:[#allocation9 + $0x1e8] sm:$0xff] }
 0x541   : > { %5692 = vst [vmem:[#allocation2 + $0x20] sm:$0xff] %v5656_v53 }
 0x542   : > { %v5621_v14 = vsel %vm5549_vm7, %v5379_v32, %v5585_v47  ;;  %v5384_v55 = vadd.f32 %v9398_v52, %v11480_v15  ;;  %v9190_v15 = vpack.c.bf16 %v6760_v62, %v6759_v50  ;;  %v6829_v50 = vld [vmem:[#allocation9 + $0x410] sm:$0xff]  ;;  %v6830_v62 = vld [vmem:[#allocation9 + $0x418] sm:$0xff] }
 0x543   : > { %v5657_v27 = vmul.f32 %v5621_v14, %v11005_v43  ;;  %v5143_v42 = vpop.f32.mrb[44].mxu1 }
 0x544   : > { %vm5550_vm8 = vcmp.ge.f32.partialorder %v5384_v55, 0.0  ;;  %v5586_v12 = vmul.f32 0.2, %v5384_v55  ;;  %v9400_v9 = vadd.f32 %v5143_v42, %v4409_v49  ;;  %v5145_v26 = vpop.f32.mrb[45].mxu1  ;;  %v5801_v18 = vld [vmem:[#allocation2 + $0x16] sm:$0xff]  ;;  %9191 = vmatpush1.bf16.msra.mxu1 %v9190_v15  ;;  %v6762_v49 = vld [vmem:[#allocation9 + $0x1f8] sm:$0xff] }
 0x545   : > { %v5729_v20 = vld [vmem:[#allocation2 + $0x15] sm:$0xff]  ;;  %5693 = vst [vmem:[#allocation2 + $0x28] sm:$0xff] %v5657_v27  ;;  %6924 = vmatprep.mubr.f32.mxu1 %v5801_v18  ;;  %9192 = vmatprep.subr.bf16.mxu1 %v12250_v13 }
 0x546   : > { %v5622_v10 = vsel %vm5550_vm8, %v5384_v55, %v5586_v12  ;;  %v5389_v32 = vadd.f32 %v9400_v9, %v11488_v3  ;;  %6925 = vmatmul.mubr.f32.gmra.mrb[112].mxu1 %v5729_v20  ;;  %v4419_v3 = vadd.f32 %v11612_v51, %v11304_v25  ;;  %v9193_v55 = vpack.c.bf16 %v6762_v49, %v6761_v41  ;;  %v12283_v49 = vld [vmem:[#allocation18_spill] sm:$0xff] }
 0x547   : > { %v5658_v43 = vmul.f32 %v5622_v10, %v11011_v35  ;;  %v5148_v56 = vpop.f32.mrb[46].mxu1  ;;  %v4424_v25 = vadd.f32 %v11612_v51, %v11309_v0 }
 0x548   : > { %vm5551_vm9 = vcmp.ge.f32.partialorder %v5389_v32, 0.0  ;;  %v5587_v53 = vmul.f32 0.2, %v5389_v32  ;;  %v9402_v58 = vadd.f32 %v5148_v56, %v4414_v39  ;;  %v5150_v47 = vpop.f32.mrb[47].mxu1  ;;  %v5802_v52 = vld [vmem:[#allocation2 + $0x1e] sm:$0xff]  ;;  %9194 = vmatpush1.bf16.msra.mxu1 %v9193_v55 }
 0x549   : > { %v5730_v4 = vld [vmem:[#allocation2 + $0x1d] sm:$0xff]  ;;  %5694 = vst [vmem:[#allocation2 + $0x30] sm:$0xff] %v5658_v43  ;;  %6929 = vmatprep.mubr.f32.mxu1 %v5802_v52  ;;  %9195 = vmatprep.subr.bf16.mxu1 %v12250_v13  ;;  %v9295_v47 = vpack.c.bf16 %v6830_v62, %v6829_v50 }
 0x54a   : > { %v5623_v14 = vsel %vm5551_vm9, %v5389_v32, %v5587_v53  ;;  %v5394_v35 = vadd.f32 %v9402_v58, %v11485_v37  ;;  %6930 = vmatmul.mubr.f32.gmra.mrb[114].mxu1 %v5730_v4  ;;  %v6831_v32 = vld [vmem:[#allocation9 + $0x420] sm:$0xff]  ;;  %v6832_v4 = vld [vmem:[#allocation9 + $0x428] sm:$0xff] }
 0x54b   : > { %v5659_v27 = vmul.f32 %v5623_v14, %v11017_v22  ;;  %v5153_v42 = vpop.f32.mrb[48].mxu1 }
 0x54c   : > { %vm5552_vm10 = vcmp.ge.f32.partialorder %v5394_v35, 0.0  ;;  %v5588_v12 = vmul.f32 0.2, %v5394_v35  ;;  %v9404_v9 = vadd.f32 %v5153_v42, %v4419_v3  ;;  %v5155_v26 = vpop.f32.mrb[49].mxu1  ;;  %v5803_v18 = vld [vmem:[#allocation2 + $0x26] sm:$0xff] }
 0x54d   : > { %v5731_v20 = vld [vmem:[#allocation2 + $0x25] sm:$0xff]  ;;  %5695 = vst [vmem:[#allocation2 + $0x38] sm:$0xff] %v5659_v27  ;;  %6934 = vmatprep.mubr.f32.mxu1 %v5803_v18  ;;  %v9299_v26 = vpack.c.bf16 %v6832_v4, %v6831_v32 }
 0x54e   : > { %v5624_v37 = vsel %vm5552_vm10, %v5394_v35, %v5588_v12  ;;  %v5399_v22 = vadd.f32 %v9404_v9, %v11493_v21  ;;  %6935 = vmatmul.mubr.f32.gmra.mrb[116].mxu1 %v5731_v20  ;;  %v4429_v21 = vadd.f32 %v11612_v51, %v11314_v1  ;;  %v6833_v35 = vld [vmem:[#allocation9 + $0x430] sm:$0xff]  ;;  %v6834_v18 = vld [vmem:[#allocation9 + $0x438] sm:$0xff] }
 0x54f   : > { %v5660_v39 = vmul.f32 %v5624_v37, %v11023_v6  ;;  %v5158_v10 = vpop.f32.mrb[50].mxu1  ;;  %v12284_v20 = vld [vmem:[#allocation48_spill] sm:$0xff] }
 0x550   : > { %vm5553_vm11 = vcmp.ge.f32.partialorder %v5399_v22, 0.0  ;;  %v5589_v15 = vmul.f32 0.2, %v5399_v22  ;;  %v9406_v43 = vadd.f32 %v5158_v10, %v4424_v25  ;;  %v5160_v56 = vpop.f32.mrb[51].mxu1  ;;  %v5804_v53 = vld [vmem:[#allocation2 + $0x2e] sm:$0xff]  ;;  %v4434_v50 = vadd.f32 %v11612_v51, %v12284_v20  ;;  %v12285_v25 = vld [vmem:[#allocation19_spill] sm:$0xff] }
 0x551   : > { %v6231_v58 = vld [vmem:[#allocation2 + $0x2a] sm:$0xff]  ;;  %5696 = vst [vmem:[#allocation2 + $0x40] sm:$0xff] %v5660_v39  ;;  %6939 = vmatprep.mubr.f32.mxu1 %v5804_v53  ;;  %v9303_v53 = vpack.c.bf16 %v6834_v18, %v6833_v35 }
 0x552   : > { %7649 = vmatprep.mubr.f32.mxu0 %v6231_v58  ;;  %v5732_v52 = vld [vmem:[#allocation2 + $0x2d] sm:$0xff]  ;;  %v5625_v41 = vsel %vm5553_vm11, %v5399_v22, %v5589_v15  ;;  %v5404_v6 = vadd.f32 %v9406_v43, %v11490_v61 }
 0x553   : > { %v6159_v0 = vld [vmem:[#allocation2 + $0x29] sm:$0xff]  ;;  %6940 = vmatmul.mubr.f32.gmra.mrb[118].mxu1 %v5732_v52  ;;  %v5661_v3 = vmul.f32 %v5625_v41, %v12283_v49  ;;  %v5163_v14 = vpop.f32.mrb[52].mxu1  ;;  %v6836_v52 = vld [vmem:[#allocation9 + $0x448] sm:$0xff]  ;;  %v12287_v41 = vld [vmem:[#allocation20_spill] sm:$0xff] }
 0x554   : > { %7650 = vmatmul.mubr.f32.vlgmr.msra.gmra.mrb[180].mxu0 %v6159_v0  ;;  %vm5554_vm12 = vcmp.ge.f32.partialorder %v5404_v6, 0.0  ;;  %v5590_v55 = vmul.f32 0.2, %v5404_v6  ;;  %v9408_v27 = vadd.f32 %v5163_v14, %v4429_v21  ;;  %v5165_v42 = vpop.f32.mrb[53].mxu1  ;;  %v5805_v12 = vld [vmem:[#allocation2 + $0x36] sm:$0xff]  ;;  %v12286_v0 = vld [vmem:[#allocation49_spill] sm:$0xff] }
 0x555   : > { %9294 = vmatpush3.bf16.msra.mxu0 %v11602_v7  ;;  %v6232_v9 = vld [vmem:[#allocation2 + $0x32] sm:$0xff]  ;;  %5697 = vst [vmem:[#allocation2 + $0x48] sm:$0xff] %v5661_v3  ;;  %6944 = vmatprep.mubr.f32.mxu1 %v5805_v12  ;;  %v4439_v4 = vadd.f32 %v11612_v51, %v12286_v0  ;;  %v6837_v3 = vld [vmem:[#allocation9 + $0x450] sm:$0xff] }
 0x556   : > { %9296 = vmatprep.subr.bf16.mxu0 %v9295_v47  ;;  %7654 = vmatprep.mubr.f32.mxu0 %v6232_v9  ;;  %v5733_v1 = vld [vmem:[#allocation2 + $0x35] sm:$0xff]  ;;  %v5626_v62 = vsel %vm5554_vm12, %v5404_v6, %v5590_v55  ;;  %v5409_v7 = vadd.f32 %v9408_v27, %v11498_v2 }
 0x557   : > { %v6160_v61 = vld [vmem:[#allocation2 + $0x31] sm:$0xff]  ;;  %6945 = vmatmul.mubr.f32.gmra.mrb[120].mxu1 %v5733_v1  ;;  %v5662_v37 = vmul.f32 %v5626_v62, %v12285_v25  ;;  %v5168_v22 = vpop.f32.mrb[54].mxu1  ;;  %v6838_v1 = vld [vmem:[#allocation9 + $0x458] sm:$0xff] }
 0x558   : > { %7655 = vmatmul.mubr.f32.gmra.mrb[182].mxu0 %v6160_v61  ;;  %v6835_v39 = vld [vmem:[#allocation9 + $0x440] sm:$0xff]  ;;  %vm5555_vm13 = vcmp.ge.f32.partialorder %v5409_v7, 0.0  ;;  %v5591_v10 = vmul.f32 0.2, %v5409_v7  ;;  %v9410_v32 = vadd.f32 %v5168_v22, %v4434_v50  ;;  %v5170_v15 = vpop.f32.mrb[55].mxu1  ;;  %v5806_v43 = vld [vmem:[#allocation2 + $0x3e] sm:$0xff] }
 0x559   : > { %9298 = vmatpush3.bf16.msra.mxu0 %v9295_v47  ;;  %v6233_v56 = vld [vmem:[#allocation2 + $0x3a] sm:$0xff]  ;;  %5698 = vst [vmem:[#allocation2 + $0x50] sm:$0xff] %v5662_v37  ;;  %6949 = vmatprep.mubr.f32.mxu1 %v5806_v43  ;;  %v9307_v12 = vpack.c.bf16 %v6836_v52, %v6835_v39  ;;  %v12288_v61 = vld [vmem:[#allocation50_spill] sm:$0xff]  ;;  %v12289_v50 = vld [vmem:[#allocation21_spill] sm:$0xff]  ;;  %v9311_v15 = vpack.c.bf16 %v6838_v1, %v6837_v3 }
 0x55a   : > { %9300 = vmatprep.subr.bf16.mxu0 %v9299_v26  ;;  %7659 = vmatprep.mubr.f32.mxu0 %v6233_v56  ;;  %v5734_v58 = vld [vmem:[#allocation2 + $0x3d] sm:$0xff]  ;;  %v5627_v21 = vsel %vm5555_vm13, %v5409_v7, %v5591_v10  ;;  %v5414_v47 = vadd.f32 %v9410_v32, %v11495_v17  ;;  %v4444_v18 = vadd.f32 %v11612_v51, %v12288_v61  ;;  %v6839_v25 = vld [vmem:[#allocation9 + $0x460] sm:$0xff] }
 0x55b   : > { %v6161_v2 = vld [vmem:[#allocation2 + $0x39] sm:$0xff]  ;;  %6950 = vmatmul.mubr.f32.gmra.mrb[122].mxu1 %v5734_v58  ;;  %v5663_v6 = vmul.f32 %v5627_v21, %v12287_v41  ;;  %v5173_v49 = vpop.f32.mrb[56].mxu1  ;;  %v12291_v0 = vld [vmem:[#allocation22_spill] sm:$0xff] }
 0x55c   : > { %7660 = vmatmul.mubr.f32.gmra.mrb[184].mxu0 %v6161_v2  ;;  %vm5556_vm14 = vcmp.ge.f32.partialorder %v5414_v47, 0.0  ;;  %v5592_v14 = vmul.f32 0.2, %v5414_v47  ;;  %v9412_v35 = vadd.f32 %v5173_v49, %v4439_v4  ;;  %v5175_v55 = vpop.f32.mrb[57].mxu1  ;;  %v5807_v27 = vld [vmem:[#allocation2 + $0x46] sm:$0xff]  ;;  %v6840_v56 = vld [vmem:[#allocation9 + $0x468] sm:$0xff] }
 0x55d   : > { %9302 = vmatpush3.bf16.msra.mxu0 %v9299_v26  ;;  %v6234_v42 = vld [vmem:[#allocation2 + $0x42] sm:$0xff]  ;;  %5699 = vst [vmem:[#allocation2 + $0x58] sm:$0xff] %v5663_v6  ;;  %6954 = vmatprep.mubr.f32.mxu1 %v5807_v27  ;;  %v12290_v58 = vld [vmem:[#allocation51_spill] sm:$0xff] }
 0x55e   : > { %9304 = vmatprep.subr.bf16.mxu0 %v9303_v53  ;;  %7664 = vmatprep.mubr.f32.mxu0 %v6234_v42  ;;  %v5735_v9 = vld [vmem:[#allocation2 + $0x45] sm:$0xff]  ;;  %v5628_v20 = vsel %vm5556_vm14, %v5414_v47, %v5592_v14  ;;  %v5419_v26 = vadd.f32 %v9412_v35, %v11503_v11  ;;  %v4449_v2 = vadd.f32 %v11612_v51, %v12290_v58  ;;  %v12293_v1 = vld [vmem:[#allocation23_spill] sm:$0xff] }
 0x55f   : > { %v6162_v17 = vld [vmem:[#allocation2 + $0x41] sm:$0xff]  ;;  %6955 = vmatmul.mubr.f32.gmra.mrb[124].mxu1 %v5735_v9  ;;  %v5664_v62 = vmul.f32 %v5628_v20, %v12289_v50  ;;  %v5178_v7 = vpop.f32.mrb[58].mxu1  ;;  %v9315_v35 = vpack.c.bf16 %v6840_v56, %v6839_v25 }
 0x560   : > { %7665 = vmatmul.mubr.f32.gmra.mrb[186].mxu0 %v6162_v17  ;;  %vm5557_vm15 = vcmp.ge.f32.partialorder %v5419_v26, 0.0  ;;  %v5593_v37 = vmul.f32 0.2, %v5419_v26  ;;  %v9414_v22 = vadd.f32 %v5178_v7, %v4444_v18  ;;  %v5180_v39 = vpop.f32.mrb[59].mxu1  ;;  %v5808_v10 = vld [vmem:[#allocation2 + $0x4e] sm:$0xff]  ;;  %v6841_v47 = vld [vmem:[#allocation9 + $0x470] sm:$0xff] }
 0x561   : > { %9306 = vmatpush3.bf16.msra.mxu0 %v9303_v53  ;;  %v6235_v32 = vld [vmem:[#allocation2 + $0x4a] sm:$0xff]  ;;  %5700 = vst [vmem:[#allocation2 + $0x60] sm:$0xff] %v5664_v62  ;;  %6959 = vmatprep.mubr.f32.mxu1 %v5808_v10  ;;  %v12292_v42 = vld [vmem:[#allocation52_spill] sm:$0xff] }
 0x562   : > { %9308 = vmatprep.subr.bf16.mxu0 %v9307_v12  ;;  %7669 = vmatprep.mubr.f32.mxu0 %v6235_v32  ;;  %v5736_v43 = vld [vmem:[#allocation2 + $0x4d] sm:$0xff]  ;;  %v5629_v52 = vsel %vm5557_vm15, %v5419_v26, %v5593_v37  ;;  %v5424_v53 = vadd.f32 %v9414_v22, %v11500_v30  ;;  %v4454_v9 = vadd.f32 %v11612_v51, %v12292_v42 }
 0x563   : > { %v6163_v11 = vld [vmem:[#allocation2 + $0x49] sm:$0xff]  ;;  %6960 = vmatmul.mubr.f32.gmra.mrb[126].mxu1 %v5736_v43  ;;  %v5665_v4 = vmul.f32 %v5629_v52, %v12291_v0  ;;  %v5183_v21 = vpop.f32.mrb[60].mxu1 }
 0x564   : > { %7670 = vmatmul.mubr.f32.gmra.mrb[188].mxu0 %v6163_v11  ;;  %vm5558_vm0 = vcmp.ge.f32.partialorder %v5424_v53, 0.0  ;;  %v5594_v41 = vmul.f32 0.2, %v5424_v53  ;;  %v9416_v6 = vadd.f32 %v5183_v21, %v4449_v2  ;;  %v5185_v49 = vpop.f32.mrb[61].mxu1  ;;  %v5809_v3 = vld [vmem:[#allocation2 + $0x56] sm:$0xff]  ;;  %v6842_v27 = vld [vmem:[#allocation9 + $0x478] sm:$0xff] }
 0x565   : > { %9310 = vmatpush3.bf16.msra.mxu0 %v9307_v12  ;;  %v6236_v14 = vld [vmem:[#allocation2 + $0x52] sm:$0xff]  ;;  %5701 = vst [vmem:[#allocation2 + $0x68] sm:$0xff] %v5665_v4  ;;  %6964 = vmatprep.mubr.f32.mxu1 %v5809_v3  ;;  %v9319_v25 = vpack.c.bf16 %v6842_v27, %v6841_v47 }
 0x566   : > { %9312 = vmatprep.subr.bf16.mxu0 %v9311_v15  ;;  %7674 = vmatprep.mubr.f32.mxu0 %v6236_v14  ;;  %v5737_v55 = vld [vmem:[#allocation2 + $0x55] sm:$0xff]  ;;  %v5630_v17 = vsel %vm5558_vm0, %v5424_v53, %v5594_v41  ;;  %v5429_v12 = vadd.f32 %v9416_v6, %v11508_v24  ;;  %v12294_v24 = vld [vmem:[#allocation53_spill] sm:$0xff] }
 0x567   : > { %v6164_v30 = vld [vmem:[#allocation2 + $0x51] sm:$0xff]  ;;  %6965 = vmatmul.mubr.f32.gmra.mrb[128].mxu1 %v5737_v55  ;;  %v5666_v61 = vmul.f32 %v5630_v17, %v12293_v1  ;;  %v5188_v18 = vpop.f32.mrb[62].mxu1  ;;  %v4459_v39 = vadd.f32 %v11612_v51, %v12294_v24  ;;  %v12297_v6 = vld [vmem:[#allocation25_spill] sm:$0xff]  ;;  %v12300_v24 = vld [vmem:[#allocation56_spill] sm:$0xff] }
 0x568   : > { %7675 = vmatmul.mubr.f32.gmra.mrb[190].mxu0 %v6164_v30  ;;  %vm5559_vm1 = vcmp.ge.f32.partialorder %v5429_v12, 0.0  ;;  %v5595_v20 = vmul.f32 0.2, %v5429_v12  ;;  %v9418_v26 = vadd.f32 %v5188_v18, %v4454_v9  ;;  %v5190_v50 = vpop.f32.mrb[63].mxu1  ;;  %v5810_v62 = vld [vmem:[#allocation2 + $0x5e] sm:$0xff]  ;;  %v12296_v21 = vld [vmem:[#allocation54_spill] sm:$0xff] }
 0x569   : > { %9314 = vmatpush3.bf16.msra.mxu0 %v9311_v15  ;;  %v6237_v7 = vld [vmem:[#allocation2 + $0x5a] sm:$0xff]  ;;  %5702 = vst [vmem:[#allocation2 + $0x70] sm:$0xff] %v5666_v61  ;;  %6969 = vmatprep.mubr.f32.mxu1 %v5810_v62  ;;  %v12299_v61 = vld [vmem:[#allocation26_spill] sm:$0xff] }
 0x56a   : > { %9316 = vmatprep.subr.bf16.mxu0 %v9315_v35  ;;  %7679 = vmatprep.mubr.f32.mxu0 %v6237_v7  ;;  %v5738_v37 = vld [vmem:[#allocation2 + $0x5d] sm:$0xff]  ;;  %v5631_v10 = vsel %vm5559_vm1, %v5429_v12, %v5595_v20  ;;  %v5434_v32 = vadd.f32 %v9418_v26, %v11505_v63  ;;  %v4464_v63 = vadd.f32 %v11612_v51, %v12296_v21 }
 0x56b   : > { %v6165_v22 = vld [vmem:[#allocation2 + $0x59] sm:$0xff]  ;;  %6970 = vmatmul.mubr.f32.gmra.mrb[130].mxu1 %v5738_v37  ;;  %v5193_v11 = vpop.f32.mrb[64].mxu1 }
 0x56c   : > { %7680 = vmatmul.mubr.f32.gmra.mrb[192].mxu0 %v6165_v22  ;;  %v12295_v15 = vld [vmem:[#allocation24_spill] sm:$0xff]  ;;  %vm5560_vm2 = vcmp.ge.f32.partialorder %v5434_v32, 0.0  ;;  %v5596_v56 = vmul.f32 0.2, %v5434_v32  ;;  %v9420_v58 = vadd.f32 %v5193_v11, %v4459_v39  ;;  %v5195_v2 = vpop.f32.mrb[65].mxu1  ;;  %v12298_v17 = vld [vmem:[#allocation55_spill] sm:$0xff]  ;;  %v4474_v39 = vadd.f32 %v11612_v51, %v12300_v24 }
 0x56d   : > { %v5667_v43 = vmul.f32 %v5631_v10, %v12295_v15  ;;  %9318 = vmatpush3.bf16.msra.mxu0 %v9315_v35  ;;  %v5811_v52 = vld [vmem:[#allocation2 + $0x66] sm:$0xff]  ;;  %v12307_v24 = vld [vmem:[#allocation30_spill] sm:$0xff] }
 0x56e   : > { %v6238_v53 = vld [vmem:[#allocation2 + $0x62] sm:$0xff]  ;;  %9320 = vmatprep.subr.bf16.mxu0 %v9319_v25  ;;  %6974 = vmatprep.mubr.f32.mxu1 %v5811_v52  ;;  %v5632_v47 = vsel %vm5560_vm2, %v5434_v32, %v5596_v56  ;;  %v5439_v41 = vadd.f32 %v9420_v58, %v11517_v59  ;;  %v4469_v59 = vadd.f32 %v11612_v51, %v12298_v17  ;;  %v12301_v32 = vld [vmem:[#allocation27_spill] sm:$0xff] }
 0x56f   : > { %5703 = vst [vmem:[#allocation2 + $0x78] sm:$0xff] %v5667_v43  ;;  %7684 = vmatprep.mubr.f32.mxu0 %v6238_v53  ;;  %v5739_v0 = vld [vmem:[#allocation2 + $0x65] sm:$0xff]  ;;  %v5668_v49 = vmul.f32 %v5632_v47, %v12297_v6  ;;  %v5198_v3 = vpop.f32.mrb[66].mxu1 }
 0x570   : > { %v6166_v4 = vld [vmem:[#allocation2 + $0x61] sm:$0xff]  ;;  %6975 = vmatmul.mubr.f32.gmra.mrb[132].mxu1 %v5739_v0  ;;  %vm5561_vm3 = vcmp.ge.f32.partialorder %v5439_v41, 0.0  ;;  %v5597_v14 = vmul.f32 0.2, %v5439_v41  ;;  %v9422_v35 = vadd.f32 %v5198_v3, %v4464_v63  ;;  %v5200_v55 = vpop.f32.mrb[67].mxu1  ;;  %v5812_v30 = vld [vmem:[#allocation2 + $0x6e] sm:$0xff] }
 0x571   : > { %7685 = vmatmul.mubr.f32.gmra.mrb[194].mxu0 %v6166_v4  ;;  %v6239_v27 = vld [vmem:[#allocation2 + $0x6a] sm:$0xff]  ;;  %5704 = vst [vmem:[#allocation2 + $0x80] sm:$0xff] %v5668_v49  ;;  %6979 = vmatprep.mubr.f32.mxu1 %v5812_v30  ;;  %v12303_v47 = vld [vmem:[#allocation28_spill] sm:$0xff] }
 0x572   : > { %9322 = vmatpush3.bf16.msra.mxu0 %v9319_v25  ;;  %7689 = vmatprep.mubr.f32.mxu0 %v6239_v27  ;;  %v5740_v42 = vld [vmem:[#allocation2 + $0x6d] sm:$0xff]  ;;  %v5633_v12 = vsel %vm5561_vm3, %v5439_v41, %v5597_v14  ;;  %v5444_v1 = vadd.f32 %v9422_v35, %v11513_v54 }
 0x573   : > { %v6167_v9 = vld [vmem:[#allocation2 + $0x69] sm:$0xff]  ;;  %v5669_v18 = vmul.f32 %v5633_v12, %v12299_v61  ;;  %v5203_v20 = vpop.f32.mrb[68].mxu1 }
 0x574   : > { %6980 = vmatmul.mubr.f32.gmra.mrb[134].mxu1 %v5740_v42  ;;  %vm5562_vm4 = vcmp.ge.f32.partialorder %v5444_v1, 0.0  ;;  %v5598_v26 = vmul.f32 0.2, %v5444_v1  ;;  %v9424_v50 = vadd.f32 %v5203_v20, %v4469_v59  ;;  %v5205_v62 = vpop.f32.mrb[69].mxu1  ;;  %v12302_v4 = vld [vmem:[#allocation57_spill] sm:$0xff]  ;;  %v12304_v42 = vld [vmem:[#allocation58_spill] sm:$0xff] }
 0x575   : > { %7690 = vmatmul.mubr.f32.gmra.mrb[196].mxu0 %v6167_v9  ;;  %5705 = vst [vmem:[#allocation2 + $0x88] sm:$0xff] %v5669_v18  ;;  %v4479_v21 = vadd.f32 %v11612_v51, %v12302_v4  ;;  %v4484_v9 = vadd.f32 %v11612_v51, %v12304_v42  ;;  %v12305_v59 = vld [vmem:[#allocation29_spill] sm:$0xff] }
 0x576   : > { %v5813_v7 = vld [vmem:[#allocation2 + $0x76] sm:$0xff]  ;;  %v5634_v54 = vsel %vm5562_vm4, %v5444_v1, %v5598_v26  ;;  %v5449_v10 = vadd.f32 %v9424_v50, %v11526_v8 }
 0x577   : > { %v6240_v25 = vld [vmem:[#allocation2 + $0x72] sm:$0xff]  ;;  %6984 = vmatprep.mubr.f32.mxu1 %v5813_v7  ;;  %v5670_v15 = vmul.f32 %v5634_v54, %v12301_v32  ;;  %v5208_v43 = vpop.f32.mrb[70].mxu1 }
 0x578   : > { %7694 = vmatprep.mubr.f32.mxu0 %v6240_v25  ;;  %v5741_v37 = vld [vmem:[#allocation2 + $0x75] sm:$0xff]  ;;  %vm5563_vm5 = vcmp.ge.f32.partialorder %v5449_v10, 0.0  ;;  %v5599_v11 = vmul.f32 0.2, %v5449_v10  ;;  %v9426_v56 = vadd.f32 %v5208_v43, %v4474_v39  ;;  %v5210_v58 = vpop.f32.mrb[71].mxu1  ;;  %v5814_v2 = vld [vmem:[#allocation2 + $0x7e] sm:$0xff] }
 0x579   : > { %v6168_v22 = vld [vmem:[#allocation2 + $0x71] sm:$0xff]  ;;  %6985 = vmatmul.mubr.f32.gmra.mrb[136].mxu1 %v5741_v37  ;;  %v6241_v52 = vld [vmem:[#allocation2 + $0x7a] sm:$0xff]  ;;  %5706 = vst [vmem:[#allocation2 + $0x90] sm:$0xff] %v5670_v15 }
 0x57a   : > { %7695 = vmatmul.mubr.f32.gmra.mrb[198].mxu0 %v6168_v22  ;;  %6989 = vmatprep.mubr.f32.mxu1 %v5814_v2  ;;  %v5742_v53 = vld [vmem:[#allocation2 + $0x7d] sm:$0xff]  ;;  %v5635_v8 = vsel %vm5563_vm5, %v5449_v10, %v5599_v11  ;;  %v5454_v63 = vadd.f32 %v9426_v56, %v11522_v19  ;;  %v4494_v2 = vadd.f32 %v11612_v51, %v11383_v16 }
 0x57b   : > { %7699 = vmatprep.mubr.f32.mxu0 %v6241_v52  ;;  %v6169_v0 = vld [vmem:[#allocation2 + $0x79] sm:$0xff]  ;;  %v5671_v41 = vmul.f32 %v5635_v8, %v12303_v47  ;;  %v5213_v6 = vpop.f32.mrb[72].mxu1  ;;  %v4499_v16 = vadd.f32 %v11612_v51, %v11387_v57 }
 0x57c   : > { %vm5564_vm6 = vcmp.ge.f32.partialorder %v5454_v63, 0.0  ;;  %v5600_v49 = vmul.f32 0.2, %v5454_v63  ;;  %v9428_v3 = vadd.f32 %v5213_v6, %v4479_v21  ;;  %v5215_v14 = vpop.f32.mrb[73].mxu1  ;;  %v5815_v35 = vld [vmem:[#allocation2 + $0x86] sm:$0xff]  ;;  %v12306_v25 = vld [vmem:[#allocation59_spill] sm:$0xff] }
 0x57d   : > { %6990 = vmatmul.mubr.f32.gmra.mrb[138].mxu1 %v5742_v53  ;;  %v6242_v55 = vld [vmem:[#allocation2 + $0x82] sm:$0xff]  ;;  %5707 = vst [vmem:[#allocation2 + $0x98] sm:$0xff] %v5671_v41  ;;  %v4489_v37 = vadd.f32 %v11612_v51, %v12306_v25  ;;  %v12308_v53 = vld [vmem:[#allocation31_spill] sm:$0xff] }
 0x57e   : > { %7700 = vmatmul.mubr.f32.gmra.mrb[200].mxu0 %v6169_v0  ;;  %6994 = vmatprep.mubr.f32.mxu1 %v5815_v35  ;;  %v5743_v30 = vld [vmem:[#allocation2 + $0x85] sm:$0xff]  ;;  %v5636_v19 = vsel %vm5564_vm6, %v5454_v63, %v5600_v49  ;;  %v5459_v17 = vadd.f32 %v9428_v3, %v11535_v48 }
 0x57f   : > { %7704 = vmatprep.mubr.f32.mxu0 %v6242_v55  ;;  %v6170_v27 = vld [vmem:[#allocation2 + $0x81] sm:$0xff]  ;;  %v5672_v12 = vmul.f32 %v5636_v19, %v12305_v59  ;;  %v5218_v1 = vpop.f32.mrb[74].mxu1 }
 0x580   : > { %vm5565_vm7 = vcmp.ge.f32.partialorder %v5459_v17, 0.0  ;;  %v5601_v61 = vmul.f32 0.2, %v5459_v17  ;;  %v9430_v18 = vadd.f32 %v5218_v1, %v4484_v9  ;;  %v5220_v20 = vpop.f32.mrb[75].mxu1  ;;  %v5816_v26 = vld [vmem:[#allocation2 + $0x8e] sm:$0xff]  ;;  %v12309_v14 = vld [vmem:[#allocation32_spill] sm:$0xff] }
 0x581   : > { %6995 = vmatmul.mubr.f32.gmra.mrb[140].mxu1 %v5743_v30  ;;  %v6243_v50 = vld [vmem:[#allocation2 + $0x8a] sm:$0xff]  ;;  %5708 = vst [vmem:[#allocation2 + $0xa0] sm:$0xff] %v5672_v12  ;;  %v12310_v57 = vld [vmem:[#allocation60_spill] sm:$0xff] }
 0x582   : > { %7705 = vmatmul.mubr.f32.gmra.mrb[202].mxu0 %v6170_v27  ;;  %6999 = vmatprep.mubr.f32.mxu1 %v5816_v26  ;;  %v5744_v62 = vld [vmem:[#allocation2 + $0x8d] sm:$0xff]  ;;  %v5637_v48 = vsel %vm5565_vm7, %v5459_v17, %v5601_v61  ;;  %v5464_v22 = vadd.f32 %v9430_v18, %v11530_v40  ;;  %v4504_v12 = vadd.f32 %v11612_v51, %v12310_v57 }
 0x583   : > { %7709 = vmatprep.mubr.f32.mxu0 %v6243_v50  ;;  %v6171_v7 = vld [vmem:[#allocation2 + $0x89] sm:$0xff]  ;;  %v5673_v39 = vmul.f32 %v5637_v48, %v12307_v24  ;;  %v5223_v54 = vpop.f32.mrb[76].mxu1 }
 0x584   : > { %vm5566_vm8 = vcmp.ge.f32.partialorder %v5464_v22, 0.0  ;;  %v5602_v10 = vmul.f32 0.2, %v5464_v22  ;;  %v9432_v32 = vadd.f32 %v5223_v54, %v4489_v37  ;;  %v5225_v15 = vpop.f32.mrb[77].mxu1  ;;  %v5817_v43 = vld [vmem:[#allocation2 + $0x96] sm:$0xff]  ;;  %v12311_v61 = vld [vmem:[#allocation33_spill] sm:$0xff] }
 0x585   : > { %7000 = vmatmul.mubr.f32.gmra.mrb[142].mxu1 %v5744_v62  ;;  %v6244_v11 = vld [vmem:[#allocation2 + $0x92] sm:$0xff]  ;;  %5709 = vst [vmem:[#allocation2 + $0xa8] sm:$0xff] %v5673_v39  ;;  %v12316_v57 = vld [vmem:[#allocation37_spill] sm:$0xff] }
 0x586   : > { %7710 = vmatmul.mubr.f32.gmra.mrb[204].mxu0 %v6171_v7  ;;  %7004 = vmatprep.mubr.f32.mxu1 %v5817_v43  ;;  %v5745_v56 = vld [vmem:[#allocation2 + $0x95] sm:$0xff]  ;;  %v5638_v40 = vsel %vm5566_vm8, %v5464_v22, %v5602_v10  ;;  %v5469_v52 = vadd.f32 %v9432_v32, %v11544_v23  ;;  %v4509_v22 = vadd.f32 %v11612_v51, %v11395_v33  ;;  %v12313_v33 = vld [vmem:[#allocation61_spill] sm:$0xff] }
 0x587   : > { %7714 = vmatprep.mubr.f32.mxu0 %v6244_v11  ;;  %v6172_v58 = vld [vmem:[#allocation2 + $0x91] sm:$0xff]  ;;  %v5674_v0 = vmul.f32 %v5638_v40, %v12308_v53  ;;  %v5228_v4 = vpop.f32.mrb[78].mxu1  ;;  %v4514_v40 = vadd.f32 %v11612_v51, %v12313_v33 }
 0x588   : > { %vm5567_vm9 = vcmp.ge.f32.partialorder %v5469_v52, 0.0  ;;  %v5603_v21 = vmul.f32 0.2, %v5469_v52  ;;  %v9434_v8 = vadd.f32 %v5228_v4, %v4494_v2  ;;  %v5230_v63 = vpop.f32.mrb[79].mxu1  ;;  %v5818_v47 = vld [vmem:[#allocation2 + $0x9e] sm:$0xff]  ;;  %v12312_v39 = vld [vmem:[#allocation34_spill] sm:$0xff] }
 0x589   : > { %7005 = vmatmul.mubr.f32.gmra.mrb[144].mxu1 %v5745_v56  ;;  %v6245_v41 = vld [vmem:[#allocation2 + $0x9a] sm:$0xff]  ;;  %5710 = vst [vmem:[#allocation2 + $0xb0] sm:$0xff] %v5674_v0 }
 0x58a   : > { %7715 = vmatmul.mubr.f32.gmra.mrb[206].mxu0 %v6172_v58  ;;  %7009 = vmatprep.mubr.f32.mxu1 %v5818_v47  ;;  %v5746_v6 = vld [vmem:[#allocation2 + $0x9d] sm:$0xff]  ;;  %v5639_v23 = vsel %vm5567_vm9, %v5469_v52, %v5603_v21  ;;  %v5474_v3 = vadd.f32 %v9434_v8, %v11540_v31 }
 0x58b   : > { %7719 = vmatprep.mubr.f32.mxu0 %v6245_v41  ;;  %v6173_v49 = vld [vmem:[#allocation2 + $0x99] sm:$0xff]  ;;  %v5675_v35 = vmul.f32 %v5639_v23, %v12309_v14  ;;  %v5233_v55 = vpop.f32.mrb[80].mxu1 }
 0x58c   : > { %vm5568_vm10 = vcmp.ge.f32.partialorder %v5474_v3, 0.0  ;;  %v5604_v30 = vmul.f32 0.2, %v5474_v3  ;;  %v9436_v27 = vadd.f32 %v5233_v55, %v4499_v16  ;;  %v5235_v42 = vpop.f32.mrb[81].mxu1  ;;  %v5819_v9 = vld [vmem:[#allocation2 + $0xa6] sm:$0xff]  ;;  %v12314_v53 = vld [vmem:[#allocation35_spill] sm:$0xff]  ;;  %v4519_v16 = vadd.f32 %v11612_v51, %v11408_v60 }
 0x58d   : > { %7010 = vmatmul.mubr.f32.gmra.mrb[146].mxu1 %v5746_v6  ;;  %v6246_v19 = vld [vmem:[#allocation2 + $0xa2] sm:$0xff]  ;;  %5711 = vst [vmem:[#allocation2 + $0xb8] sm:$0xff] %v5675_v35  ;;  %v4524_v60 = vadd.f32 %v11612_v51, %v11416_v45  ;;  %v12317_v45 = vld [vmem:[#allocation66_spill] sm:$0xff] }
 0x58e   : > { %7720 = vmatmul.mubr.f32.gmra.mrb[208].mxu0 %v6173_v49  ;;  %7014 = vmatprep.mubr.f32.mxu1 %v5819_v9  ;;  %v5747_v17 = vld [vmem:[#allocation2 + $0xa5] sm:$0xff]  ;;  %v5640_v31 = vsel %vm5568_vm10, %v5474_v3, %v5604_v30  ;;  %v5479_v1 = vadd.f32 %v9436_v27, %v11553_v5 }
 0x58f   : > { %7724 = vmatprep.mubr.f32.mxu0 %v6246_v19  ;;  %v6174_v59 = vld [vmem:[#allocation2 + $0xa1] sm:$0xff]  ;;  %v5676_v18 = vmul.f32 %v5640_v31, %v12311_v61  ;;  %v5238_v20 = vpop.f32.mrb[82].mxu1 }
 0x590   : > { %vm5569_vm11 = vcmp.ge.f32.partialorder %v5479_v1, 0.0  ;;  %v5605_v26 = vmul.f32 0.2, %v5479_v1  ;;  %v9438_v50 = vadd.f32 %v5238_v20, %v4504_v12  ;;  %v5240_v62 = vpop.f32.mrb[83].mxu1  ;;  %v5820_v7 = vld [vmem:[#allocation2 + $0xae] sm:$0xff]  ;;  %v12315_v3 = vld [vmem:[#allocation36_spill] sm:$0xff] }
 0x591   : > { %7015 = vmatmul.mubr.f32.gmra.mrb[148].mxu1 %v5747_v17  ;;  %v6247_v25 = vld [vmem:[#allocation2 + $0xaa] sm:$0xff]  ;;  %5712 = vst [vmem:[#allocation2 + $0xc0] sm:$0xff] %v5676_v18 }
 0x592   : > { %7725 = vmatmul.mubr.f32.gmra.mrb[210].mxu0 %v6174_v59  ;;  %7019 = vmatprep.mubr.f32.mxu1 %v5820_v7  ;;  %v5748_v37 = vld [vmem:[#allocation2 + $0xad] sm:$0xff]  ;;  %v5641_v5 = vsel %vm5569_vm11, %v5479_v1, %v5605_v26  ;;  %v5484_v24 = vadd.f32 %v9438_v50, %v11549_v29  ;;  %v4529_v7 = vadd.f32 %v11612_v51, %v12317_v45  ;;  %v12319_v51 = vld [vmem:[#allocation68_spill] sm:$0xff] }
 0x593   : > { %7729 = vmatprep.mubr.f32.mxu0 %v6247_v25  ;;  %v6175_v48 = vld [vmem:[#allocation2 + $0xa9] sm:$0xff]  ;;  %v5677_v54 = vmul.f32 %v5641_v5, %v12312_v39  ;;  %v5243_v10 = vpop.f32.mrb[84].mxu1 }
 0x594   : > { %vm5570_vm12 = vcmp.ge.f32.partialorder %v5484_v24, 0.0  ;;  %v5606_v32 = vmul.f32 0.2, %v5484_v24  ;;  %v9440_v15 = vadd.f32 %v5243_v10, %v4509_v22  ;;  %v5245_v43 = vpop.f32.mrb[85].mxu1  ;;  %v5821_v11 = vld [vmem:[#allocation2 + $0xb6] sm:$0xff] }
 0x595   : > { %7020 = vmatmul.mubr.f32.gmra.mrb[150].mxu1 %v5748_v37  ;;  %v6248_v56 = vld [vmem:[#allocation2 + $0xb2] sm:$0xff]  ;;  %5713 = vst [vmem:[#allocation2 + $0xc8] sm:$0xff] %v5677_v54 }
 0x596   : > { %7730 = vmatmul.mubr.f32.gmra.mrb[212].mxu0 %v6175_v48  ;;  %7024 = vmatprep.mubr.f32.mxu1 %v5821_v11  ;;  %v5749_v58 = vld [vmem:[#allocation2 + $0xb5] sm:$0xff]  ;;  %v5642_v29 = vsel %vm5570_vm12, %v5484_v24, %v5606_v32  ;;  %v5489_v52 = vadd.f32 %v9440_v15, %v11562_v28 }
 0x597   : > { %7734 = vmatprep.mubr.f32.mxu0 %v6248_v56  ;;  %v6176_v2 = vld [vmem:[#allocation2 + $0xb1] sm:$0xff]  ;;  %v5678_v0 = vmul.f32 %v5642_v29, %v12314_v53  ;;  %v5248_v4 = vpop.f32.mrb[86].mxu1 }
 0x598   : > { %vm5571_vm13 = vcmp.ge.f32.partialorder %v5489_v52, 0.0  ;;  %v5607_v21 = vmul.f32 0.2, %v5489_v52  ;;  %v9442_v8 = vadd.f32 %v5248_v4, %v4514_v40  ;;  %v5250_v63 = vpop.f32.mrb[87].mxu1  ;;  %v5822_v47 = vld [vmem:[#allocation2 + $0xbe] sm:$0xff]  ;;  %v12318_v37 = vld [vmem:[#allocation38_spill] sm:$0xff] }
 0x599   : > { %7025 = vmatmul.mubr.f32.gmra.mrb[152].mxu1 %v5749_v58  ;;  %v6249_v41 = vld [vmem:[#allocation2 + $0xba] sm:$0xff]  ;;  %5714 = vst [vmem:[#allocation2 + $0xd0] sm:$0xff] %v5678_v0  ;;  %v12322_v63 = vld [vmem:[#allocation70_spill] sm:$0xff] }
 0x59a   : > { %7735 = vmatmul.mubr.f32.gmra.mrb[214].mxu0 %v6176_v2  ;;  %7029 = vmatprep.mubr.f32.mxu1 %v5822_v47  ;;  %v5750_v6 = vld [vmem:[#allocation2 + $0xbd] sm:$0xff]  ;;  %v5643_v28 = vsel %vm5571_vm13, %v5489_v52, %v5607_v21  ;;  %v5494_v23 = vadd.f32 %v9442_v8, %v11558_v46 }
 0x59b   : > { %7739 = vmatprep.mubr.f32.mxu0 %v6249_v41  ;;  %v6177_v49 = vld [vmem:[#allocation2 + $0xb9] sm:$0xff]  ;;  %v5679_v14 = vmul.f32 %v5643_v28, %v12315_v3  ;;  %v5253_v35 = vpop.f32.mrb[88].mxu1 }
 0x59c   : > { %vm5572_vm14 = vcmp.ge.f32.partialorder %v5494_v23, 0.0  ;;  %v5608_v55 = vmul.f32 0.2, %v5494_v23  ;;  %v9444_v30 = vadd.f32 %v5253_v35, %v4519_v16  ;;  %v5255_v27 = vpop.f32.mrb[89].mxu1  ;;  %v5823_v42 = vld [vmem:[#allocation2 + $0xc6] sm:$0xff]  ;;  %v12320_v56 = vld [vmem:[#allocation87_spill] sm:$0xff] }
 0x59d   : > { %7030 = vmatmul.mubr.f32.gmra.mrb[154].mxu1 %v5750_v6  ;;  %v6250_v9 = vld [vmem:[#allocation2 + $0xc2] sm:$0xff]  ;;  %5715 = vst [vmem:[#allocation2 + $0xd8] sm:$0xff] %v5679_v14  ;;  %v12321_v2 = vld [vmem:[#allocation39_spill] sm:$0xff]  ;;  %v12323_v6 = vld [vmem:[#allocation86_spill] sm:$0xff] }
 0x59e   : > { %7740 = vmatmul.mubr.f32.gmra.mrb[216].mxu0 %v6177_v49  ;;  %7034 = vmatprep.mubr.f32.mxu1 %v5823_v42  ;;  %v5751_v19 = vld [vmem:[#allocation2 + $0xc5] sm:$0xff]  ;;  %v5644_v46 = vsel %vm5572_vm14, %v5494_v23, %v5608_v55  ;;  %v5499_v59 = vadd.f32 %v9444_v30, %v11571_v38  ;;  %v6304_v42 = vld [vmem:[#allocation2 + $0x33] sm:$0xff] }
 0x59f   : > { %7744 = vmatprep.mubr.f32.mxu0 %v6250_v9  ;;  %v6178_v17 = vld [vmem:[#allocation2 + $0xc1] sm:$0xff]  ;;  %v5680_v12 = vmul.f32 %v5644_v46, %v12316_v57  ;;  %v5258_v31 = vpop.f32.mrb[90].mxu1  ;;  %v6303_v16 = vld [vmem:[#allocation2 + $0x2b] sm:$0xff] }
 0x5a0   : > { %vm5573_vm15 = vcmp.ge.f32.partialorder %v5499_v59, 0.0  ;;  %v5609_v1 = vmul.f32 0.2, %v5499_v59  ;;  %v9446_v61 = vadd.f32 %v5258_v31, %v4524_v60  ;;  %v5260_v18 = vpop.f32.mrb[91].mxu1  ;;  %v5824_v20 = vld [vmem:[#allocation2 + $0xce] sm:$0xff]  ;;  %v12324_v28 = vld [vmem:[#allocation40_spill] sm:$0xff] }
 0x5a1   : > { %7035 = vmatmul.mubr.f32.gmra.mrb[156].mxu1 %v5751_v19  ;;  %v6251_v26 = vld [vmem:[#allocation2 + $0xca] sm:$0xff]  ;;  %5716 = vst [vmem:[#allocation2 + $0xe0] sm:$0xff] %v5680_v12  ;;  %v12325_v9 = vld [vmem:[#allocation72_spill] sm:$0xff] }
 0x5a2   : > { %7745 = vmatmul.mubr.f32.gmra.mrb[218].mxu0 %v6178_v17  ;;  %7039 = vmatprep.mubr.f32.mxu1 %v5824_v20  ;;  %v5752_v50 = vld [vmem:[#allocation2 + $0xcd] sm:$0xff]  ;;  %v5645_v38 = vsel %vm5573_vm15, %v5499_v59, %v5609_v1  ;;  %v5504_v25 = vadd.f32 %v9446_v61, %v11567_v34  ;;  %v11739_v34 = vld [vmem:[%s12135_s5] ss:$0 sm:$0xff] }
 0x5a3   : > { %7749 = vmatprep.mubr.f32.mxu0 %v6251_v26  ;;  %v6179_v62 = vld [vmem:[#allocation2 + $0xc9] sm:$0xff]  ;;  %v5681_v48 = vmul.f32 %v5645_v38, %v12318_v37  ;;  %v5263_v22 = vpop.f32.mrb[92].mxu1  ;;  %v4534_v43 = vadd.f32 %v11739_v34, %v12319_v51  ;;  %v4539_v47 = vadd.f32 %v11739_v34, %v12322_v63  ;;  %v4544_v19 = vadd.f32 %v11739_v34, %v12325_v9  ;;  %v6305_v59 = vld [vmem:[#allocation2 + $0x3b] sm:$0xff] }
 0x5a4   : > { %vm5574_vm0 = vcmp.ge.f32.partialorder %v5504_v25, 0.0  ;;  %v5610_v5 = vmul.f32 0.2, %v5504_v25  ;;  %v9448_v24 = vadd.f32 %v5263_v22, %v4529_v7  ;;  %v5265_v39 = vpop.f32.mrb[93].mxu1  ;;  %v5825_v54 = vld [vmem:[#allocation2 + $0xd6] sm:$0xff]  ;;  %v12326_v60 = vld [vmem:[#allocation89_spill] sm:$0xff] }
 0x5a5   : > { %7040 = vmatmul.mubr.f32.gmra.mrb[158].mxu1 %v5752_v50  ;;  %v6252_v10 = vld [vmem:[#allocation2 + $0xd2] sm:$0xff]  ;;  %5717 = vst [vmem:[#allocation2 + $0xe8] sm:$0xff] %v5681_v48  ;;  %v12327_v57 = vld [vmem:[#allocation41_spill] sm:$0xff]  ;;  %v12329_v38 = vld [vmem:[#allocation88_spill] sm:$0xff] }
 0x5a6   : > { %7750 = vmatmul.mubr.f32.gmra.mrb[220].mxu0 %v6179_v62  ;;  %7044 = vmatprep.mubr.f32.mxu1 %v5825_v54  ;;  %v5753_v32 = vld [vmem:[#allocation2 + $0xd5] sm:$0xff]  ;;  %v5646_v11 = vsel %vm5574_vm0, %v5504_v25, %v5610_v5  ;;  %v5509_v58 = vadd.f32 %v9448_v24, %v12320_v56  ;;  %v6306_v50 = vld [vmem:[#allocation2 + $0x43] sm:$0xff]  ;;  %v6307_v37 = vld [vmem:[#allocation2 + $0x4b] sm:$0xff] }
 0x5a7   : > { %7754 = vmatprep.mubr.f32.mxu0 %v6252_v10  ;;  %v6180_v15 = vld [vmem:[#allocation2 + $0xd1] sm:$0xff]  ;;  %v5682_v33 = vmul.f32 %v5646_v11, %v12321_v2  ;;  %v5268_v40 = vpop.f32.mrb[94].mxu1  ;;  %v6309_v2 = vld [vmem:[#allocation2 + $0x5b] sm:$0xff]  ;;  %v12337_v9 = vld [vmem:[#allocation77_spill] sm:$0xff] }
 0x5a8   : > { %vm5575_vm1 = vcmp.ge.f32.partialorder %v5509_v58, 0.0  ;;  %v5611_v29 = vmul.f32 0.2, %v5509_v58  ;;  %v9450_v52 = vadd.f32 %v5268_v40, %v4534_v43  ;;  %v5270_v53 = vpop.f32.mrb[95].mxu1  ;;  %v5826_v0 = vld [vmem:[#allocation2 + $0xde] sm:$0xff]  ;;  %v12328_v62 = vld [vmem:[#allocation74_spill] sm:$0xff] }
 0x5a9   : > { %7045 = vmatmul.mubr.f32.gmra.mrb[160].mxu1 %v5753_v32  ;;  %v6253_v4 = vld [vmem:[#allocation2 + $0xda] sm:$0xff]  ;;  %5718 = vst [vmem:[#allocation2 + $0xf0] sm:$0xff] %v5682_v33  ;;  %v4549_v45 = vadd.f32 %v11739_v34, %v12328_v62  ;;  %v12330_v48 = vld [vmem:[#allocation42_spill] sm:$0xff] }
 0x5aa   : > { %7755 = vmatmul.mubr.f32.gmra.mrb[222].mxu0 %v6180_v15  ;;  %7049 = vmatprep.mubr.f32.mxu1 %v5826_v0  ;;  %v5754_v21 = vld [vmem:[#allocation2 + $0xdd] sm:$0xff]  ;;  %v5647_v41 = vsel %vm5575_vm1, %v5509_v58, %v5611_v29  ;;  %v5514_v49 = vadd.f32 %v9450_v52, %v12323_v6  ;;  %v6308_v15 = vld [vmem:[#allocation2 + $0x53] sm:$0xff] }
 0x5ab   : > { %7759 = vmatprep.mubr.f32.mxu0 %v6253_v4  ;;  %v6181_v8 = vld [vmem:[#allocation2 + $0xd9] sm:$0xff]  ;;  %v5683_v23 = vmul.f32 %v5647_v41, %v12324_v28  ;;  %v5273_v3 = vpop.f32.mrb[96].mxu1  ;;  %v12335_v6 = vld [vmem:[#allocation90_spill] sm:$0xff] }
 0x5ac   : > { %vm5576_vm2 = vcmp.ge.f32.partialorder %v5514_v49, 0.0  ;;  %v5612_v14 = vmul.f32 0.2, %v5514_v49  ;;  %v9452_v35 = vadd.f32 %v5273_v3, %v4539_v47  ;;  %v5275_v55 = vpop.f32.mrb[97].mxu1  ;;  %v5827_v30 = vld [vmem:[#allocation2 + $0xe6] sm:$0xff]  ;;  %v12331_v51 = vld [vmem:[#allocation75_spill] sm:$0xff] }
 0x5ad   : > { %7050 = vmatmul.mubr.f32.gmra.mrb[162].mxu1 %v5754_v21  ;;  %v5755_v27 = vld [vmem:[#allocation2 + $0xe5] sm:$0xff]  ;;  %5719 = vst [vmem:[#allocation2 + $0xf8] sm:$0xff] %v5683_v23  ;;  %v4554_v43 = vadd.f32 %v11739_v34, %v12331_v51  ;;  %v12332_v56 = vld [vmem:[#allocation91_spill] sm:$0xff]  ;;  %v12339_v62 = vld [vmem:[#allocation46_spill] sm:$0xff] }
 0x5ae   : > { %7760 = vmatmul.mubr.f32.gmra.mrb[224].mxu0 %v6181_v8  ;;  %7054 = vmatprep.mubr.f32.mxu1 %v5827_v30  ;;  %v5648_v17 = vsel %vm5576_vm2, %v5514_v49, %v5612_v14  ;;  %v5519_v46 = vadd.f32 %v9452_v35, %v12326_v60  ;;  %v12333_v33 = vld [vmem:[#allocation43_spill] sm:$0xff]  ;;  %v6310_v8 = vld [vmem:[#allocation2 + $0x63] sm:$0xff]  ;;  %v6319_v51 = vld [vmem:[#allocation2 + $0xab] sm:$0xff] }
 0x5af   : > { %8597 = vmatprep.mubr.f32.mxu0 %v6303_v16  ;;  %v5684_v12 = vmul.f32 %v5648_v17, %v12327_v57  ;;  %v5278_v31 = vpop.f32.mrb[98].mxu1  ;;  %v12334_v63 = vld [vmem:[#allocation76_spill] sm:$0xff]  ;;  %v6311_v16 = vld [vmem:[#allocation2 + $0x6b] sm:$0xff] }
 0x5b0   : > { %vm5577_vm3 = vcmp.ge.f32.partialorder %v5519_v46, 0.0  ;;  %v5613_v1 = vmul.f32 0.2, %v5519_v46  ;;  %v9454_v61 = vadd.f32 %v5278_v31, %v4544_v19  ;;  %v5280_v18 = vpop.f32.mrb[99].mxu1  ;;  %v5828_v20 = vld [vmem:[#allocation2 + $0xee] sm:$0xff]  ;;  %v4559_v47 = vadd.f32 %v11739_v34, %v12334_v63  ;;  %v12336_v28 = vld [vmem:[#allocation44_spill] sm:$0xff] }
 0x5b1   : > { %7055 = vmatmul.mubr.f32.gmra.mrb[164].mxu1 %v5755_v27  ;;  %v5756_v26 = vld [vmem:[#allocation2 + $0xed] sm:$0xff]  ;;  %5720 = vst [vmem:[#allocation2 + $0x100] sm:$0xff] %v5684_v12  ;;  %v4564_v19 = vadd.f32 %v11739_v34, %v12337_v9 }
 0x5b2   : > { %8598 = vmatmul.mubr.f32.vlgmr.msra.gmra.mrb[226].mxu0 %v6304_v42  ;;  %7059 = vmatprep.mubr.f32.mxu1 %v5828_v20  ;;  %v5649_v7 = vsel %vm5577_vm3, %v5519_v46, %v5613_v1  ;;  %v5524_v25 = vadd.f32 %v9454_v61, %v12329_v38  ;;  %v6312_v42 = vld [vmem:[#allocation2 + $0x73] sm:$0xff]  ;;  %v6313_v46 = vld [vmem:[#allocation2 + $0x7b] sm:$0xff]  ;;  %v6774_v9 = vld [vmem:[#allocation9 + $0x258] sm:$0xff] }
 0x5b3   : > { %8600 = vmatprep.mubr.f32.mxu0 %v6305_v59  ;;  %v5685_v22 = vmul.f32 %v5649_v7, %v12330_v48  ;;  %v5283_v5 = vpop.f32.mrb[100].mxu1  ;;  %v12338_v59 = vld [vmem:[#allocation45_spill] sm:$0xff] }
 0x5b4   : > { %vm5578_vm4 = vcmp.ge.f32.partialorder %v5524_v25, 0.0  ;;  %v5614_v24 = vmul.f32 0.2, %v5524_v25  ;;  %v9456_v39 = vadd.f32 %v5283_v5, %v4549_v45  ;;  %v5285_v54 = vpop.f32.mrb[101].mxu1  ;;  %v5829_v10 = vld [vmem:[#allocation2 + $0xf6] sm:$0xff] }
 0x5b5   : > { %7060 = vmatmul.mubr.f32.gmra.mrb[166].mxu1 %v5756_v26  ;;  %v5757_v32 = vld [vmem:[#allocation2 + $0xf5] sm:$0xff]  ;;  %5721 = vst [vmem:[#allocation2 + $0x108] sm:$0xff] %v5685_v22  ;;  %v6314_v26 = vld [vmem:[#allocation2 + $0x83] sm:$0xff] }
 0x5b6   : > { %8601 = vmatmul.mubr.f32.gmra.mrb[228].mxu0 %v6306_v50  ;;  %7064 = vmatprep.mubr.f32.mxu1 %v5829_v10  ;;  %v5650_v11 = vsel %vm5578_vm4, %v5524_v25, %v5614_v24  ;;  %v5529_v58 = vadd.f32 %v9456_v39, %v12332_v56  ;;  %v6317_v22 = vld [vmem:[#allocation2 + $0x9b] sm:$0xff]  ;;  %v6320_v56 = vld [vmem:[#allocation2 + $0xb3] sm:$0xff] }
 0x5b7   : > { %8603 = vmatprep.mubr.f32.mxu0 %v6307_v37  ;;  %v5686_v40 = vmul.f32 %v5650_v11, %v12333_v33  ;;  %v5288_v29 = vpop.f32.mrb[102].mxu1  ;;  %v6316_v37 = vld [vmem:[#allocation2 + $0x93] sm:$0xff]  ;;  %v5944_v33 = vld [vmem:[#allocation2 + $0x1f] sm:$0xff] }
 0x5b8   : > { %vm5579_vm5 = vcmp.ge.f32.partialorder %v5529_v58, 0.0  ;;  %v5615_v52 = vmul.f32 0.2, %v5529_v58  ;;  %v9458_v53 = vadd.f32 %v5288_v29, %v4554_v43  ;;  %v5290_v0 = vpop.f32.mrb[103].mxu1  ;;  %v5830_v4 = vld [vmem:[#allocation2 + $0xfe] sm:$0xff]  ;;  %v5871_v43 = vld [vmem:[#allocation2 + $0x7] sm:$0xff] }
 0x5b9   : > { %7065 = vmatmul.mubr.f32.gmra.mrb[168].mxu1 %v5757_v32  ;;  %v5758_v21 = vld [vmem:[#allocation2 + $0xfd] sm:$0xff]  ;;  %5722 = vst [vmem:[#allocation2 + $0x110] sm:$0xff] %v5686_v40  ;;  %v5872_v29 = vld [vmem:[#allocation2 + $0xf] sm:$0xff] }
 0x5ba   : > { %8604 = vmatmul.mubr.f32.gmra.mrb[230].mxu0 %v6308_v15  ;;  %7069 = vmatprep.mubr.f32.mxu1 %v5830_v4  ;;  %v5651_v41 = vsel %vm5579_vm5, %v5529_v58, %v5615_v52  ;;  %v5534_v49 = vadd.f32 %v9458_v53, %v12335_v6  ;;  %v12340_v5 = vld [vmem:[#allocation47_spill] sm:$0xff]  ;;  %v6318_v32 = vld [vmem:[#allocation2 + $0xa3] sm:$0xff]  ;;  %v6767_v0 = vld [vmem:[#allocation9 + $0x220] sm:$0xff] }
 0x5bb   : > { %8606 = vmatprep.mubr.f32.mxu0 %v6309_v2  ;;  %v5687_v23 = vmul.f32 %v5651_v41, %v12336_v28  ;;  %v5293_v3 = vpop.f32.mrb[104].mxu1  ;;  %v6764_v10 = vld [vmem:[#allocation9 + $0x208] sm:$0xff]  ;;  %v6765_v58 = vld [vmem:[#allocation9 + $0x210] sm:$0xff]  ;;  %v6766_v2 = vld [vmem:[#allocation9 + $0x218] sm:$0xff] }
 0x5bc   : > { %vm5580_vm6 = vcmp.ge.f32.partialorder %v5534_v49, 0.0  ;;  %v5616_v14 = vmul.f32 0.2, %v5534_v49  ;;  %v9460_v35 = vadd.f32 %v5293_v3, %v4559_v47  ;;  %v5295_v55 = vpop.f32.mrb[105].mxu1  ;;  %v5831_v30 = vld [vmem:[#allocation2 + $0x106] sm:$0xff]  ;;  %v5943_v15 = vld [vmem:[#allocation2 + $0x17] sm:$0xff]  ;;  %v9199_v52 = vpack.c.bf16 %v6766_v2, %v6765_v58 }
 0x5bd   : > { %7070 = vmatmul.mubr.f32.gmra.mrb[170].mxu1 %v5758_v21  ;;  %v5759_v27 = vld [vmem:[#allocation2 + $0x105] sm:$0xff]  ;;  %5723 = vst [vmem:[#allocation2 + $0x118] sm:$0xff] %v5687_v23  ;;  %v6321_v40 = vld [vmem:[#allocation2 + $0xbb] sm:$0xff]  ;;  %v6324_v47 = vld [vmem:[#allocation2 + $0xd3] sm:$0xff] }
 0x5be   : > { %8607 = vmatmul.mubr.f32.gmra.mrb[232].mxu0 %v6310_v8  ;;  %7074 = vmatprep.mubr.f32.mxu1 %v5831_v30  ;;  %v5652_v17 = vsel %vm5580_vm6, %v5534_v49, %v5616_v14  ;;  %v5539_v60 = vadd.f32 %v9460_v35, %v11630_v44  ;;  %v6315_v44 = vld [vmem:[#allocation2 + $0x8b] sm:$0xff]  ;;  %v6322_v53 = vld [vmem:[#allocation2 + $0xc3] sm:$0xff]  ;;  %v6768_v4 = vld [vmem:[#allocation9 + $0x228] sm:$0xff] }
 0x5bf   : > { %8609 = vmatprep.mubr.f32.mxu0 %v6311_v16  ;;  %v5688_v57 = vmul.f32 %v5652_v17, %v12338_v59  ;;  %v5298_v12 = vpop.f32.mrb[106].mxu1  ;;  %v5945_v21 = vld [vmem:[#allocation2 + $0x27] sm:$0xff]  ;;  %v9202_v63 = vpack.c.bf16 %v6768_v4, %v6767_v0  ;;  %v5946_v49 = vld [vmem:[#allocation2 + $0x2f] sm:$0xff]  ;;  %v6325_v16 = vld [vmem:[#allocation2 + $0xdb] sm:$0xff] }
 0x5c0   : > { %vm5581_vm7 = vcmp.ge.f32.partialorder %v5539_v60, 0.0  ;;  %v5617_v31 = vmul.f32 0.2, %v5539_v60  ;;  %v9462_v1 = vadd.f32 %v5298_v12, %v4564_v19  ;;  %v5300_v61 = vpop.f32.mrb[107].mxu1  ;;  %v5832_v18 = vld [vmem:[#allocation2 + $0x10e] sm:$0xff]  ;;  %v6769_v41 = vld [vmem:[#allocation9 + $0x230] sm:$0xff] }
 0x5c1   : > { %7075 = vmatmul.mubr.f32.gmra.mrb[172].mxu1 %v5759_v27  ;;  %v5760_v20 = vld [vmem:[#allocation2 + $0x10d] sm:$0xff]  ;;  %5724 = vst [vmem:[#allocation2 + $0x120] sm:$0xff] %v5688_v57  ;;  %v6326_v23 = vld [vmem:[#allocation2 + $0xe3] sm:$0xff]  ;;  %v6772_v14 = vld [vmem:[#allocation9 + $0x248] sm:$0xff] }
 0x5c2   : > { %8610 = vmatmul.mubr.f32.gmra.mrb[234].mxu0 %v6312_v42  ;;  %7079 = vmatprep.mubr.f32.mxu1 %v5832_v18  ;;  %v5653_v34 = vsel %vm5581_vm7, %v5539_v60, %v5617_v31  ;;  %v5544_v50 = vadd.f32 %v9462_v1, %v11628_v36  ;;  %v6763_v36 = vld [vmem:[#allocation9 + $0x200] sm:$0xff]  ;;  %v6770_v6 = vld [vmem:[#allocation9 + $0x238] sm:$0xff]  ;;  %v6773_v42 = vld [vmem:[#allocation9 + $0x250] sm:$0xff] }
 0x5c3   : > { %8612 = vmatprep.mubr.f32.mxu0 %v6313_v46  ;;  %v5689_v45 = vmul.f32 %v5653_v34, %v12339_v62  ;;  %v9196_v11 = vpack.c.bf16 %v6764_v10, %v6763_v36  ;;  %v6323_v8 = vld [vmem:[#allocation2 + $0xcb] sm:$0xff]  ;;  %v9205_v28 = vpack.c.bf16 %v6770_v6, %v6769_v41  ;;  %v5947_v35 = vld [vmem:[#allocation2 + $0x37] sm:$0xff]  ;;  %v5948_v19 = vld [vmem:[#allocation2 + $0x3f] sm:$0xff]  ;;  %v9211_v60 = vpack.c.bf16 %v6774_v9, %v6773_v42 }
 0x5c4   : > { %vm5582_vm8 = vcmp.ge.f32.partialorder %v5544_v50, 0.0  ;;  %v5618_v7 = vmul.f32 0.2, %v5544_v50  ;;  %v5833_v38 = vld [vmem:[#allocation2 + $0x116] sm:$0xff]  ;;  %v6327_v55 = vld [vmem:[#allocation2 + $0xeb] sm:$0xff]  ;;  %v6330_v46 = vld [vmem:[#allocation2 + $0x103] sm:$0xff] }
 0x5c5   : > { %7080 = vmatmul.mubr.f32.gmra.mrb[174].mxu1 %v5760_v20  ;;  %v5761_v25 = vld [vmem:[#allocation2 + $0x115] sm:$0xff]  ;;  %5725 = vst [vmem:[#allocation2 + $0x128] sm:$0xff] %v5689_v45  ;;  %v5949_v12 = vld [vmem:[#allocation2 + $0x47] sm:$0xff] }
 0x5c6   : > { %8613 = vmatmul.mubr.f32.gmra.mrb[236].mxu0 %v6314_v26  ;;  %7084 = vmatprep.mubr.f32.mxu1 %v5833_v38  ;;  %v5654_v48 = vsel %vm5582_vm8, %v5544_v50, %v5618_v7  ;;  %v6771_v3 = vld [vmem:[#allocation9 + $0x240] sm:$0xff]  ;;  %v6329_v17 = vld [vmem:[#allocation2 + $0xfb] sm:$0xff]  ;;  %v6778_v20 = vld [vmem:[#allocation9 + $0x278] sm:$0xff] }
 0x5c7   : > { %8615 = vmatprep.mubr.f32.mxu0 %v6315_v44  ;;  %v5690_v24 = vmul.f32 %v5654_v48, %v12340_v5  ;;  %v9208_v30 = vpack.c.bf16 %v6772_v14, %v6771_v3  ;;  %v6328_v27 = vld [vmem:[#allocation2 + $0xf3] sm:$0xff]  ;;  %v6331_v31 = vld [vmem:[#allocation2 + $0x10b] sm:$0xff]  ;;  %v6777_v18 = vld [vmem:[#allocation9 + $0x270] sm:$0xff] }
 0x5c8   : > { %v5834_v39 = vld [vmem:[#allocation2 + $0x11e] sm:$0xff]  ;;  %v6775_v59 = vld [vmem:[#allocation9 + $0x260] sm:$0xff]  ;;  %v9217_v50 = vpack.c.bf16 %v6778_v20, %v6777_v18  ;;  %v5957_v4 = vld [vmem:[#allocation2 + $0x87] sm:$0xff] }
 0x5c9   : > { %7085 = vmatmul.mubr.f32.gmra.mrb[176].mxu1 %v5761_v25  ;;  %v5762_v54 = vld [vmem:[#allocation2 + $0x11d] sm:$0xff]  ;;  %5726 = vst [vmem:[#allocation2 + $0x130] sm:$0xff] %v5690_v24  ;;  %v6332_v61 = vld [vmem:[#allocation2 + $0x113] sm:$0xff]  ;;  %v5965_v14 = vld [vmem:[#allocation2 + $0xc7] sm:$0xff] }
 0x5ca   : > { %8616 = vmatmul.mubr.f32.gmra.mrb[238].mxu0 %v6316_v37  ;;  %7089 = vmatprep.mubr.f32.mxu1 %v5834_v39  ;;  %v6776_v57 = vld [vmem:[#allocation9 + $0x268] sm:$0xff]  ;;  %v5950_v26 = vld [vmem:[#allocation2 + $0x4f] sm:$0xff]  ;;  %v6781_v48 = vld [vmem:[#allocation9 + $0x290] sm:$0xff] }
 0x5cb   : > { %8618 = vmatprep.mubr.f32.mxu0 %v6317_v22  ;;  %v9214_v1 = vpack.c.bf16 %v6776_v57, %v6775_v59  ;;  %v6333_v34 = vld [vmem:[#allocation2 + $0x11b] sm:$0xff]  ;;  %v6779_v62 = vld [vmem:[#allocation9 + $0x280] sm:$0xff]  ;;  %v6782_v22 = vld [vmem:[#allocation9 + $0x298] sm:$0xff] }
 0x5cc   : > { %v6334_v44 = vld [vmem:[#allocation2 + $0x123] sm:$0xff]  ;;  %v6780_v45 = vld [vmem:[#allocation9 + $0x288] sm:$0xff]  ;;  %v9223_v24 = vpack.c.bf16 %v6782_v22, %v6781_v48  ;;  %v6783_v36 = vld [vmem:[#allocation9 + $0x2a0] sm:$0xff] }
 0x5cd   : > { %7090 = vmatmul.mubr.f32.gmra.mrb[178].mxu1 %v5762_v54  ;;  %v5951_v7 = vld [vmem:[#allocation2 + $0x57] sm:$0xff]  ;;  %v9220_v25 = vpack.c.bf16 %v6780_v45, %v6779_v62  ;;  %v5952_v5 = vld [vmem:[#allocation2 + $0x5f] sm:$0xff]  ;;  %v5953_v54 = vld [vmem:[#allocation2 + $0x67] sm:$0xff] }
 0x5ce   : > { %8619 = vmatmul.mubr.f32.gmra.mrb[240].mxu0 %v6318_v32  ;;  %7159 = vmatprep.mubr.f32.mxu1 %v5943_v15  ;;  %v6784_v39 = vld [vmem:[#allocation9 + $0x2a8] sm:$0xff]  ;;  %v6785_v32 = vld [vmem:[#allocation9 + $0x2b0] sm:$0xff] }
 0x5cf   : > { %8621 = vmatprep.mubr.f32.mxu0 %v6319_v51  ;;  %v9226_v10 = vpack.c.bf16 %v6784_v39, %v6783_v36  ;;  %v5954_v51 = vld [vmem:[#allocation2 + $0x6f] sm:$0xff]  ;;  %v5955_v58 = vld [vmem:[#allocation2 + $0x77] sm:$0xff]  ;;  %v5964_v3 = vld [vmem:[#allocation2 + $0xbf] sm:$0xff] }
 0x5d0   : > { %v6335_v38 = vld [vmem:[#allocation2 + $0x12b] sm:$0xff]  ;;  %v6336_v37 = vld [vmem:[#allocation2 + $0x133] sm:$0xff]  ;;  %v5976_v36 = vld [vmem:[#allocation2 + $0x11f] sm:$0xff] }
 0x5d1   : > { %7160 = vmatmul.mubr.f32.vlgmr.msra.gmra.mrb[108].mxu1 %v5871_v43  ;;  %v6792_v0 = vld [vmem:[#allocation9 + $0x2e8] sm:$0xff]  ;;  %v5969_v57 = vld [vmem:[#allocation2 + $0xe7] sm:$0xff] }
 0x5d2   : > { %8622 = vmatmul.mubr.f32.gmra.mrb[242].mxu0 %v6320_v56  ;;  %7164 = vmatprep.mubr.f32.mxu1 %v5944_v33  ;;  %v6788_v56 = vld [vmem:[#allocation9 + $0x2c8] sm:$0xff]  ;;  %v5973_v45 = vld [vmem:[#allocation2 + $0x107] sm:$0xff] }
 0x5d3   : > { %9197 = vmatpush1.bf16.msra.mxu1 %v9196_v11  ;;  %8624 = vmatprep.mubr.f32.mxu0 %v6321_v40  ;;  %v6787_v11 = vld [vmem:[#allocation9 + $0x2c0] sm:$0xff]  ;;  %v6790_v40 = vld [vmem:[#allocation9 + $0x2d8] sm:$0xff] }
 0x5d4   : > { %9198 = vmatprep.subr.bf16.mxu1 %v12250_v13  ;;  %v9232_v2 = vpack.c.bf16 %v6788_v56, %v6787_v11  ;;  %v5959_v6 = vld [vmem:[#allocation2 + $0x97] sm:$0xff] }
 0x5d5   : > { %7165 = vmatmul.mubr.f32.gmra.mrb[110].mxu1 %v5872_v29  ;;  %v5956_v29 = vld [vmem:[#allocation2 + $0x7f] sm:$0xff]  ;;  %v5967_v9 = vld [vmem:[#allocation2 + $0xd7] sm:$0xff] }
 0x5d6   : > { %8625 = vmatmul.mubr.f32.gmra.mrb[244].mxu0 %v6322_v53  ;;  %7169 = vmatprep.mubr.f32.mxu1 %v5945_v21  ;;  %v6791_v53 = vld [vmem:[#allocation9 + $0x2e0] sm:$0xff]  ;;  %v6087_v56 = vld [vmem:[#allocation2 + $0x19] sm:$0xff] }
 0x5d7   : > { %8627 = vmatprep.mubr.f32.mxu0 %v6323_v8  ;;  %9200 = vmatpush1.bf16.msra.mxu1 %v9199_v52  ;;  %v6793_v8 = vld [vmem:[#allocation9 + $0x2f0] sm:$0xff]  ;;  %v5971_v20 = vld [vmem:[#allocation2 + $0xf7] sm:$0xff] }
 0x5d8   : > { %9201 = vmatprep.subr.bf16.mxu1 %v12250_v13  ;;  %v5975_v22 = vld [vmem:[#allocation2 + $0x117] sm:$0xff] }
 0x5d9   : > { %7170 = vmatmul.mubr.f32.gmra.mrb[112].mxu1 %v5943_v15  ;;  %v6786_v15 = vld [vmem:[#allocation9 + $0x2b8] sm:$0xff] }
 0x5da   : > { %8628 = vmatmul.mubr.f32.gmra.mrb[246].mxu0 %v6324_v47  ;;  %7174 = vmatprep.mubr.f32.mxu1 %v5946_v49  ;;  %v9229_v43 = vpack.c.bf16 %v6786_v15, %v6785_v32  ;;  %v5958_v47 = vld [vmem:[#allocation2 + $0x8f] sm:$0xff] }
 0x5db   : > { %8630 = vmatprep.mubr.f32.mxu0 %v6325_v16  ;;  %9203 = vmatpush1.bf16.msra.mxu1 %v9202_v63  ;;  %v6794_v63 = vld [vmem:[#allocation9 + $0x2f8] sm:$0xff] }
 0x5dc   : > { %9204 = vmatprep.subr.bf16.mxu1 %v12250_v13  ;;  %v9241_v41 = vpack.c.bf16 %v6794_v63, %v6793_v8  ;;  %v5961_v16 = vld [vmem:[#allocation2 + $0xa7] sm:$0xff] }
 0x5dd   : > { %7175 = vmatmul.mubr.f32.gmra.mrb[114].mxu1 %v5944_v33  ;;  %v6789_v33 = vld [vmem:[#allocation9 + $0x2d0] sm:$0xff]  ;;  %v6017_v63 = vld [vmem:[#allocation2 + $0x28] sm:$0xff] }
 0x5de   : > { %8631 = vmatmul.mubr.f32.gmra.mrb[248].mxu0 %v6326_v23  ;;  %7179 = vmatprep.mubr.f32.mxu1 %v5947_v35  ;;  %v9235_v52 = vpack.c.bf16 %v6790_v40, %v6789_v33  ;;  %v5963_v23 = vld [vmem:[#allocation2 + $0xb7] sm:$0xff]  ;;  %v6088_v40 = vld [vmem:[#allocation2 + $0x21] sm:$0xff] }
 0x5df   : > { %8633 = vmatprep.mubr.f32.mxu0 %v6327_v55  ;;  %9206 = vmatpush1.bf16.msra.mxu1 %v9205_v28  ;;  %v5962_v28 = vld [vmem:[#allocation2 + $0xaf] sm:$0xff] }
 0x5e0   : > { %9207 = vmatprep.subr.bf16.mxu1 %v12250_v13 }
 0x5e1   : > { %7180 = vmatmul.mubr.f32.gmra.mrb[116].mxu1 %v5945_v21  ;;  %v9238_v21 = vpack.c.bf16 %v6792_v0, %v6791_v53  ;;  %v6016_v53 = vld [vmem:[#allocation2 + $0x20] sm:$0xff] }
 0x5e2   : > { %8634 = vmatmul.mubr.f32.gmra.mrb[250].mxu0 %v6328_v27  ;;  %7184 = vmatprep.mubr.f32.mxu1 %v5948_v19 }
 0x5e3   : > { %8636 = vmatprep.mubr.f32.mxu0 %v6329_v17  ;;  %9209 = vmatpush1.bf16.msra.mxu1 %v9208_v30  ;;  %v5966_v30 = vld [vmem:[#allocation2 + $0xcf] sm:$0xff] }
 0x5e4   : > { %9210 = vmatprep.subr.bf16.mxu1 %v12250_v13 }
 0x5e5   : > { %7185 = vmatmul.mubr.f32.gmra.mrb[118].mxu1 %v5946_v49  ;;  %v5960_v49 = vld [vmem:[#allocation2 + $0x9f] sm:$0xff] }
 0x5e6   : > { %8637 = vmatmul.mubr.f32.gmra.mrb[252].mxu0 %v6330_v46  ;;  %7189 = vmatprep.mubr.f32.mxu1 %v5949_v12 }
 0x5e7   : > { %8639 = vmatprep.mubr.f32.mxu0 %v6331_v31  ;;  %9212 = vmatpush1.bf16.msra.mxu1 %v9211_v60  ;;  %v5968_v60 = vld [vmem:[#allocation2 + $0xdf] sm:$0xff] }
 0x5e8   : > { %9213 = vmatprep.subr.bf16.mxu1 %v12250_v13 }
 0x5e9   : > { %7190 = vmatmul.mubr.f32.gmra.mrb[120].mxu1 %v5947_v35 }
 0x5ea   : > { %8640 = vmatmul.mubr.f32.gmra.mrb[254].mxu0 %v6332_v61  ;;  %7194 = vmatprep.mubr.f32.mxu1 %v5950_v26 }
 0x5eb   : > { %8642 = vmatprep.mubr.f32.mxu0 %v6333_v34  ;;  %9215 = vmatpush1.bf16.msra.mxu1 %v9214_v1  ;;  %v5970_v1 = vld [vmem:[#allocation2 + $0xef] sm:$0xff] }
 0x5ec   : > { %9216 = vmatprep.subr.bf16.mxu1 %v12250_v13 }
 0x5ed   : > { %7195 = vmatmul.mubr.f32.gmra.mrb[122].mxu1 %v5948_v19 }
 0x5ee   : > { %8643 = vmatmul.mubr.f32.gmra.mrb[0].mxu0 %v6334_v44  ;;  %7199 = vmatprep.mubr.f32.mxu1 %v5951_v7 }
 0x5ef   : > { %8645 = vmatprep.mubr.f32.mxu0 %v6335_v38  ;;  %9218 = vmatpush1.bf16.msra.mxu1 %v9217_v50  ;;  %v5972_v50 = vld [vmem:[#allocation2 + $0xff] sm:$0xff] }
 0x5f0   : > { %9219 = vmatprep.subr.bf16.mxu1 %v12250_v13 }
 0x5f1   : > { %7200 = vmatmul.mubr.f32.gmra.mrb[124].mxu1 %v5949_v12 }
 0x5f2   : > { %8646 = vmatmul.mubr.f32.gmra.mrb[2].mxu0 %v6336_v37  ;;  %7204 = vmatprep.mubr.f32.mxu1 %v5952_v5 }
 0x5f3   : > { %9221 = vmatpush1.bf16.msra.mxu1 %v9220_v25  ;;  %v5974_v25 = vld [vmem:[#allocation2 + $0x10f] sm:$0xff] }
 0x5f4   : > { %9222 = vmatprep.subr.bf16.mxu1 %v12250_v13 }
 0x5f5   : > { %7205 = vmatmul.mubr.f32.gmra.mrb[126].mxu1 %v5950_v26 }
 0x5f6   : > { %7209 = vmatprep.mubr.f32.mxu1 %v5953_v54 }
 0x5f7   : > { %9224 = vmatpush1.bf16.msra.mxu1 %v9223_v24 }
 0x5f8   : > { %9225 = vmatprep.subr.bf16.mxu1 %v12250_v13 }
 0x5f9   : > { %7210 = vmatmul.mubr.f32.gmra.mrb[128].mxu1 %v5951_v7 }
 0x5fa   : > { %7214 = vmatprep.mubr.f32.mxu1 %v5954_v51 }
 0x5fb   : > { %9227 = vmatpush1.bf16.msra.mxu1 %v9226_v10  ;;  %v5977_v10 = vld [vmem:[#allocation2 + $0x127] sm:$0xff] }
 0x5fc   : > { %9228 = vmatprep.subr.bf16.mxu1 %v12250_v13 }
 0x5fd   : > { %7215 = vmatmul.mubr.f32.gmra.mrb[130].mxu1 %v5952_v5 }
 0x5fe   : > { %7219 = vmatprep.mubr.f32.mxu1 %v5955_v58 }
 0x5ff   : > { %9230 = vmatpush1.bf16.msra.mxu1 %v9229_v43 }
 0x600   : > { %9231 = vmatprep.subr.bf16.mxu1 %v12250_v13 }
 0x601   : > { %7220 = vmatmul.mubr.f32.gmra.mrb[132].mxu1 %v5953_v54 }
 0x602   : > { %7224 = vmatprep.mubr.f32.mxu1 %v5956_v29 }
 0x603   : > { %9233 = vmatpush1.bf16.msra.mxu1 %v9232_v2  ;;  %v6015_v2 = vld [vmem:[#allocation2 + $0x18] sm:$0xff] }
 0x604   : > { %9234 = vmatprep.subr.bf16.mxu1 %v12250_v13 }
 0x605   : > { %7225 = vmatmul.mubr.f32.gmra.mrb[134].mxu1 %v5954_v51  ;;  %v5978_v51 = vld [vmem:[#allocation2 + $0x12f] sm:$0xff] }
 0x606   : > { %7229 = vmatprep.mubr.f32.mxu1 %v5957_v4 }
 0x607   : > { %9236 = vmatpush1.bf16.msra.mxu1 %v9235_v52 }
 0x608   : > { %9237 = vmatprep.subr.bf16.mxu1 %v12250_v13 }
 0x609   : > { %7230 = vmatmul.mubr.f32.gmra.mrb[136].mxu1 %v5955_v58 }
 0x60a   : > { %7234 = vmatprep.mubr.f32.mxu1 %v5958_v47 }
 0x60b   : > { %9239 = vmatpush1.bf16.msra.mxu1 %v9238_v21  ;;  %v12342_v21 = vld [vmem:[#allocation63_spill] sm:$0xff] }
 0x60c   : > { %9240 = vmatprep.subr.bf16.mxu1 %v12250_v13 }
 0x60d   : > { %7235 = vmatmul.mubr.f32.gmra.mrb[138].mxu1 %v5956_v29  ;;  %v12341_v29 = vld [vmem:[#allocation62_spill] sm:$0xff] }
 0x60e   : > { %7239 = vmatprep.mubr.f32.mxu1 %v5959_v6 }
 0x60f   : > { %9242 = vmatpush1.bf16.msra.mxu1 %v9241_v41  ;;  %v6090_v41 = vld [vmem:[#allocation2 + $0x31] sm:$0xff] }
 0x610   : > { %9323 = vmatprep.subr.bf16.mxu1 %v12250_v13 }
 0x611   : > { %7240 = vmatmul.mubr.f32.gmra.mrb[140].mxu1 %v5957_v4  ;;  %v6089_v4 = vld [vmem:[#allocation2 + $0x29] sm:$0xff] }
 0x612   : > { %7244 = vmatprep.mubr.f32.mxu1 %v5960_v49 }
 0x615   : > { %7245 = vmatmul.mubr.f32.gmra.mrb[142].mxu1 %v5958_v47 }
 0x616   : > { %7249 = vmatprep.mubr.f32.mxu1 %v5961_v16 }
 0x619   : > { %7250 = vmatmul.mubr.f32.gmra.mrb[144].mxu1 %v5959_v6  ;;  %v12343_v6 = vld [vmem:[#allocation64_spill] sm:$0xff] }
 0x61a   : > { %7254 = vmatprep.mubr.f32.mxu1 %v5962_v28 }
 0x61d   : > { %7255 = vmatmul.mubr.f32.gmra.mrb[146].mxu1 %v5960_v49 }
 0x61e   : > { %7259 = vmatprep.mubr.f32.mxu1 %v5963_v23 }
 0x621   : > { %7260 = vmatmul.mubr.f32.gmra.mrb[148].mxu1 %v5961_v16  ;;  %v6018_v16 = vld [vmem:[#allocation2 + $0x30] sm:$0xff] }
 0x622   : > { %7264 = vmatprep.mubr.f32.mxu1 %v5964_v3 }
 0x625   : > { %7265 = vmatmul.mubr.f32.gmra.mrb[150].mxu1 %v5962_v28 }
 0x626   : > { %7269 = vmatprep.mubr.f32.mxu1 %v5965_v14 }
 0x627   : > { %v11788_v35 = vpop.f32.mrb[180].mxu0 }
 0x628   : > { %v7653_v55 = vpop.f32.mrb[181].mxu0 }
 0x629   : > { %7270 = vmatmul.mubr.f32.gmra.mrb[152].mxu1 %v5963_v23  ;;  %v6091_v23 = vld [vmem:[#allocation2 + $0x39] sm:$0xff] }
 0x62a   : > { %7274 = vmatprep.mubr.f32.mxu1 %v5966_v30  ;;  %v6019_v55 = vld [vmem:[#allocation2 + $0x38] sm:$0xff] }
 0x62b   : > { %v11790_v27 = vpop.f32.mrb[182].mxu0 }
 0x62c   : > { %v7658_v42 = vpop.f32.mrb[183].mxu0 }
 0x62d   : > { %7275 = vmatmul.mubr.f32.gmra.mrb[154].mxu1 %v5964_v3  ;;  %v12344_v3 = vld [vmem:[#allocation65_spill] sm:$0xff] }
 0x62e   : > { %7279 = vmatprep.mubr.f32.mxu1 %v5967_v9  ;;  %v6092_v42 = vld [vmem:[#allocation2 + $0x41] sm:$0xff] }
 0x62f   : > { %v11792_v19 = vpop.f32.mrb[184].mxu0 }
 0x630   : > { %v7663_v17 = vpop.f32.mrb[185].mxu0 }
 0x631   : > { %7280 = vmatmul.mubr.f32.gmra.mrb[156].mxu1 %v5965_v14 }
 0x632   : > { %7284 = vmatprep.mubr.f32.mxu1 %v5968_v60 }
 0x633   : > { %v11794_v46 = vpop.f32.mrb[186].mxu0 }
 0x634   : > { %v7668_v59 = vpop.f32.mrb[187].mxu0 }
 0x635   : > { %7285 = vmatmul.mubr.f32.gmra.mrb[158].mxu1 %v5966_v30 }
 0x636   : > { %7289 = vmatprep.mubr.f32.mxu1 %v5969_v57 }
 0x637   : > { %v11796_v12 = vpop.f32.mrb[188].mxu0 }
 0x638   : > { %v7673_v31 = vpop.f32.mrb[189].mxu0 }
 0x639   : > { %7290 = vmatmul.mubr.f32.gmra.mrb[160].mxu1 %v5967_v9  ;;  %v12345_v9 = vld [vmem:[#allocation67_spill] sm:$0xff]  ;;  %v12346_v31 = vld [vmem:[#allocation69_spill] sm:$0xff] }
 0x63a   : > { %7294 = vmatprep.mubr.f32.mxu1 %v5970_v1 }
 0x63b   : > { %v11798_v61 = vpop.f32.mrb[190].mxu0 }
 0x63c   : > { %v7678_v18 = vpop.f32.mrb[191].mxu0 }
 0x63d   : > { %7295 = vmatmul.mubr.f32.gmra.mrb[162].mxu1 %v5968_v60  ;;  %v6020_v60 = vld [vmem:[#allocation2 + $0x40] sm:$0xff]  ;;  %v6021_v18 = vld [vmem:[#allocation2 + $0x48] sm:$0xff] }
 0x63e   : > { %7299 = vmatprep.mubr.f32.mxu1 %v5971_v20 }
 0x63f   : > { %v11800_v26 = vpop.f32.mrb[192].mxu0 }
 0x640   : > { %v7683_v34 = vpop.f32.mrb[193].mxu0 }
 0x641   : > { %7300 = vmatmul.mubr.f32.gmra.mrb[164].mxu1 %v5969_v57  ;;  %v6093_v57 = vld [vmem:[#allocation2 + $0x49] sm:$0xff]  ;;  %v6094_v34 = vld [vmem:[#allocation2 + $0x51] sm:$0xff] }
 0x642   : > { %7304 = vmatprep.mubr.f32.mxu1 %v5972_v50 }
 0x644   : > { %v11802_v44 = vpop.f32.mrb[194].mxu0 }
 0x645   : > { %7305 = vmatmul.mubr.f32.gmra.mrb[166].mxu1 %v5970_v1  ;;  %v7688_v62 = vpop.f32.mrb[195].mxu0 }
 0x646   : > { %7309 = vmatprep.mubr.f32.mxu1 %v5973_v45 }
 0x648   : > { %v11804_v7 = vpop.f32.mrb[196].mxu0 }
 0x649   : > { %7310 = vmatmul.mubr.f32.gmra.mrb[168].mxu1 %v5971_v20  ;;  %v7693_v38 = vpop.f32.mrb[197].mxu0 }
 0x64a   : > { %7314 = vmatprep.mubr.f32.mxu1 %v5974_v25 }
 0x64d   : > { %v11806_v37 = vpop.f32.mrb[198].mxu0  ;;  %7315 = vmatmul.mubr.f32.gmra.mrb[170].mxu1 %v5972_v50  ;;  %v12347_v50 = vld [vmem:[#allocation71_spill] sm:$0xff] }
 0x64e   : > { %v7698_v48 = vpop.f32.mrb[199].mxu0  ;;  %7319 = vmatprep.mubr.f32.mxu1 %v5975_v22 }
 0x64f   : > { %v12348_v48 = vld [vmem:[#allocation73_spill] sm:$0xff] }
 0x651   : > { %v11808_v5 = vpop.f32.mrb[200].mxu0  ;;  %7320 = vmatmul.mubr.f32.gmra.mrb[172].mxu1 %v5973_v45  ;;  %v6022_v45 = vld [vmem:[#allocation2 + $0x50] sm:$0xff] }
 0x652   : > { %v7703_v24 = vpop.f32.mrb[201].mxu0  ;;  %7324 = vmatprep.mubr.f32.mxu1 %v5976_v36 }
 0x653   : > { %v6023_v24 = vld [vmem:[#allocation2 + $0x58] sm:$0xff] }
 0x655   : > { %v11810_v39 = vpop.f32.mrb[202].mxu0  ;;  %7325 = vmatmul.mubr.f32.gmra.mrb[174].mxu1 %v5974_v25  ;;  %v6095_v25 = vld [vmem:[#allocation2 + $0x59] sm:$0xff] }
 0x656   : > { %v7708_v54 = vpop.f32.mrb[203].mxu0  ;;  %7329 = vmatprep.mubr.f32.mxu1 %v5977_v10  ;;  %v12349_v10 = vld [vmem:[#allocation78_spill] sm:$0xff] }
 0x657   : > { %v6096_v54 = vld [vmem:[#allocation2 + $0x61] sm:$0xff] }
 0x659   : > { %v11812_v32 = vpop.f32.mrb[204].mxu0  ;;  %7330 = vmatmul.mubr.f32.gmra.mrb[176].mxu1 %v5975_v22 }
 0x65a   : > { %v7713_v15 = vpop.f32.mrb[205].mxu0  ;;  %7334 = vmatprep.mubr.f32.mxu1 %v5978_v51  ;;  %v6024_v51 = vld [vmem:[#allocation2 + $0x60] sm:$0xff] }
 0x65d   : > { %v11814_v43 = vpop.f32.mrb[206].mxu0  ;;  %7335 = vmatmul.mubr.f32.gmra.mrb[178].mxu1 %v5976_v36 }
 0x65e   : > { %v7718_v11 = vpop.f32.mrb[207].mxu0  ;;  %7404 = vmatprep.mubr.f32.mxu1 %v6087_v56  ;;  %v6097_v56 = vld [vmem:[#allocation2 + $0x69] sm:$0xff] }
 0x661   : > { %v11816_v58 = vpop.f32.mrb[208].mxu0  ;;  %7405 = vmatmul.mubr.f32.vlgmr.msra.gmra.mrb[108].mxu1 %v6015_v2  ;;  %v12350_v2 = vld [vmem:[#allocation79_spill] sm:$0xff] }
 0x662   : > { %v7723_v33 = vpop.f32.mrb[209].mxu0  ;;  %7409 = vmatprep.mubr.f32.mxu1 %v6088_v40  ;;  %9339 = vmatpush1.bf16.msra.mxu1 %v12341_v29  ;;  %v6025_v40 = vld [vmem:[#allocation2 + $0x68] sm:$0xff] }
 0x663   : > { %9324 = vmatprep.subr.bf16.mxu1 %v12250_v13 }
 0x665   : > { %v11820_v52 = vpop.f32.mrb[210].mxu0  ;;  %7410 = vmatmul.mubr.f32.gmra.mrb[110].mxu1 %v6016_v53  ;;  %v6098_v53 = vld [vmem:[#allocation2 + $0x71] sm:$0xff] }
 0x666   : > { %v7728_v0 = vpop.f32.mrb[211].mxu0  ;;  %7414 = vmatprep.mubr.f32.mxu1 %v6089_v4  ;;  %9340 = vmatpush1.bf16.msra.mxu1 %v12342_v21  ;;  %v6026_v21 = vld [vmem:[#allocation2 + $0x70] sm:$0xff] }
 0x667   : > { %9325 = vmatprep.subr.bf16.mxu1 %v12250_v13  ;;  %v12351_v0 = vld [vmem:[#allocation80_spill] sm:$0xff] }
 0x669   : > { %v11824_v8 = vpop.f32.mrb[212].mxu0  ;;  %7415 = vmatmul.mubr.f32.gmra.mrb[112].mxu1 %v6017_v63 }
 0x66a   : > { %v7733_v47 = vpop.f32.mrb[213].mxu0  ;;  %7419 = vmatprep.mubr.f32.mxu1 %v6090_v41  ;;  %9341 = vmatpush1.bf16.msra.mxu1 %v12343_v6  ;;  %v12352_v41 = vld [vmem:[#allocation81_spill] sm:$0xff] }
 0x66b   : > { %9326 = vmatprep.subr.bf16.mxu1 %v12250_v13  ;;  %v6099_v47 = vld [vmem:[#allocation2 + $0x79] sm:$0xff] }
 0x66d   : > { %v11828_v49 = vpop.f32.mrb[214].mxu0  ;;  %7420 = vmatmul.mubr.f32.gmra.mrb[114].mxu1 %v6018_v16  ;;  %v6027_v16 = vld [vmem:[#allocation2 + $0x78] sm:$0xff] }
 0x66e   : > { %v7738_v28 = vpop.f32.mrb[215].mxu0  ;;  %7424 = vmatprep.mubr.f32.mxu1 %v6091_v23  ;;  %9342 = vmatpush1.bf16.msra.mxu1 %v12344_v3  ;;  %v6100_v23 = vld [vmem:[#allocation2 + $0x81] sm:$0xff]  ;;  %v12353_v3 = vld [vmem:[#allocation82_spill] sm:$0xff] }
 0x66f   : > { %9327 = vmatprep.subr.bf16.mxu1 %v12250_v13 }
 0x671   : > { %v11832_v14 = vpop.f32.mrb[216].mxu0  ;;  %7425 = vmatmul.mubr.f32.gmra.mrb[116].mxu1 %v6019_v55 }
 0x672   : > { %v7743_v30 = vpop.f32.mrb[217].mxu0  ;;  %7429 = vmatprep.mubr.f32.mxu1 %v6092_v42  ;;  %9343 = vmatpush1.bf16.msra.mxu1 %v12345_v9  ;;  %v6101_v9 = vld [vmem:[#allocation2 + $0x89] sm:$0xff] }
 0x673   : > { %9328 = vmatprep.subr.bf16.mxu1 %v12250_v13  ;;  %v6028_v30 = vld [vmem:[#allocation2 + $0x80] sm:$0xff] }
 0x675   : > { %v11836_v17 = vpop.f32.mrb[218].mxu0  ;;  %7430 = vmatmul.mubr.f32.gmra.mrb[118].mxu1 %v6020_v60  ;;  %v12354_v60 = vld [vmem:[#allocation83_spill] sm:$0xff] }
 0x676   : > { %v7748_v59 = vpop.f32.mrb[219].mxu0  ;;  %7434 = vmatprep.mubr.f32.mxu1 %v6093_v57  ;;  %9344 = vmatpush1.bf16.msra.mxu1 %v12346_v31  ;;  %v6029_v57 = vld [vmem:[#allocation2 + $0x88] sm:$0xff] }
 0x677   : > { %9329 = vmatprep.subr.bf16.mxu1 %v12250_v13 }
 0x679   : > { %v11840_v1 = vpop.f32.mrb[220].mxu0  ;;  %7435 = vmatmul.mubr.f32.gmra.mrb[120].mxu1 %v6021_v18  ;;  %v6102_v18 = vld [vmem:[#allocation2 + $0x91] sm:$0xff] }
 0x67a   : > { %v7753_v20 = vpop.f32.mrb[221].mxu0  ;;  %7439 = vmatprep.mubr.f32.mxu1 %v6094_v34  ;;  %9345 = vmatpush1.bf16.msra.mxu1 %v12347_v50  ;;  %v6030_v50 = vld [vmem:[#allocation2 + $0x90] sm:$0xff] }
 0x67b   : > { %9330 = vmatprep.subr.bf16.mxu1 %v12250_v13  ;;  %v12355_v20 = vld [vmem:[#allocation84_spill] sm:$0xff] }
 0x67d   : > { %v11844_v62 = vpop.f32.mrb[222].mxu0  ;;  %7440 = vmatmul.mubr.f32.gmra.mrb[122].mxu1 %v6022_v45 }
 0x67e   : > { %v7758_v38 = vpop.f32.mrb[223].mxu0  ;;  %7444 = vmatprep.mubr.f32.mxu1 %v6095_v25  ;;  %9346 = vmatpush1.bf16.msra.mxu1 %v12348_v48  ;;  %v6337_v25 = vld [vmem:[#allocation2 + $0x13b] sm:$0xff]  ;;  %v6338_v48 = vld [vmem:[#allocation2 + $0x143] sm:$0xff] }
 0x67f   : > { %9331 = vmatprep.subr.bf16.mxu1 %v12250_v13  ;;  %v6103_v38 = vld [vmem:[#allocation2 + $0x99] sm:$0xff]  ;;  %8648 = vmatprep.mubr.f32.mxu0 %v6337_v25 }
 0x680   : > { %8649 = vmatmul.mubr.f32.gmra.mrb[4].mxu0 %v6338_v48  ;;  %v6037_v48 = vld [vmem:[#allocation2 + $0xc8] sm:$0xff] }
 0x681   : > { %v11848_v22 = vpop.f32.mrb[224].mxu0  ;;  %7445 = vmatmul.mubr.f32.gmra.mrb[124].mxu1 %v6023_v24  ;;  %v12356_v24 = vld [vmem:[#allocation85_spill] sm:$0xff] }
 0x682   : > { %v7763_v36 = vpop.f32.mrb[225].mxu0  ;;  %7449 = vmatprep.mubr.f32.mxu1 %v6096_v54  ;;  %9347 = vmatpush1.bf16.msra.mxu1 %v12349_v10  ;;  %v6031_v54 = vld [vmem:[#allocation2 + $0x98] sm:$0xff] }
 0x683   : > { %9332 = vmatprep.subr.bf16.mxu1 %v12250_v13 }
 0x685   : > { %v11852_v15 = vpop.f32.mrb[226].mxu0  ;;  %7450 = vmatmul.mubr.f32.gmra.mrb[126].mxu1 %v6024_v51 }
 0x686   : > { %v11854_v11 = vpop.f32.mrb[227].mxu0  ;;  %7454 = vmatprep.mubr.f32.mxu1 %v6097_v56  ;;  %9348 = vmatpush1.bf16.msra.mxu1 %v12350_v2  ;;  %v6032_v56 = vld [vmem:[#allocation2 + $0xa0] sm:$0xff] }
 0x687   : > { %9333 = vmatprep.subr.bf16.mxu1 %v12250_v13 }
 0x689   : > { %v11858_v33 = vpop.f32.mrb[228].mxu0  ;;  %7455 = vmatmul.mubr.f32.gmra.mrb[128].mxu1 %v6025_v40  ;;  %v6105_v40 = vld [vmem:[#allocation2 + $0xa9] sm:$0xff] }
 0x68a   : > { %v11860_v29 = vpop.f32.mrb[229].mxu0  ;;  %7459 = vmatprep.mubr.f32.mxu1 %v6098_v53  ;;  %9349 = vmatpush1.bf16.msra.mxu1 %v12351_v0  ;;  %v6033_v0 = vld [vmem:[#allocation2 + $0xa8] sm:$0xff] }
 0x68b   : > { %9334 = vmatprep.subr.bf16.mxu1 %v12250_v13 }
 0x68d   : > { %v11864_v4 = vpop.f32.mrb[230].mxu0  ;;  %7460 = vmatmul.mubr.f32.gmra.mrb[130].mxu1 %v6026_v21 }
 0x68e   : > { %v11866_v63 = vpop.f32.mrb[231].mxu0  ;;  %7464 = vmatprep.mubr.f32.mxu1 %v6099_v47  ;;  %9350 = vmatpush1.bf16.msra.mxu1 %v12352_v41  ;;  %v6106_v47 = vld [vmem:[#allocation2 + $0xb1] sm:$0xff] }
 0x68f   : > { %9335 = vmatprep.subr.bf16.mxu1 %v12250_v13 }
 0x691   : > { %v11870_v6 = vpop.f32.mrb[232].mxu0  ;;  %7465 = vmatmul.mubr.f32.gmra.mrb[132].mxu1 %v6027_v16  ;;  %v6034_v16 = vld [vmem:[#allocation2 + $0xb0] sm:$0xff] }
 0x692   : > { %v11872_v28 = vpop.f32.mrb[233].mxu0  ;;  %7469 = vmatprep.mubr.f32.mxu1 %v6100_v23  ;;  %9351 = vmatpush1.bf16.msra.mxu1 %v12353_v3  ;;  %v6107_v3 = vld [vmem:[#allocation2 + $0xb9] sm:$0xff] }
 0x693   : > { %9336 = vmatprep.subr.bf16.mxu1 %v12250_v13 }
 0x695   : > { %v11876_v55 = vpop.f32.mrb[234].mxu0  ;;  %7470 = vmatmul.mubr.f32.gmra.mrb[134].mxu1 %v6028_v30 }
 0x696   : > { %v11878_v42 = vpop.f32.mrb[235].mxu0  ;;  %7474 = vmatprep.mubr.f32.mxu1 %v6101_v9  ;;  %9352 = vmatpush1.bf16.msra.mxu1 %v12354_v60  ;;  %v6035_v9 = vld [vmem:[#allocation2 + $0xb8] sm:$0xff] }
 0x697   : > { %9337 = vmatprep.subr.bf16.mxu1 %v12250_v13 }
 0x699   : > { %v11882_v59 = vpop.f32.mrb[236].mxu0  ;;  %7475 = vmatmul.mubr.f32.gmra.mrb[136].mxu1 %v6029_v57  ;;  %v6108_v57 = vld [vmem:[#allocation2 + $0xc1] sm:$0xff] }
 0x69a   : > { %v11884_v31 = vpop.f32.mrb[237].mxu0  ;;  %7479 = vmatprep.mubr.f32.mxu1 %v6102_v18  ;;  %9353 = vmatpush1.bf16.msra.mxu1 %v12355_v20  ;;  %v6036_v20 = vld [vmem:[#allocation2 + $0xc0] sm:$0xff] }
 0x69b   : > { %9338 = vmatprep.subr.bf16.mxu1 %v12250_v13  ;;  %v6104_v13 = vld [vmem:[#allocation2 + $0xa1] sm:$0xff] }
 0x69d   : > { %v11888_v34 = vpop.f32.mrb[238].mxu0  ;;  %7480 = vmatmul.mubr.f32.gmra.mrb[138].mxu1 %v6030_v50 }
 0x69e   : > { %v11890_v45 = vpop.f32.mrb[239].mxu0  ;;  %7484 = vmatprep.mubr.f32.mxu1 %v6103_v38  ;;  %9354 = vmatpush1.bf16.msra.mxu1 %v12356_v24  ;;  %v6109_v38 = vld [vmem:[#allocation2 + $0xc9] sm:$0xff] }
 0x6a1   : > { %v11893_v36 = vpop.f32.mrb[240].mxu0  ;;  %7485 = vmatmul.mubr.f32.gmra.mrb[140].mxu1 %v6031_v54  ;;  %v6110_v54 = vld [vmem:[#allocation2 + $0xd1] sm:$0xff] }
 0x6a2   : > { %v11895_v10 = vpop.f32.mrb[241].mxu0  ;;  %7489 = vmatprep.mubr.f32.mxu1 %v6104_v13 }
 0x6a5   : > { %v11897_v51 = vpop.f32.mrb[242].mxu0  ;;  %7490 = vmatmul.mubr.f32.gmra.mrb[142].mxu1 %v6032_v56  ;;  %v6038_v56 = vld [vmem:[#allocation2 + $0xd0] sm:$0xff] }
 0x6a6   : > { %v11899_v2 = vpop.f32.mrb[243].mxu0  ;;  %7494 = vmatprep.mubr.f32.mxu1 %v6105_v40 }
 0x6a9   : > { %v11901_v53 = vpop.f32.mrb[244].mxu0  ;;  %7495 = vmatmul.mubr.f32.gmra.mrb[144].mxu1 %v6033_v0  ;;  %v6111_v0 = vld [vmem:[#allocation2 + $0xd9] sm:$0xff] }
 0x6aa   : > { %v11903_v21 = vpop.f32.mrb[245].mxu0  ;;  %7499 = vmatprep.mubr.f32.mxu1 %v6106_v47 }
 0x6ad   : > { %v11905_v41 = vpop.f32.mrb[246].mxu0  ;;  %7500 = vmatmul.mubr.f32.gmra.mrb[146].mxu1 %v6034_v16  ;;  %v6039_v16 = vld [vmem:[#allocation2 + $0xd8] sm:$0xff] }
 0x6ae   : > { %v11907_v23 = vpop.f32.mrb[247].mxu0  ;;  %7504 = vmatprep.mubr.f32.mxu1 %v6107_v3 }
 0x6b1   : > { %v11909_v30 = vpop.f32.mrb[248].mxu0  ;;  %7505 = vmatmul.mubr.f32.gmra.mrb[148].mxu1 %v6035_v9  ;;  %v6112_v9 = vld [vmem:[#allocation2 + $0xe1] sm:$0xff] }
 0x6b2   : > { %12357 = vst [vmem:[#allocation18_spill] sm:$0xff] %v11909_v30  ;;  %v11911_v60 = vpop.f32.mrb[249].mxu0  ;;  %7509 = vmatprep.mubr.f32.mxu1 %v6108_v57  ;;  %v6256_v30 = vld [vmem:[#allocation2 + $0xf2] sm:$0xff] }
 0x6b3   : > { %12358 = vst [vmem:[#allocation48_spill] sm:$0xff] %v11911_v60  ;;  %v6260_v60 = vld [vmem:[#allocation2 + $0x112] sm:$0xff] }
 0x6b5   : > { %v11913_v18 = vpop.f32.mrb[250].mxu0  ;;  %7510 = vmatmul.mubr.f32.gmra.mrb[150].mxu1 %v6036_v20  ;;  %v6040_v20 = vld [vmem:[#allocation2 + $0xe0] sm:$0xff] }
 0x6b6   : > { %12359 = vst [vmem:[#allocation19_spill] sm:$0xff] %v11913_v18  ;;  %v11915_v50 = vpop.f32.mrb[251].mxu0  ;;  %7514 = vmatprep.mubr.f32.mxu1 %v6109_v38  ;;  %v6049_v18 = vld [vmem:[#allocation2 + $0x128] sm:$0xff] }
 0x6b7   : > { %12360 = vst [vmem:[#allocation49_spill] sm:$0xff] %v11915_v50  ;;  %v6050_v50 = vld [vmem:[#allocation2 + $0x130] sm:$0xff] }
 0x6b9   : > { %v11917_v25 = vpop.f32.mrb[252].mxu0  ;;  %7515 = vmatmul.mubr.f32.gmra.mrb[152].mxu1 %v6037_v48  ;;  %v6113_v48 = vld [vmem:[#allocation2 + $0xe9] sm:$0xff] }
 0x6ba   : > { %12361 = vst [vmem:[#allocation20_spill] sm:$0xff] %v11917_v25  ;;  %v11919_v24 = vpop.f32.mrb[253].mxu0  ;;  %7519 = vmatprep.mubr.f32.mxu1 %v6110_v54  ;;  %v6041_v54 = vld [vmem:[#allocation2 + $0xe8] sm:$0xff]  ;;  %v6047_v25 = vld [vmem:[#allocation2 + $0x118] sm:$0xff] }
 0x6bb   : > { %12362 = vst [vmem:[#allocation50_spill] sm:$0xff] %v11919_v24  ;;  %v6048_v24 = vld [vmem:[#allocation2 + $0x120] sm:$0xff] }
 0x6bd   : > { %v11921_v13 = vpop.f32.mrb[254].mxu0  ;;  %7520 = vmatmul.mubr.f32.gmra.mrb[154].mxu1 %v6038_v56  ;;  %v6114_v56 = vld [vmem:[#allocation2 + $0xf1] sm:$0xff] }
 0x6be   : > { %12363 = vst [vmem:[#allocation21_spill] sm:$0xff] %v11921_v13  ;;  %v11923_v40 = vpop.f32.mrb[255].mxu0  ;;  %7524 = vmatprep.mubr.f32.mxu1 %v6111_v0  ;;  %v6042_v0 = vld [vmem:[#allocation2 + $0xf0] sm:$0xff]  ;;  %v6044_v13 = vld [vmem:[#allocation2 + $0x100] sm:$0xff] }
 0x6bf   : > { %12364 = vst [vmem:[#allocation51_spill] sm:$0xff] %v11923_v40  ;;  %v6046_v40 = vld [vmem:[#allocation2 + $0x110] sm:$0xff] }
 0x6c1   : > { %v11925_v47 = vpop.f32.mrb[0].mxu0  ;;  %7525 = vmatmul.mubr.f32.gmra.mrb[156].mxu1 %v6039_v16  ;;  %v6043_v16 = vld [vmem:[#allocation2 + $0xf8] sm:$0xff] }
 0x6c2   : > { %12365 = vst [vmem:[#allocation22_spill] sm:$0xff] %v11925_v47  ;;  %v11927_v3 = vpop.f32.mrb[1].mxu0  ;;  %7529 = vmatprep.mubr.f32.mxu1 %v6112_v9  ;;  %v6115_v47 = vld [vmem:[#allocation2 + $0xf9] sm:$0xff] }
 0x6c3   : > { %12366 = vst [vmem:[#allocation52_spill] sm:$0xff] %v11927_v3  ;;  %v6116_v3 = vld [vmem:[#allocation2 + $0x101] sm:$0xff] }
 0x6c5   : > { %v11929_v57 = vpop.f32.mrb[2].mxu0  ;;  %7530 = vmatmul.mubr.f32.gmra.mrb[158].mxu1 %v6040_v20  ;;  %v6045_v20 = vld [vmem:[#allocation2 + $0x108] sm:$0xff] }
 0x6c6   : > { %12367 = vst [vmem:[#allocation23_spill] sm:$0xff] %v11929_v57  ;;  %v11931_v38 = vpop.f32.mrb[3].mxu0  ;;  %7534 = vmatprep.mubr.f32.mxu1 %v6113_v48  ;;  %v6117_v57 = vld [vmem:[#allocation2 + $0x109] sm:$0xff] }
 0x6c7   : > { %12368 = vst [vmem:[#allocation53_spill] sm:$0xff] %v11931_v38  ;;  %v6118_v38 = vld [vmem:[#allocation2 + $0x111] sm:$0xff] }
 0x6c9   : > { %7535 = vmatmul.mubr.f32.gmra.mrb[160].mxu1 %v6041_v54  ;;  %v6119_v54 = vld [vmem:[#allocation2 + $0x119] sm:$0xff] }
 0x6ca   : > { %7539 = vmatprep.mubr.f32.mxu1 %v6114_v56 }
 0x6cd   : > { %7540 = vmatmul.mubr.f32.gmra.mrb[162].mxu1 %v6042_v0  ;;  %v6120_v0 = vld [vmem:[#allocation2 + $0x121] sm:$0xff] }
 0x6ce   : > { %7544 = vmatprep.mubr.f32.mxu1 %v6115_v47 }
 0x6d1   : > { %7545 = vmatmul.mubr.f32.gmra.mrb[164].mxu1 %v6043_v16  ;;  %v6121_v16 = vld [vmem:[#allocation2 + $0x129] sm:$0xff] }
 0x6d2   : > { %7549 = vmatprep.mubr.f32.mxu1 %v6116_v3 }
 0x6d5   : > { %7550 = vmatmul.mubr.f32.gmra.mrb[166].mxu1 %v6044_v13  ;;  %v6122_v13 = vld [vmem:[#allocation2 + $0x131] sm:$0xff] }
 0x6d6   : > { %7554 = vmatprep.mubr.f32.mxu1 %v6117_v57 }
 0x6d9   : > { %7555 = vmatmul.mubr.f32.gmra.mrb[168].mxu1 %v6045_v20  ;;  %v6254_v20 = vld [vmem:[#allocation2 + $0xe2] sm:$0xff] }
 0x6da   : > { %7559 = vmatprep.mubr.f32.mxu1 %v6118_v38 }
 0x6dd   : > { %7560 = vmatmul.mubr.f32.gmra.mrb[170].mxu1 %v6046_v40  ;;  %v6255_v40 = vld [vmem:[#allocation2 + $0xea] sm:$0xff] }
 0x6de   : > { %7564 = vmatprep.mubr.f32.mxu1 %v6119_v54 }
 0x6e1   : > { %7565 = vmatmul.mubr.f32.gmra.mrb[172].mxu1 %v6047_v25  ;;  %v6257_v25 = vld [vmem:[#allocation2 + $0xfa] sm:$0xff] }
 0x6e2   : > { %7569 = vmatprep.mubr.f32.mxu1 %v6120_v0 }
 0x6e5   : > { %7570 = vmatmul.mubr.f32.gmra.mrb[174].mxu1 %v6048_v24  ;;  %v6258_v24 = vld [vmem:[#allocation2 + $0x102] sm:$0xff] }
 0x6e6   : > { %7574 = vmatprep.mubr.f32.mxu1 %v6121_v16 }
 0x6e9   : > { %7575 = vmatmul.mubr.f32.gmra.mrb[176].mxu1 %v6049_v18  ;;  %v6259_v18 = vld [vmem:[#allocation2 + $0x10a] sm:$0xff] }
 0x6ea   : > { %7579 = vmatprep.mubr.f32.mxu1 %v6122_v13 }
 0x6ed   : > { %7580 = vmatmul.mubr.f32.gmra.mrb[178].mxu1 %v6050_v50  ;;  %v6261_v50 = vld [vmem:[#allocation2 + $0x11a] sm:$0xff] }
 0x6ee   : > { %7764 = vmatprep.mubr.f32.mxu1 %v6254_v20 }
 0x6f1   : > { %7765 = vmatmul.mubr.f32.vlgmr.msra.gmra.mrb[154].mxu1 %v6112_v9  ;;  %v6262_v9 = vld [vmem:[#allocation2 + $0x122] sm:$0xff] }
 0x6f2   : > { %7769 = vmatprep.mubr.f32.mxu1 %v6255_v40 }
 0x6f5   : > { %7770 = vmatmul.mubr.f32.gmra.mrb[156].mxu1 %v6113_v48  ;;  %v6266_v48 = vld [vmem:[#allocation2 + $0x142] sm:$0xff] }
 0x6f6   : > { %7774 = vmatprep.mubr.f32.mxu1 %v6256_v30  ;;  %v6263_v30 = vld [vmem:[#allocation2 + $0x12a] sm:$0xff] }
 0x6f9   : > { %7775 = vmatmul.mubr.f32.gmra.mrb[158].mxu1 %v6114_v56 }
 0x6fa   : > { %7779 = vmatprep.mubr.f32.mxu1 %v6257_v25 }
 0x6fd   : > { %7780 = vmatmul.mubr.f32.gmra.mrb[160].mxu1 %v6115_v47  ;;  %v6264_v47 = vld [vmem:[#allocation2 + $0x132] sm:$0xff] }
 0x6fe   : > { %7784 = vmatprep.mubr.f32.mxu1 %v6258_v24 }
 0x701   : > { %7785 = vmatmul.mubr.f32.gmra.mrb[162].mxu1 %v6116_v3  ;;  %v6265_v3 = vld [vmem:[#allocation2 + $0x13a] sm:$0xff] }
 0x702   : > { %7789 = vmatprep.mubr.f32.mxu1 %v6259_v18 }
 0x705   : > { %7790 = vmatmul.mubr.f32.gmra.mrb[164].mxu1 %v6117_v57  ;;  %v6193_v57 = vld [vmem:[#allocation2 + $0x139] sm:$0xff] }
 0x706   : > { %7794 = vmatprep.mubr.f32.mxu1 %v6260_v60  ;;  %v6194_v60 = vld [vmem:[#allocation2 + $0x141] sm:$0xff] }
 0x709   : > { %7795 = vmatmul.mubr.f32.gmra.mrb[166].mxu1 %v6118_v38  ;;  %v11937_v38 = vld [vmem:[%s12137_s7] ss:$0 sm:$0xff] }
 0x70a   : > { %7799 = vmatprep.mubr.f32.mxu1 %v6261_v50 }
 0x70d   : > { %7800 = vmatmul.mubr.f32.gmra.mrb[168].mxu1 %v6119_v54 }
 0x70e   : > { %7804 = vmatprep.mubr.f32.mxu1 %v6262_v9 }
 0x711   : > { %7805 = vmatmul.mubr.f32.gmra.mrb[170].mxu1 %v6120_v0 }
 0x712   : > { %7809 = vmatprep.mubr.f32.mxu1 %v6263_v30 }
 0x715   : > { %7810 = vmatmul.mubr.f32.gmra.mrb[172].mxu1 %v6121_v16 }
 0x716   : > { %7814 = vmatprep.mubr.f32.mxu1 %v6264_v47 }
 0x719   : > { %7815 = vmatmul.mubr.f32.gmra.mrb[174].mxu1 %v6122_v13 }
 0x71a   : > { %7819 = vmatprep.mubr.f32.mxu1 %v6265_v3 }
 0x71d   : > { %7820 = vmatmul.mubr.f32.gmra.mrb[176].mxu1 %v6193_v57 }
 0x71e   : > { %7824 = vmatprep.mubr.f32.mxu1 %v6266_v48 }
 0x721   : > { %7825 = vmatmul.mubr.f32.gmra.mrb[178].mxu1 %v6194_v60 }
 0x734   : > { %v7406_v56 = vpop.f32.mrb[108].mxu1 }
 0x735   : > { %v9463_v54 = vadd.f32 %v11937_v38, %v7406_v56  ;;  %v7408_v0 = vpop.f32.mrb[109].mxu1 }
 0x737   : > { %v9464_v16 = vadd.f32 %v9463_v54, %v11788_v35 }
 0x738   : > { %v7411_v13 = vpop.f32.mrb[110].mxu1 }
 0x739   : > { %v7897_v20 = vadd.f32 %v9464_v16, %v11854_v11  ;;  %v9465_v40 = vadd.f32 %v11937_v38, %v7411_v13  ;;  %v7413_v25 = vpop.f32.mrb[111].mxu1 }
 0x73b   : > { %8075 = vst [vmem:[%s11945_s26] sm:$0xff] %v7897_v20  ;;  %v9466_v24 = vadd.f32 %v9465_v40, %v11790_v27 }
 0x73c   : > { %v7416_v18 = vpop.f32.mrb[112].mxu1 }
 0x73d   : > { %v7902_v50 = vadd.f32 %v9466_v24, %v11852_v15  ;;  %v9467_v35 = vadd.f32 %v11937_v38, %v7416_v18  ;;  %v7418_v9 = vpop.f32.mrb[113].mxu1 }
 0x73f   : > { %8076 = vst [vmem:[%s11945_s26 + $0x8] sm:$0xff] %v7902_v50  ;;  %v9468_v11 = vadd.f32 %v9467_v35, %v11792_v19 }
 0x740   : > { %v7421_v30 = vpop.f32.mrb[114].mxu1 }
 0x741   : > { %v7907_v47 = vadd.f32 %v9468_v11, %v11860_v29  ;;  %v9469_v3 = vadd.f32 %v11937_v38, %v7421_v30  ;;  %v7423_v57 = vpop.f32.mrb[115].mxu1 }
 0x743   : > { %8077 = vst [vmem:[%s11945_s26 + $0x10] sm:$0xff] %v7907_v47  ;;  %v9470_v27 = vadd.f32 %v9469_v3, %v11794_v46 }
 0x744   : > { %v7426_v48 = vpop.f32.mrb[116].mxu1 }
 0x745   : > { %v7912_v15 = vadd.f32 %v9470_v27, %v11858_v33  ;;  %v9471_v60 = vadd.f32 %v11937_v38, %v7426_v48  ;;  %v7428_v56 = vpop.f32.mrb[117].mxu1 }
 0x747   : > { %8078 = vst [vmem:[%s11945_s26 + $0x18] sm:$0xff] %v7912_v15  ;;  %v9472_v19 = vadd.f32 %v9471_v60, %v11796_v12 }
 0x748   : > { %v7431_v54 = vpop.f32.mrb[118].mxu1 }
 0x749   : > { %v7917_v29 = vadd.f32 %v9472_v19, %v11866_v63  ;;  %v9473_v0 = vadd.f32 %v11937_v38, %v7431_v54  ;;  %v7433_v16 = vpop.f32.mrb[119].mxu1 }
 0x74b   : > { %8079 = vst [vmem:[%s11945_s26 + $0x20] sm:$0xff] %v7917_v29  ;;  %v9474_v46 = vadd.f32 %v9473_v0, %v11798_v61 }
 0x74c   : > { %v7436_v13 = vpop.f32.mrb[120].mxu1 }
 0x74d   : > { %v7922_v33 = vadd.f32 %v9474_v46, %v11864_v4  ;;  %v9475_v20 = vadd.f32 %v11937_v38, %v7436_v13  ;;  %v7438_v40 = vpop.f32.mrb[121].mxu1 }
 0x74f   : > { %8080 = vst [vmem:[%s11945_s26 + $0x28] sm:$0xff] %v7922_v33  ;;  %v9476_v12 = vadd.f32 %v9475_v20, %v11800_v26 }
 0x750   : > { %v7441_v25 = vpop.f32.mrb[122].mxu1 }
 0x751   : > { %v7927_v63 = vadd.f32 %v9476_v12, %v11872_v28  ;;  %v9477_v24 = vadd.f32 %v11937_v38, %v7441_v25  ;;  %v7443_v18 = vpop.f32.mrb[123].mxu1 }
 0x753   : > { %8081 = vst [vmem:[%s11945_s26 + $0x30] sm:$0xff] %v7927_v63  ;;  %v9478_v61 = vadd.f32 %v9477_v24, %v11802_v44  ;;  %v12005_v25 = vpop.f32.mrb[4].mxu0 }
 0x754   : > { %v7446_v50 = vpop.f32.mrb[124].mxu1  ;;  %v12007_v63 = vpop.f32.mrb[5].mxu0 }
 0x755   : > { %v7932_v4 = vadd.f32 %v9478_v61, %v11870_v6  ;;  %v9479_v35 = vadd.f32 %v11937_v38, %v7446_v50  ;;  %v7448_v9 = vpop.f32.mrb[125].mxu1 }
 0x757   : > { %8082 = vst [vmem:[%s11945_s26 + $0x38] sm:$0xff] %v7932_v4  ;;  %v9480_v26 = vadd.f32 %v9479_v35, %v11804_v7 }
 0x758   : > { %v7451_v11 = vpop.f32.mrb[126].mxu1 }
 0x759   : > { %v7937_v28 = vadd.f32 %v9480_v26, %v11878_v42  ;;  %v9481_v30 = vadd.f32 %v11937_v38, %v7451_v11  ;;  %v7453_v47 = vpop.f32.mrb[127].mxu1 }
 0x75b   : > { %8083 = vst [vmem:[%s11945_s26 + $0x40] sm:$0xff] %v7937_v28  ;;  %v9482_v44 = vadd.f32 %v9481_v30, %v11806_v37 }
 0x75c   : > { %v7456_v3 = vpop.f32.mrb[128].mxu1 }
 0x75d   : > { %v7942_v6 = vadd.f32 %v9482_v44, %v11876_v55  ;;  %v9483_v57 = vadd.f32 %v11937_v38, %v7456_v3  ;;  %v7458_v27 = vpop.f32.mrb[129].mxu1 }
 0x75f   : > { %8084 = vst [vmem:[%s11945_s26 + $0x48] sm:$0xff] %v7942_v6  ;;  %v9484_v7 = vadd.f32 %v9483_v57, %v11808_v5 }
 0x760   : > { %v7461_v48 = vpop.f32.mrb[130].mxu1 }
 0x761   : > { %v7947_v42 = vadd.f32 %v9484_v7, %v11884_v31  ;;  %v9485_v15 = vadd.f32 %v11937_v38, %v7461_v48  ;;  %v7463_v60 = vpop.f32.mrb[131].mxu1 }
 0x762   : > { %v12369_v60 = vld [vmem:[#allocation48_spill] sm:$0xff] }
 0x763   : > { %8085 = vst [vmem:[%s11945_s26 + $0x50] sm:$0xff] %v7947_v42  ;;  %v9486_v37 = vadd.f32 %v9485_v15, %v11810_v39 }
 0x764   : > { %v7466_v56 = vpop.f32.mrb[132].mxu1 }
 0x765   : > { %v7952_v55 = vadd.f32 %v9486_v37, %v11882_v59  ;;  %v9487_v19 = vadd.f32 %v11937_v38, %v7466_v56  ;;  %v7468_v54 = vpop.f32.mrb[133].mxu1 }
 0x767   : > { %8086 = vst [vmem:[%s11945_s26 + $0x58] sm:$0xff] %v7952_v55  ;;  %v9488_v5 = vadd.f32 %v9487_v19, %v11812_v32  ;;  %v12370_v19 = vld [vmem:[#allocation18_spill] sm:$0xff] }
 0x768   : > { %v7471_v29 = vpop.f32.mrb[134].mxu1 }
 0x769   : > { %v7957_v31 = vadd.f32 %v9488_v5, %v11890_v45  ;;  %v9489_v0 = vadd.f32 %v11937_v38, %v7471_v29  ;;  %v7473_v16 = vpop.f32.mrb[135].mxu1  ;;  %v12371_v29 = vld [vmem:[#allocation49_spill] sm:$0xff] }
 0x76b   : > { %8087 = vst [vmem:[%s11945_s26 + $0x60] sm:$0xff] %v7957_v31  ;;  %v9490_v39 = vadd.f32 %v9489_v0, %v11814_v43 }
 0x76c   : > { %v7476_v46 = vpop.f32.mrb[136].mxu1 }
 0x76d   : > { %v7962_v13 = vadd.f32 %v9490_v39, %v11888_v34  ;;  %v9491_v59 = vadd.f32 %v11937_v38, %v7476_v46  ;;  %v7478_v33 = vpop.f32.mrb[137].mxu1  ;;  %v12372_v39 = vld [vmem:[#allocation19_spill] sm:$0xff] }
 0x76f   : > { %8088 = vst [vmem:[%s11945_s26 + $0x68] sm:$0xff] %v7962_v13  ;;  %v9492_v32 = vadd.f32 %v9491_v59, %v11816_v58 }
 0x770   : > { %v7481_v20 = vpop.f32.mrb[138].mxu1 }
 0x771   : > { %v7967_v40 = vadd.f32 %v9492_v32, %v11895_v10  ;;  %v9493_v45 = vadd.f32 %v11937_v38, %v7481_v20  ;;  %v7483_v12 = vpop.f32.mrb[139].mxu1  ;;  %v12373_v32 = vld [vmem:[#allocation50_spill] sm:$0xff] }
 0x773   : > { %8089 = vst [vmem:[%s11945_s26 + $0x70] sm:$0xff] %v7967_v40  ;;  %v9494_v43 = vadd.f32 %v9493_v45, %v11820_v52 }
 0x774   : > { %v7486_v34 = vpop.f32.mrb[140].mxu1 }
 0x775   : > { %v7972_v24 = vadd.f32 %v9494_v43, %v11893_v36  ;;  %v9495_v58 = vadd.f32 %v11937_v38, %v7486_v34  ;;  %v7488_v18 = vpop.f32.mrb[141].mxu1  ;;  %v12374_v43 = vld [vmem:[#allocation20_spill] sm:$0xff] }
 0x777   : > { %8090 = vst [vmem:[%s11945_s26 + $0x78] sm:$0xff] %v7972_v24  ;;  %v9496_v10 = vadd.f32 %v9495_v58, %v11824_v8 }
 0x778   : > { %v7491_v61 = vpop.f32.mrb[142].mxu1 }
 0x779   : > { %v7977_v50 = vadd.f32 %v9496_v10, %v11899_v2  ;;  %v9497_v52 = vadd.f32 %v11937_v38, %v7491_v61  ;;  %v7493_v4 = vpop.f32.mrb[143].mxu1  ;;  %v12375_v10 = vld [vmem:[#allocation51_spill] sm:$0xff] }
 0x77b   : > { %8091 = vst [vmem:[%s11945_s26 + $0x80] sm:$0xff] %v7977_v50  ;;  %v9498_v35 = vadd.f32 %v9497_v52, %v11828_v49 }
 0x77c   : > { %v7496_v9 = vpop.f32.mrb[144].mxu1 }
 0x77d   : > { %v7982_v36 = vadd.f32 %v9498_v35, %v11897_v51  ;;  %v9499_v26 = vadd.f32 %v11937_v38, %v7496_v9  ;;  %v7498_v11 = vpop.f32.mrb[145].mxu1  ;;  %v12376_v35 = vld [vmem:[#allocation21_spill] sm:$0xff] }
 0x77f   : > { %8092 = vst [vmem:[%s11945_s26 + $0x88] sm:$0xff] %v7982_v36  ;;  %v9500_v8 = vadd.f32 %v9499_v26, %v11832_v14 }
 0x780   : > { %v7501_v28 = vpop.f32.mrb[146].mxu1 }
 0x781   : > { %v7987_v2 = vadd.f32 %v9500_v8, %v11903_v21  ;;  %v9501_v30 = vadd.f32 %v11937_v38, %v7501_v28  ;;  %v7503_v47 = vpop.f32.mrb[147].mxu1  ;;  %v12377_v8 = vld [vmem:[#allocation52_spill] sm:$0xff] }
 0x783   : > { %8093 = vst [vmem:[%s11945_s26 + $0x90] sm:$0xff] %v7987_v2  ;;  %v9502_v49 = vadd.f32 %v9501_v30, %v11836_v17 }
 0x784   : > { %v7506_v44 = vpop.f32.mrb[148].mxu1 }
 0x785   : > { %v7992_v51 = vadd.f32 %v9502_v49, %v11901_v53  ;;  %v9503_v3 = vadd.f32 %v11937_v38, %v7506_v44  ;;  %v7508_v6 = vpop.f32.mrb[149].mxu1  ;;  %v12378_v49 = vld [vmem:[#allocation22_spill] sm:$0xff] }
 0x787   : > { %8094 = vst [vmem:[%s11945_s26 + $0x98] sm:$0xff] %v7992_v51  ;;  %v9504_v14 = vadd.f32 %v9503_v3, %v11840_v1 }
 0x788   : > { %v7511_v57 = vpop.f32.mrb[150].mxu1 }
 0x789   : > { %v7997_v21 = vadd.f32 %v9504_v14, %v11907_v23  ;;  %v9505_v27 = vadd.f32 %v11937_v38, %v7511_v57  ;;  %v7513_v7 = vpop.f32.mrb[151].mxu1  ;;  %v12379_v14 = vld [vmem:[#allocation53_spill] sm:$0xff] }
 0x78b   : > { %8095 = vst [vmem:[%s11945_s26 + $0xa0] sm:$0xff] %v7997_v21  ;;  %v9506_v17 = vadd.f32 %v9505_v27, %v11844_v62 }
 0x78c   : > { %v7516_v48 = vpop.f32.mrb[152].mxu1 }
 0x78d   : > { %v8002_v53 = vadd.f32 %v9506_v17, %v11905_v41  ;;  %v9507_v42 = vadd.f32 %v11937_v38, %v7516_v48  ;;  %v7518_v15 = vpop.f32.mrb[153].mxu1  ;;  %v12380_v17 = vld [vmem:[#allocation23_spill] sm:$0xff] }
 0x78f   : > { %8096 = vst [vmem:[%s11945_s26 + $0xa8] sm:$0xff] %v8002_v53  ;;  %v9508_v1 = vadd.f32 %v9507_v42, %v11848_v22 }
 0x791   : > { %v8007_v37 = vadd.f32 %v9508_v1, %v12369_v60 }
 0x793   : > { %8097 = vst [vmem:[%s11945_s26 + $0xb0] sm:$0xff] %v8007_v37 }
 0x7c4   : > { %v7766_v23 = vpop.f32.mrb[154].mxu1 }
 0x7c5   : > { %v9509_v56 = vadd.f32 %v11937_v38, %v7766_v23  ;;  %v7768_v55 = vpop.f32.mrb[155].mxu1 }
 0x7c7   : > { %v8012_v62 = vadd.f32 %v9509_v56, %v12370_v19 }
 0x7c8   : > { %v7771_v54 = vpop.f32.mrb[156].mxu1 }
 0x7c9   : > { %8098 = vst [vmem:[%s11945_s26 + $0xb8] sm:$0xff] %v8012_v62  ;;  %v9510_v41 = vadd.f32 %v11937_v38, %v7771_v54  ;;  %v7773_v5 = vpop.f32.mrb[157].mxu1 }
 0x7cb   : > { %v8017_v31 = vadd.f32 %v9510_v41, %v12371_v29 }
 0x7cc   : > { %v7776_v0 = vpop.f32.mrb[158].mxu1 }
 0x7cd   : > { %8099 = vst [vmem:[%s11945_s26 + $0xc0] sm:$0xff] %v8017_v31  ;;  %v9511_v22 = vadd.f32 %v11937_v38, %v7776_v0  ;;  %v7778_v16 = vpop.f32.mrb[159].mxu1 }
 0x7cf   : > { %v8022_v46 = vadd.f32 %v9511_v22, %v12372_v39 }
 0x7d0   : > { %v7781_v13 = vpop.f32.mrb[160].mxu1 }
 0x7d1   : > { %8100 = vst [vmem:[%s11945_s26 + $0xc8] sm:$0xff] %v8022_v46  ;;  %v9512_v59 = vadd.f32 %v11937_v38, %v7781_v13  ;;  %v7783_v33 = vpop.f32.mrb[161].mxu1 }
 0x7d3   : > { %v8027_v20 = vadd.f32 %v9512_v59, %v12373_v32 }
 0x7d4   : > { %v7786_v40 = vpop.f32.mrb[162].mxu1 }
 0x7d5   : > { %8101 = vst [vmem:[%s11945_s26 + $0xd0] sm:$0xff] %v8027_v20  ;;  %v9513_v45 = vadd.f32 %v11937_v38, %v7786_v40  ;;  %v7788_v12 = vpop.f32.mrb[163].mxu1 }
 0x7d7   : > { %v8032_v34 = vadd.f32 %v9513_v45, %v12374_v43 }
 0x7d8   : > { %v7791_v24 = vpop.f32.mrb[164].mxu1 }
 0x7d9   : > { %8102 = vst [vmem:[%s11945_s26 + $0xd8] sm:$0xff] %v8032_v34  ;;  %v9514_v58 = vadd.f32 %v11937_v38, %v7791_v24  ;;  %v7793_v18 = vpop.f32.mrb[165].mxu1 }
 0x7db   : > { %v8037_v61 = vadd.f32 %v9514_v58, %v12375_v10 }
 0x7dc   : > { %v7796_v50 = vpop.f32.mrb[166].mxu1 }
 0x7dd   : > { %8103 = vst [vmem:[%s11945_s26 + $0xe0] sm:$0xff] %v8037_v61  ;;  %v9515_v52 = vadd.f32 %v11937_v38, %v7796_v50  ;;  %v7798_v4 = vpop.f32.mrb[167].mxu1 }
 0x7df   : > { %v8042_v9 = vadd.f32 %v9515_v52, %v12376_v35 }
 0x7e0   : > { %v7801_v36 = vpop.f32.mrb[168].mxu1 }
 0x7e1   : > { %8104 = vst [vmem:[%s11945_s26 + $0xe8] sm:$0xff] %v8042_v9  ;;  %v9516_v26 = vadd.f32 %v11937_v38, %v7801_v36  ;;  %v7803_v11 = vpop.f32.mrb[169].mxu1 }
 0x7e3   : > { %v8047_v28 = vadd.f32 %v9516_v26, %v12377_v8 }
 0x7e4   : > { %v7806_v2 = vpop.f32.mrb[170].mxu1 }
 0x7e5   : > { %8105 = vst [vmem:[%s11945_s26 + $0xf0] sm:$0xff] %v8047_v28  ;;  %v9517_v30 = vadd.f32 %v11937_v38, %v7806_v2  ;;  %v7808_v47 = vpop.f32.mrb[171].mxu1 }
 0x7e7   : > { %v8052_v44 = vadd.f32 %v9517_v30, %v12378_v49 }
 0x7e8   : > { %v7811_v51 = vpop.f32.mrb[172].mxu1 }
 0x7e9   : > { %8106 = vst [vmem:[%s11945_s26 + $0xf8] sm:$0xff] %v8052_v44  ;;  %v9518_v3 = vadd.f32 %v11937_v38, %v7811_v51  ;;  %v7813_v6 = vpop.f32.mrb[173].mxu1 }
 0x7eb   : > { %v8057_v57 = vadd.f32 %v9518_v3, %v12379_v14 }
 0x7ec   : > { %v7816_v21 = vpop.f32.mrb[174].mxu1 }
 0x7ed   : > { %8107 = vst [vmem:[%s11945_s26 + $0x100] sm:$0xff] %v8057_v57  ;;  %v9519_v27 = vadd.f32 %v11937_v38, %v7816_v21  ;;  %v7818_v7 = vpop.f32.mrb[175].mxu1 }
 0x7ef   : > { %v8062_v48 = vadd.f32 %v9519_v27, %v12380_v17 }
 0x7f0   : > { %v7821_v53 = vpop.f32.mrb[176].mxu1 }
 0x7f1   : > { %8108 = vst [vmem:[%s11945_s26 + $0x108] sm:$0xff] %v8062_v48  ;;  %v9520_v42 = vadd.f32 %v11937_v38, %v7821_v53  ;;  %v7823_v15 = vpop.f32.mrb[177].mxu1 }
 0x7f3   : > { %v8067_v1 = vadd.f32 %v9520_v42, %v12007_v63 }
 0x7f4   : > { %v7826_v60 = vpop.f32.mrb[178].mxu1 }
 0x7f5   : > { %8109 = vst [vmem:[%s11945_s26 + $0x110] sm:$0xff] %v8067_v1  ;;  %v9521_v37 = vadd.f32 %v11937_v38, %v7826_v60  ;;  %v7828_v23 = vpop.f32.mrb[179].mxu1 }
 0x7f7   : > { %v8072_v56 = vadd.f32 %v9521_v37, %v12005_v25 }
 0x7f9   : > { %8110 = vst [vmem:[%s11945_s26 + $0x118] sm:$0xff] %v8072_v56 }
 0x7fa   : > { %10232 = shalt.err (!%p10229_p9)
}
 0x7fb   : > { %s10233_s19 = scalar_lea.hbm %s12081_s12, 4608  ;;  %s10237_s17 = scalar_lea.hbm %s12138_s8, 9216 }
 0x7fc   : > { %p10234_p2 = scmp.ne.s32.totalorder %s12081_s12, %s10233_s19  ;;  %p10238_p5 = scmp.lt.u32.totalorder %s12081_s12, %s12138_s8 }
 0x7fd   : > { %p10239_p10 = scmp.lt.u32.totalorder %s10237_s17, %s10233_s19  ;;  %p10241_p4 = scmp.lt.u32.totalorder %s10233_s19, %s12081_s12 }
 0x7fe   : > { %p10235_p0 = pnand %p10234_p2, %p12381_p7 }
 0x7ff   : > { %p10240_p12 = por %p10239_p10, %p10238_p5 }
 0x800   : > { %p10236_p3 = pneg %p10235_p0 }
 0x801   : > { %p10242_p8 = por %p10241_p4, %p10240_p12 }
 0x803   : > { %p10243_p11 = pnand %p10242_p8, %p10236_p3 }
 0x805   : > { %10246 = shalt.err (!%p10243_p11)
}
 0x806   : > { %s10300_s18 = smov 128   ;;  %s10301_s26 = smov 8  }
 0x807   : > { %10066 = dma.vmem_to_hbm [thread:$0]  (%p12381_p7), %s12084_s11, 4608, %s12081_s12, %s12089_s9, %s10300_s18, %s10300_s18, %s10301_s26  }
 0x808 PF: > { %s12382_s10 = sld [smem:[#allocation17_spill]]  ;;  %p10088_p13 = scmp.ge.s32.totalorder %s10289_s30, 2 }
 0x809   : > { %s8140_s14 = sand.u32 1, %s10277_s27  }
 0x80a   : > { %s8141_s16 = scalar_lea.sflag [#allocation6], %s8140_s14 }
 0x80e   : > { %p12383_p1 = scmp.ne.s32.totalorder %s12382_s10, 0 }
 0x810   : > { %p10079_p6 = pnand %p10088_p13, %p12383_p1 }
 0x812   : > { %10272 = dma.done.wait (!%p10079_p6), %s8141_s16, 4608  }
 0x813   : > { %10274 = vsyncadd (!%p10079_p6), %s8141_s16, 4294962688  ;;  %s12384_s30 = sld [smem:[#allocation15_spill]]  ;;  %s12385_s13 = sld [smem:[#allocation14_spill]] }
 0x814   : > { %s12386_s29 = sld [smem:[#allocation16_spill]]  ;;  %s12387_s27 = smov %s10281_s28 }
 0x819   : > { %p20_p9 = scmp.ge.s32.totalorder %s12384_s30, 4   ;;  %s12388_s28 = smov %s12385_s13 }
 0x81b   :  { %22 = sbr.rel (!%p20_p9) target bundleno = 5 (0x5), region = 100 }
 0x822   :  { %8146 = vsyncpa [#allocation5], 1 }
 0x823   :  { %8148 = vsyncpa [#allocation5 + $0x1], 1 }
 0x824   :  { %8149 = vsyncpa [#allocation8], 1 }
 0x825   :  { %8150 = vsyncpa [#allocation6], 1 }
 0x826   :  { %8152 = vsyncpa [#allocation6 + $0x1], 1 }

</bundles_post_ra>
